<compile_context>
chip_gen: v7x
topology: tpu7x:2x2x1
jax: 0.10.0
libtpu: 0.0.40
codegen_flags: <defaults>
</compile_context>

<pallas_src>
import jax
import jax.numpy as jnp
from jax.experimental import pallas as pl
from jax.experimental.pallas import tpu as pltpu

TB = 32     # batch tile (multiple of 8 sublanes; 2x the previous tile)
NEG = 0.1   # LeakyReLU negative slope


def _leaky(y):
    # negative_slope=0.1 > 0  =>  LeakyReLU(y) == max(y, 0.1*y) (one VALU op).
    return jnp.maximum(y, NEG * y)


# ---------------------------------------------------------------------------
# Fused kernel: conv1 -> conv2 -> conv3 -> linear for one batch tile.
# ---------------------------------------------------------------------------
def _cnn_encoder_kernel(p1_ref, w1_ref, w2_ref, w3_ref, wl_ref,
                        b1_ref, b2_ref, b3_ref, bl_ref,
                        out_ref, act1_scr):
    """Whole CNNEncoder forward for one tile of TB images.

    p1_ref  : (4, 5, 5, TB, 16) bf16  conv1 im2col patches, phase-split:
              p1[rh*2+rw, i, j, b, kh*4+kw] = x[b, 2*(2*i+rh)+kh, 2*(2*j+rw)+kw]
    w1_ref  : (16, 32)          bf16  conv1 weight, rows ordered (kh, kw)
    w2_ref  : (4, 4, 32, 64)    bf16  conv2 weight (KH, KW, Cin, Cout)
    w3_ref  : (4, 4, 64, 128)   bf16  conv3 weight (KH, KW, Cin, Cout)
    wl_ref  : (128, 1024)       bf16  linear weight (in, out)
    b*_ref  : (1, C)            f32   biases
    out_ref : (TB, 1024)        f32   final encoding (post-ReLU)
    act1_scr: (4, 5, 5, TB, 32) bf16  conv1 activations, phase-split, VMEM-resident
    """
    f32 = jnp.float32

    # ---- conv1 + LeakyReLU: one (5*5*TB, 16) @ (16, 32) matmul per phase ----
    for ph in range(4):
        lhs = p1_ref[ph].reshape(5 * 5 * TB, 16)                     # bf16
        y1 = jnp.dot(lhs, w1_ref[...], preferred_element_type=f32) + b1_ref[...]
        act1_scr[ph] = _leaky(y1).astype(jnp.bfloat16).reshape(5, 5, TB, 32)

    # ---- conv2 + LeakyReLU: in-kernel im2col as 16 per-tap matmuls ----------
    # Only the 4x4 top-left block of the 5x5 conv2 output feeds conv3, so only
    # that region is computed.  acc2 rows are ordered (oh2, ow2, b).
    acc2 = jnp.zeros((4 * 4 * TB, 64), dtype=f32)
    for kh in range(4):
        rh, qh = kh % 2, kh // 2
        for kw in range(4):
            rw, qw = kw % 2, kw // 2
            # act1 row 2*oh2+kh lives in phase rh at within-phase index oh2+qh,
            # so the stride-2 window is a *contiguous* slice of the scratch.
            win = act1_scr[rh * 2 + rw, qh:qh + 4, qw:qw + 4, :, :]  # (4,4,TB,32)
            acc2 += jnp.dot(win.reshape(4 * 4 * TB, 32), w2_ref[kh, kw],
                            preferred_element_type=f32)
    y2 = _leaky(acc2 + b2_ref[...]).astype(jnp.bfloat16)

    # ---- conv3 + LeakyReLU: single 1x1 output, 16 per-tap (TB,64)@(64,128) --
    acc3 = jnp.zeros((TB, 128), dtype=f32)
    for kh in range(4):
        for kw in range(4):
            r = (kh * 4 + kw) * TB
            acc3 += jnp.dot(y2[r:r + TB, :], w3_ref[kh, kw],
                            preferred_element_type=f32)
    y3 = _leaky(acc3 + b3_ref[...]).astype(jnp.bfloat16)             # (TB, 128)

    # ---- Linear(128 -> 1024) + ReLU, lane-dense store -----------------------
    y4 = jnp.dot(y3, wl_ref[...], preferred_element_type=f32) + bl_ref[...]
    out_ref[...] = jnp.maximum(y4, 0.0)


# ---------------------------------------------------------------------------
# Wrapper-side glue (tiny, plain JAX): conv1 patches in phase-split layout.
# ---------------------------------------------------------------------------
def _conv1_patches_phase_split(x):
    """x: (N, 28, 28) f32 -> (4, 5, 5, N, 16) conv1 im2col patches.

    Only conv1 output rows/cols 0..9 are consumed downstream, so only those
    100 positions are built.  Output position (oh1, ow1) = (2*i + rh, 2*j + rw)
    is stored at [rh*2 + rw, i, j, b, :]; feature order is (kh, kw).
    """
    n = x.shape[0]
    cols = []
    for kh in range(4):
        for kw in range(4):
            cols.append(x[:, kh:kh + 19:2, kw:kw + 19:2])    # (N, 10, 10)
    p = jnp.stack(cols, axis=-1)                             # (N, 10, 10, 16)
    p = p.reshape(n, 5, 2, 5, 2, 16)                         # (b, i, rh, j, rw, k)
    p = jnp.transpose(p, (2, 4, 1, 3, 0, 5))                 # (rh, rw, i, j, b, k)
    return p.reshape(4, 5, 5, n, 16)


def cnn_encoder_forward(x_nchw, params):
    """x_nchw: (N, 1, 28, 28) -> (N, 1024) f32 encoding (post-ReLU)."""
    n = x_nchw.shape[0]
    assert x_nchw.shape[1:] == (1, 28, 28), x_nchw.shape
    x = x_nchw[:, 0].astype(jnp.float32)                     # (N, 28, 28)
    pad = (-n) % TB
    if pad:
        x = jnp.pad(x, ((0, pad), (0, 0), (0, 0)))
    n_pad = n + pad

    p1 = _conv1_patches_phase_split(x).astype(jnp.bfloat16)  # (4, 5, 5, NP, 16)

    # NOTE: weights here are (KH, KW, Cin, Cout).  Real PyTorch checkpoints
    # store (Cout, Cin, KH, KW) and must be permuted with .transpose(2,3,1,0).
    w1 = params["w1"].reshape(16, 32).astype(jnp.bfloat16)
    w2 = params["w2"].astype(jnp.bfloat16)
    w3 = params["w3"].astype(jnp.bfloat16)
    wl = params["wl"].astype(jnp.bfloat16)
    b1 = params["b1"].reshape(1, 32).astype(jnp.float32)
    b2 = params["b2"].reshape(1, 64).astype(jnp.float32)
    b3 = params["b3"].reshape(1, 128).astype(jnp.float32)
    bl = params["bl"].reshape(1, 1024).astype(jnp.float32)

    out = pl.pallas_call(
        _cnn_encoder_kernel,
        out_shape=jax.ShapeDtypeStruct((n_pad, 1024), jnp.float32),
        grid=(n_pad // TB,),
        in_specs=[
            pl.BlockSpec((4, 5, 5, TB, 16), lambda t: (0, 0, 0, t, 0)),  # patches
            pl.BlockSpec((16, 32), lambda t: (0, 0)),                    # w1
            pl.BlockSpec((4, 4, 32, 64), lambda t: (0, 0, 0, 0)),        # w2
            pl.BlockSpec((4, 4, 64, 128), lambda t: (0, 0, 0, 0)),       # w3
            pl.BlockSpec((128, 1024), lambda t: (0, 0)),                 # wl
            pl.BlockSpec((1, 32), lambda t: (0, 0)),                     # b1
            pl.BlockSpec((1, 64), lambda t: (0, 0)),                     # b2
            pl.BlockSpec((1, 128), lambda t: (0, 0)),                    # b3
            pl.BlockSpec((1, 1024), lambda t: (0, 0)),                   # bl
        ],
        out_specs=pl.BlockSpec((TB, 1024), lambda t: (t, 0)),
        scratch_shapes=[pltpu.VMEM((4, 5, 5, TB, 32), jnp.bfloat16)],
        compiler_params=pltpu.CompilerParams(
            dimension_semantics=("parallel",)),
    )(p1, w1, w2, w3, wl, b1, b2, b3, bl)
    return out[:n]


# ---------------------------------------------------------------------------
# Plain-JAX f32 reference (for correctness check) + param init.
# ---------------------------------------------------------------------------
def reference_forward(x_nchw, params):
    leaky = lambda v: jnp.where(v >= 0.0, v, 0.1 * v)
    x = jnp.transpose(x_nchw, (0, 2, 3, 1)).astype(jnp.float32)     # NHWC

    def conv(v, w, b):
        y = jax.lax.conv_general_dilated(
            v, w, window_strides=(2, 2), padding="VALID",
            dimension_numbers=("NHWC", "HWIO", "NHWC"))
        return y + b.reshape(1, 1, 1, -1)

    x = leaky(conv(x, params["w1"], params["b1"]))      # (N, 13, 13, 32)
    x = leaky(conv(x, params["w2"], params["b2"]))      # (N, 5, 5, 64)
    x = leaky(conv(x, params["w3"], params["b3"]))      # (N, 1, 1, 128)
    x = x.reshape(x.shape[0], -1)                       # (N, 128)
    return jnp.maximum(x @ params["wl"] + params["bl"], 0.0)


def init_params(key):
    ks = jax.random.split(key, 8)

    def u(k, shape, fan_in):
        bound = 1.0 / jnp.sqrt(fan_in)
        return jax.random.uniform(k, shape, jnp.float32, -bound, bound)

    return {
        "w1": u(ks[0], (4, 4, 1, 32), 4 * 4 * 1),
        "b1": u(ks[1], (32,), 4 * 4 * 1),
        "w2": u(ks[2], (4, 4, 32, 64), 4 * 4 * 32),
        "b2": u(ks[3], (64,), 4 * 4 * 32),
        "w3": u(ks[4], (4, 4, 64, 128), 4 * 4 * 64),
        "b3": u(ks[5], (128,), 4 * 4 * 64),
        "wl": u(ks[6], (128, 1024), 128),
        "bl": u(ks[7], (1024,), 128),
    }


if __name__ == "__main__":
    key = jax.random.PRNGKey(0)
    k_x, k_p = jax.random.split(key)
    # 28x28 single-channel input is required for Linear(128, .) to be valid.
    # Batch 40: exercises both the batch-tile padding path (40 -> 64) and a
    # multi-step grid (2 tiles of TB=32).
    x = jax.random.normal(k_x, (40, 1, 28, 28), dtype=jnp.float32)
    params = init_params(k_p)

    fwd = jax.jit(cnn_encoder_forward)
    out = jax.block_until_ready(fwd(x, params))

    assert out.shape == (40, 1024), out.shape
    assert bool(jnp.all(out >= 0.0))                    # final ReLU
    ref = reference_forward(x, params)
    err = float(jnp.max(jnp.abs(out - ref)))
    # bf16 matmul operands with f32 accumulation => small deviation from f32 ref.
    assert err < 2e-1, f"max abs error vs f32 reference: {err}"
    print("KERNEL_OK")
</pallas_src>

<mosaic_0001>
module attributes {stable_mosaic.version = 11 : i64} {
  func.func @_cnn_encoder_kernel(%arg0: i32, %arg1: memref<4x5x5x32x16xbf16, #tpu.memory_space<vmem>>, %arg2: memref<16x32xbf16, #tpu.memory_space<vmem>>, %arg3: memref<4x4x32x64xbf16, #tpu.memory_space<vmem>>, %arg4: memref<4x4x64x128xbf16, #tpu.memory_space<vmem>>, %arg5: memref<128x1024xbf16, #tpu.memory_space<vmem>>, %arg6: memref<1x32xf32, #tpu.memory_space<vmem>>, %arg7: memref<1x64xf32, #tpu.memory_space<vmem>>, %arg8: memref<1x128xf32, #tpu.memory_space<vmem>>, %arg9: memref<1x1024xf32, #tpu.memory_space<vmem>>, %arg10: memref<32x1024xf32, #tpu.memory_space<vmem>>, %arg11: memref<4x5x5x32x32xbf16, #tpu.memory_space<vmem>>) attributes {dimension_semantics = [#tpu.dimension_semantics<parallel>], iteration_bounds = array<i64: 2>, scalar_prefetch = 0 : i64, scratch_operands = 1 : i64, tpu.core_type = #tpu.core_type<tc>, window_params = [{transform_indices = @transform_0, window_bounds = array<i64: 4, 5, 5, 32, 16>}, {pipeline_mode = #tpu.pipeline_mode<synchronous>, transform_indices = @transform_1, window_bounds = array<i64: 16, 32>}, {pipeline_mode = #tpu.pipeline_mode<synchronous>, transform_indices = @transform_2, window_bounds = array<i64: 4, 4, 32, 64>}, {pipeline_mode = #tpu.pipeline_mode<synchronous>, transform_indices = @transform_3, window_bounds = array<i64: 4, 4, 64, 128>}, {pipeline_mode = #tpu.pipeline_mode<synchronous>, transform_indices = @transform_4, window_bounds = array<i64: 128, 1024>}, {pipeline_mode = #tpu.pipeline_mode<synchronous>, transform_indices = @transform_5, window_bounds = array<i64: 1, 32>}, {pipeline_mode = #tpu.pipeline_mode<synchronous>, transform_indices = @transform_6, window_bounds = array<i64: 1, 64>}, {pipeline_mode = #tpu.pipeline_mode<synchronous>, transform_indices = @transform_7, window_bounds = array<i64: 1, 128>}, {pipeline_mode = #tpu.pipeline_mode<synchronous>, transform_indices = @transform_8, window_bounds = array<i64: 1, 1024>}, {transform_indices = @transform_9, window_bounds = array<i64: 32, 1024>}]} {
    %c0 = arith.constant 0 : index
    %c0_0 = arith.constant 0 : index
    %c0_1 = arith.constant 0 : index
    %c0_2 = arith.constant 0 : index
    %c0_3 = arith.constant 0 : index
    %0 = vector.load %arg1[%c0, %c0_0, %c0_1, %c0_2, %c0_3] : memref<4x5x5x32x16xbf16, #tpu.memory_space<vmem>>, vector<1x5x5x32x16xbf16>
    %1 = vector.shape_cast %0 : vector<1x5x5x32x16xbf16> to vector<5x5x32x16xbf16>
    %2 = vector.shape_cast %1 : vector<5x5x32x16xbf16> to vector<800x16xbf16>
    %c0_4 = arith.constant 0 : index
    %c0_5 = arith.constant 0 : index
    %3 = vector.load %arg2[%c0_4, %c0_5] : memref<16x32xbf16, #tpu.memory_space<vmem>>, vector<16x32xbf16>
    %cst = arith.constant dense<0.000000e+00> : vector<800x32xf32>
    %4 = tpu.matmul %2, %3, %cst {dimension_numbers = #tpu.dot_dimension_numbers<[1], [0], [0], [1], [0, 0, 1, 1], [], []>} : vector<800x16xbf16>, vector<16x32xbf16>, vector<800x32xf32> -> vector<800x32xf32>
    %c0_6 = arith.constant 0 : index
    %c0_7 = arith.constant 0 : index
    %5 = vector.load %arg6[%c0_6, %c0_7] : memref<1x32xf32, #tpu.memory_space<vmem>>, vector<1x32xf32>
    %6 = vector.broadcast %5 : vector<1x32xf32> to vector<800x32xf32>
    %7 = arith.addf %4, %6 : vector<800x32xf32>
    %cst_8 = arith.constant 1.000000e-01 : f32
    %8 = vector.broadcast %cst_8 : f32 to vector<800x32xf32>
    %9 = arith.mulf %8, %7 : vector<800x32xf32>
    %10 = arith.maximumf %7, %9 : vector<800x32xf32>
    %11 = arith.truncf %10 : vector<800x32xf32> to vector<800x32xbf16>
    %12 = vector.shape_cast %11 : vector<800x32xbf16> to vector<5x5x32x32xbf16>
    %c0_9 = arith.constant 0 : index
    %c0_10 = arith.constant 0 : index
    %c0_11 = arith.constant 0 : index
    %c0_12 = arith.constant 0 : index
    %c0_13 = arith.constant 0 : index
    %13 = vector.load %arg11[%c0_9, %c0_10, %c0_11, %c0_12, %c0_13] : memref<4x5x5x32x32xbf16, #tpu.memory_space<vmem>>, vector<1x5x5x32x32xbf16>
    %14 = vector.shape_cast %13 : vector<1x5x5x32x32xbf16> to vector<5x5x32x32xbf16>
    %15 = vector.shape_cast %12 : vector<5x5x32x32xbf16> to vector<1x5x5x32x32xbf16>
    tpu.vector_store %arg11[%c0_9, %c0_10, %c0_11, %c0_12, %c0_13], %15 {strides = array<i32>} : memref<4x5x5x32x32xbf16, #tpu.memory_space<vmem>>, vector<1x5x5x32x32xbf16>,
    %c1 = arith.constant 1 : index
    %c0_14 = arith.constant 0 : index
    %c0_15 = arith.constant 0 : index
    %c0_16 = arith.constant 0 : index
    %c0_17 = arith.constant 0 : index
    %16 = vector.load %arg1[%c1, %c0_14, %c0_15, %c0_16, %c0_17] : memref<4x5x5x32x16xbf16, #tpu.memory_space<vmem>>, vector<1x5x5x32x16xbf16>
    %17 = vector.shape_cast %16 : vector<1x5x5x32x16xbf16> to vector<5x5x32x16xbf16>
    %18 = vector.shape_cast %17 : vector<5x5x32x16xbf16> to vector<800x16xbf16>
    %c0_18 = arith.constant 0 : index
    %c0_19 = arith.constant 0 : index
    %19 = vector.load %arg2[%c0_18, %c0_19] : memref<16x32xbf16, #tpu.memory_space<vmem>>, vector<16x32xbf16>
    %cst_20 = arith.constant dense<0.000000e+00> : vector<800x32xf32>
    %20 = tpu.matmul %18, %19, %cst_20 {dimension_numbers = #tpu.dot_dimension_numbers<[1], [0], [0], [1], [0, 0, 1, 1], [], []>} : vector<800x16xbf16>, vector<16x32xbf16>, vector<800x32xf32> -> vector<800x32xf32>
    %c0_21 = arith.constant 0 : index
    %c0_22 = arith.constant 0 : index
    %21 = vector.load %arg6[%c0_21, %c0_22] : memref<1x32xf32, #tpu.memory_space<vmem>>, vector<1x32xf32>
    %22 = vector.broadcast %21 : vector<1x32xf32> to vector<800x32xf32>
    %23 = arith.addf %20, %22 : vector<800x32xf32>
    %cst_23 = arith.constant 1.000000e-01 : f32
    %24 = vector.broadcast %cst_23 : f32 to vector<800x32xf32>
    %25 = arith.mulf %24, %23 : vector<800x32xf32>
    %26 = arith.maximumf %23, %25 : vector<800x32xf32>
    %27 = arith.truncf %26 : vector<800x32xf32> to vector<800x32xbf16>
    %28 = vector.shape_cast %27 : vector<800x32xbf16> to vector<5x5x32x32xbf16>
    %c1_24 = arith.constant 1 : index
    %c0_25 = arith.constant 0 : index
    %c0_26 = arith.constant 0 : index
    %c0_27 = arith.constant 0 : index
    %c0_28 = arith.constant 0 : index
    %29 = vector.load %arg11[%c1_24, %c0_25, %c0_26, %c0_27, %c0_28] : memref<4x5x5x32x32xbf16, #tpu.memory_space<vmem>>, vector<1x5x5x32x32xbf16>
    %30 = vector.shape_cast %29 : vector<1x5x5x32x32xbf16> to vector<5x5x32x32xbf16>
    %31 = vector.shape_cast %28 : vector<5x5x32x32xbf16> to vector<1x5x5x32x32xbf16>
    tpu.vector_store %arg11[%c1_24, %c0_25, %c0_26, %c0_27, %c0_28], %31 {strides = array<i32>} : memref<4x5x5x32x32xbf16, #tpu.memory_space<vmem>>, vector<1x5x5x32x32xbf16>,
    %c2 = arith.constant 2 : index
    %c0_29 = arith.constant 0 : index
    %c0_30 = arith.constant 0 : index
    %c0_31 = arith.constant 0 : index
    %c0_32 = arith.constant 0 : index
    %32 = vector.load %arg1[%c2, %c0_29, %c0_30, %c0_31, %c0_32] : memref<4x5x5x32x16xbf16, #tpu.memory_space<vmem>>, vector<1x5x5x32x16xbf16>
    %33 = vector.shape_cast %32 : vector<1x5x5x32x16xbf16> to vector<5x5x32x16xbf16>
    %34 = vector.shape_cast %33 : vector<5x5x32x16xbf16> to vector<800x16xbf16>
    %c0_33 = arith.constant 0 : index
    %c0_34 = arith.constant 0 : index
    %35 = vector.load %arg2[%c0_33, %c0_34] : memref<16x32xbf16, #tpu.memory_space<vmem>>, vector<16x32xbf16>
    %cst_35 = arith.constant dense<0.000000e+00> : vector<800x32xf32>
    %36 = tpu.matmul %34, %35, %cst_35 {dimension_numbers = #tpu.dot_dimension_numbers<[1], [0], [0], [1], [0, 0, 1, 1], [], []>} : vector<800x16xbf16>, vector<16x32xbf16>, vector<800x32xf32> -> vector<800x32xf32>
    %c0_36 = arith.constant 0 : index
    %c0_37 = arith.constant 0 : index
    %37 = vector.load %arg6[%c0_36, %c0_37] : memref<1x32xf32, #tpu.memory_space<vmem>>, vector<1x32xf32>
    %38 = vector.broadcast %37 : vector<1x32xf32> to vector<800x32xf32>
    %39 = arith.addf %36, %38 : vector<800x32xf32>
    %cst_38 = arith.constant 1.000000e-01 : f32
    %40 = vector.broadcast %cst_38 : f32 to vector<800x32xf32>
    %41 = arith.mulf %40, %39 : vector<800x32xf32>
    %42 = arith.maximumf %39, %41 : vector<800x32xf32>
    %43 = arith.truncf %42 : vector<800x32xf32> to vector<800x32xbf16>
    %44 = vector.shape_cast %43 : vector<800x32xbf16> to vector<5x5x32x32xbf16>
    %c2_39 = arith.constant 2 : index
    %c0_40 = arith.constant 0 : index
    %c0_41 = arith.constant 0 : index
    %c0_42 = arith.constant 0 : index
    %c0_43 = arith.constant 0 : index
    %45 = vector.load %arg11[%c2_39, %c0_40, %c0_41, %c0_42, %c0_43] : memref<4x5x5x32x32xbf16, #tpu.memory_space<vmem>>, vector<1x5x5x32x32xbf16>
    %46 = vector.shape_cast %45 : vector<1x5x5x32x32xbf16> to vector<5x5x32x32xbf16>
    %47 = vector.shape_cast %44 : vector<5x5x32x32xbf16> to vector<1x5x5x32x32xbf16>
    tpu.vector_store %arg11[%c2_39, %c0_40, %c0_41, %c0_42, %c0_43], %47 {strides = array<i32>} : memref<4x5x5x32x32xbf16, #tpu.memory_space<vmem>>, vector<1x5x5x32x32xbf16>,
    %c3 = arith.constant 3 : index
    %c0_44 = arith.constant 0 : index
    %c0_45 = arith.constant 0 : index
    %c0_46 = arith.constant 0 : index
    %c0_47 = arith.constant 0 : index
    %48 = vector.load %arg1[%c3, %c0_44, %c0_45, %c0_46, %c0_47] : memref<4x5x5x32x16xbf16, #tpu.memory_space<vmem>>, vector<1x5x5x32x16xbf16>
    %49 = vector.shape_cast %48 : vector<1x5x5x32x16xbf16> to vector<5x5x32x16xbf16>
    %50 = vector.shape_cast %49 : vector<5x5x32x16xbf16> to vector<800x16xbf16>
    %c0_48 = arith.constant 0 : index
    %c0_49 = arith.constant 0 : index
    %51 = vector.load %arg2[%c0_48, %c0_49] : memref<16x32xbf16, #tpu.memory_space<vmem>>, vector<16x32xbf16>
    %cst_50 = arith.constant dense<0.000000e+00> : vector<800x32xf32>
    %52 = tpu.matmul %50, %51, %cst_50 {dimension_numbers = #tpu.dot_dimension_numbers<[1], [0], [0], [1], [0, 0, 1, 1], [], []>} : vector<800x16xbf16>, vector<16x32xbf16>, vector<800x32xf32> -> vector<800x32xf32>
    %c0_51 = arith.constant 0 : index
    %c0_52 = arith.constant 0 : index
    %53 = vector.load %arg6[%c0_51, %c0_52] : memref<1x32xf32, #tpu.memory_space<vmem>>, vector<1x32xf32>
    %54 = vector.broadcast %53 : vector<1x32xf32> to vector<800x32xf32>
    %55 = arith.addf %52, %54 : vector<800x32xf32>
    %cst_53 = arith.constant 1.000000e-01 : f32
    %56 = vector.broadcast %cst_53 : f32 to vector<800x32xf32>
    %57 = arith.mulf %56, %55 : vector<800x32xf32>
    %58 = arith.maximumf %55, %57 : vector<800x32xf32>
    %59 = arith.truncf %58 : vector<800x32xf32> to vector<800x32xbf16>
    %60 = vector.shape_cast %59 : vector<800x32xbf16> to vector<5x5x32x32xbf16>
    %c3_54 = arith.constant 3 : index
    %c0_55 = arith.constant 0 : index
    %c0_56 = arith.constant 0 : index
    %c0_57 = arith.constant 0 : index
    %c0_58 = arith.constant 0 : index
    %61 = vector.load %arg11[%c3_54, %c0_55, %c0_56, %c0_57, %c0_58] : memref<4x5x5x32x32xbf16, #tpu.memory_space<vmem>>, vector<1x5x5x32x32xbf16>
    %62 = vector.shape_cast %61 : vector<1x5x5x32x32xbf16> to vector<5x5x32x32xbf16>
    %63 = vector.shape_cast %60 : vector<5x5x32x32xbf16> to vector<1x5x5x32x32xbf16>
    tpu.vector_store %arg11[%c3_54, %c0_55, %c0_56, %c0_57, %c0_58], %63 {strides = array<i32>} : memref<4x5x5x32x32xbf16, #tpu.memory_space<vmem>>, vector<1x5x5x32x32xbf16>,
    %cst_59 = arith.constant 0.000000e+00 : f32
    %64 = vector.broadcast %cst_59 : f32 to vector<512x64xf32>
    %c0_60 = arith.constant 0 : index
    %c0_61 = arith.constant 0 : index
    %c0_62 = arith.constant 0 : index
    %c0_63 = arith.constant 0 : index
    %c0_64 = arith.constant 0 : index
    %65 = vector.load %arg11[%c0_60, %c0_61, %c0_62, %c0_63, %c0_64] : memref<4x5x5x32x32xbf16, #tpu.memory_space<vmem>>, vector<1x4x4x32x32xbf16>
    %66 = vector.shape_cast %65 : vector<1x4x4x32x32xbf16> to vector<4x4x32x32xbf16>
    %67 = vector.shape_cast %66 : vector<4x4x32x32xbf16> to vector<512x32xbf16>
    %c0_65 = arith.constant 0 : index
    %c0_66 = arith.constant 0 : index
    %c0_67 = arith.constant 0 : index
    %c0_68 = arith.constant 0 : index
    %68 = vector.load %arg3[%c0_65, %c0_66, %c0_67, %c0_68] : memref<4x4x32x64xbf16, #tpu.memory_space<vmem>>, vector<1x1x32x64xbf16>
    %69 = vector.shape_cast %68 : vector<1x1x32x64xbf16> to vector<32x64xbf16>
    %cst_69 = arith.constant dense<0.000000e+00> : vector<512x64xf32>
    %70 = tpu.matmul %67, %69, %cst_69 {dimension_numbers = #tpu.dot_dimension_numbers<[1], [0], [0], [1], [0, 0, 1, 1], [], []>} : vector<512x32xbf16>, vector<32x64xbf16>, vector<512x64xf32> -> vector<512x64xf32>
    %71 = arith.addf %64, %70 : vector<512x64xf32>
    %c1_70 = arith.constant 1 : index
    %c0_71 = arith.constant 0 : index
    %c0_72 = arith.constant 0 : index
    %c0_73 = arith.constant 0 : index
    %c0_74 = arith.constant 0 : index
    %72 = vector.load %arg11[%c1_70, %c0_71, %c0_72, %c0_73, %c0_74] : memref<4x5x5x32x32xbf16, #tpu.memory_space<vmem>>, vector<1x4x4x32x32xbf16>
    %73 = vector.shape_cast %72 : vector<1x4x4x32x32xbf16> to vector<4x4x32x32xbf16>
    %74 = vector.shape_cast %73 : vector<4x4x32x32xbf16> to vector<512x32xbf16>
    %c0_75 = arith.constant 0 : index
    %c1_76 = arith.constant 1 : index
    %c0_77 = arith.constant 0 : index
    %c0_78 = arith.constant 0 : index
    %75 = vector.load %arg3[%c0_75, %c1_76, %c0_77, %c0_78] : memref<4x4x32x64xbf16, #tpu.memory_space<vmem>>, vector<1x1x32x64xbf16>
    %76 = vector.shape_cast %75 : vector<1x1x32x64xbf16> to vector<32x64xbf16>
    %cst_79 = arith.constant dense<0.000000e+00> : vector<512x64xf32>
    %77 = tpu.matmul %74, %76, %cst_79 {dimension_numbers = #tpu.dot_dimension_numbers<[1], [0], [0], [1], [0, 0, 1, 1], [], []>} : vector<512x32xbf16>, vector<32x64xbf16>, vector<512x64xf32> -> vector<512x64xf32>
    %78 = arith.addf %71, %77 : vector<512x64xf32>
    %c0_80 = arith.constant 0 : index
    %c0_81 = arith.constant 0 : index
    %c1_82 = arith.constant 1 : index
    %c0_83 = arith.constant 0 : index
    %c0_84 = arith.constant 0 : index
    %79 = vector.load %arg11[%c0_80, %c0_81, %c1_82, %c0_83, %c0_84] : memref<4x5x5x32x32xbf16, #tpu.memory_space<vmem>>, vector<1x4x4x32x32xbf16>
    %80 = vector.shape_cast %79 : vector<1x4x4x32x32xbf16> to vector<4x4x32x32xbf16>
    %81 = vector.shape_cast %80 : vector<4x4x32x32xbf16> to vector<512x32xbf16>
    %c0_85 = arith.constant 0 : index
    %c2_86 = arith.constant 2 : index
    %c0_87 = arith.constant 0 : index
    %c0_88 = arith.constant 0 : index
    %82 = vector.load %arg3[%c0_85, %c2_86, %c0_87, %c0_88] : memref<4x4x32x64xbf16, #tpu.memory_space<vmem>>, vector<1x1x32x64xbf16>
    %83 = vector.shape_cast %82 : vector<1x1x32x64xbf16> to vector<32x64xbf16>
    %cst_89 = arith.constant dense<0.000000e+00> : vector<512x64xf32>
    %84 = tpu.matmul %81, %83, %cst_89 {dimension_numbers = #tpu.dot_dimension_numbers<[1], [0], [0], [1], [0, 0, 1, 1], [], []>} : vector<512x32xbf16>, vector<32x64xbf16>, vector<512x64xf32> -> vector<512x64xf32>
    %85 = arith.addf %78, %84 : vector<512x64xf32>
    %c1_90 = arith.constant 1 : index
    %c0_91 = arith.constant 0 : index
    %c1_92 = arith.constant 1 : index
    %c0_93 = arith.constant 0 : index
    %c0_94 = arith.constant 0 : index
    %86 = vector.load %arg11[%c1_90, %c0_91, %c1_92, %c0_93, %c0_94] : memref<4x5x5x32x32xbf16, #tpu.memory_space<vmem>>, vector<1x4x4x32x32xbf16>
    %87 = vector.shape_cast %86 : vector<1x4x4x32x32xbf16> to vector<4x4x32x32xbf16>
    %88 = vector.shape_cast %87 : vector<4x4x32x32xbf16> to vector<512x32xbf16>
    %c0_95 = arith.constant 0 : index
    %c3_96 = arith.constant 3 : index
    %c0_97 = arith.constant 0 : index
    %c0_98 = arith.constant 0 : index
    %89 = vector.load %arg3[%c0_95, %c3_96, %c0_97, %c0_98] : memref<4x4x32x64xbf16, #tpu.memory_space<vmem>>, vector<1x1x32x64xbf16>
    %90 = vector.shape_cast %89 : vector<1x1x32x64xbf16> to vector<32x64xbf16>
    %cst_99 = arith.constant dense<0.000000e+00> : vector<512x64xf32>
    %91 = tpu.matmul %88, %90, %cst_99 {dimension_numbers = #tpu.dot_dimension_numbers<[1], [0], [0], [1], [0, 0, 1, 1], [], []>} : vector<512x32xbf16>, vector<32x64xbf16>, vector<512x64xf32> -> vector<512x64xf32>
    %92 = arith.addf %85, %91 : vector<512x64xf32>
    %c2_100 = arith.constant 2 : index
    %c0_101 = arith.constant 0 : index
    %c0_102 = arith.constant 0 : index
    %c0_103 = arith.constant 0 : index
    %c0_104 = arith.constant 0 : index
    %93 = vector.load %arg11[%c2_100, %c0_101, %c0_102, %c0_103, %c0_104] : memref<4x5x5x32x32xbf16, #tpu.memory_space<vmem>>, vector<1x4x4x32x32xbf16>
    %94 = vector.shape_cast %93 : vector<1x4x4x32x32xbf16> to vector<4x4x32x32xbf16>
    %95 = vector.shape_cast %94 : vector<4x4x32x32xbf16> to vector<512x32xbf16>
    %c1_105 = arith.constant 1 : index
    %c0_106 = arith.constant 0 : index
    %c0_107 = arith.constant 0 : index
    %c0_108 = arith.constant 0 : index
    %96 = vector.load %arg3[%c1_105, %c0_106, %c0_107, %c0_108] : memref<4x4x32x64xbf16, #tpu.memory_space<vmem>>, vector<1x1x32x64xbf16>
    %97 = vector.shape_cast %96 : vector<1x1x32x64xbf16> to vector<32x64xbf16>
    %cst_109 = arith.constant dense<0.000000e+00> : vector<512x64xf32>
    %98 = tpu.matmul %95, %97, %cst_109 {dimension_numbers = #tpu.dot_dimension_numbers<[1], [0], [0], [1], [0, 0, 1, 1], [], []>} : vector<512x32xbf16>, vector<32x64xbf16>, vector<512x64xf32> -> vector<512x64xf32>
    %99 = arith.addf %92, %98 : vector<512x64xf32>
    %c3_110 = arith.constant 3 : index
    %c0_111 = arith.constant 0 : index
    %c0_112 = arith.constant 0 : index
    %c0_113 = arith.constant 0 : index
    %c0_114 = arith.constant 0 : index
    %100 = vector.load %arg11[%c3_110, %c0_111, %c0_112, %c0_113, %c0_114] : memref<4x5x5x32x32xbf16, #tpu.memory_space<vmem>>, vector<1x4x4x32x32xbf16>
    %101 = vector.shape_cast %100 : vector<1x4x4x32x32xbf16> to vector<4x4x32x32xbf16>
    %102 = vector.shape_cast %101 : vector<4x4x32x32xbf16> to vector<512x32xbf16>
    %c1_115 = arith.constant 1 : index
    %c1_116 = arith.constant 1 : index
    %c0_117 = arith.constant 0 : index
    %c0_118 = arith.constant 0 : index
    %103 = vector.load %arg3[%c1_115, %c1_116, %c0_117, %c0_118] : memref<4x4x32x64xbf16, #tpu.memory_space<vmem>>, vector<1x1x32x64xbf16>
    %104 = vector.shape_cast %103 : vector<1x1x32x64xbf16> to vector<32x64xbf16>
    %cst_119 = arith.constant dense<0.000000e+00> : vector<512x64xf32>
    %105 = tpu.matmul %102, %104, %cst_119 {dimension_numbers = #tpu.dot_dimension_numbers<[1], [0], [0], [1], [0, 0, 1, 1], [], []>} : vector<512x32xbf16>, vector<32x64xbf16>, vector<512x64xf32> -> vector<512x64xf32>
    %106 = arith.addf %99, %105 : vector<512x64xf32>
    %c2_120 = arith.constant 2 : index
    %c0_121 = arith.constant 0 : index
    %c1_122 = arith.constant 1 : index
    %c0_123 = arith.constant 0 : index
    %c0_124 = arith.constant 0 : index
    %107 = vector.load %arg11[%c2_120, %c0_121, %c1_122, %c0_123, %c0_124] : memref<4x5x5x32x32xbf16, #tpu.memory_space<vmem>>, vector<1x4x4x32x32xbf16>
    %108 = vector.shape_cast %107 : vector<1x4x4x32x32xbf16> to vector<4x4x32x32xbf16>
    %109 = vector.shape_cast %108 : vector<4x4x32x32xbf16> to vector<512x32xbf16>
    %c1_125 = arith.constant 1 : index
    %c2_126 = arith.constant 2 : index
    %c0_127 = arith.constant 0 : index
    %c0_128 = arith.constant 0 : index
    %110 = vector.load %arg3[%c1_125, %c2_126, %c0_127, %c0_128] : memref<4x4x32x64xbf16, #tpu.memory_space<vmem>>, vector<1x1x32x64xbf16>
    %111 = vector.shape_cast %110 : vector<1x1x32x64xbf16> to vector<32x64xbf16>
    %cst_129 = arith.constant dense<0.000000e+00> : vector<512x64xf32>
    %112 = tpu.matmul %109, %111, %cst_129 {dimension_numbers = #tpu.dot_dimension_numbers<[1], [0], [0], [1], [0, 0, 1, 1], [], []>} : vector<512x32xbf16>, vector<32x64xbf16>, vector<512x64xf32> -> vector<512x64xf32>
    %113 = arith.addf %106, %112 : vector<512x64xf32>
    %c3_130 = arith.constant 3 : index
    %c0_131 = arith.constant 0 : index
    %c1_132 = arith.constant 1 : index
    %c0_133 = arith.constant 0 : index
    %c0_134 = arith.constant 0 : index
    %114 = vector.load %arg11[%c3_130, %c0_131, %c1_132, %c0_133, %c0_134] : memref<4x5x5x32x32xbf16, #tpu.memory_space<vmem>>, vector<1x4x4x32x32xbf16>
    %115 = vector.shape_cast %114 : vector<1x4x4x32x32xbf16> to vector<4x4x32x32xbf16>
    %116 = vector.shape_cast %115 : vector<4x4x32x32xbf16> to vector<512x32xbf16>
    %c1_135 = arith.constant 1 : index
    %c3_136 = arith.constant 3 : index
    %c0_137 = arith.constant 0 : index
    %c0_138 = arith.constant 0 : index
    %117 = vector.load %arg3[%c1_135, %c3_136, %c0_137, %c0_138] : memref<4x4x32x64xbf16, #tpu.memory_space<vmem>>, vector<1x1x32x64xbf16>
    %118 = vector.shape_cast %117 : vector<1x1x32x64xbf16> to vector<32x64xbf16>
    %cst_139 = arith.constant dense<0.000000e+00> : vector<512x64xf32>
    %119 = tpu.matmul %116, %118, %cst_139 {dimension_numbers = #tpu.dot_dimension_numbers<[1], [0], [0], [1], [0, 0, 1, 1], [], []>} : vector<512x32xbf16>, vector<32x64xbf16>, vector<512x64xf32> -> vector<512x64xf32>
    %120 = arith.addf %113, %119 : vector<512x64xf32>
    %c0_140 = arith.constant 0 : index
    %c1_141 = arith.constant 1 : index
    %c0_142 = arith.constant 0 : index
    %c0_143 = arith.constant 0 : index
    %c0_144 = arith.constant 0 : index
    %121 = vector.load %arg11[%c0_140, %c1_141, %c0_142, %c0_143, %c0_144] : memref<4x5x5x32x32xbf16, #tpu.memory_space<vmem>>, vector<1x4x4x32x32xbf16>
    %122 = vector.shape_cast %121 : vector<1x4x4x32x32xbf16> to vector<4x4x32x32xbf16>
    %123 = vector.shape_cast %122 : vector<4x4x32x32xbf16> to vector<512x32xbf16>
    %c2_145 = arith.constant 2 : index
    %c0_146 = arith.constant 0 : index
    %c0_147 = arith.constant 0 : index
    %c0_148 = arith.constant 0 : index
    %124 = vector.load %arg3[%c2_145, %c0_146, %c0_147, %c0_148] : memref<4x4x32x64xbf16, #tpu.memory_space<vmem>>, vector<1x1x32x64xbf16>
    %125 = vector.shape_cast %124 : vector<1x1x32x64xbf16> to vector<32x64xbf16>
    %cst_149 = arith.constant dense<0.000000e+00> : vector<512x64xf32>
    %126 = tpu.matmul %123, %125, %cst_149 {dimension_numbers = #tpu.dot_dimension_numbers<[1], [0], [0], [1], [0, 0, 1, 1], [], []>} : vector<512x32xbf16>, vector<32x64xbf16>, vector<512x64xf32> -> vector<512x64xf32>
    %127 = arith.addf %120, %126 : vector<512x64xf32>
    %c1_150 = arith.constant 1 : index
    %c1_151 = arith.constant 1 : index
    %c0_152 = arith.constant 0 : index
    %c0_153 = arith.constant 0 : index
    %c0_154 = arith.constant 0 : index
    %128 = vector.load %arg11[%c1_150, %c1_151, %c0_152, %c0_153, %c0_154] : memref<4x5x5x32x32xbf16, #tpu.memory_space<vmem>>, vector<1x4x4x32x32xbf16>
    %129 = vector.shape_cast %128 : vector<1x4x4x32x32xbf16> to vector<4x4x32x32xbf16>
    %130 = vector.shape_cast %129 : vector<4x4x32x32xbf16> to vector<512x32xbf16>
    %c2_155 = arith.constant 2 : index
    %c1_156 = arith.constant 1 : index
    %c0_157 = arith.constant 0 : index
    %c0_158 = arith.constant 0 : index
    %131 = vector.load %arg3[%c2_155, %c1_156, %c0_157, %c0_158] : memref<4x4x32x64xbf16, #tpu.memory_space<vmem>>, vector<1x1x32x64xbf16>
    %132 = vector.shape_cast %131 : vector<1x1x32x64xbf16> to vector<32x64xbf16>
    %cst_159 = arith.constant dense<0.000000e+00> : vector<512x64xf32>
    %133 = tpu.matmul %130, %132, %cst_159 {dimension_numbers = #tpu.dot_dimension_numbers<[1], [0], [0], [1], [0, 0, 1, 1], [], []>} : vector<512x32xbf16>, vector<32x64xbf16>, vector<512x64xf32> -> vector<512x64xf32>
    %134 = arith.addf %127, %133 : vector<512x64xf32>
    %c0_160 = arith.constant 0 : index
    %c1_161 = arith.constant 1 : index
    %c1_162 = arith.constant 1 : index
    %c0_163 = arith.constant 0 : index
    %c0_164 = arith.constant 0 : index
    %135 = vector.load %arg11[%c0_160, %c1_161, %c1_162, %c0_163, %c0_164] : memref<4x5x5x32x32xbf16, #tpu.memory_space<vmem>>, vector<1x4x4x32x32xbf16>
    %136 = vector.shape_cast %135 : vector<1x4x4x32x32xbf16> to vector<4x4x32x32xbf16>
    %137 = vector.shape_cast %136 : vector<4x4x32x32xbf16> to vector<512x32xbf16>
    %c2_165 = arith.constant 2 : index
    %c2_166 = arith.constant 2 : index
    %c0_167 = arith.constant 0 : index
    %c0_168 = arith.constant 0 : index
    %138 = vector.load %arg3[%c2_165, %c2_166, %c0_167, %c0_168] : memref<4x4x32x64xbf16, #tpu.memory_space<vmem>>, vector<1x1x32x64xbf16>
    %139 = vector.shape_cast %138 : vector<1x1x32x64xbf16> to vector<32x64xbf16>
    %cst_169 = arith.constant dense<0.000000e+00> : vector<512x64xf32>
    %140 = tpu.matmul %137, %139, %cst_169 {dimension_numbers = #tpu.dot_dimension_numbers<[1], [0], [0], [1], [0, 0, 1, 1], [], []>} : vector<512x32xbf16>, vector<32x64xbf16>, vector<512x64xf32> -> vector<512x64xf32>
    %141 = arith.addf %134, %140 : vector<512x64xf32>
    %c1_170 = arith.constant 1 : index
    %c1_171 = arith.constant 1 : index
    %c1_172 = arith.constant 1 : index
    %c0_173 = arith.constant 0 : index
    %c0_174 = arith.constant 0 : index
    %142 = vector.load %arg11[%c1_170, %c1_171, %c1_172, %c0_173, %c0_174] : memref<4x5x5x32x32xbf16, #tpu.memory_space<vmem>>, vector<1x4x4x32x32xbf16>
    %143 = vector.shape_cast %142 : vector<1x4x4x32x32xbf16> to vector<4x4x32x32xbf16>
    %144 = vector.shape_cast %143 : vector<4x4x32x32xbf16> to vector<512x32xbf16>
    %c2_175 = arith.constant 2 : index
    %c3_176 = arith.constant 3 : index
    %c0_177 = arith.constant 0 : index
    %c0_178 = arith.constant 0 : index
    %145 = vector.load %arg3[%c2_175, %c3_176, %c0_177, %c0_178] : memref<4x4x32x64xbf16, #tpu.memory_space<vmem>>, vector<1x1x32x64xbf16>
    %146 = vector.shape_cast %145 : vector<1x1x32x64xbf16> to vector<32x64xbf16>
    %cst_179 = arith.constant dense<0.000000e+00> : vector<512x64xf32>
    %147 = tpu.matmul %144, %146, %cst_179 {dimension_numbers = #tpu.dot_dimension_numbers<[1], [0], [0], [1], [0, 0, 1, 1], [], []>} : vector<512x32xbf16>, vector<32x64xbf16>, vector<512x64xf32> -> vector<512x64xf32>
    %148 = arith.addf %141, %147 : vector<512x64xf32>
    %c2_180 = arith.constant 2 : index
    %c1_181 = arith.constant 1 : index
    %c0_182 = arith.constant 0 : index
    %c0_183 = arith.constant 0 : index
    %c0_184 = arith.constant 0 : index
    %149 = vector.load %arg11[%c2_180, %c1_181, %c0_182, %c0_183, %c0_184] : memref<4x5x5x32x32xbf16, #tpu.memory_space<vmem>>, vector<1x4x4x32x32xbf16>
    %150 = vector.shape_cast %149 : vector<1x4x4x32x32xbf16> to vector<4x4x32x32xbf16>
    %151 = vector.shape_cast %150 : vector<4x4x32x32xbf16> to vector<512x32xbf16>
    %c3_185 = arith.constant 3 : index
    %c0_186 = arith.constant 0 : index
    %c0_187 = arith.constant 0 : index
    %c0_188 = arith.constant 0 : index
    %152 = vector.load %arg3[%c3_185, %c0_186, %c0_187, %c0_188] : memref<4x4x32x64xbf16, #tpu.memory_space<vmem>>, vector<1x1x32x64xbf16>
    %153 = vector.shape_cast %152 : vector<1x1x32x64xbf16> to vector<32x64xbf16>
    %cst_189 = arith.constant dense<0.000000e+00> : vector<512x64xf32>
    %154 = tpu.matmul %151, %153, %cst_189 {dimension_numbers = #tpu.dot_dimension_numbers<[1], [0], [0], [1], [0, 0, 1, 1], [], []>} : vector<512x32xbf16>, vector<32x64xbf16>, vector<512x64xf32> -> vector<512x64xf32>
    %155 = arith.addf %148, %154 : vector<512x64xf32>
    %c3_190 = arith.constant 3 : index
    %c1_191 = arith.constant 1 : index
    %c0_192 = arith.constant 0 : index
    %c0_193 = arith.constant 0 : index
    %c0_194 = arith.constant 0 : index
    %156 = vector.load %arg11[%c3_190, %c1_191, %c0_192, %c0_193, %c0_194] : memref<4x5x5x32x32xbf16, #tpu.memory_space<vmem>>, vector<1x4x4x32x32xbf16>
    %157 = vector.shape_cast %156 : vector<1x4x4x32x32xbf16> to vector<4x4x32x32xbf16>
    %158 = vector.shape_cast %157 : vector<4x4x32x32xbf16> to vector<512x32xbf16>
    %c3_195 = arith.constant 3 : index
    %c1_196 = arith.constant 1 : index
    %c0_197 = arith.constant 0 : index
    %c0_198 = arith.constant 0 : index
    %159 = vector.load %arg3[%c3_195, %c1_196, %c0_197, %c0_198] : memref<4x4x32x64xbf16, #tpu.memory_space<vmem>>, vector<1x1x32x64xbf16>
    %160 = vector.shape_cast %159 : vector<1x1x32x64xbf16> to vector<32x64xbf16>
    %cst_199 = arith.constant dense<0.000000e+00> : vector<512x64xf32>
    %161 = tpu.matmul %158, %160, %cst_199 {dimension_numbers = #tpu.dot_dimension_numbers<[1], [0], [0], [1], [0, 0, 1, 1], [], []>} : vector<512x32xbf16>, vector<32x64xbf16>, vector<512x64xf32> -> vector<512x64xf32>
    %162 = arith.addf %155, %161 : vector<512x64xf32>
    %c2_200 = arith.constant 2 : index
    %c1_201 = arith.constant 1 : index
    %c1_202 = arith.constant 1 : index
    %c0_203 = arith.constant 0 : index
    %c0_204 = arith.constant 0 : index
    %163 = vector.load %arg11[%c2_200, %c1_201, %c1_202, %c0_203, %c0_204] : memref<4x5x5x32x32xbf16, #tpu.memory_space<vmem>>, vector<1x4x4x32x32xbf16>
    %164 = vector.shape_cast %163 : vector<1x4x4x32x32xbf16> to vector<4x4x32x32xbf16>
    %165 = vector.shape_cast %164 : vector<4x4x32x32xbf16> to vector<512x32xbf16>
    %c3_205 = arith.constant 3 : index
    %c2_206 = arith.constant 2 : index
    %c0_207 = arith.constant 0 : index
    %c0_208 = arith.constant 0 : index
    %166 = vector.load %arg3[%c3_205, %c2_206, %c0_207, %c0_208] : memref<4x4x32x64xbf16, #tpu.memory_space<vmem>>, vector<1x1x32x64xbf16>
    %167 = vector.shape_cast %166 : vector<1x1x32x64xbf16> to vector<32x64xbf16>
    %cst_209 = arith.constant dense<0.000000e+00> : vector<512x64xf32>
    %168 = tpu.matmul %165, %167, %cst_209 {dimension_numbers = #tpu.dot_dimension_numbers<[1], [0], [0], [1], [0, 0, 1, 1], [], []>} : vector<512x32xbf16>, vector<32x64xbf16>, vector<512x64xf32> -> vector<512x64xf32>
    %169 = arith.addf %162, %168 : vector<512x64xf32>
    %c3_210 = arith.constant 3 : index
    %c1_211 = arith.constant 1 : index
    %c1_212 = arith.constant 1 : index
    %c0_213 = arith.constant 0 : index
    %c0_214 = arith.constant 0 : index
    %170 = vector.load %arg11[%c3_210, %c1_211, %c1_212, %c0_213, %c0_214] : memref<4x5x5x32x32xbf16, #tpu.memory_space<vmem>>, vector<1x4x4x32x32xbf16>
    %171 = vector.shape_cast %170 : vector<1x4x4x32x32xbf16> to vector<4x4x32x32xbf16>
    %172 = vector.shape_cast %171 : vector<4x4x32x32xbf16> to vector<512x32xbf16>
    %c3_215 = arith.constant 3 : index
    %c3_216 = arith.constant 3 : index
    %c0_217 = arith.constant 0 : index
    %c0_218 = arith.constant 0 : index
    %173 = vector.load %arg3[%c3_215, %c3_216, %c0_217, %c0_218] : memref<4x4x32x64xbf16, #tpu.memory_space<vmem>>, vector<1x1x32x64xbf16>
    %174 = vector.shape_cast %173 : vector<1x1x32x64xbf16> to vector<32x64xbf16>
    %cst_219 = arith.constant dense<0.000000e+00> : vector<512x64xf32>
    %175 = tpu.matmul %172, %174, %cst_219 {dimension_numbers = #tpu.dot_dimension_numbers<[1], [0], [0], [1], [0, 0, 1, 1], [], []>} : vector<512x32xbf16>, vector<32x64xbf16>, vector<512x64xf32> -> vector<512x64xf32>
    %176 = arith.addf %169, %175 : vector<512x64xf32>
    %c0_220 = arith.constant 0 : index
    %c0_221 = arith.constant 0 : index
    %177 = vector.load %arg7[%c0_220, %c0_221] : memref<1x64xf32, #tpu.memory_space<vmem>>, vector<1x64xf32>
    %178 = vector.broadcast %177 : vector<1x64xf32> to vector<512x64xf32>
    %179 = arith.addf %176, %178 : vector<512x64xf32>
    %cst_222 = arith.constant 1.000000e-01 : f32
    %180 = vector.broadcast %cst_222 : f32 to vector<512x64xf32>
    %181 = arith.mulf %180, %179 : vector<512x64xf32>
    %182 = arith.maximumf %179, %181 : vector<512x64xf32>
    %183 = arith.truncf %182 : vector<512x64xf32> to vector<512x64xbf16>
    %cst_223 = arith.constant 0.000000e+00 : f32
    %184 = vector.broadcast %cst_223 : f32 to vector<32x128xf32>
    %185 = vector.extract_strided_slice %183 {offsets = [0, 0], sizes = [32, 64], strides = [1, 1]} : vector<512x64xbf16> to vector<32x64xbf16>
    %c0_224 = arith.constant 0 : index
    %c0_225 = arith.constant 0 : index
    %c0_226 = arith.constant 0 : index
    %c0_227 = arith.constant 0 : index
    %186 = vector.load %arg4[%c0_224, %c0_225, %c0_226, %c0_227] : memref<4x4x64x128xbf16, #tpu.memory_space<vmem>>, vector<1x1x64x128xbf16>
    %187 = vector.shape_cast %186 : vector<1x1x64x128xbf16> to vector<64x128xbf16>
    %cst_228 = arith.constant dense<0.000000e+00> : vector<32x128xf32>
    %188 = tpu.matmul %185, %187, %cst_228 {dimension_numbers = #tpu.dot_dimension_numbers<[1], [0], [0], [1], [0, 0, 1, 1], [], []>} : vector<32x64xbf16>, vector<64x128xbf16>, vector<32x128xf32> -> vector<32x128xf32>
    %189 = arith.addf %184, %188 : vector<32x128xf32>
    %190 = vector.extract_strided_slice %183 {offsets = [32, 0], sizes = [32, 64], strides = [1, 1]} : vector<512x64xbf16> to vector<32x64xbf16>
    %c0_229 = arith.constant 0 : index
    %c1_230 = arith.constant 1 : index
    %c0_231 = arith.constant 0 : index
    %c0_232 = arith.constant 0 : index
    %191 = vector.load %arg4[%c0_229, %c1_230, %c0_231, %c0_232] : memref<4x4x64x128xbf16, #tpu.memory_space<vmem>>, vector<1x1x64x128xbf16>
    %192 = vector.shape_cast %191 : vector<1x1x64x128xbf16> to vector<64x128xbf16>
    %cst_233 = arith.constant dense<0.000000e+00> : vector<32x128xf32>
    %193 = tpu.matmul %190, %192, %cst_233 {dimension_numbers = #tpu.dot_dimension_numbers<[1], [0], [0], [1], [0, 0, 1, 1], [], []>} : vector<32x64xbf16>, vector<64x128xbf16>, vector<32x128xf32> -> vector<32x128xf32>
    %194 = arith.addf %189, %193 : vector<32x128xf32>
    %195 = vector.extract_strided_slice %183 {offsets = [64, 0], sizes = [32, 64], strides = [1, 1]} : vector<512x64xbf16> to vector<32x64xbf16>
    %c0_234 = arith.constant 0 : index
    %c2_235 = arith.constant 2 : index
    %c0_236 = arith.constant 0 : index
    %c0_237 = arith.constant 0 : index
    %196 = vector.load %arg4[%c0_234, %c2_235, %c0_236, %c0_237] : memref<4x4x64x128xbf16, #tpu.memory_space<vmem>>, vector<1x1x64x128xbf16>
    %197 = vector.shape_cast %196 : vector<1x1x64x128xbf16> to vector<64x128xbf16>
    %cst_238 = arith.constant dense<0.000000e+00> : vector<32x128xf32>
    %198 = tpu.matmul %195, %197, %cst_238 {dimension_numbers = #tpu.dot_dimension_numbers<[1], [0], [0], [1], [0, 0, 1, 1], [], []>} : vector<32x64xbf16>, vector<64x128xbf16>, vector<32x128xf32> -> vector<32x128xf32>
    %199 = arith.addf %194, %198 : vector<32x128xf32>
    %200 = vector.extract_strided_slice %183 {offsets = [96, 0], sizes = [32, 64], strides = [1, 1]} : vector<512x64xbf16> to vector<32x64xbf16>
    %c0_239 = arith.constant 0 : index
    %c3_240 = arith.constant 3 : index
    %c0_241 = arith.constant 0 : index
    %c0_242 = arith.constant 0 : index
    %201 = vector.load %arg4[%c0_239, %c3_240, %c0_241, %c0_242] : memref<4x4x64x128xbf16, #tpu.memory_space<vmem>>, vector<1x1x64x128xbf16>
    %202 = vector.shape_cast %201 : vector<1x1x64x128xbf16> to vector<64x128xbf16>
    %cst_243 = arith.constant dense<0.000000e+00> : vector<32x128xf32>
    %203 = tpu.matmul %200, %202, %cst_243 {dimension_numbers = #tpu.dot_dimension_numbers<[1], [0], [0], [1], [0, 0, 1, 1], [], []>} : vector<32x64xbf16>, vector<64x128xbf16>, vector<32x128xf32> -> vector<32x128xf32>
    %204 = arith.addf %199, %203 : vector<32x128xf32>
    %205 = vector.extract_strided_slice %183 {offsets = [128, 0], sizes = [32, 64], strides = [1, 1]} : vector<512x64xbf16> to vector<32x64xbf16>
    %c1_244 = arith.constant 1 : index
    %c0_245 = arith.constant 0 : index
    %c0_246 = arith.constant 0 : index
    %c0_247 = arith.constant 0 : index
    %206 = vector.load %arg4[%c1_244, %c0_245, %c0_246, %c0_247] : memref<4x4x64x128xbf16, #tpu.memory_space<vmem>>, vector<1x1x64x128xbf16>
    %207 = vector.shape_cast %206 : vector<1x1x64x128xbf16> to vector<64x128xbf16>
    %cst_248 = arith.constant dense<0.000000e+00> : vector<32x128xf32>
    %208 = tpu.matmul %205, %207, %cst_248 {dimension_numbers = #tpu.dot_dimension_numbers<[1], [0], [0], [1], [0, 0, 1, 1], [], []>} : vector<32x64xbf16>, vector<64x128xbf16>, vector<32x128xf32> -> vector<32x128xf32>
    %209 = arith.addf %204, %208 : vector<32x128xf32>
    %210 = vector.extract_strided_slice %183 {offsets = [160, 0], sizes = [32, 64], strides = [1, 1]} : vector<512x64xbf16> to vector<32x64xbf16>
    %c1_249 = arith.constant 1 : index
    %c1_250 = arith.constant 1 : index
    %c0_251 = arith.constant 0 : index
    %c0_252 = arith.constant 0 : index
    %211 = vector.load %arg4[%c1_249, %c1_250, %c0_251, %c0_252] : memref<4x4x64x128xbf16, #tpu.memory_space<vmem>>, vector<1x1x64x128xbf16>
    %212 = vector.shape_cast %211 : vector<1x1x64x128xbf16> to vector<64x128xbf16>
    %cst_253 = arith.constant dense<0.000000e+00> : vector<32x128xf32>
    %213 = tpu.matmul %210, %212, %cst_253 {dimension_numbers = #tpu.dot_dimension_numbers<[1], [0], [0], [1], [0, 0, 1, 1], [], []>} : vector<32x64xbf16>, vector<64x128xbf16>, vector<32x128xf32> -> vector<32x128xf32>
    %214 = arith.addf %209, %213 : vector<32x128xf32>
    %215 = vector.extract_strided_slice %183 {offsets = [192, 0], sizes = [32, 64], strides = [1, 1]} : vector<512x64xbf16> to vector<32x64xbf16>
    %c1_254 = arith.constant 1 : index
    %c2_255 = arith.constant 2 : index
    %c0_256 = arith.constant 0 : index
    %c0_257 = arith.constant 0 : index
    %216 = vector.load %arg4[%c1_254, %c2_255, %c0_256, %c0_257] : memref<4x4x64x128xbf16, #tpu.memory_space<vmem>>, vector<1x1x64x128xbf16>
    %217 = vector.shape_cast %216 : vector<1x1x64x128xbf16> to vector<64x128xbf16>
    %cst_258 = arith.constant dense<0.000000e+00> : vector<32x128xf32>
    %218 = tpu.matmul %215, %217, %cst_258 {dimension_numbers = #tpu.dot_dimension_numbers<[1], [0], [0], [1], [0, 0, 1, 1], [], []>} : vector<32x64xbf16>, vector<64x128xbf16>, vector<32x128xf32> -> vector<32x128xf32>
    %219 = arith.addf %214, %218 : vector<32x128xf32>
    %220 = vector.extract_strided_slice %183 {offsets = [224, 0], sizes = [32, 64], strides = [1, 1]} : vector<512x64xbf16> to vector<32x64xbf16>
    %c1_259 = arith.constant 1 : index
    %c3_260 = arith.constant 3 : index
    %c0_261 = arith.constant 0 : index
    %c0_262 = arith.constant 0 : index
    %221 = vector.load %arg4[%c1_259, %c3_260, %c0_261, %c0_262] : memref<4x4x64x128xbf16, #tpu.memory_space<vmem>>, vector<1x1x64x128xbf16>
    %222 = vector.shape_cast %221 : vector<1x1x64x128xbf16> to vector<64x128xbf16>
    %cst_263 = arith.constant dense<0.000000e+00> : vector<32x128xf32>
    %223 = tpu.matmul %220, %222, %cst_263 {dimension_numbers = #tpu.dot_dimension_numbers<[1], [0], [0], [1], [0, 0, 1, 1], [], []>} : vector<32x64xbf16>, vector<64x128xbf16>, vector<32x128xf32> -> vector<32x128xf32>
    %224 = arith.addf %219, %223 : vector<32x128xf32>
    %225 = vector.extract_strided_slice %183 {offsets = [256, 0], sizes = [32, 64], strides = [1, 1]} : vector<512x64xbf16> to vector<32x64xbf16>
    %c2_264 = arith.constant 2 : index
    %c0_265 = arith.constant 0 : index
    %c0_266 = arith.constant 0 : index
    %c0_267 = arith.constant 0 : index
    %226 = vector.load %arg4[%c2_264, %c0_265, %c0_266, %c0_267] : memref<4x4x64x128xbf16, #tpu.memory_space<vmem>>, vector<1x1x64x128xbf16>
    %227 = vector.shape_cast %226 : vector<1x1x64x128xbf16> to vector<64x128xbf16>
    %cst_268 = arith.constant dense<0.000000e+00> : vector<32x128xf32>
    %228 = tpu.matmul %225, %227, %cst_268 {dimension_numbers = #tpu.dot_dimension_numbers<[1], [0], [0], [1], [0, 0, 1, 1], [], []>} : vector<32x64xbf16>, vector<64x128xbf16>, vector<32x128xf32> -> vector<32x128xf32>
    %229 = arith.addf %224, %228 : vector<32x128xf32>
    %230 = vector.extract_strided_slice %183 {offsets = [288, 0], sizes = [32, 64], strides = [1, 1]} : vector<512x64xbf16> to vector<32x64xbf16>
    %c2_269 = arith.constant 2 : index
    %c1_270 = arith.constant 1 : index
    %c0_271 = arith.constant 0 : index
    %c0_272 = arith.constant 0 : index
    %231 = vector.load %arg4[%c2_269, %c1_270, %c0_271, %c0_272] : memref<4x4x64x128xbf16, #tpu.memory_space<vmem>>, vector<1x1x64x128xbf16>
    %232 = vector.shape_cast %231 : vector<1x1x64x128xbf16> to vector<64x128xbf16>
    %cst_273 = arith.constant dense<0.000000e+00> : vector<32x128xf32>
    %233 = tpu.matmul %230, %232, %cst_273 {dimension_numbers = #tpu.dot_dimension_numbers<[1], [0], [0], [1], [0, 0, 1, 1], [], []>} : vector<32x64xbf16>, vector<64x128xbf16>, vector<32x128xf32> -> vector<32x128xf32>
    %234 = arith.addf %229, %233 : vector<32x128xf32>
    %235 = vector.extract_strided_slice %183 {offsets = [320, 0], sizes = [32, 64], strides = [1, 1]} : vector<512x64xbf16> to vector<32x64xbf16>
    %c2_274 = arith.constant 2 : index
    %c2_275 = arith.constant 2 : index
    %c0_276 = arith.constant 0 : index
    %c0_277 = arith.constant 0 : index
    %236 = vector.load %arg4[%c2_274, %c2_275, %c0_276, %c0_277] : memref<4x4x64x128xbf16, #tpu.memory_space<vmem>>, vector<1x1x64x128xbf16>
    %237 = vector.shape_cast %236 : vector<1x1x64x128xbf16> to vector<64x128xbf16>
    %cst_278 = arith.constant dense<0.000000e+00> : vector<32x128xf32>
    %238 = tpu.matmul %235, %237, %cst_278 {dimension_numbers = #tpu.dot_dimension_numbers<[1], [0], [0], [1], [0, 0, 1, 1], [], []>} : vector<32x64xbf16>, vector<64x128xbf16>, vector<32x128xf32> -> vector<32x128xf32>
    %239 = arith.addf %234, %238 : vector<32x128xf32>
    %240 = vector.extract_strided_slice %183 {offsets = [352, 0], sizes = [32, 64], strides = [1, 1]} : vector<512x64xbf16> to vector<32x64xbf16>
    %c2_279 = arith.constant 2 : index
    %c3_280 = arith.constant 3 : index
    %c0_281 = arith.constant 0 : index
    %c0_282 = arith.constant 0 : index
    %241 = vector.load %arg4[%c2_279, %c3_280, %c0_281, %c0_282] : memref<4x4x64x128xbf16, #tpu.memory_space<vmem>>, vector<1x1x64x128xbf16>
    %242 = vector.shape_cast %241 : vector<1x1x64x128xbf16> to vector<64x128xbf16>
    %cst_283 = arith.constant dense<0.000000e+00> : vector<32x128xf32>
    %243 = tpu.matmul %240, %242, %cst_283 {dimension_numbers = #tpu.dot_dimension_numbers<[1], [0], [0], [1], [0, 0, 1, 1], [], []>} : vector<32x64xbf16>, vector<64x128xbf16>, vector<32x128xf32> -> vector<32x128xf32>
    %244 = arith.addf %239, %243 : vector<32x128xf32>
    %245 = vector.extract_strided_slice %183 {offsets = [384, 0], sizes = [32, 64], strides = [1, 1]} : vector<512x64xbf16> to vector<32x64xbf16>
    %c3_284 = arith.constant 3 : index
    %c0_285 = arith.constant 0 : index
    %c0_286 = arith.constant 0 : index
    %c0_287 = arith.constant 0 : index
    %246 = vector.load %arg4[%c3_284, %c0_285, %c0_286, %c0_287] : memref<4x4x64x128xbf16, #tpu.memory_space<vmem>>, vector<1x1x64x128xbf16>
    %247 = vector.shape_cast %246 : vector<1x1x64x128xbf16> to vector<64x128xbf16>
    %cst_288 = arith.constant dense<0.000000e+00> : vector<32x128xf32>
    %248 = tpu.matmul %245, %247, %cst_288 {dimension_numbers = #tpu.dot_dimension_numbers<[1], [0], [0], [1], [0, 0, 1, 1], [], []>} : vector<32x64xbf16>, vector<64x128xbf16>, vector<32x128xf32> -> vector<32x128xf32>
    %249 = arith.addf %244, %248 : vector<32x128xf32>
    %250 = vector.extract_strided_slice %183 {offsets = [416, 0], sizes = [32, 64], strides = [1, 1]} : vector<512x64xbf16> to vector<32x64xbf16>
    %c3_289 = arith.constant 3 : index
    %c1_290 = arith.constant 1 : index
    %c0_291 = arith.constant 0 : index
    %c0_292 = arith.constant 0 : index
    %251 = vector.load %arg4[%c3_289, %c1_290, %c0_291, %c0_292] : memref<4x4x64x128xbf16, #tpu.memory_space<vmem>>, vector<1x1x64x128xbf16>
    %252 = vector.shape_cast %251 : vector<1x1x64x128xbf16> to vector<64x128xbf16>
    %cst_293 = arith.constant dense<0.000000e+00> : vector<32x128xf32>
    %253 = tpu.matmul %250, %252, %cst_293 {dimension_numbers = #tpu.dot_dimension_numbers<[1], [0], [0], [1], [0, 0, 1, 1], [], []>} : vector<32x64xbf16>, vector<64x128xbf16>, vector<32x128xf32> -> vector<32x128xf32>
    %254 = arith.addf %249, %253 : vector<32x128xf32>
    %255 = vector.extract_strided_slice %183 {offsets = [448, 0], sizes = [32, 64], strides = [1, 1]} : vector<512x64xbf16> to vector<32x64xbf16>
    %c3_294 = arith.constant 3 : index
    %c2_295 = arith.constant 2 : index
    %c0_296 = arith.constant 0 : index
    %c0_297 = arith.constant 0 : index
    %256 = vector.load %arg4[%c3_294, %c2_295, %c0_296, %c0_297] : memref<4x4x64x128xbf16, #tpu.memory_space<vmem>>, vector<1x1x64x128xbf16>
    %257 = vector.shape_cast %256 : vector<1x1x64x128xbf16> to vector<64x128xbf16>
    %cst_298 = arith.constant dense<0.000000e+00> : vector<32x128xf32>
    %258 = tpu.matmul %255, %257, %cst_298 {dimension_numbers = #tpu.dot_dimension_numbers<[1], [0], [0], [1], [0, 0, 1, 1], [], []>} : vector<32x64xbf16>, vector<64x128xbf16>, vector<32x128xf32> -> vector<32x128xf32>
    %259 = arith.addf %254, %258 : vector<32x128xf32>
    %260 = vector.extract_strided_slice %183 {offsets = [480, 0], sizes = [32, 64], strides = [1, 1]} : vector<512x64xbf16> to vector<32x64xbf16>
    %c3_299 = arith.constant 3 : index
    %c3_300 = arith.constant 3 : index
    %c0_301 = arith.constant 0 : index
    %c0_302 = arith.constant 0 : index
    %261 = vector.load %arg4[%c3_299, %c3_300, %c0_301, %c0_302] : memref<4x4x64x128xbf16, #tpu.memory_space<vmem>>, vector<1x1x64x128xbf16>
    %262 = vector.shape_cast %261 : vector<1x1x64x128xbf16> to vector<64x128xbf16>
    %cst_303 = arith.constant dense<0.000000e+00> : vector<32x128xf32>
    %263 = tpu.matmul %260, %262, %cst_303 {dimension_numbers = #tpu.dot_dimension_numbers<[1], [0], [0], [1], [0, 0, 1, 1], [], []>} : vector<32x64xbf16>, vector<64x128xbf16>, vector<32x128xf32> -> vector<32x128xf32>
    %264 = arith.addf %259, %263 : vector<32x128xf32>
    %c0_304 = arith.constant 0 : index
    %c0_305 = arith.constant 0 : index
    %265 = vector.load %arg8[%c0_304, %c0_305] : memref<1x128xf32, #tpu.memory_space<vmem>>, vector<1x128xf32>
    %266 = vector.broadcast %265 : vector<1x128xf32> to vector<32x128xf32>
    %267 = arith.addf %264, %266 : vector<32x128xf32>
    %cst_306 = arith.constant 1.000000e-01 : f32
    %268 = vector.broadcast %cst_306 : f32 to vector<32x128xf32>
    %269 = arith.mulf %268, %267 : vector<32x128xf32>
    %270 = arith.maximumf %267, %269 : vector<32x128xf32>
    %271 = arith.truncf %270 : vector<32x128xf32> to vector<32x128xbf16>
    %c0_307 = arith.constant 0 : index
    %c0_308 = arith.constant 0 : index
    %272 = vector.load %arg5[%c0_307, %c0_308] : memref<128x1024xbf16, #tpu.memory_space<vmem>>, vector<128x1024xbf16>
    %cst_309 = arith.constant dense<0.000000e+00> : vector<32x1024xf32>
    %273 = tpu.matmul %271, %272, %cst_309 {dimension_numbers = #tpu.dot_dimension_numbers<[1], [0], [0], [1], [0, 0, 1, 1], [], []>} : vector<32x128xbf16>, vector<128x1024xbf16>, vector<32x1024xf32> -> vector<32x1024xf32>
    %c0_310 = arith.constant 0 : index
    %c0_311 = arith.constant 0 : index
    %274 = vector.load %arg9[%c0_310, %c0_311] : memref<1x1024xf32, #tpu.memory_space<vmem>>, vector<1x1024xf32>
    %275 = vector.broadcast %274 : vector<1x1024xf32> to vector<32x1024xf32>
    %276 = arith.addf %273, %275 : vector<32x1024xf32>
    %cst_312 = arith.constant 0.000000e+00 : f32
    %277 = vector.broadcast %cst_312 : f32 to vector<32x1024xf32>
    %278 = arith.maximumf %276, %277 : vector<32x1024xf32>
    %c0_313 = arith.constant 0 : index
    %c0_314 = arith.constant 0 : index
    %279 = vector.load %arg10[%c0_313, %c0_314] : memref<32x1024xf32, #tpu.memory_space<vmem>>, vector<32x1024xf32>
    tpu.vector_store %arg10[%c0_313, %c0_314], %278 {strides = array<i32>} : memref<32x1024xf32, #tpu.memory_space<vmem>>, vector<32x1024xf32>,
    return
  }
  func.func @transform_0(%arg0: i32) -> (i32, i32, i32, i32, i32) {
    %c0_i32 = arith.constant 0 : i32
    %c0_i32_0 = arith.constant 0 : i32
    %c0_i32_1 = arith.constant 0 : i32
    %c0_i32_2 = arith.constant 0 : i32
    %c0_i32_3 = arith.constant 0 : i32
    return %c0_i32, %c0_i32_0, %c0_i32_1, %arg0, %c0_i32_2 : i32, i32, i32, i32, i32
  }
  func.func @transform_1(%arg0: i32) -> (i32, i32) {
    %c0_i32 = arith.constant 0 : i32
    %c0_i32_0 = arith.constant 0 : i32
    %c0_i32_1 = arith.constant 0 : i32
    return %c0_i32, %c0_i32_0 : i32, i32
  }
  func.func @transform_2(%arg0: i32) -> (i32, i32, i32, i32) {
    %c0_i32 = arith.constant 0 : i32
    %c0_i32_0 = arith.constant 0 : i32
    %c0_i32_1 = arith.constant 0 : i32
    %c0_i32_2 = arith.constant 0 : i32
    %c0_i32_3 = arith.constant 0 : i32
    return %c0_i32, %c0_i32_0, %c0_i32_1, %c0_i32_2 : i32, i32, i32, i32
  }
  func.func @transform_3(%arg0: i32) -> (i32, i32, i32, i32) {
    %c0_i32 = arith.constant 0 : i32
    %c0_i32_0 = arith.constant 0 : i32
    %c0_i32_1 = arith.constant 0 : i32
    %c0_i32_2 = arith.constant 0 : i32
    %c0_i32_3 = arith.constant 0 : i32
    return %c0_i32, %c0_i32_0, %c0_i32_1, %c0_i32_2 : i32, i32, i32, i32
  }
  func.func @transform_4(%arg0: i32) -> (i32, i32) {
    %c0_i32 = arith.constant 0 : i32
    %c0_i32_0 = arith.constant 0 : i32
    %c0_i32_1 = arith.constant 0 : i32
    return %c0_i32, %c0_i32_0 : i32, i32
  }
  func.func @transform_5(%arg0: i32) -> (i32, i32) {
    %c0_i32 = arith.constant 0 : i32
    %c0_i32_0 = arith.constant 0 : i32
    %c0_i32_1 = arith.constant 0 : i32
    return %c0_i32, %c0_i32_0 : i32, i32
  }
  func.func @transform_6(%arg0: i32) -> (i32, i32) {
    %c0_i32 = arith.constant 0 : i32
    %c0_i32_0 = arith.constant 0 : i32
    %c0_i32_1 = arith.constant 0 : i32
    return %c0_i32, %c0_i32_0 : i32, i32
  }
  func.func @transform_7(%arg0: i32) -> (i32, i32) {
    %c0_i32 = arith.constant 0 : i32
    %c0_i32_0 = arith.constant 0 : i32
    %c0_i32_1 = arith.constant 0 : i32
    return %c0_i32, %c0_i32_0 : i32, i32
  }
  func.func @transform_8(%arg0: i32) -> (i32, i32) {
    %c0_i32 = arith.constant 0 : i32
    %c0_i32_0 = arith.constant 0 : i32
    %c0_i32_1 = arith.constant 0 : i32
    return %c0_i32, %c0_i32_0 : i32, i32
  }
  func.func @transform_9(%arg0: i32) -> (i32, i32) {
    %c0_i32 = arith.constant 0 : i32
    %c0_i32_0 = arith.constant 0 : i32
    return %arg0, %c0_i32 : i32, i32
  }
}

</mosaic_0001>

<bundles_post_ra>
// kernel: cnn_encoder_forward.1
= control target key start
LH: loop header
LB: loop body
LE: loop exit
PB: predicated region body
PF: predicated region fallthrough
CT: control target
= control target key end

     0   :  { %s22892_s30 = smov 0   ;;  %s22894_s10 = smov 0   ;;  %s26453_s0 = inlined_call_operand.vmem [shape: bf16[4,5,5,64,16], index: 0, kind: input, shape index: {}]   ;;  %s26454_s1 = inlined_call_operand.vmem [shape: bf16[16,32], index: 1, kind: input, shape index: {}]   ;;  %s26455_s2 = inlined_call_operand.vmem [shape: bf16[4,4,32,64], index: 2, kind: input, shape index: {}]   ;;  %s26456_s3 = inlined_call_operand.vmem [shape: bf16[4,4,64,128], index: 3, kind: input, shape index: {}]   ;;  %s26457_s4 = inlined_call_operand.vmem [shape: bf16[128,1024], index: 4, kind: input, shape index: {}]   ;;  %s26458_s5 = inlined_call_operand.vmem [shape: f32[1,32], index: 5, kind: input, shape index: {}]   ;;  %s26459_s6 = inlined_call_operand.vmem [shape: f32[1,64], index: 6, kind: input, shape index: {}]   ;;  %s26460_s7 = inlined_call_operand.vmem [shape: f32[1,128], index: 7, kind: input, shape index: {}]   ;;  %s26461_s8 = inlined_call_operand.vmem [shape: f32[1,1024], index: 8, kind: input, shape index: {}]   ;;  %s26462_s9 = inlined_call_operand.vmem [shape: f32[64,1024], index: 9, kind: output, shape index: {}]  }
   0x1   :  { %s22896_s11 = smov 0  }
   0x2 LB: > { %s17309_s12 = sadd.s32 4294967295, %s22839_s11   ;;  %s22909_s13 = sadd.s32 1, %s22839_s11   ;;  %s22839_s11 = sphi %s22896_s11, %s26574_s11   ;;  %s22835_s10 = sphi %s22894_s10, %s26573_s10   ;;  %s22831_s30 = sphi %s22892_s30, %s26572_s30  }
   0x3   : > { %s23_s14 = ssub.s32 %s22839_s11, %s22909_s13  ;;  %s26_s15 = sadd.s32 1, %s22835_s10 }
   0x4   : > { %p24_p0 = scmp.eq.s32.totalorder %s23_s14, 0  ;;  %p33_p1 = scmp.ne.s32.totalorder %s22835_s10, %s22831_s30 }
   0x5   : > { %p34_p2 = scmp.eq.s32.totalorder %s22839_s11, 0  ;;  %p17312_p4 = scmp.ge.s32.totalorder %s22839_s11, 2 }
   0x6   : > { %s22918_s16 = scalar_select %p24_p0, %s22835_s10, %s26_s15  }
   0x7   : > { %p35_p3 = por %p34_p2, %p33_p1  ;;  %277 = sbr.rel (%p17312_p4) target bundleno = 118 (0x76), region = 48 }
   0xe   : > { %280 = sbr.rel (!%p35_p3) target bundleno = 118 (0x76), region = 52  ;;  %s282_s17 = sand.u32 (%p35_p3), 1, %s22835_s10  }
   0xf   : > { %s18915_s18 = sshll.u32 (%p35_p3), %s22839_s11, 4  ;;  %s22473_s19 = smul.u32 (%p35_p3), 1600, %s282_s17 }
  0x10   : > { %s22926_s22 = scalar_lea.vmem (%p35_p3), %s26453_s0, %s18915_s18 }
  0x11   : > { %v303_v0 = vld [vmem:[%s22926_s22] sm:$0xff] (%p35_p3)   ;;  %v307_v1 = vld [vmem:[%s22926_s22 + $0x8] sm:$0xff] (%p35_p3)   ;;  %s22934_s23 = scalar_lea.vmem (%p35_p3), [#allocation3], %s22473_s19 }
  0x12   : > { %v311_v2 = vld [vmem:[%s22926_s22 + $0x20] sm:$0xff] (%p35_p3)   ;;  %v315_v3 = vld [vmem:[%s22926_s22 + $0x28] sm:$0xff] (%p35_p3)   ;;  %304 = vst [vmem:[%s22934_s23] sm:$0xff] (%p35_p3), %v303_v0   ;;  %308 = vst [vmem:[%s22934_s23 + $0x8] sm:$0xff] (%p35_p3), %v307_v1  }
  0x13   : > { %v319_v4 = vld [vmem:[%s22926_s22 + $0x40] sm:$0xff] (%p35_p3)   ;;  %v323_v5 = vld [vmem:[%s22926_s22 + $0x48] sm:$0xff] (%p35_p3)   ;;  %312 = vst [vmem:[%s22934_s23 + $0x10] sm:$0xff] (%p35_p3), %v311_v2   ;;  %316 = vst [vmem:[%s22934_s23 + $0x18] sm:$0xff] (%p35_p3), %v315_v3  }
  0x14   : > { %320 = vst [vmem:[%s22934_s23 + $0x20] sm:$0xff] (%p35_p3), %v319_v4   ;;  %324 = vst [vmem:[%s22934_s23 + $0x28] sm:$0xff] (%p35_p3), %v323_v5   ;;  %v327_v6 = vld [vmem:[%s22926_s22 + $0x60] sm:$0xff] (%p35_p3)   ;;  %v331_v7 = vld [vmem:[%s22926_s22 + $0x68] sm:$0xff] (%p35_p3)  }
  0x15   : > { %v335_v8 = vld [vmem:[%s22926_s22 + $0x80] sm:$0xff]   ;;  %328 = vst [vmem:[%s22934_s23 + $0x30] sm:$0xff] %v327_v6   ;;  %332 = vst [vmem:[%s22934_s23 + $0x38] sm:$0xff] %v331_v7   ;;  %v339_v9 = vld [vmem:[%s22926_s22 + $0x88] sm:$0xff]  }
  0x16   : > { %336 = vst [vmem:[%s22934_s23 + $0x40] sm:$0xff] %v335_v8   ;;  %v343_v10 = vld [vmem:[%s22926_s22 + $0xa0] sm:$0xff]   ;;  %v347_v11 = vld [vmem:[%s22926_s22 + $0xa8] sm:$0xff]   ;;  %340 = vst [vmem:[%s22934_s23 + $0x48] sm:$0xff] %v339_v9  }
  0x17   : > { %344 = vst [vmem:[%s22934_s23 + $0x50] sm:$0xff] %v343_v10   ;;  %348 = vst [vmem:[%s22934_s23 + $0x58] sm:$0xff] %v347_v11   ;;  %v351_v12 = vld [vmem:[%s22926_s22 + $0xc0] sm:$0xff]   ;;  %v355_v13 = vld [vmem:[%s22926_s22 + $0xc8] sm:$0xff]  }
  0x18   : > { %v359_v14 = vld [vmem:[%s22926_s22 + $0xe0] sm:$0xff]   ;;  %352 = vst [vmem:[%s22934_s23 + $0x60] sm:$0xff] %v351_v12   ;;  %356 = vst [vmem:[%s22934_s23 + $0x68] sm:$0xff] %v355_v13   ;;  %v363_v15 = vld [vmem:[%s22926_s22 + $0xe8] sm:$0xff]  }
  0x19   : > { %360 = vst [vmem:[%s22934_s23 + $0x70] sm:$0xff] %v359_v14   ;;  %v367_v16 = vld [vmem:[%s22926_s22 + $0x100] sm:$0xff]   ;;  %v371_v17 = vld [vmem:[%s22926_s22 + $0x108] sm:$0xff]   ;;  %364 = vst [vmem:[%s22934_s23 + $0x78] sm:$0xff] %v363_v15  }
  0x1a   : > { %368 = vst [vmem:[%s22934_s23 + $0x80] sm:$0xff] %v367_v16   ;;  %372 = vst [vmem:[%s22934_s23 + $0x88] sm:$0xff] %v371_v17   ;;  %v375_v18 = vld [vmem:[%s22926_s22 + $0x120] sm:$0xff]   ;;  %v379_v19 = vld [vmem:[%s22926_s22 + $0x128] sm:$0xff]  }
  0x1b   : > { %v383_v20 = vld [vmem:[%s22926_s22 + $0x140] sm:$0xff]   ;;  %376 = vst [vmem:[%s22934_s23 + $0x90] sm:$0xff] %v375_v18   ;;  %380 = vst [vmem:[%s22934_s23 + $0x98] sm:$0xff] %v379_v19   ;;  %v387_v21 = vld [vmem:[%s22926_s22 + $0x148] sm:$0xff]  }
  0x1c   : > { %384 = vst [vmem:[%s22934_s23 + $0xa0] sm:$0xff] %v383_v20   ;;  %v391_v22 = vld [vmem:[%s22926_s22 + $0x160] sm:$0xff]   ;;  %v395_v23 = vld [vmem:[%s22926_s22 + $0x168] sm:$0xff]   ;;  %388 = vst [vmem:[%s22934_s23 + $0xa8] sm:$0xff] %v387_v21  }
  0x1d   : > { %392 = vst [vmem:[%s22934_s23 + $0xb0] sm:$0xff] %v391_v22   ;;  %396 = vst [vmem:[%s22934_s23 + $0xb8] sm:$0xff] %v395_v23   ;;  %v399_v24 = vld [vmem:[%s22926_s22 + $0x180] sm:$0xff]   ;;  %v403_v25 = vld [vmem:[%s22926_s22 + $0x188] sm:$0xff]  }
  0x1e   : > { %v407_v26 = vld [vmem:[%s22926_s22 + $0x1a0] sm:$0xff]   ;;  %400 = vst [vmem:[%s22934_s23 + $0xc0] sm:$0xff] %v399_v24   ;;  %404 = vst [vmem:[%s22934_s23 + $0xc8] sm:$0xff] %v403_v25   ;;  %v411_v27 = vld [vmem:[%s22926_s22 + $0x1a8] sm:$0xff]  }
  0x1f   : > { %408 = vst [vmem:[%s22934_s23 + $0xd0] sm:$0xff] %v407_v26   ;;  %v415_v28 = vld [vmem:[%s22926_s22 + $0x1c0] sm:$0xff]   ;;  %v419_v29 = vld [vmem:[%s22926_s22 + $0x1c8] sm:$0xff]   ;;  %412 = vst [vmem:[%s22934_s23 + $0xd8] sm:$0xff] %v411_v27  }
  0x20   : > { %416 = vst [vmem:[%s22934_s23 + $0xe0] sm:$0xff] %v415_v28   ;;  %420 = vst [vmem:[%s22934_s23 + $0xe8] sm:$0xff] %v419_v29   ;;  %v423_v30 = vld [vmem:[%s22926_s22 + $0x1e0] sm:$0xff]   ;;  %v427_v31 = vld [vmem:[%s22926_s22 + $0x1e8] sm:$0xff]  }
  0x21   : > { %v431_v32 = vld [vmem:[%s22926_s22 + $0x200] sm:$0xff]   ;;  %424 = vst [vmem:[%s22934_s23 + $0xf0] sm:$0xff] %v423_v30   ;;  %428 = vst [vmem:[%s22934_s23 + $0xf8] sm:$0xff] %v427_v31   ;;  %v435_v33 = vld [vmem:[%s22926_s22 + $0x208] sm:$0xff]  }
  0x22   : > { %432 = vst [vmem:[%s22934_s23 + $0x100] sm:$0xff] %v431_v32   ;;  %v439_v34 = vld [vmem:[%s22926_s22 + $0x220] sm:$0xff]   ;;  %v443_v35 = vld [vmem:[%s22926_s22 + $0x228] sm:$0xff]   ;;  %436 = vst [vmem:[%s22934_s23 + $0x108] sm:$0xff] %v435_v33  }
  0x23   : > { %440 = vst [vmem:[%s22934_s23 + $0x110] sm:$0xff] %v439_v34   ;;  %444 = vst [vmem:[%s22934_s23 + $0x118] sm:$0xff] %v443_v35   ;;  %v447_v36 = vld [vmem:[%s22926_s22 + $0x240] sm:$0xff]   ;;  %v451_v37 = vld [vmem:[%s22926_s22 + $0x248] sm:$0xff]  }
  0x24   : > { %v455_v38 = vld [vmem:[%s22926_s22 + $0x260] sm:$0xff]   ;;  %448 = vst [vmem:[%s22934_s23 + $0x120] sm:$0xff] %v447_v36   ;;  %452 = vst [vmem:[%s22934_s23 + $0x128] sm:$0xff] %v451_v37   ;;  %v459_v39 = vld [vmem:[%s22926_s22 + $0x268] sm:$0xff]  }
  0x25   : > { %456 = vst [vmem:[%s22934_s23 + $0x130] sm:$0xff] %v455_v38   ;;  %v463_v40 = vld [vmem:[%s22926_s22 + $0x280] sm:$0xff]   ;;  %v467_v41 = vld [vmem:[%s22926_s22 + $0x288] sm:$0xff]   ;;  %460 = vst [vmem:[%s22934_s23 + $0x138] sm:$0xff] %v459_v39  }
  0x26   : > { %464 = vst [vmem:[%s22934_s23 + $0x140] sm:$0xff] %v463_v40   ;;  %468 = vst [vmem:[%s22934_s23 + $0x148] sm:$0xff] %v467_v41   ;;  %v471_v42 = vld [vmem:[%s22926_s22 + $0x2a0] sm:$0xff]   ;;  %v475_v43 = vld [vmem:[%s22926_s22 + $0x2a8] sm:$0xff]  }
  0x27   : > { %v479_v44 = vld [vmem:[%s22926_s22 + $0x2c0] sm:$0xff]   ;;  %472 = vst [vmem:[%s22934_s23 + $0x150] sm:$0xff] %v471_v42   ;;  %476 = vst [vmem:[%s22934_s23 + $0x158] sm:$0xff] %v475_v43   ;;  %v483_v45 = vld [vmem:[%s22926_s22 + $0x2c8] sm:$0xff]  }
  0x28   : > { %480 = vst [vmem:[%s22934_s23 + $0x160] sm:$0xff] %v479_v44   ;;  %v487_v46 = vld [vmem:[%s22926_s22 + $0x2e0] sm:$0xff]   ;;  %v491_v47 = vld [vmem:[%s22926_s22 + $0x2e8] sm:$0xff]   ;;  %484 = vst [vmem:[%s22934_s23 + $0x168] sm:$0xff] %v483_v45  }
  0x29   : > { %488 = vst [vmem:[%s22934_s23 + $0x170] sm:$0xff] %v487_v46   ;;  %492 = vst [vmem:[%s22934_s23 + $0x178] sm:$0xff] %v491_v47   ;;  %v495_v48 = vld [vmem:[%s22926_s22 + $0x300] sm:$0xff]   ;;  %v499_v49 = vld [vmem:[%s22926_s22 + $0x308] sm:$0xff]  }
  0x2a   : > { %v503_v50 = vld [vmem:[%s22926_s22 + $0x320] sm:$0xff]   ;;  %496 = vst [vmem:[%s22934_s23 + $0x180] sm:$0xff] %v495_v48   ;;  %500 = vst [vmem:[%s22934_s23 + $0x188] sm:$0xff] %v499_v49   ;;  %v507_v51 = vld [vmem:[%s22926_s22 + $0x328] sm:$0xff]  }
  0x2b   : > { %504 = vst [vmem:[%s22934_s23 + $0x190] sm:$0xff] %v503_v50   ;;  %v511_v52 = vld [vmem:[%s22926_s22 + $0x340] sm:$0xff]   ;;  %v515_v53 = vld [vmem:[%s22926_s22 + $0x348] sm:$0xff]   ;;  %508 = vst [vmem:[%s22934_s23 + $0x198] sm:$0xff] %v507_v51  }
  0x2c   : > { %512 = vst [vmem:[%s22934_s23 + $0x1a0] sm:$0xff] %v511_v52   ;;  %516 = vst [vmem:[%s22934_s23 + $0x1a8] sm:$0xff] %v515_v53   ;;  %v519_v54 = vld [vmem:[%s22926_s22 + $0x360] sm:$0xff]   ;;  %v523_v55 = vld [vmem:[%s22926_s22 + $0x368] sm:$0xff]  }
  0x2d   : > { %v527_v56 = vld [vmem:[%s22926_s22 + $0x380] sm:$0xff]   ;;  %520 = vst [vmem:[%s22934_s23 + $0x1b0] sm:$0xff] %v519_v54   ;;  %524 = vst [vmem:[%s22934_s23 + $0x1b8] sm:$0xff] %v523_v55   ;;  %v531_v57 = vld [vmem:[%s22926_s22 + $0x388] sm:$0xff]  }
  0x2e   : > { %528 = vst [vmem:[%s22934_s23 + $0x1c0] sm:$0xff] %v527_v56   ;;  %v535_v58 = vld [vmem:[%s22926_s22 + $0x3a0] sm:$0xff]   ;;  %v539_v59 = vld [vmem:[%s22926_s22 + $0x3a8] sm:$0xff]   ;;  %532 = vst [vmem:[%s22934_s23 + $0x1c8] sm:$0xff] %v531_v57  }
  0x2f   : > { %536 = vst [vmem:[%s22934_s23 + $0x1d0] sm:$0xff] %v535_v58   ;;  %540 = vst [vmem:[%s22934_s23 + $0x1d8] sm:$0xff] %v539_v59   ;;  %v543_v60 = vld [vmem:[%s22926_s22 + $0x3c0] sm:$0xff]   ;;  %v547_v61 = vld [vmem:[%s22926_s22 + $0x3c8] sm:$0xff]  }
  0x30   : > { %v551_v62 = vld [vmem:[%s22926_s22 + $0x3e0] sm:$0xff]   ;;  %544 = vst [vmem:[%s22934_s23 + $0x1e0] sm:$0xff] %v543_v60   ;;  %548 = vst [vmem:[%s22934_s23 + $0x1e8] sm:$0xff] %v547_v61   ;;  %v555_v63 = vld [vmem:[%s22926_s22 + $0x3e8] sm:$0xff]  }
  0x31   : > { %552 = vst [vmem:[%s22934_s23 + $0x1f0] sm:$0xff] %v551_v62   ;;  %v559_v0 = vld [vmem:[%s22926_s22 + $0x400] sm:$0xff]   ;;  %v563_v1 = vld [vmem:[%s22926_s22 + $0x408] sm:$0xff]   ;;  %556 = vst [vmem:[%s22934_s23 + $0x1f8] sm:$0xff] %v555_v63  }
  0x32   : > { %560 = vst [vmem:[%s22934_s23 + $0x200] sm:$0xff] %v559_v0   ;;  %564 = vst [vmem:[%s22934_s23 + $0x208] sm:$0xff] %v563_v1   ;;  %v567_v2 = vld [vmem:[%s22926_s22 + $0x420] sm:$0xff]   ;;  %v571_v3 = vld [vmem:[%s22926_s22 + $0x428] sm:$0xff]  }
  0x33   : > { %v575_v4 = vld [vmem:[%s22926_s22 + $0x440] sm:$0xff]   ;;  %568 = vst [vmem:[%s22934_s23 + $0x210] sm:$0xff] %v567_v2   ;;  %572 = vst [vmem:[%s22934_s23 + $0x218] sm:$0xff] %v571_v3   ;;  %v579_v5 = vld [vmem:[%s22926_s22 + $0x448] sm:$0xff]  }
  0x34   : > { %576 = vst [vmem:[%s22934_s23 + $0x220] sm:$0xff] %v575_v4   ;;  %v583_v6 = vld [vmem:[%s22926_s22 + $0x460] sm:$0xff]   ;;  %v587_v7 = vld [vmem:[%s22926_s22 + $0x468] sm:$0xff]   ;;  %580 = vst [vmem:[%s22934_s23 + $0x228] sm:$0xff] %v579_v5  }
  0x35   : > { %584 = vst [vmem:[%s22934_s23 + $0x230] sm:$0xff] %v583_v6   ;;  %588 = vst [vmem:[%s22934_s23 + $0x238] sm:$0xff] %v587_v7   ;;  %v591_v8 = vld [vmem:[%s22926_s22 + $0x480] sm:$0xff]   ;;  %v595_v9 = vld [vmem:[%s22926_s22 + $0x488] sm:$0xff]  }
  0x36   : > { %v599_v10 = vld [vmem:[%s22926_s22 + $0x4a0] sm:$0xff]   ;;  %592 = vst [vmem:[%s22934_s23 + $0x240] sm:$0xff] %v591_v8   ;;  %596 = vst [vmem:[%s22934_s23 + $0x248] sm:$0xff] %v595_v9   ;;  %v603_v11 = vld [vmem:[%s22926_s22 + $0x4a8] sm:$0xff]  }
  0x37   : > { %600 = vst [vmem:[%s22934_s23 + $0x250] sm:$0xff] %v599_v10   ;;  %v607_v12 = vld [vmem:[%s22926_s22 + $0x4c0] sm:$0xff]   ;;  %v611_v13 = vld [vmem:[%s22926_s22 + $0x4c8] sm:$0xff]   ;;  %604 = vst [vmem:[%s22934_s23 + $0x258] sm:$0xff] %v603_v11  }
  0x38   : > { %608 = vst [vmem:[%s22934_s23 + $0x260] sm:$0xff] %v607_v12   ;;  %612 = vst [vmem:[%s22934_s23 + $0x268] sm:$0xff] %v611_v13   ;;  %v615_v14 = vld [vmem:[%s22926_s22 + $0x4e0] sm:$0xff]   ;;  %v619_v15 = vld [vmem:[%s22926_s22 + $0x4e8] sm:$0xff]  }
  0x39   : > { %v623_v16 = vld [vmem:[%s22926_s22 + $0x500] sm:$0xff]   ;;  %616 = vst [vmem:[%s22934_s23 + $0x270] sm:$0xff] %v615_v14   ;;  %620 = vst [vmem:[%s22934_s23 + $0x278] sm:$0xff] %v619_v15   ;;  %v627_v17 = vld [vmem:[%s22926_s22 + $0x508] sm:$0xff]  }
  0x3a   : > { %624 = vst [vmem:[%s22934_s23 + $0x280] sm:$0xff] %v623_v16   ;;  %v631_v18 = vld [vmem:[%s22926_s22 + $0x520] sm:$0xff]   ;;  %v635_v19 = vld [vmem:[%s22926_s22 + $0x528] sm:$0xff]   ;;  %628 = vst [vmem:[%s22934_s23 + $0x288] sm:$0xff] %v627_v17  }
  0x3b   : > { %632 = vst [vmem:[%s22934_s23 + $0x290] sm:$0xff] %v631_v18   ;;  %636 = vst [vmem:[%s22934_s23 + $0x298] sm:$0xff] %v635_v19   ;;  %v639_v20 = vld [vmem:[%s22926_s22 + $0x540] sm:$0xff]   ;;  %v643_v21 = vld [vmem:[%s22926_s22 + $0x548] sm:$0xff]  }
  0x3c   : > { %v647_v22 = vld [vmem:[%s22926_s22 + $0x560] sm:$0xff]   ;;  %640 = vst [vmem:[%s22934_s23 + $0x2a0] sm:$0xff] %v639_v20   ;;  %644 = vst [vmem:[%s22934_s23 + $0x2a8] sm:$0xff] %v643_v21   ;;  %v651_v23 = vld [vmem:[%s22926_s22 + $0x568] sm:$0xff]  }
  0x3d   : > { %648 = vst [vmem:[%s22934_s23 + $0x2b0] sm:$0xff] %v647_v22   ;;  %v655_v24 = vld [vmem:[%s22926_s22 + $0x580] sm:$0xff]   ;;  %v659_v25 = vld [vmem:[%s22926_s22 + $0x588] sm:$0xff]   ;;  %652 = vst [vmem:[%s22934_s23 + $0x2b8] sm:$0xff] %v651_v23  }
  0x3e   : > { %656 = vst [vmem:[%s22934_s23 + $0x2c0] sm:$0xff] %v655_v24   ;;  %660 = vst [vmem:[%s22934_s23 + $0x2c8] sm:$0xff] %v659_v25   ;;  %v663_v26 = vld [vmem:[%s22926_s22 + $0x5a0] sm:$0xff]   ;;  %v667_v27 = vld [vmem:[%s22926_s22 + $0x5a8] sm:$0xff]  }
  0x3f   : > { %v671_v28 = vld [vmem:[%s22926_s22 + $0x5c0] sm:$0xff]   ;;  %664 = vst [vmem:[%s22934_s23 + $0x2d0] sm:$0xff] %v663_v26   ;;  %668 = vst [vmem:[%s22934_s23 + $0x2d8] sm:$0xff] %v667_v27   ;;  %v675_v29 = vld [vmem:[%s22926_s22 + $0x5c8] sm:$0xff]  }
  0x40   : > { %672 = vst [vmem:[%s22934_s23 + $0x2e0] sm:$0xff] %v671_v28   ;;  %v679_v30 = vld [vmem:[%s22926_s22 + $0x5e0] sm:$0xff]   ;;  %v683_v31 = vld [vmem:[%s22926_s22 + $0x5e8] sm:$0xff]   ;;  %676 = vst [vmem:[%s22934_s23 + $0x2e8] sm:$0xff] %v675_v29  }
  0x41   : > { %680 = vst [vmem:[%s22934_s23 + $0x2f0] sm:$0xff] %v679_v30   ;;  %684 = vst [vmem:[%s22934_s23 + $0x2f8] sm:$0xff] %v683_v31   ;;  %v687_v32 = vld [vmem:[%s22926_s22 + $0x600] sm:$0xff]   ;;  %v691_v33 = vld [vmem:[%s22926_s22 + $0x608] sm:$0xff]  }
  0x42   : > { %v695_v34 = vld [vmem:[%s22926_s22 + $0x620] sm:$0xff]   ;;  %688 = vst [vmem:[%s22934_s23 + $0x300] sm:$0xff] %v687_v32   ;;  %692 = vst [vmem:[%s22934_s23 + $0x308] sm:$0xff] %v691_v33   ;;  %v699_v35 = vld [vmem:[%s22926_s22 + $0x628] sm:$0xff]  }
  0x43   : > { %696 = vst [vmem:[%s22934_s23 + $0x310] sm:$0xff] %v695_v34   ;;  %v703_v36 = vld [vmem:[%s22926_s22 + $0x640] sm:$0xff]   ;;  %v707_v37 = vld [vmem:[%s22926_s22 + $0x648] sm:$0xff]   ;;  %700 = vst [vmem:[%s22934_s23 + $0x318] sm:$0xff] %v699_v35  }
  0x44   : > { %704 = vst [vmem:[%s22934_s23 + $0x320] sm:$0xff] %v703_v36   ;;  %708 = vst [vmem:[%s22934_s23 + $0x328] sm:$0xff] %v707_v37   ;;  %v711_v38 = vld [vmem:[%s22926_s22 + $0x660] sm:$0xff]   ;;  %v715_v39 = vld [vmem:[%s22926_s22 + $0x668] sm:$0xff]  }
  0x45   : > { %v719_v40 = vld [vmem:[%s22926_s22 + $0x680] sm:$0xff]   ;;  %712 = vst [vmem:[%s22934_s23 + $0x330] sm:$0xff] %v711_v38   ;;  %716 = vst [vmem:[%s22934_s23 + $0x338] sm:$0xff] %v715_v39   ;;  %v723_v41 = vld [vmem:[%s22926_s22 + $0x688] sm:$0xff]  }
  0x46   : > { %720 = vst [vmem:[%s22934_s23 + $0x340] sm:$0xff] %v719_v40   ;;  %v727_v42 = vld [vmem:[%s22926_s22 + $0x6a0] sm:$0xff]   ;;  %v731_v43 = vld [vmem:[%s22926_s22 + $0x6a8] sm:$0xff]   ;;  %724 = vst [vmem:[%s22934_s23 + $0x348] sm:$0xff] %v723_v41  }
  0x47   : > { %728 = vst [vmem:[%s22934_s23 + $0x350] sm:$0xff] %v727_v42   ;;  %732 = vst [vmem:[%s22934_s23 + $0x358] sm:$0xff] %v731_v43   ;;  %v735_v44 = vld [vmem:[%s22926_s22 + $0x6c0] sm:$0xff]   ;;  %v739_v45 = vld [vmem:[%s22926_s22 + $0x6c8] sm:$0xff]  }
  0x48   : > { %v743_v46 = vld [vmem:[%s22926_s22 + $0x6e0] sm:$0xff]   ;;  %736 = vst [vmem:[%s22934_s23 + $0x360] sm:$0xff] %v735_v44   ;;  %740 = vst [vmem:[%s22934_s23 + $0x368] sm:$0xff] %v739_v45   ;;  %v747_v47 = vld [vmem:[%s22926_s22 + $0x6e8] sm:$0xff]  }
  0x49   : > { %744 = vst [vmem:[%s22934_s23 + $0x370] sm:$0xff] %v743_v46   ;;  %v751_v48 = vld [vmem:[%s22926_s22 + $0x700] sm:$0xff]   ;;  %v755_v49 = vld [vmem:[%s22926_s22 + $0x708] sm:$0xff]   ;;  %748 = vst [vmem:[%s22934_s23 + $0x378] sm:$0xff] %v747_v47  }
  0x4a   : > { %752 = vst [vmem:[%s22934_s23 + $0x380] sm:$0xff] %v751_v48   ;;  %756 = vst [vmem:[%s22934_s23 + $0x388] sm:$0xff] %v755_v49   ;;  %v759_v50 = vld [vmem:[%s22926_s22 + $0x720] sm:$0xff]   ;;  %v763_v51 = vld [vmem:[%s22926_s22 + $0x728] sm:$0xff]  }
  0x4b   : > { %v767_v52 = vld [vmem:[%s22926_s22 + $0x740] sm:$0xff]   ;;  %760 = vst [vmem:[%s22934_s23 + $0x390] sm:$0xff] %v759_v50   ;;  %764 = vst [vmem:[%s22934_s23 + $0x398] sm:$0xff] %v763_v51   ;;  %v771_v53 = vld [vmem:[%s22926_s22 + $0x748] sm:$0xff]  }
  0x4c   : > { %768 = vst [vmem:[%s22934_s23 + $0x3a0] sm:$0xff] %v767_v52   ;;  %v775_v54 = vld [vmem:[%s22926_s22 + $0x760] sm:$0xff]   ;;  %v779_v55 = vld [vmem:[%s22926_s22 + $0x768] sm:$0xff]   ;;  %772 = vst [vmem:[%s22934_s23 + $0x3a8] sm:$0xff] %v771_v53  }
  0x4d   : > { %776 = vst [vmem:[%s22934_s23 + $0x3b0] sm:$0xff] %v775_v54   ;;  %780 = vst [vmem:[%s22934_s23 + $0x3b8] sm:$0xff] %v779_v55   ;;  %v783_v56 = vld [vmem:[%s22926_s22 + $0x780] sm:$0xff]   ;;  %v787_v57 = vld [vmem:[%s22926_s22 + $0x788] sm:$0xff]  }
  0x4e   : > { %v791_v58 = vld [vmem:[%s22926_s22 + $0x7a0] sm:$0xff]   ;;  %784 = vst [vmem:[%s22934_s23 + $0x3c0] sm:$0xff] %v783_v56   ;;  %788 = vst [vmem:[%s22934_s23 + $0x3c8] sm:$0xff] %v787_v57   ;;  %v795_v59 = vld [vmem:[%s22926_s22 + $0x7a8] sm:$0xff]  }
  0x4f   : > { %792 = vst [vmem:[%s22934_s23 + $0x3d0] sm:$0xff] %v791_v58   ;;  %v799_v60 = vld [vmem:[%s22926_s22 + $0x7c0] sm:$0xff]   ;;  %v803_v61 = vld [vmem:[%s22926_s22 + $0x7c8] sm:$0xff]   ;;  %796 = vst [vmem:[%s22934_s23 + $0x3d8] sm:$0xff] %v795_v59  }
  0x50   : > { %800 = vst [vmem:[%s22934_s23 + $0x3e0] sm:$0xff] %v799_v60   ;;  %804 = vst [vmem:[%s22934_s23 + $0x3e8] sm:$0xff] %v803_v61   ;;  %v807_v62 = vld [vmem:[%s22926_s22 + $0x7e0] sm:$0xff]   ;;  %v811_v63 = vld [vmem:[%s22926_s22 + $0x7e8] sm:$0xff]  }
  0x51   : > { %v815_v0 = vld [vmem:[%s22926_s22 + $0x800] sm:$0xff]   ;;  %808 = vst [vmem:[%s22934_s23 + $0x3f0] sm:$0xff] %v807_v62   ;;  %812 = vst [vmem:[%s22934_s23 + $0x3f8] sm:$0xff] %v811_v63   ;;  %v819_v1 = vld [vmem:[%s22926_s22 + $0x808] sm:$0xff]  }
  0x52   : > { %816 = vst [vmem:[%s22934_s23 + $0x400] sm:$0xff] %v815_v0   ;;  %v823_v2 = vld [vmem:[%s22926_s22 + $0x820] sm:$0xff]   ;;  %v827_v3 = vld [vmem:[%s22926_s22 + $0x828] sm:$0xff]   ;;  %820 = vst [vmem:[%s22934_s23 + $0x408] sm:$0xff] %v819_v1  }
  0x53   : > { %824 = vst [vmem:[%s22934_s23 + $0x410] sm:$0xff] %v823_v2   ;;  %828 = vst [vmem:[%s22934_s23 + $0x418] sm:$0xff] %v827_v3   ;;  %v831_v4 = vld [vmem:[%s22926_s22 + $0x840] sm:$0xff]   ;;  %v835_v5 = vld [vmem:[%s22926_s22 + $0x848] sm:$0xff]  }
  0x54   : > { %v839_v6 = vld [vmem:[%s22926_s22 + $0x860] sm:$0xff]   ;;  %832 = vst [vmem:[%s22934_s23 + $0x420] sm:$0xff] %v831_v4   ;;  %836 = vst [vmem:[%s22934_s23 + $0x428] sm:$0xff] %v835_v5   ;;  %v843_v7 = vld [vmem:[%s22926_s22 + $0x868] sm:$0xff]  }
  0x55   : > { %840 = vst [vmem:[%s22934_s23 + $0x430] sm:$0xff] %v839_v6   ;;  %v847_v8 = vld [vmem:[%s22926_s22 + $0x880] sm:$0xff]   ;;  %v851_v9 = vld [vmem:[%s22926_s22 + $0x888] sm:$0xff]   ;;  %844 = vst [vmem:[%s22934_s23 + $0x438] sm:$0xff] %v843_v7  }
  0x56   : > { %848 = vst [vmem:[%s22934_s23 + $0x440] sm:$0xff] %v847_v8   ;;  %852 = vst [vmem:[%s22934_s23 + $0x448] sm:$0xff] %v851_v9   ;;  %v855_v10 = vld [vmem:[%s22926_s22 + $0x8a0] sm:$0xff]   ;;  %v859_v11 = vld [vmem:[%s22926_s22 + $0x8a8] sm:$0xff]  }
  0x57   : > { %v863_v12 = vld [vmem:[%s22926_s22 + $0x8c0] sm:$0xff]   ;;  %856 = vst [vmem:[%s22934_s23 + $0x450] sm:$0xff] %v855_v10   ;;  %860 = vst [vmem:[%s22934_s23 + $0x458] sm:$0xff] %v859_v11   ;;  %v867_v13 = vld [vmem:[%s22926_s22 + $0x8c8] sm:$0xff]  }
  0x58   : > { %864 = vst [vmem:[%s22934_s23 + $0x460] sm:$0xff] %v863_v12   ;;  %v871_v14 = vld [vmem:[%s22926_s22 + $0x8e0] sm:$0xff]   ;;  %v875_v15 = vld [vmem:[%s22926_s22 + $0x8e8] sm:$0xff]   ;;  %868 = vst [vmem:[%s22934_s23 + $0x468] sm:$0xff] %v867_v13  }
  0x59   : > { %872 = vst [vmem:[%s22934_s23 + $0x470] sm:$0xff] %v871_v14   ;;  %876 = vst [vmem:[%s22934_s23 + $0x478] sm:$0xff] %v875_v15   ;;  %v879_v16 = vld [vmem:[%s22926_s22 + $0x900] sm:$0xff]   ;;  %v883_v17 = vld [vmem:[%s22926_s22 + $0x908] sm:$0xff]  }
  0x5a   : > { %v887_v18 = vld [vmem:[%s22926_s22 + $0x920] sm:$0xff]   ;;  %880 = vst [vmem:[%s22934_s23 + $0x480] sm:$0xff] %v879_v16   ;;  %884 = vst [vmem:[%s22934_s23 + $0x488] sm:$0xff] %v883_v17   ;;  %v891_v19 = vld [vmem:[%s22926_s22 + $0x928] sm:$0xff]  }
  0x5b   : > { %888 = vst [vmem:[%s22934_s23 + $0x490] sm:$0xff] %v887_v18   ;;  %v895_v20 = vld [vmem:[%s22926_s22 + $0x940] sm:$0xff]   ;;  %v899_v21 = vld [vmem:[%s22926_s22 + $0x948] sm:$0xff]   ;;  %892 = vst [vmem:[%s22934_s23 + $0x498] sm:$0xff] %v891_v19  }
  0x5c   : > { %896 = vst [vmem:[%s22934_s23 + $0x4a0] sm:$0xff] %v895_v20   ;;  %900 = vst [vmem:[%s22934_s23 + $0x4a8] sm:$0xff] %v899_v21   ;;  %v903_v22 = vld [vmem:[%s22926_s22 + $0x960] sm:$0xff]   ;;  %v907_v23 = vld [vmem:[%s22926_s22 + $0x968] sm:$0xff]  }
  0x5d   : > { %v911_v24 = vld [vmem:[%s22926_s22 + $0x980] sm:$0xff]   ;;  %904 = vst [vmem:[%s22934_s23 + $0x4b0] sm:$0xff] %v903_v22   ;;  %908 = vst [vmem:[%s22934_s23 + $0x4b8] sm:$0xff] %v907_v23   ;;  %v915_v25 = vld [vmem:[%s22926_s22 + $0x988] sm:$0xff]  }
  0x5e   : > { %912 = vst [vmem:[%s22934_s23 + $0x4c0] sm:$0xff] %v911_v24   ;;  %v919_v26 = vld [vmem:[%s22926_s22 + $0x9a0] sm:$0xff]   ;;  %v923_v27 = vld [vmem:[%s22926_s22 + $0x9a8] sm:$0xff]   ;;  %916 = vst [vmem:[%s22934_s23 + $0x4c8] sm:$0xff] %v915_v25  }
  0x5f   : > { %920 = vst [vmem:[%s22934_s23 + $0x4d0] sm:$0xff] %v919_v26   ;;  %924 = vst [vmem:[%s22934_s23 + $0x4d8] sm:$0xff] %v923_v27   ;;  %v927_v28 = vld [vmem:[%s22926_s22 + $0x9c0] sm:$0xff]   ;;  %v931_v29 = vld [vmem:[%s22926_s22 + $0x9c8] sm:$0xff]  }
  0x60   : > { %v935_v30 = vld [vmem:[%s22926_s22 + $0x9e0] sm:$0xff]   ;;  %928 = vst [vmem:[%s22934_s23 + $0x4e0] sm:$0xff] %v927_v28   ;;  %932 = vst [vmem:[%s22934_s23 + $0x4e8] sm:$0xff] %v931_v29   ;;  %v939_v31 = vld [vmem:[%s22926_s22 + $0x9e8] sm:$0xff]  }
  0x61   : > { %936 = vst [vmem:[%s22934_s23 + $0x4f0] sm:$0xff] %v935_v30   ;;  %v943_v32 = vld [vmem:[%s22926_s22 + $0xa00] sm:$0xff]   ;;  %v947_v33 = vld [vmem:[%s22926_s22 + $0xa08] sm:$0xff]   ;;  %940 = vst [vmem:[%s22934_s23 + $0x4f8] sm:$0xff] %v939_v31  }
  0x62   : > { %944 = vst [vmem:[%s22934_s23 + $0x500] sm:$0xff] %v943_v32   ;;  %948 = vst [vmem:[%s22934_s23 + $0x508] sm:$0xff] %v947_v33   ;;  %v951_v34 = vld [vmem:[%s22926_s22 + $0xa20] sm:$0xff]   ;;  %v955_v35 = vld [vmem:[%s22926_s22 + $0xa28] sm:$0xff]  }
  0x63   : > { %v959_v36 = vld [vmem:[%s22926_s22 + $0xa40] sm:$0xff]   ;;  %952 = vst [vmem:[%s22934_s23 + $0x510] sm:$0xff] %v951_v34   ;;  %956 = vst [vmem:[%s22934_s23 + $0x518] sm:$0xff] %v955_v35   ;;  %v963_v37 = vld [vmem:[%s22926_s22 + $0xa48] sm:$0xff]  }
  0x64   : > { %960 = vst [vmem:[%s22934_s23 + $0x520] sm:$0xff] %v959_v36   ;;  %v967_v38 = vld [vmem:[%s22926_s22 + $0xa60] sm:$0xff]   ;;  %v971_v39 = vld [vmem:[%s22926_s22 + $0xa68] sm:$0xff]   ;;  %964 = vst [vmem:[%s22934_s23 + $0x528] sm:$0xff] %v963_v37  }
  0x65   : > { %968 = vst [vmem:[%s22934_s23 + $0x530] sm:$0xff] %v967_v38   ;;  %972 = vst [vmem:[%s22934_s23 + $0x538] sm:$0xff] %v971_v39   ;;  %v975_v40 = vld [vmem:[%s22926_s22 + $0xa80] sm:$0xff]   ;;  %v979_v41 = vld [vmem:[%s22926_s22 + $0xa88] sm:$0xff]  }
  0x66   : > { %v983_v42 = vld [vmem:[%s22926_s22 + $0xaa0] sm:$0xff]   ;;  %976 = vst [vmem:[%s22934_s23 + $0x540] sm:$0xff] %v975_v40   ;;  %980 = vst [vmem:[%s22934_s23 + $0x548] sm:$0xff] %v979_v41   ;;  %v987_v43 = vld [vmem:[%s22926_s22 + $0xaa8] sm:$0xff]  }
  0x67   : > { %984 = vst [vmem:[%s22934_s23 + $0x550] sm:$0xff] %v983_v42   ;;  %v991_v44 = vld [vmem:[%s22926_s22 + $0xac0] sm:$0xff]   ;;  %v995_v45 = vld [vmem:[%s22926_s22 + $0xac8] sm:$0xff]   ;;  %988 = vst [vmem:[%s22934_s23 + $0x558] sm:$0xff] %v987_v43  }
  0x68   : > { %992 = vst [vmem:[%s22934_s23 + $0x560] sm:$0xff] %v991_v44   ;;  %996 = vst [vmem:[%s22934_s23 + $0x568] sm:$0xff] %v995_v45   ;;  %v999_v46 = vld [vmem:[%s22926_s22 + $0xae0] sm:$0xff]   ;;  %v1003_v47 = vld [vmem:[%s22926_s22 + $0xae8] sm:$0xff]  }
  0x69   : > { %v1007_v48 = vld [vmem:[%s22926_s22 + $0xb00] sm:$0xff]   ;;  %1000 = vst [vmem:[%s22934_s23 + $0x570] sm:$0xff] %v999_v46   ;;  %1004 = vst [vmem:[%s22934_s23 + $0x578] sm:$0xff] %v1003_v47   ;;  %v1011_v49 = vld [vmem:[%s22926_s22 + $0xb08] sm:$0xff]  }
  0x6a   : > { %1008 = vst [vmem:[%s22934_s23 + $0x580] sm:$0xff] %v1007_v48   ;;  %v1015_v50 = vld [vmem:[%s22926_s22 + $0xb20] sm:$0xff]   ;;  %v1019_v51 = vld [vmem:[%s22926_s22 + $0xb28] sm:$0xff]   ;;  %1012 = vst [vmem:[%s22934_s23 + $0x588] sm:$0xff] %v1011_v49  }
  0x6b   : > { %1016 = vst [vmem:[%s22934_s23 + $0x590] sm:$0xff] %v1015_v50   ;;  %1020 = vst [vmem:[%s22934_s23 + $0x598] sm:$0xff] %v1019_v51   ;;  %v1023_v52 = vld [vmem:[%s22926_s22 + $0xb40] sm:$0xff]   ;;  %v1027_v53 = vld [vmem:[%s22926_s22 + $0xb48] sm:$0xff]  }
  0x6c   : > { %v1031_v54 = vld [vmem:[%s22926_s22 + $0xb60] sm:$0xff]   ;;  %1024 = vst [vmem:[%s22934_s23 + $0x5a0] sm:$0xff] %v1023_v52   ;;  %1028 = vst [vmem:[%s22934_s23 + $0x5a8] sm:$0xff] %v1027_v53   ;;  %v1035_v55 = vld [vmem:[%s22926_s22 + $0xb68] sm:$0xff]  }
  0x6d   : > { %1032 = vst [vmem:[%s22934_s23 + $0x5b0] sm:$0xff] %v1031_v54   ;;  %v1039_v56 = vld [vmem:[%s22926_s22 + $0xb80] sm:$0xff]   ;;  %v1043_v57 = vld [vmem:[%s22926_s22 + $0xb88] sm:$0xff]   ;;  %1036 = vst [vmem:[%s22934_s23 + $0x5b8] sm:$0xff] %v1035_v55  }
  0x6e   : > { %1040 = vst [vmem:[%s22934_s23 + $0x5c0] sm:$0xff] %v1039_v56   ;;  %1044 = vst [vmem:[%s22934_s23 + $0x5c8] sm:$0xff] %v1043_v57   ;;  %v1047_v58 = vld [vmem:[%s22926_s22 + $0xba0] sm:$0xff]   ;;  %v1051_v59 = vld [vmem:[%s22926_s22 + $0xba8] sm:$0xff]  }
  0x6f   : > { %v1055_v60 = vld [vmem:[%s22926_s22 + $0xbc0] sm:$0xff]   ;;  %1048 = vst [vmem:[%s22934_s23 + $0x5d0] sm:$0xff] %v1047_v58   ;;  %1052 = vst [vmem:[%s22934_s23 + $0x5d8] sm:$0xff] %v1051_v59   ;;  %v1059_v61 = vld [vmem:[%s22926_s22 + $0xbc8] sm:$0xff]  }
  0x70   : > { %1056 = vst [vmem:[%s22934_s23 + $0x5e0] sm:$0xff] %v1055_v60   ;;  %v1063_v62 = vld [vmem:[%s22926_s22 + $0xbe0] sm:$0xff]   ;;  %v1067_v63 = vld [vmem:[%s22926_s22 + $0xbe8] sm:$0xff]   ;;  %1060 = vst [vmem:[%s22934_s23 + $0x5e8] sm:$0xff] %v1059_v61  }
  0x71   : > { %1064 = vst [vmem:[%s22934_s23 + $0x5f0] sm:$0xff] %v1063_v62   ;;  %1068 = vst [vmem:[%s22934_s23 + $0x5f8] sm:$0xff] %v1067_v63   ;;  %v1071_v0 = vld [vmem:[%s22926_s22 + $0xc00] sm:$0xff]   ;;  %v1075_v1 = vld [vmem:[%s22926_s22 + $0xc08] sm:$0xff]  }
  0x72   : > { %v1079_v2 = vld [vmem:[%s22926_s22 + $0xc20] sm:$0xff]   ;;  %1072 = vst [vmem:[%s22934_s23 + $0x600] sm:$0xff] %v1071_v0   ;;  %1076 = vst [vmem:[%s22934_s23 + $0x608] sm:$0xff] %v1075_v1   ;;  %v1083_v3 = vld [vmem:[%s22926_s22 + $0xc28] sm:$0xff]  }
  0x73   : > { %1080 = vst [vmem:[%s22934_s23 + $0x610] sm:$0xff] %v1079_v2   ;;  %v1087_v4 = vld [vmem:[%s22926_s22 + $0xc40] sm:$0xff]   ;;  %v1091_v5 = vld [vmem:[%s22926_s22 + $0xc48] sm:$0xff]   ;;  %1084 = vst [vmem:[%s22934_s23 + $0x618] sm:$0xff] %v1083_v3  }
  0x74   : > { %1088 = vst [vmem:[%s22934_s23 + $0x620] sm:$0xff] %v1087_v4   ;;  %1092 = vst [vmem:[%s22934_s23 + $0x628] sm:$0xff] %v1091_v5   ;;  %v1095_v6 = vld [vmem:[%s22926_s22 + $0xc60] sm:$0xff]   ;;  %v1099_v7 = vld [vmem:[%s22926_s22 + $0xc68] sm:$0xff]  }
  0x75   : > { %1096 = vst [vmem:[%s22934_s23 + $0x630] sm:$0xff] %v1095_v6   ;;  %1100 = vst [vmem:[%s22934_s23 + $0x638] sm:$0xff] %v1099_v7  }
  0x76 PF: > { %p17315_p5 = scmp.ge.s32.totalorder %s22839_s11, 1  ;;  %p1924_p6 = scmp.lt.s32.totalorder %s22839_s11, 3 }
  0x78   : > { %p1925_p7 = pnand %p17315_p5, %p1924_p6 }
  0x7a   : > { %1928 = sbr.rel (%p1925_p7) target bundleno = 3292 (0xcdc), region = 93 }
  0x81   : > { %v22500_v8 = vld [vmem:[%s26454_s1] sm:$0xff]   ;;  %s1931_s26 = sand.u32 1, %s22831_s30   ;;  %vm2341_vm0 = vcmask 130048   ;;  %vm3175_vm1 = vcmask 261120   ;;  %vm15099_vm2 = vcmask 523264   ;;  %s17316_s28 = sshll.u32 %s17309_s12, 2 }
  0x82   : > { %s22474_s27 = smul.u32 1600, %s1931_s26  ;;  %19761 = vmatprep.subr.bf16.mxu1 %v22500_v8  ;;  %v22502_v9 = vld [vmem:[%s26454_s1] sm:$0xff]   ;;  %p1969_p8 = scmp.lt.s32.totalorder %s17316_s28, 7 }
  0x83   : > { %19762 = vmatpush3.bf16.msra.mxu1 %v22500_v8  ;;  %v23382_v29 = vld [vmem:[%s26454_s1] sm:$0xff]  }
  0x84   : > { %s23339_s14 = scalar_lea.vmem [#allocation3], %s22474_s27  ;;  %19863 = vmatprep.subr.bf16.mxu1 %v22502_v9  ;;  %v23459_v2 = vld [vmem:[%s26458_s5] ss:$0 sm:$0xff]  ;;  %s26576_s28 = smov (!%p1969_p8, %s17316_s28), 7 }
  0x85   : > { %v22501_v10 = vld [vmem:[%s23339_s14] sm:$0xff]   ;;  %v22503_v11 = vld [vmem:[%s23339_s14 + $0x8] sm:$0xff]   ;;  %v22504_v12 = vld [vmem:[%s23339_s14 + $0x10] sm:$0xff]   ;;  %s18916_s15 = sshll.u32 %s26576_s28, 6 }
  0x86   : > { %19763 = vmatprep.mubr.msk.bf16.mxu1 %vm2341_vm0, %v22501_v10  ;;  %v22505_v13 = vld [vmem:[%s23339_s14 + $0x18] sm:$0xff]   ;;  %v22506_v14 = vld [vmem:[%s23339_s14 + $0x20] sm:$0xff]   ;;  %v22507_v15 = vld [vmem:[%s23339_s14 + $0x28] sm:$0xff]   ;;  %s26397_s17 = scalar_lea.vmem %s26462_s9, %s18916_s15 }
  0x87   : > { %19764 = vmatmul.mubr.msk.bf16.vlgmr.msra.gmra.mrb[0].mxu1 %vm2341_vm0, %v22503_v11  ;;  %v22508_v16 = vld [vmem:[%s23339_s14 + $0x30] sm:$0xff]   ;;  %v22509_v17 = vld [vmem:[%s23339_s14 + $0x38] sm:$0xff]   ;;  %v22510_v18 = vld [vmem:[%s23339_s14 + $0x40] sm:$0xff]  }
  0x88   : > { %19864 = vmatpush3.bf16.msra.mxu1 %v22502_v9  ;;  %19767 = vmatprep.mubr.msk.bf16.mxu1 %vm2341_vm0, %v22504_v12  ;;  %v22511_v19 = vld [vmem:[%s23339_s14 + $0x48] sm:$0xff]   ;;  %v22512_v20 = vld [vmem:[%s23339_s14 + $0x50] sm:$0xff]   ;;  %v22513_v21 = vld [vmem:[%s23339_s14 + $0x58] sm:$0xff]  }
  0x89   : > { %v22514_v22 = vld [vmem:[%s23339_s14 + $0x60] sm:$0xff]   ;;  %v22515_v23 = vld [vmem:[%s23339_s14 + $0x68] sm:$0xff]   ;;  %v22516_v24 = vld [vmem:[%s23339_s14 + $0x70] sm:$0xff]   ;;  %19965 = vmatprep.subr.bf16.mxu1 %v23382_v29 }
  0x8a   : > { %v22517_v25 = vld [vmem:[%s23339_s14 + $0x78] sm:$0xff]   ;;  %v22518_v26 = vld [vmem:[%s23339_s14 + $0x80] sm:$0xff]   ;;  %v22519_v27 = vld [vmem:[%s23339_s14 + $0x88] sm:$0xff]  }
  0x8b   : > { %v22520_v28 = vld [vmem:[%s23339_s14 + $0x90] sm:$0xff]   ;;  %v22521_v30 = vld [vmem:[%s23339_s14 + $0x98] sm:$0xff]   ;;  %v22522_v31 = vld [vmem:[%s23339_s14 + $0xa0] sm:$0xff]  }
  0x8c   : > { %v22523_v32 = vld [vmem:[%s23339_s14 + $0xa8] sm:$0xff]   ;;  %v22524_v33 = vld [vmem:[%s23339_s14 + $0xb0] sm:$0xff]   ;;  %v22525_v34 = vld [vmem:[%s23339_s14 + $0xb8] sm:$0xff]  }
  0x8d   : > { %v22526_v35 = vld [vmem:[%s23339_s14 + $0xc0] sm:$0xff]   ;;  %v22527_v36 = vld [vmem:[%s23339_s14 + $0xc8] sm:$0xff]   ;;  %v22528_v37 = vld [vmem:[%s23339_s14 + $0xd0] sm:$0xff]  }
  0x8e   : > { %v22529_v38 = vld [vmem:[%s23339_s14 + $0xd8] sm:$0xff]   ;;  %v22530_v39 = vld [vmem:[%s23339_s14 + $0xe0] sm:$0xff]   ;;  %v22531_v40 = vld [vmem:[%s23339_s14 + $0xe8] sm:$0xff]  }
  0x8f   : > { %19768 = vmatmul.mubr.msk.bf16.gmra.mrb[4].mxu1 %vm2341_vm0, %v22505_v13  ;;  %v22532_v41 = vld [vmem:[%s23339_s14 + $0xf0] sm:$0xff]   ;;  %v22533_v42 = vld [vmem:[%s23339_s14 + $0xf8] sm:$0xff]   ;;  %v22534_v43 = vld [vmem:[%s23339_s14 + $0x100] sm:$0xff]  }
  0x90   : > { %19771 = vmatprep.mubr.msk.bf16.mxu1 %vm2341_vm0, %v22506_v14  ;;  %v22535_v44 = vld [vmem:[%s23339_s14 + $0x108] sm:$0xff]   ;;  %v22536_v45 = vld [vmem:[%s23339_s14 + $0x110] sm:$0xff]   ;;  %v22537_v46 = vld [vmem:[%s23339_s14 + $0x118] sm:$0xff]  }
  0x91   : > { %v22538_v47 = vld [vmem:[%s23339_s14 + $0x120] sm:$0xff]   ;;  %v22539_v48 = vld [vmem:[%s23339_s14 + $0x128] sm:$0xff]   ;;  %v22540_v49 = vld [vmem:[%s23339_s14 + $0x130] sm:$0xff]  }
  0x92   : > { %v22541_v50 = vld [vmem:[%s23339_s14 + $0x138] sm:$0xff]   ;;  %v22542_v51 = vld [vmem:[%s23339_s14 + $0x140] sm:$0xff]   ;;  %v22543_v52 = vld [vmem:[%s23339_s14 + $0x148] sm:$0xff]  }
  0x93   : > { %v22544_v53 = vld [vmem:[%s23339_s14 + $0x150] sm:$0xff]   ;;  %v22545_v54 = vld [vmem:[%s23339_s14 + $0x158] sm:$0xff]   ;;  %v22546_v55 = vld [vmem:[%s23339_s14 + $0x160] sm:$0xff]  }
  0x94   : > { %v22547_v56 = vld [vmem:[%s23339_s14 + $0x168] sm:$0xff]   ;;  %v22548_v57 = vld [vmem:[%s23339_s14 + $0x170] sm:$0xff]   ;;  %v22549_v58 = vld [vmem:[%s23339_s14 + $0x178] sm:$0xff]  }
  0x95   : > { %v22550_v59 = vld [vmem:[%s23339_s14 + $0x180] sm:$0xff]   ;;  %v22551_v60 = vld [vmem:[%s23339_s14 + $0x188] sm:$0xff]   ;;  %v22552_v61 = vld [vmem:[%s23339_s14 + $0x190] sm:$0xff]  }
  0x96   : > { %v22554_v62 = vld [vmem:[%s23339_s14 + $0x198] sm:$0xff]   ;;  %v22555_v63 = vld [vmem:[%s23339_s14 + $0x1a0] sm:$0xff]   ;;  %v22556_v0 = vld [vmem:[%s23339_s14 + $0x1a8] sm:$0xff]  }
  0x97   : > { %19772 = vmatmul.mubr.msk.bf16.gmra.mrb[8].mxu1 %vm2341_vm0, %v22507_v15  ;;  %v22557_v1 = vld [vmem:[%s23339_s14 + $0x1b0] sm:$0xff]   ;;  %v22558_v6 = vld [vmem:[%s23339_s14 + $0x1b8] sm:$0xff]   ;;  %v22559_v9 = vld [vmem:[%s23339_s14 + $0x1c0] sm:$0xff]  }
  0x98   : > { %19775 = vmatprep.mubr.msk.bf16.mxu1 %vm2341_vm0, %v22508_v16 }
  0x9f   : > { %19776 = vmatmul.mubr.msk.bf16.gmra.mrb[12].mxu1 %vm2341_vm0, %v22509_v17 }
  0xa0   : > { %19779 = vmatprep.mubr.msk.bf16.mxu1 %vm2341_vm0, %v22510_v18 }
  0xa7   : > { %19780 = vmatmul.mubr.msk.bf16.gmra.mrb[16].mxu1 %vm2341_vm0, %v22511_v19 }
  0xa8   : > { %19783 = vmatprep.mubr.msk.bf16.mxu1 %vm2341_vm0, %v22512_v20 }
  0xaf   : > { %19784 = vmatmul.mubr.msk.bf16.gmra.mrb[20].mxu1 %vm2341_vm0, %v22513_v21 }
  0xb0   : > { %19787 = vmatprep.mubr.msk.bf16.mxu1 %vm2341_vm0, %v22514_v22 }
  0xb7   : > { %19788 = vmatmul.mubr.msk.bf16.gmra.mrb[24].mxu1 %vm2341_vm0, %v22515_v23 }
  0xb8   : > { %19791 = vmatprep.mubr.msk.bf16.mxu1 %vm2341_vm0, %v22516_v24 }
  0xbf   : > { %19792 = vmatmul.mubr.msk.bf16.gmra.mrb[28].mxu1 %vm2341_vm0, %v22517_v25  ;;  %v22560_v25 = vld [vmem:[%s23339_s14 + $0x1c8] sm:$0xff]  }
  0xc0   : > { %19795 = vmatprep.mubr.msk.bf16.mxu1 %vm2341_vm0, %v22518_v26 }
  0xc7   : > { %19796 = vmatmul.mubr.msk.bf16.gmra.mrb[32].mxu1 %vm2341_vm0, %v22519_v27 }
  0xc8   : > { %19799 = vmatprep.mubr.msk.bf16.mxu1 %vm2341_vm0, %v22520_v28 }
  0xcf   : > { %19800 = vmatmul.mubr.msk.bf16.gmra.mrb[36].mxu1 %vm2341_vm0, %v22521_v30 }
  0xd0   : > { %19803 = vmatprep.mubr.msk.bf16.mxu1 %vm2341_vm0, %v22522_v31 }
  0xd7   : > { %19804 = vmatmul.mubr.msk.bf16.gmra.mrb[40].mxu1 %vm2341_vm0, %v22523_v32 }
  0xd8   : > { %19807 = vmatprep.mubr.msk.bf16.mxu1 %vm2341_vm0, %v22524_v33 }
  0xdf   : > { %19808 = vmatmul.mubr.msk.bf16.gmra.mrb[44].mxu1 %vm2341_vm0, %v22525_v34 }
  0xe0   : > { %19811 = vmatprep.mubr.msk.bf16.mxu1 %vm2341_vm0, %v22526_v35 }
  0xe7   : > { %19812 = vmatmul.mubr.msk.bf16.gmra.mrb[48].mxu1 %vm2341_vm0, %v22527_v36 }
  0xe8   : > { %19815 = vmatprep.mubr.msk.bf16.mxu1 %vm2341_vm0, %v22528_v37 }
  0xef   : > { %19816 = vmatmul.mubr.msk.bf16.gmra.mrb[52].mxu1 %vm2341_vm0, %v22529_v38 }
  0xf0   : > { %19819 = vmatprep.mubr.msk.bf16.mxu1 %vm2341_vm0, %v22530_v39 }
  0xf7   : > { %19820 = vmatmul.mubr.msk.bf16.gmra.mrb[56].mxu1 %vm2341_vm0, %v22531_v40 }
  0xf8   : > { %19823 = vmatprep.mubr.msk.bf16.mxu1 %vm2341_vm0, %v22532_v41 }
  0xff   : > { %19824 = vmatmul.mubr.msk.bf16.gmra.mrb[60].mxu1 %vm2341_vm0, %v22533_v42 }
 0x100   : > { %19827 = vmatprep.mubr.msk.bf16.mxu1 %vm2341_vm0, %v22534_v43 }
 0x107   : > { %19828 = vmatmul.mubr.msk.bf16.gmra.mrb[64].mxu1 %vm2341_vm0, %v22535_v44 }
 0x108   : > { %19831 = vmatprep.mubr.msk.bf16.mxu1 %vm2341_vm0, %v22536_v45  ;;  %v22562_v45 = vld [vmem:[%s23339_s14 + $0x1d8] sm:$0xff]  }
 0x10f   : > { %19832 = vmatmul.mubr.msk.bf16.gmra.mrb[68].mxu1 %vm2341_vm0, %v22537_v46 }
 0x110   : > { %19835 = vmatprep.mubr.msk.bf16.mxu1 %vm2341_vm0, %v22538_v47 }
 0x117   : > { %19836 = vmatmul.mubr.msk.bf16.gmra.mrb[72].mxu1 %vm2341_vm0, %v22539_v48 }
 0x118   : > { %19839 = vmatprep.mubr.msk.bf16.mxu1 %vm2341_vm0, %v22540_v49  ;;  %v22563_v49 = vld [vmem:[%s23339_s14 + $0x1e0] sm:$0xff]  }
 0x11f   : > { %19840 = vmatmul.mubr.msk.bf16.gmra.mrb[76].mxu1 %vm2341_vm0, %v22541_v50 }
 0x120   : > { %19843 = vmatprep.mubr.msk.bf16.mxu1 %vm2341_vm0, %v22542_v51 }
 0x127   : > { %19844 = vmatmul.mubr.msk.bf16.gmra.mrb[80].mxu1 %vm2341_vm0, %v22543_v52 }
 0x128   : > { %19847 = vmatprep.mubr.msk.bf16.mxu1 %vm2341_vm0, %v22544_v53 }
 0x12f   : > { %19848 = vmatmul.mubr.msk.bf16.gmra.mrb[84].mxu1 %vm2341_vm0, %v22545_v54 }
 0x130   : > { %19851 = vmatprep.mubr.msk.bf16.mxu1 %vm2341_vm0, %v22546_v55 }
 0x137   : > { %19852 = vmatmul.mubr.msk.bf16.gmra.mrb[88].mxu1 %vm2341_vm0, %v22547_v56 }
 0x138   : > { %19855 = vmatprep.mubr.msk.bf16.mxu1 %vm2341_vm0, %v22548_v57 }
 0x13f   : > { %19856 = vmatmul.mubr.msk.bf16.gmra.mrb[92].mxu1 %vm2341_vm0, %v22549_v58 }
 0x140   : > { %19859 = vmatprep.mubr.msk.bf16.mxu1 %vm2341_vm0, %v22550_v59 }
 0x147   : > { %19860 = vmatmul.mubr.msk.bf16.gmra.mrb[96].mxu1 %vm2341_vm0, %v22551_v60 }
 0x148   : > { %19865 = vmatprep.mubr.msk.bf16.mxu1 %vm2341_vm0, %v22552_v61 }
 0x14f   : > { %19866 = vmatmul.mubr.msk.bf16.vlgmr.msra.gmra.mrb[100].mxu1 %vm2341_vm0, %v22554_v62 }
 0x150   : > { %19966 = vmatpush3.bf16.msra.mxu1 %v23382_v29  ;;  %19869 = vmatprep.mubr.msk.bf16.mxu1 %vm2341_vm0, %v22555_v63  ;;  %v22561_v29 = vld [vmem:[%s23339_s14 + $0x1d0] sm:$0xff]  }
 0x157   : > { %19870 = vmatmul.mubr.msk.bf16.gmra.mrb[104].mxu1 %vm2341_vm0, %v22556_v0 }
 0x158   : > { %19873 = vmatprep.mubr.msk.bf16.mxu1 %vm2341_vm0, %v22557_v1  ;;  %v22564_v1 = vld [vmem:[%s23339_s14 + $0x1e8] sm:$0xff]  }
 0x15a   : > { %v19765_v3 = vpop.f32.mrb[0].mxu1 }
 0x15b   : > { %v2535_v4 = vadd.f32 %v19765_v3, %v23459_v2  ;;  %v2526_v5 = vpop.f32.mrb[1].mxu1 }
 0x15c   : > { %v2527_v7 = vadd.f32 %v23459_v2, %v2526_v5  ;;  %v19766_v8 = vpop.f32.mrb[2].mxu1 }
 0x15d   : > { %v2927_v10 = vmul.f32 0.1, %v2535_v4  ;;  %v2538_v11 = vadd.f32 %v19766_v8, %v23459_v2  ;;  %v2529_v12 = vpop.f32.mrb[3].mxu1 }
 0x15e   : > { %v2925_v13 = vmul.f32 0.1, %v2527_v7  ;;  %v2530_v14 = vadd.f32 %v23459_v2, %v2529_v12 }
 0x15f   : > { %v2928_v15 = vmul.f32 0.1, %v2538_v11  ;;  %19874 = vmatmul.mubr.msk.bf16.gmra.mrb[108].mxu1 %vm2341_vm0, %v22558_v6  ;;  %v3027_v17 = vmax.f32 %v2535_v4, %v2927_v10  ;;  %v22565_v6 = vld [vmem:[%s23339_s14 + $0x1f0] sm:$0xff]  }
 0x160   : > { %v2926_v16 = vmul.f32 0.1, %v2530_v14  ;;  %19877 = vmatprep.mubr.msk.bf16.mxu1 %vm2341_vm0, %v22559_v9  ;;  %v3025_v19 = vmax.f32 %v2527_v7, %v2925_v13 }
 0x161   : > { %v3028_v18 = vmax.f32 %v2538_v11, %v2928_v15 }
 0x162   : > { %v3026_v20 = vmax.f32 %v2530_v14, %v2926_v16  ;;  %v19769_v21 = vpop.f32.mrb[4].mxu1 }
 0x163   : > { %v3126_v22 = vpack.c.bf16 %v3028_v18, %v3027_v17  ;;  %v2551_v23 = vadd.f32 %v19769_v21, %v23459_v2  ;;  %v2542_v24 = vpop.f32.mrb[5].mxu1 }
 0x164   : > { %v3125_v26 = vpack.c.bf16 %v3026_v20, %v3025_v19  ;;  %v2543_v27 = vadd.f32 %v23459_v2, %v2542_v24  ;;  %v19770_v28 = vpop.f32.mrb[6].mxu1 }
 0x165   : > { %3177 = vst.msk [vmem:[#allocation2 + $0x8] sm:$0xff] %vm3175_vm1, %v3126_v22  ;;  %v2931_v30 = vmul.f32 0.1, %v2551_v23  ;;  %v2554_v31 = vadd.f32 %v19770_v28, %v23459_v2  ;;  %v2545_v32 = vpop.f32.mrb[7].mxu1  ;;  %v22566_v22 = vld [vmem:[%s23339_s14 + $0x1f8] sm:$0xff]  }
 0x166   : > { %3176 = vst.msk [vmem:[#allocation2] sm:$0xff] %vm3175_vm1, %v3125_v26  ;;  %v2929_v33 = vmul.f32 0.1, %v2543_v27  ;;  %v2546_v34 = vadd.f32 %v23459_v2, %v2545_v32  ;;  %v22567_v26 = vld [vmem:[%s23339_s14 + $0x200] sm:$0xff]  }
 0x167   : > { %v2932_v35 = vmul.f32 0.1, %v2554_v31  ;;  %19878 = vmatmul.mubr.msk.bf16.gmra.mrb[112].mxu1 %vm2341_vm0, %v22560_v25  ;;  %v3031_v37 = vmax.f32 %v2551_v23, %v2931_v30 }
 0x168   : > { %v2930_v36 = vmul.f32 0.1, %v2546_v34  ;;  %19881 = vmatprep.mubr.msk.bf16.mxu1 %vm2341_vm0, %v22561_v29  ;;  %v3029_v39 = vmax.f32 %v2543_v27, %v2929_v33 }
 0x169   : > { %v3032_v38 = vmax.f32 %v2554_v31, %v2932_v35 }
 0x16a   : > { %v3030_v40 = vmax.f32 %v2546_v34, %v2930_v36  ;;  %v19773_v41 = vpop.f32.mrb[8].mxu1 }
 0x16b   : > { %v3128_v42 = vpack.c.bf16 %v3032_v38, %v3031_v37  ;;  %v2567_v43 = vadd.f32 %v19773_v41, %v23459_v2  ;;  %v2558_v44 = vpop.f32.mrb[9].mxu1 }
 0x16c   : > { %v3127_v46 = vpack.c.bf16 %v3030_v40, %v3029_v39  ;;  %v2559_v47 = vadd.f32 %v23459_v2, %v2558_v44  ;;  %v19774_v48 = vpop.f32.mrb[10].mxu1 }
 0x16d   : > { %3179 = vst.msk [vmem:[#allocation2 + $0x18] sm:$0xff] %vm3175_vm1, %v3128_v42  ;;  %v2935_v50 = vmul.f32 0.1, %v2567_v43  ;;  %v2570_v51 = vadd.f32 %v19774_v48, %v23459_v2  ;;  %v2561_v52 = vpop.f32.mrb[11].mxu1  ;;  %v22568_v42 = vld [vmem:[%s23339_s14 + $0x208] sm:$0xff]  }
 0x16e   : > { %3178 = vst.msk [vmem:[#allocation2 + $0x10] sm:$0xff] %vm3175_vm1, %v3127_v46  ;;  %v2933_v53 = vmul.f32 0.1, %v2559_v47  ;;  %v2562_v54 = vadd.f32 %v23459_v2, %v2561_v52  ;;  %v22569_v46 = vld [vmem:[%s23339_s14 + $0x210] sm:$0xff]  }
 0x16f   : > { %v2936_v55 = vmul.f32 0.1, %v2570_v51  ;;  %19882 = vmatmul.mubr.msk.bf16.gmra.mrb[116].mxu1 %vm2341_vm0, %v22562_v45  ;;  %v3035_v57 = vmax.f32 %v2567_v43, %v2935_v50 }
 0x170   : > { %v2934_v56 = vmul.f32 0.1, %v2562_v54  ;;  %19885 = vmatprep.mubr.msk.bf16.mxu1 %vm2341_vm0, %v22563_v49  ;;  %v3033_v59 = vmax.f32 %v2559_v47, %v2933_v53 }
 0x171   : > { %v3036_v58 = vmax.f32 %v2570_v51, %v2936_v55 }
 0x172   : > { %v3034_v60 = vmax.f32 %v2562_v54, %v2934_v56  ;;  %v19777_v61 = vpop.f32.mrb[12].mxu1 }
 0x173   : > { %v3130_v62 = vpack.c.bf16 %v3036_v58, %v3035_v57  ;;  %v2583_v63 = vadd.f32 %v19777_v61, %v23459_v2  ;;  %v2574_v0 = vpop.f32.mrb[13].mxu1 }
 0x174   : > { %v3129_v3 = vpack.c.bf16 %v3034_v60, %v3033_v59  ;;  %v2575_v4 = vadd.f32 %v23459_v2, %v2574_v0  ;;  %v19778_v5 = vpop.f32.mrb[14].mxu1 }
 0x175   : > { %3181 = vst.msk [vmem:[#allocation2 + $0x28] sm:$0xff] %vm3175_vm1, %v3130_v62  ;;  %v2939_v7 = vmul.f32 0.1, %v2583_v63  ;;  %v2586_v8 = vadd.f32 %v19778_v5, %v23459_v2  ;;  %v2577_v9 = vpop.f32.mrb[15].mxu1  ;;  %v22570_v62 = vld [vmem:[%s23339_s14 + $0x218] sm:$0xff]  }
 0x176   : > { %3180 = vst.msk [vmem:[#allocation2 + $0x20] sm:$0xff] %vm3175_vm1, %v3129_v3  ;;  %v2937_v10 = vmul.f32 0.1, %v2575_v4  ;;  %v2578_v11 = vadd.f32 %v23459_v2, %v2577_v9  ;;  %v22571_v3 = vld [vmem:[%s23339_s14 + $0x220] sm:$0xff]  }
 0x177   : > { %v2940_v12 = vmul.f32 0.1, %v2586_v8  ;;  %19886 = vmatmul.mubr.msk.bf16.gmra.mrb[120].mxu1 %vm2341_vm0, %v22564_v1  ;;  %v3039_v14 = vmax.f32 %v2583_v63, %v2939_v7 }
 0x178   : > { %v2938_v13 = vmul.f32 0.1, %v2578_v11  ;;  %19889 = vmatprep.mubr.msk.bf16.mxu1 %vm2341_vm0, %v22565_v6  ;;  %v3037_v16 = vmax.f32 %v2575_v4, %v2937_v10 }
 0x179   : > { %v3040_v15 = vmax.f32 %v2586_v8, %v2940_v12 }
 0x17a   : > { %v3038_v17 = vmax.f32 %v2578_v11, %v2938_v13  ;;  %v19781_v18 = vpop.f32.mrb[16].mxu1 }
 0x17b   : > { %v3132_v19 = vpack.c.bf16 %v3040_v15, %v3039_v14  ;;  %v2599_v20 = vadd.f32 %v19781_v18, %v23459_v2  ;;  %v2590_v21 = vpop.f32.mrb[17].mxu1 }
 0x17c   : > { %v3131_v23 = vpack.c.bf16 %v3038_v17, %v3037_v16  ;;  %v2591_v24 = vadd.f32 %v23459_v2, %v2590_v21  ;;  %v19782_v25 = vpop.f32.mrb[18].mxu1 }
 0x17d   : > { %3183 = vst.msk [vmem:[#allocation2 + $0x38] sm:$0xff] %vm3175_vm1, %v3132_v19  ;;  %v2943_v27 = vmul.f32 0.1, %v2599_v20  ;;  %v2602_v28 = vadd.f32 %v19782_v25, %v23459_v2  ;;  %v2593_v29 = vpop.f32.mrb[19].mxu1  ;;  %v22572_v19 = vld [vmem:[%s23339_s14 + $0x228] sm:$0xff]  }
 0x17e   : > { %3182 = vst.msk [vmem:[#allocation2 + $0x30] sm:$0xff] %vm3175_vm1, %v3131_v23  ;;  %v2941_v30 = vmul.f32 0.1, %v2591_v24  ;;  %v2594_v31 = vadd.f32 %v23459_v2, %v2593_v29  ;;  %v22573_v23 = vld [vmem:[%s23339_s14 + $0x230] sm:$0xff]  }
 0x17f   : > { %v2944_v32 = vmul.f32 0.1, %v2602_v28  ;;  %19890 = vmatmul.mubr.msk.bf16.gmra.mrb[124].mxu1 %vm2341_vm0, %v22566_v22  ;;  %v3043_v34 = vmax.f32 %v2599_v20, %v2943_v27 }
 0x180   : > { %v2942_v33 = vmul.f32 0.1, %v2594_v31  ;;  %19893 = vmatprep.mubr.msk.bf16.mxu1 %vm2341_vm0, %v22567_v26  ;;  %v3041_v36 = vmax.f32 %v2591_v24, %v2941_v30 }
 0x181   : > { %v3044_v35 = vmax.f32 %v2602_v28, %v2944_v32 }
 0x182   : > { %v3042_v37 = vmax.f32 %v2594_v31, %v2942_v33  ;;  %v19785_v38 = vpop.f32.mrb[20].mxu1 }
 0x183   : > { %v3134_v39 = vpack.c.bf16 %v3044_v35, %v3043_v34  ;;  %v2615_v40 = vadd.f32 %v19785_v38, %v23459_v2  ;;  %v2606_v41 = vpop.f32.mrb[21].mxu1 }
 0x184   : > { %v3133_v43 = vpack.c.bf16 %v3042_v37, %v3041_v36  ;;  %v2607_v44 = vadd.f32 %v23459_v2, %v2606_v41  ;;  %v19786_v45 = vpop.f32.mrb[22].mxu1 }
 0x185   : > { %3185 = vst.msk [vmem:[#allocation2 + $0x48] sm:$0xff] %vm3175_vm1, %v3134_v39  ;;  %v2947_v47 = vmul.f32 0.1, %v2615_v40  ;;  %v2618_v48 = vadd.f32 %v19786_v45, %v23459_v2  ;;  %v2609_v49 = vpop.f32.mrb[23].mxu1  ;;  %v22574_v39 = vld [vmem:[%s23339_s14 + $0x238] sm:$0xff]  }
 0x186   : > { %3184 = vst.msk [vmem:[#allocation2 + $0x40] sm:$0xff] %vm3175_vm1, %v3133_v43  ;;  %v2945_v50 = vmul.f32 0.1, %v2607_v44  ;;  %v2610_v51 = vadd.f32 %v23459_v2, %v2609_v49  ;;  %v22575_v43 = vld [vmem:[%s23339_s14 + $0x240] sm:$0xff]  }
 0x187   : > { %v2948_v52 = vmul.f32 0.1, %v2618_v48  ;;  %19894 = vmatmul.mubr.msk.bf16.gmra.mrb[128].mxu1 %vm2341_vm0, %v22568_v42  ;;  %v3047_v54 = vmax.f32 %v2615_v40, %v2947_v47  ;;  %v23552_v49 = vld [vmem:[%s26454_s1] sm:$0xff]  }
 0x188   : > { %v2946_v53 = vmul.f32 0.1, %v2610_v51  ;;  %19897 = vmatprep.mubr.msk.bf16.mxu1 %vm2341_vm0, %v22569_v46  ;;  %v3045_v56 = vmax.f32 %v2607_v44, %v2945_v50  ;;  %20067 = vmatprep.subr.bf16.mxu1 %v23552_v49 }
 0x189   : > { %v3048_v55 = vmax.f32 %v2618_v48, %v2948_v52 }
 0x18a   : > { %v3046_v57 = vmax.f32 %v2610_v51, %v2946_v53  ;;  %v19789_v58 = vpop.f32.mrb[24].mxu1 }
 0x18b   : > { %v3136_v59 = vpack.c.bf16 %v3048_v55, %v3047_v54  ;;  %v2631_v60 = vadd.f32 %v19789_v58, %v23459_v2  ;;  %v2622_v61 = vpop.f32.mrb[25].mxu1 }
 0x18c   : > { %v3135_v63 = vpack.c.bf16 %v3046_v57, %v3045_v56  ;;  %v2623_v0 = vadd.f32 %v23459_v2, %v2622_v61  ;;  %v19790_v1 = vpop.f32.mrb[26].mxu1 }
 0x18d   : > { %3187 = vst.msk [vmem:[#allocation2 + $0x58] sm:$0xff] %vm3175_vm1, %v3136_v59  ;;  %v2951_v4 = vmul.f32 0.1, %v2631_v60  ;;  %v2634_v5 = vadd.f32 %v19790_v1, %v23459_v2  ;;  %v2625_v6 = vpop.f32.mrb[27].mxu1 }
 0x18e   : > { %3186 = vst.msk [vmem:[#allocation2 + $0x50] sm:$0xff] %vm3175_vm1, %v3135_v63  ;;  %v2949_v7 = vmul.f32 0.1, %v2623_v0  ;;  %v2626_v8 = vadd.f32 %v23459_v2, %v2625_v6 }
 0x18f   : > { %v2952_v9 = vmul.f32 0.1, %v2634_v5  ;;  %19898 = vmatmul.mubr.msk.bf16.gmra.mrb[132].mxu1 %vm2341_vm0, %v22570_v62  ;;  %v3051_v11 = vmax.f32 %v2631_v60, %v2951_v4  ;;  %v22576_v60 = vld [vmem:[%s23339_s14 + $0x248] sm:$0xff]  }
 0x190   : > { %v2950_v10 = vmul.f32 0.1, %v2626_v8  ;;  %19901 = vmatprep.mubr.msk.bf16.mxu1 %vm2341_vm0, %v22571_v3  ;;  %v3049_v13 = vmax.f32 %v2623_v0, %v2949_v7  ;;  %v22577_v0 = vld [vmem:[%s23339_s14 + $0x250] sm:$0xff]  }
 0x191   : > { %v3052_v12 = vmax.f32 %v2634_v5, %v2952_v9 }
 0x192   : > { %v3050_v14 = vmax.f32 %v2626_v8, %v2950_v10  ;;  %v19793_v15 = vpop.f32.mrb[28].mxu1 }
 0x193   : > { %v3138_v16 = vpack.c.bf16 %v3052_v12, %v3051_v11  ;;  %v2647_v17 = vadd.f32 %v19793_v15, %v23459_v2  ;;  %v2638_v18 = vpop.f32.mrb[29].mxu1 }
 0x194   : > { %v3137_v20 = vpack.c.bf16 %v3050_v14, %v3049_v13  ;;  %v2639_v21 = vadd.f32 %v23459_v2, %v2638_v18  ;;  %v19794_v22 = vpop.f32.mrb[30].mxu1 }
 0x195   : > { %3189 = vst.msk [vmem:[#allocation2 + $0x68] sm:$0xff] %vm3175_vm1, %v3138_v16  ;;  %v2955_v24 = vmul.f32 0.1, %v2647_v17  ;;  %v2650_v25 = vadd.f32 %v19794_v22, %v23459_v2  ;;  %v2641_v26 = vpop.f32.mrb[31].mxu1 }
 0x196   : > { %3188 = vst.msk [vmem:[#allocation2 + $0x60] sm:$0xff] %vm3175_vm1, %v3137_v20  ;;  %v2953_v27 = vmul.f32 0.1, %v2639_v21  ;;  %v2642_v28 = vadd.f32 %v23459_v2, %v2641_v26 }
 0x197   : > { %v2956_v29 = vmul.f32 0.1, %v2650_v25  ;;  %19902 = vmatmul.mubr.msk.bf16.gmra.mrb[136].mxu1 %vm2341_vm0, %v22572_v19  ;;  %v3055_v31 = vmax.f32 %v2647_v17, %v2955_v24  ;;  %v22578_v17 = vld [vmem:[%s23339_s14 + $0x258] sm:$0xff]  }
 0x198   : > { %v2954_v30 = vmul.f32 0.1, %v2642_v28  ;;  %19905 = vmatprep.mubr.msk.bf16.mxu1 %vm2341_vm0, %v22573_v23  ;;  %v3053_v33 = vmax.f32 %v2639_v21, %v2953_v27  ;;  %v22579_v21 = vld [vmem:[%s23339_s14 + $0x260] sm:$0xff]  }
 0x199   : > { %v3056_v32 = vmax.f32 %v2650_v25, %v2956_v29 }
 0x19a   : > { %v3054_v34 = vmax.f32 %v2642_v28, %v2954_v30  ;;  %v19797_v35 = vpop.f32.mrb[32].mxu1 }
 0x19b   : > { %v3140_v36 = vpack.c.bf16 %v3056_v32, %v3055_v31  ;;  %v2663_v37 = vadd.f32 %v19797_v35, %v23459_v2  ;;  %v2654_v38 = vpop.f32.mrb[33].mxu1 }
 0x19c   : > { %v3139_v40 = vpack.c.bf16 %v3054_v34, %v3053_v33  ;;  %v2655_v41 = vadd.f32 %v23459_v2, %v2654_v38  ;;  %v19798_v42 = vpop.f32.mrb[34].mxu1 }
 0x19d   : > { %3191 = vst.msk [vmem:[#allocation2 + $0x78] sm:$0xff] %vm3175_vm1, %v3140_v36  ;;  %v2959_v44 = vmul.f32 0.1, %v2663_v37  ;;  %v2666_v45 = vadd.f32 %v19798_v42, %v23459_v2  ;;  %v2657_v46 = vpop.f32.mrb[35].mxu1 }
 0x19e   : > { %3190 = vst.msk [vmem:[#allocation2 + $0x70] sm:$0xff] %vm3175_vm1, %v3139_v40  ;;  %v2957_v47 = vmul.f32 0.1, %v2655_v41  ;;  %v2658_v48 = vadd.f32 %v23459_v2, %v2657_v46 }
 0x19f   : > { %v2960_v50 = vmul.f32 0.1, %v2666_v45  ;;  %19906 = vmatmul.mubr.msk.bf16.gmra.mrb[140].mxu1 %vm2341_vm0, %v22574_v39  ;;  %v3059_v52 = vmax.f32 %v2663_v37, %v2959_v44  ;;  %v22580_v37 = vld [vmem:[%s23339_s14 + $0x268] sm:$0xff]  }
 0x1a0   : > { %v2958_v51 = vmul.f32 0.1, %v2658_v48  ;;  %19909 = vmatprep.mubr.msk.bf16.mxu1 %vm2341_vm0, %v22575_v43  ;;  %v3057_v54 = vmax.f32 %v2655_v41, %v2957_v47  ;;  %v22581_v41 = vld [vmem:[%s23339_s14 + $0x270] sm:$0xff]  }
 0x1a1   : > { %v3060_v53 = vmax.f32 %v2666_v45, %v2960_v50  ;;  %v22614_v45 = vld [vmem:[%s26455_s2 + $0x30] sm:$0xff]  }
 0x1a2   : > { %v3058_v55 = vmax.f32 %v2658_v48, %v2958_v51  ;;  %v19801_v56 = vpop.f32.mrb[36].mxu1  ;;  %20373 = vmatprep.subr.bf16.mxu0 %v22614_v45 }
 0x1a3   : > { %v3142_v57 = vpack.c.bf16 %v3060_v53, %v3059_v52  ;;  %v2679_v58 = vadd.f32 %v19801_v56, %v23459_v2  ;;  %v2670_v59 = vpop.f32.mrb[37].mxu1  ;;  %20374 = vmatpush3.bf16.msra.mxu0 %v22614_v45  ;;  %v22615_v53 = vld [vmem:[%s26455_s2 + $0x38] sm:$0xff]  }
 0x1a4   : > { %v3141_v61 = vpack.c.bf16 %v3058_v55, %v3057_v54  ;;  %v2671_v62 = vadd.f32 %v23459_v2, %v2670_v59  ;;  %v19802_v63 = vpop.f32.mrb[38].mxu1  ;;  %20375 = vmatprep.subr.bf16.mxu0 %v22615_v53 }
 0x1a5   : > { %3193 = vst.msk [vmem:[#allocation2 + $0x88] sm:$0xff] %vm3175_vm1, %v3142_v57  ;;  %v2963_v1 = vmul.f32 0.1, %v2679_v58  ;;  %v2682_v3 = vadd.f32 %v19802_v63, %v23459_v2  ;;  %v2673_v4 = vpop.f32.mrb[39].mxu1 }
 0x1a6   : > { %3192 = vst.msk [vmem:[#allocation2 + $0x80] sm:$0xff] %vm3175_vm1, %v3141_v61  ;;  %v2961_v5 = vmul.f32 0.1, %v2671_v62  ;;  %v2674_v6 = vadd.f32 %v23459_v2, %v2673_v4 }
 0x1a7   : > { %v2964_v7 = vmul.f32 0.1, %v2682_v3  ;;  %19910 = vmatmul.mubr.msk.bf16.gmra.mrb[144].mxu1 %vm2341_vm0, %v22576_v60  ;;  %v3063_v9 = vmax.f32 %v2679_v58, %v2963_v1  ;;  %v22582_v60 = vld [vmem:[%s23339_s14 + $0x278] sm:$0xff]   ;;  %20376 = vmatpush3.bf16.msra.mxu0 %v22615_v53 }
 0x1a8   : > { %v2962_v8 = vmul.f32 0.1, %v2674_v6  ;;  %19913 = vmatprep.mubr.msk.bf16.mxu1 %vm2341_vm0, %v22577_v0  ;;  %v3061_v11 = vmax.f32 %v2671_v62, %v2961_v5  ;;  %v22583_v0 = vld [vmem:[%s23339_s14 + $0x280] sm:$0xff]  }
 0x1a9   : > { %v3064_v10 = vmax.f32 %v2682_v3, %v2964_v7 }
 0x1aa   : > { %v3062_v12 = vmax.f32 %v2674_v6, %v2962_v8  ;;  %v19805_v13 = vpop.f32.mrb[40].mxu1 }
 0x1ab   : > { %v3144_v14 = vpack.c.bf16 %v3064_v10, %v3063_v9  ;;  %v2695_v15 = vadd.f32 %v19805_v13, %v23459_v2  ;;  %v2686_v16 = vpop.f32.mrb[41].mxu1 }
 0x1ac   : > { %v3143_v18 = vpack.c.bf16 %v3062_v12, %v3061_v11  ;;  %v2687_v19 = vadd.f32 %v23459_v2, %v2686_v16  ;;  %v19806_v20 = vpop.f32.mrb[42].mxu1 }
 0x1ad   : > { %3195 = vst.msk [vmem:[#allocation2 + $0x98] sm:$0xff] %vm3175_vm1, %v3144_v14  ;;  %v2967_v22 = vmul.f32 0.1, %v2695_v15  ;;  %v2698_v23 = vadd.f32 %v19806_v20, %v23459_v2  ;;  %v2689_v24 = vpop.f32.mrb[43].mxu1 }
 0x1ae   : > { %3194 = vst.msk [vmem:[#allocation2 + $0x90] sm:$0xff] %vm3175_vm1, %v3143_v18  ;;  %v2965_v25 = vmul.f32 0.1, %v2687_v19  ;;  %v2690_v26 = vadd.f32 %v23459_v2, %v2689_v24 }
 0x1af   : > { %v2968_v27 = vmul.f32 0.1, %v2698_v23  ;;  %19914 = vmatmul.mubr.msk.bf16.gmra.mrb[148].mxu1 %vm2341_vm0, %v22578_v17  ;;  %v3067_v29 = vmax.f32 %v2695_v15, %v2967_v22  ;;  %v22584_v17 = vld [vmem:[%s23339_s14 + $0x288] sm:$0xff]  }
 0x1b0   : > { %v2966_v28 = vmul.f32 0.1, %v2690_v26  ;;  %19917 = vmatprep.mubr.msk.bf16.mxu1 %vm2341_vm0, %v22579_v21  ;;  %v3065_v31 = vmax.f32 %v2687_v19, %v2965_v25  ;;  %v22585_v21 = vld [vmem:[%s23339_s14 + $0x290] sm:$0xff]  }
 0x1b1   : > { %v3068_v30 = vmax.f32 %v2698_v23, %v2968_v27 }
 0x1b2   : > { %v3066_v32 = vmax.f32 %v2690_v26, %v2966_v28  ;;  %v19809_v33 = vpop.f32.mrb[44].mxu1 }
 0x1b3   : > { %v3146_v34 = vpack.c.bf16 %v3068_v30, %v3067_v29  ;;  %v2711_v35 = vadd.f32 %v19809_v33, %v23459_v2  ;;  %v2702_v36 = vpop.f32.mrb[45].mxu1 }
 0x1b4   : > { %v3145_v38 = vpack.c.bf16 %v3066_v32, %v3065_v31  ;;  %v2703_v39 = vadd.f32 %v23459_v2, %v2702_v36  ;;  %v19810_v40 = vpop.f32.mrb[46].mxu1 }
 0x1b5   : > { %3197 = vst.msk [vmem:[#allocation2 + $0xa8] sm:$0xff] %vm3175_vm1, %v3146_v34  ;;  %v2971_v42 = vmul.f32 0.1, %v2711_v35  ;;  %v2714_v43 = vadd.f32 %v19810_v40, %v23459_v2  ;;  %v2705_v44 = vpop.f32.mrb[47].mxu1 }
 0x1b6   : > { %3196 = vst.msk [vmem:[#allocation2 + $0xa0] sm:$0xff] %vm3175_vm1, %v3145_v38  ;;  %v2969_v46 = vmul.f32 0.1, %v2703_v39  ;;  %v2706_v47 = vadd.f32 %v23459_v2, %v2705_v44 }
 0x1b7   : > { %v2972_v48 = vmul.f32 0.1, %v2714_v43  ;;  %19918 = vmatmul.mubr.msk.bf16.gmra.mrb[152].mxu1 %vm2341_vm0, %v22580_v37  ;;  %v3071_v51 = vmax.f32 %v2711_v35, %v2971_v42  ;;  %v22586_v37 = vld [vmem:[%s23339_s14 + $0x298] sm:$0xff]  }
 0x1b8   : > { %v2970_v50 = vmul.f32 0.1, %v2706_v47  ;;  %19921 = vmatprep.mubr.msk.bf16.mxu1 %vm2341_vm0, %v22581_v41  ;;  %v3069_v54 = vmax.f32 %v2703_v39, %v2969_v46  ;;  %v22587_v41 = vld [vmem:[%s23339_s14 + $0x2a0] sm:$0xff]  }
 0x1b9   : > { %v3072_v52 = vmax.f32 %v2714_v43, %v2972_v48 }
 0x1ba   : > { %v3070_v55 = vmax.f32 %v2706_v47, %v2970_v50  ;;  %v19813_v56 = vpop.f32.mrb[48].mxu1 }
 0x1bb   : > { %v3148_v57 = vpack.c.bf16 %v3072_v52, %v3071_v51  ;;  %v2727_v58 = vadd.f32 %v19813_v56, %v23459_v2  ;;  %v2718_v59 = vpop.f32.mrb[49].mxu1 }
 0x1bc   : > { %v3147_v61 = vpack.c.bf16 %v3070_v55, %v3069_v54  ;;  %v2719_v62 = vadd.f32 %v23459_v2, %v2718_v59  ;;  %v19814_v63 = vpop.f32.mrb[50].mxu1 }
 0x1bd   : > { %3199 = vst.msk [vmem:[#allocation2 + $0xb8] sm:$0xff] %vm3175_vm1, %v3148_v57  ;;  %v2975_v1 = vmul.f32 0.1, %v2727_v58  ;;  %v2730_v3 = vadd.f32 %v19814_v63, %v23459_v2  ;;  %v2721_v4 = vpop.f32.mrb[51].mxu1 }
 0x1be   : > { %3198 = vst.msk [vmem:[#allocation2 + $0xb0] sm:$0xff] %vm3175_vm1, %v3147_v61  ;;  %v2973_v5 = vmul.f32 0.1, %v2719_v62  ;;  %v2722_v6 = vadd.f32 %v23459_v2, %v2721_v4 }
 0x1bf   : > { %v2976_v7 = vmul.f32 0.1, %v2730_v3  ;;  %19922 = vmatmul.mubr.msk.bf16.gmra.mrb[156].mxu1 %vm2341_vm0, %v22582_v60  ;;  %v3075_v9 = vmax.f32 %v2727_v58, %v2975_v1  ;;  %v22588_v58 = vld [vmem:[%s23339_s14 + $0x2a8] sm:$0xff]  }
 0x1c0   : > { %v2974_v8 = vmul.f32 0.1, %v2722_v6  ;;  %19925 = vmatprep.mubr.msk.bf16.mxu1 %vm2341_vm0, %v22583_v0  ;;  %v3073_v11 = vmax.f32 %v2719_v62, %v2973_v5  ;;  %v22589_v62 = vld [vmem:[%s23339_s14 + $0x2b0] sm:$0xff]  }
 0x1c1   : > { %v3076_v10 = vmax.f32 %v2730_v3, %v2976_v7 }
 0x1c2   : > { %v3074_v12 = vmax.f32 %v2722_v6, %v2974_v8  ;;  %v19817_v13 = vpop.f32.mrb[52].mxu1 }
 0x1c3   : > { %v3150_v14 = vpack.c.bf16 %v3076_v10, %v3075_v9  ;;  %v2743_v15 = vadd.f32 %v19817_v13, %v23459_v2  ;;  %v2734_v16 = vpop.f32.mrb[53].mxu1 }
 0x1c4   : > { %v3149_v18 = vpack.c.bf16 %v3074_v12, %v3073_v11  ;;  %v2735_v19 = vadd.f32 %v23459_v2, %v2734_v16  ;;  %v19818_v20 = vpop.f32.mrb[54].mxu1 }
 0x1c5   : > { %3201 = vst.msk [vmem:[#allocation2 + $0xc8] sm:$0xff] %vm3175_vm1, %v3150_v14  ;;  %v2979_v22 = vmul.f32 0.1, %v2743_v15  ;;  %v2746_v23 = vadd.f32 %v19818_v20, %v23459_v2  ;;  %v2737_v24 = vpop.f32.mrb[55].mxu1 }
 0x1c6   : > { %3200 = vst.msk [vmem:[#allocation2 + $0xc0] sm:$0xff] %vm3175_vm1, %v3149_v18  ;;  %v2977_v25 = vmul.f32 0.1, %v2735_v19  ;;  %v2738_v26 = vadd.f32 %v23459_v2, %v2737_v24 }
 0x1c7   : > { %v2980_v27 = vmul.f32 0.1, %v2746_v23  ;;  %19926 = vmatmul.mubr.msk.bf16.gmra.mrb[160].mxu1 %vm2341_vm0, %v22584_v17  ;;  %v3079_v29 = vmax.f32 %v2743_v15, %v2979_v22  ;;  %v22590_v15 = vld [vmem:[%s23339_s14 + $0x2b8] sm:$0xff]  }
 0x1c8   : > { %v2978_v28 = vmul.f32 0.1, %v2738_v26  ;;  %19929 = vmatprep.mubr.msk.bf16.mxu1 %vm2341_vm0, %v22585_v21  ;;  %v3077_v31 = vmax.f32 %v2735_v19, %v2977_v25  ;;  %v22591_v19 = vld [vmem:[%s23339_s14 + $0x2c0] sm:$0xff]  }
 0x1c9   : > { %v3080_v30 = vmax.f32 %v2746_v23, %v2980_v27 }
 0x1ca   : > { %v3078_v32 = vmax.f32 %v2738_v26, %v2978_v28  ;;  %v19821_v33 = vpop.f32.mrb[56].mxu1 }
 0x1cb   : > { %v3152_v34 = vpack.c.bf16 %v3080_v30, %v3079_v29  ;;  %v2759_v35 = vadd.f32 %v19821_v33, %v23459_v2  ;;  %v2750_v36 = vpop.f32.mrb[57].mxu1 }
 0x1cc   : > { %v3151_v38 = vpack.c.bf16 %v3078_v32, %v3077_v31  ;;  %v2751_v39 = vadd.f32 %v23459_v2, %v2750_v36  ;;  %v19822_v40 = vpop.f32.mrb[58].mxu1 }
 0x1cd   : > { %3203 = vst.msk [vmem:[#allocation2 + $0xd8] sm:$0xff] %vm3175_vm1, %v3152_v34  ;;  %v2983_v42 = vmul.f32 0.1, %v2759_v35  ;;  %v2762_v43 = vadd.f32 %v19822_v40, %v23459_v2  ;;  %v2753_v44 = vpop.f32.mrb[59].mxu1 }
 0x1ce   : > { %3202 = vst.msk [vmem:[#allocation2 + $0xd0] sm:$0xff] %vm3175_vm1, %v3151_v38  ;;  %v2981_v45 = vmul.f32 0.1, %v2751_v39  ;;  %v2754_v46 = vadd.f32 %v23459_v2, %v2753_v44 }
 0x1cf   : > { %v2984_v47 = vmul.f32 0.1, %v2762_v43  ;;  %19930 = vmatmul.mubr.msk.bf16.gmra.mrb[164].mxu1 %vm2341_vm0, %v22586_v37  ;;  %v3083_v50 = vmax.f32 %v2759_v35, %v2983_v42  ;;  %v22592_v35 = vld [vmem:[%s23339_s14 + $0x2c8] sm:$0xff]  }
 0x1d0   : > { %v2982_v48 = vmul.f32 0.1, %v2754_v46  ;;  %19933 = vmatprep.mubr.msk.bf16.mxu1 %vm2341_vm0, %v22587_v41  ;;  %v3081_v52 = vmax.f32 %v2751_v39, %v2981_v45  ;;  %v22593_v39 = vld [vmem:[%s23339_s14 + $0x2d0] sm:$0xff]  }
 0x1d1   : > { %v3084_v51 = vmax.f32 %v2762_v43, %v2984_v47 }
 0x1d2   : > { %v3082_v53 = vmax.f32 %v2754_v46, %v2982_v48  ;;  %v19825_v54 = vpop.f32.mrb[60].mxu1 }
 0x1d3   : > { %v3154_v55 = vpack.c.bf16 %v3084_v51, %v3083_v50  ;;  %v2775_v56 = vadd.f32 %v19825_v54, %v23459_v2  ;;  %v2766_v57 = vpop.f32.mrb[61].mxu1 }
 0x1d4   : > { %v3153_v59 = vpack.c.bf16 %v3082_v53, %v3081_v52  ;;  %v2767_v60 = vadd.f32 %v23459_v2, %v2766_v57  ;;  %v19826_v61 = vpop.f32.mrb[62].mxu1 }
 0x1d5   : > { %3205 = vst.msk [vmem:[#allocation2 + $0xe8] sm:$0xff] %vm3175_vm1, %v3154_v55  ;;  %v2987_v63 = vmul.f32 0.1, %v2775_v56  ;;  %v2778_v0 = vadd.f32 %v19826_v61, %v23459_v2  ;;  %v2769_v1 = vpop.f32.mrb[63].mxu1 }
 0x1d6   : > { %3204 = vst.msk [vmem:[#allocation2 + $0xe0] sm:$0xff] %vm3175_vm1, %v3153_v59  ;;  %v2985_v3 = vmul.f32 0.1, %v2767_v60  ;;  %v2770_v4 = vadd.f32 %v23459_v2, %v2769_v1 }
 0x1d7   : > { %v2988_v5 = vmul.f32 0.1, %v2778_v0  ;;  %19934 = vmatmul.mubr.msk.bf16.gmra.mrb[168].mxu1 %vm2341_vm0, %v22588_v58  ;;  %v3087_v7 = vmax.f32 %v2775_v56, %v2987_v63  ;;  %v22594_v56 = vld [vmem:[%s23339_s14 + $0x2d8] sm:$0xff]  }
 0x1d8   : > { %v2986_v6 = vmul.f32 0.1, %v2770_v4  ;;  %19937 = vmatprep.mubr.msk.bf16.mxu1 %vm2341_vm0, %v22589_v62  ;;  %v3085_v9 = vmax.f32 %v2767_v60, %v2985_v3  ;;  %v22595_v60 = vld [vmem:[%s23339_s14 + $0x2e0] sm:$0xff]  }
 0x1d9   : > { %v3088_v8 = vmax.f32 %v2778_v0, %v2988_v5 }
 0x1da   : > { %v3086_v10 = vmax.f32 %v2770_v4, %v2986_v6  ;;  %v19829_v11 = vpop.f32.mrb[64].mxu1 }
 0x1db   : > { %v3156_v12 = vpack.c.bf16 %v3088_v8, %v3087_v7  ;;  %v2791_v13 = vadd.f32 %v19829_v11, %v23459_v2  ;;  %v2782_v14 = vpop.f32.mrb[65].mxu1  ;;  %v23666_v11 = vld [vmem:[%s26458_s5] ss:$0 sm:$0xff] }
 0x1dc   : > { %v3155_v16 = vpack.c.bf16 %v3086_v10, %v3085_v9  ;;  %v2783_v17 = vadd.f32 %v23459_v2, %v2782_v14  ;;  %v19830_v18 = vpop.f32.mrb[66].mxu1 }
 0x1dd   : > { %3207 = vst.msk [vmem:[#allocation2 + $0xf8] sm:$0xff] %vm3175_vm1, %v3156_v12  ;;  %v2991_v20 = vmul.f32 0.1, %v2791_v13  ;;  %v2794_v21 = vadd.f32 %v19830_v18, %v23459_v2  ;;  %v2785_v22 = vpop.f32.mrb[67].mxu1 }
 0x1de   : > { %3206 = vst.msk [vmem:[#allocation2 + $0xf0] sm:$0xff] %vm3175_vm1, %v3155_v16  ;;  %v2989_v23 = vmul.f32 0.1, %v2783_v17  ;;  %v2786_v24 = vadd.f32 %v23459_v2, %v2785_v22 }
 0x1df   : > { %v2992_v25 = vmul.f32 0.1, %v2794_v21  ;;  %19938 = vmatmul.mubr.msk.bf16.gmra.mrb[172].mxu1 %vm2341_vm0, %v22590_v15  ;;  %v3091_v27 = vmax.f32 %v2791_v13, %v2991_v20  ;;  %v22596_v13 = vld [vmem:[%s23339_s14 + $0x2e8] sm:$0xff]  }
 0x1e0   : > { %v2990_v26 = vmul.f32 0.1, %v2786_v24  ;;  %19941 = vmatprep.mubr.msk.bf16.mxu1 %vm2341_vm0, %v22591_v19  ;;  %v3089_v29 = vmax.f32 %v2783_v17, %v2989_v23  ;;  %v22597_v17 = vld [vmem:[%s23339_s14 + $0x2f0] sm:$0xff]  }
 0x1e1   : > { %v3092_v28 = vmax.f32 %v2794_v21, %v2992_v25 }
 0x1e2   : > { %v3090_v30 = vmax.f32 %v2786_v24, %v2990_v26  ;;  %v19833_v31 = vpop.f32.mrb[68].mxu1 }
 0x1e3   : > { %v3158_v32 = vpack.c.bf16 %v3092_v28, %v3091_v27  ;;  %v2807_v33 = vadd.f32 %v19833_v31, %v23459_v2  ;;  %v2798_v34 = vpop.f32.mrb[69].mxu1 }
 0x1e4   : > { %v3157_v36 = vpack.c.bf16 %v3090_v30, %v3089_v29  ;;  %v2799_v37 = vadd.f32 %v23459_v2, %v2798_v34  ;;  %v19834_v38 = vpop.f32.mrb[70].mxu1 }
 0x1e5   : > { %3209 = vst.msk [vmem:[#allocation2 + $0x108] sm:$0xff] %vm3175_vm1, %v3158_v32  ;;  %v2995_v40 = vmul.f32 0.1, %v2807_v33  ;;  %v2810_v41 = vadd.f32 %v19834_v38, %v23459_v2  ;;  %v2801_v42 = vpop.f32.mrb[71].mxu1 }
 0x1e6   : > { %3208 = vst.msk [vmem:[#allocation2 + $0x100] sm:$0xff] %vm3175_vm1, %v3157_v36  ;;  %v2993_v43 = vmul.f32 0.1, %v2799_v37  ;;  %v2802_v44 = vadd.f32 %v23459_v2, %v2801_v42 }
 0x1e7   : > { %v2996_v45 = vmul.f32 0.1, %v2810_v41  ;;  %19942 = vmatmul.mubr.msk.bf16.gmra.mrb[176].mxu1 %vm2341_vm0, %v22592_v35  ;;  %v3095_v47 = vmax.f32 %v2807_v33, %v2995_v40  ;;  %v22598_v33 = vld [vmem:[%s23339_s14 + $0x2f8] sm:$0xff]  }
 0x1e8   : > { %v2994_v46 = vmul.f32 0.1, %v2802_v44  ;;  %19945 = vmatprep.mubr.msk.bf16.mxu1 %vm2341_vm0, %v22593_v39  ;;  %v3093_v50 = vmax.f32 %v2799_v37, %v2993_v43  ;;  %v22599_v37 = vld [vmem:[%s23339_s14 + $0x300] sm:$0xff]  }
 0x1e9   : > { %v3096_v48 = vmax.f32 %v2810_v41, %v2996_v45 }
 0x1ea   : > { %v3094_v51 = vmax.f32 %v2802_v44, %v2994_v46  ;;  %v19837_v52 = vpop.f32.mrb[72].mxu1 }
 0x1eb   : > { %v3160_v53 = vpack.c.bf16 %v3096_v48, %v3095_v47  ;;  %v2823_v54 = vadd.f32 %v19837_v52, %v23459_v2  ;;  %v2814_v55 = vpop.f32.mrb[73].mxu1 }
 0x1ec   : > { %v3159_v57 = vpack.c.bf16 %v3094_v51, %v3093_v50  ;;  %v2815_v58 = vadd.f32 %v23459_v2, %v2814_v55  ;;  %v19838_v59 = vpop.f32.mrb[74].mxu1 }
 0x1ed   : > { %3211 = vst.msk [vmem:[#allocation2 + $0x118] sm:$0xff] %vm3175_vm1, %v3160_v53  ;;  %v2999_v61 = vmul.f32 0.1, %v2823_v54  ;;  %v2826_v62 = vadd.f32 %v19838_v59, %v23459_v2  ;;  %v2817_v63 = vpop.f32.mrb[75].mxu1 }
 0x1ee   : > { %3210 = vst.msk [vmem:[#allocation2 + $0x110] sm:$0xff] %vm3175_vm1, %v3159_v57  ;;  %v2997_v0 = vmul.f32 0.1, %v2815_v58  ;;  %v2818_v1 = vadd.f32 %v23459_v2, %v2817_v63 }
 0x1ef   : > { %v3000_v3 = vmul.f32 0.1, %v2826_v62  ;;  %19946 = vmatmul.mubr.msk.bf16.gmra.mrb[180].mxu1 %vm2341_vm0, %v22594_v56  ;;  %v3099_v5 = vmax.f32 %v2823_v54, %v2999_v61  ;;  %v22600_v54 = vld [vmem:[%s23339_s14 + $0x308] sm:$0xff]  }
 0x1f0   : > { %v2998_v4 = vmul.f32 0.1, %v2818_v1  ;;  %19949 = vmatprep.mubr.msk.bf16.mxu1 %vm2341_vm0, %v22595_v60  ;;  %v3097_v7 = vmax.f32 %v2815_v58, %v2997_v0  ;;  %v22601_v58 = vld [vmem:[%s23339_s14 + $0x310] sm:$0xff]  }
 0x1f1   : > { %v3100_v6 = vmax.f32 %v2826_v62, %v3000_v3 }
 0x1f2   : > { %v3098_v8 = vmax.f32 %v2818_v1, %v2998_v4  ;;  %v19841_v9 = vpop.f32.mrb[76].mxu1 }
 0x1f3   : > { %v3162_v10 = vpack.c.bf16 %v3100_v6, %v3099_v5  ;;  %v2839_v2 = vadd.f32 %v23666_v11, %v19841_v9  ;;  %v2830_v12 = vpop.f32.mrb[77].mxu1 }
 0x1f4   : > { %v3161_v14 = vpack.c.bf16 %v3098_v8, %v3097_v7  ;;  %v2831_v15 = vadd.f32 %v23666_v11, %v2830_v12  ;;  %v19842_v16 = vpop.f32.mrb[78].mxu1 }
 0x1f5   : > { %3213 = vst.msk [vmem:[#allocation2 + $0x128] sm:$0xff] %vm3175_vm1, %v3162_v10  ;;  %v3003_v18 = vmul.f32 0.1, %v2839_v2  ;;  %v2842_v19 = vadd.f32 %v23666_v11, %v19842_v16  ;;  %v2833_v20 = vpop.f32.mrb[79].mxu1 }
 0x1f6   : > { %3212 = vst.msk [vmem:[#allocation2 + $0x120] sm:$0xff] %vm3175_vm1, %v3161_v14  ;;  %v3001_v21 = vmul.f32 0.1, %v2831_v15  ;;  %v2834_v22 = vadd.f32 %v23666_v11, %v2833_v20 }
 0x1f7   : > { %v3004_v23 = vmul.f32 0.1, %v2842_v19  ;;  %19950 = vmatmul.mubr.msk.bf16.gmra.mrb[184].mxu1 %vm2341_vm0, %v22596_v13  ;;  %v3103_v25 = vmax.f32 %v2839_v2, %v3003_v18  ;;  %v22602_v2 = vld [vmem:[%s23339_s14 + $0x318] sm:$0xff]  }
 0x1f8   : > { %v3002_v24 = vmul.f32 0.1, %v2834_v22  ;;  %19953 = vmatprep.mubr.msk.bf16.mxu1 %vm2341_vm0, %v22597_v17  ;;  %v3101_v27 = vmax.f32 %v2831_v15, %v3001_v21  ;;  %v22603_v15 = vld [vmem:[%s23339_s14 + $0x320] sm:$0xff]  }
 0x1f9   : > { %v3104_v26 = vmax.f32 %v2842_v19, %v3004_v23 }
 0x1fa   : > { %v3102_v28 = vmax.f32 %v2834_v22, %v3002_v24  ;;  %v19845_v29 = vpop.f32.mrb[80].mxu1 }
 0x1fb   : > { %v3164_v30 = vpack.c.bf16 %v3104_v26, %v3103_v25  ;;  %v2855_v31 = vadd.f32 %v23666_v11, %v19845_v29  ;;  %v2846_v32 = vpop.f32.mrb[81].mxu1 }
 0x1fc   : > { %v3163_v34 = vpack.c.bf16 %v3102_v28, %v3101_v27  ;;  %v2847_v35 = vadd.f32 %v23666_v11, %v2846_v32  ;;  %v19846_v36 = vpop.f32.mrb[82].mxu1 }
 0x1fd   : > { %3215 = vst.msk [vmem:[#allocation2 + $0x138] sm:$0xff] %vm3175_vm1, %v3164_v30  ;;  %v3007_v38 = vmul.f32 0.1, %v2855_v31  ;;  %v2858_v39 = vadd.f32 %v23666_v11, %v19846_v36  ;;  %v2849_v40 = vpop.f32.mrb[83].mxu1 }
 0x1fe   : > { %3214 = vst.msk [vmem:[#allocation2 + $0x130] sm:$0xff] %vm3175_vm1, %v3163_v34  ;;  %v3005_v41 = vmul.f32 0.1, %v2847_v35  ;;  %v2850_v42 = vadd.f32 %v23666_v11, %v2849_v40 }
 0x1ff   : > { %v3008_v43 = vmul.f32 0.1, %v2858_v39  ;;  %19954 = vmatmul.mubr.msk.bf16.gmra.mrb[188].mxu1 %vm2341_vm0, %v22598_v33  ;;  %v3107_v45 = vmax.f32 %v2855_v31, %v3007_v38  ;;  %v22605_v31 = vld [vmem:[%s23339_s14 + $0x328] sm:$0xff]  }
 0x200   : > { %v3006_v44 = vmul.f32 0.1, %v2850_v42  ;;  %19957 = vmatprep.mubr.msk.bf16.mxu1 %vm2341_vm0, %v22599_v37  ;;  %v3105_v47 = vmax.f32 %v2847_v35, %v3005_v41  ;;  %v22606_v35 = vld [vmem:[%s23339_s14 + $0x330] sm:$0xff]  }
 0x201   : > { %v3108_v46 = vmax.f32 %v2858_v39, %v3008_v43 }
 0x202   : > { %v3106_v48 = vmax.f32 %v2850_v42, %v3006_v44  ;;  %v19849_v50 = vpop.f32.mrb[84].mxu1 }
 0x203   : > { %v3166_v51 = vpack.c.bf16 %v3108_v46, %v3107_v45  ;;  %v2871_v52 = vadd.f32 %v23666_v11, %v19849_v50  ;;  %v2862_v53 = vpop.f32.mrb[85].mxu1 }
 0x204   : > { %v3165_v55 = vpack.c.bf16 %v3106_v48, %v3105_v47  ;;  %v2863_v56 = vadd.f32 %v23666_v11, %v2862_v53  ;;  %v19850_v57 = vpop.f32.mrb[86].mxu1 }
 0x205   : > { %3217 = vst.msk [vmem:[#allocation2 + $0x148] sm:$0xff] %vm3175_vm1, %v3166_v51  ;;  %v3011_v59 = vmul.f32 0.1, %v2871_v52  ;;  %v2874_v60 = vadd.f32 %v23666_v11, %v19850_v57  ;;  %v2865_v61 = vpop.f32.mrb[87].mxu1 }
 0x206   : > { %3216 = vst.msk [vmem:[#allocation2 + $0x140] sm:$0xff] %vm3175_vm1, %v3165_v55  ;;  %v3009_v62 = vmul.f32 0.1, %v2863_v56  ;;  %v2866_v63 = vadd.f32 %v23666_v11, %v2865_v61 }
 0x207   : > { %v3012_v0 = vmul.f32 0.1, %v2874_v60  ;;  %19958 = vmatmul.mubr.msk.bf16.gmra.mrb[192].mxu1 %vm2341_vm0, %v22600_v54  ;;  %v3111_v3 = vmax.f32 %v2871_v52, %v3011_v59  ;;  %v22607_v52 = vld [vmem:[%s23339_s14 + $0x338] sm:$0xff]  }
 0x208   : > { %v3010_v1 = vmul.f32 0.1, %v2866_v63  ;;  %19961 = vmatprep.mubr.msk.bf16.mxu1 %vm2341_vm0, %v22601_v58  ;;  %v3109_v5 = vmax.f32 %v2863_v56, %v3009_v62  ;;  %v22608_v56 = vld [vmem:[%s23339_s14 + $0x340] sm:$0xff]  }
 0x209   : > { %v3112_v4 = vmax.f32 %v2874_v60, %v3012_v0 }
 0x20a   : > { %v3110_v6 = vmax.f32 %v2866_v63, %v3010_v1  ;;  %v19853_v7 = vpop.f32.mrb[88].mxu1  ;;  %v23731_v63 = vld [vmem:[%s26458_s5] ss:$0 sm:$0xff] }
 0x20b   : > { %v3168_v8 = vpack.c.bf16 %v3112_v4, %v3111_v3  ;;  %v2887_v9 = vadd.f32 %v23666_v11, %v19853_v7  ;;  %v2878_v10 = vpop.f32.mrb[89].mxu1 }
 0x20c   : > { %v3167_v12 = vpack.c.bf16 %v3110_v6, %v3109_v5  ;;  %v2879_v13 = vadd.f32 %v23666_v11, %v2878_v10  ;;  %v19854_v14 = vpop.f32.mrb[90].mxu1 }
 0x20d   : > { %3219 = vst.msk [vmem:[#allocation2 + $0x158] sm:$0xff] %vm3175_vm1, %v3168_v8  ;;  %v3015_v16 = vmul.f32 0.1, %v2887_v9  ;;  %v2890_v17 = vadd.f32 %v23666_v11, %v19854_v14  ;;  %v2881_v18 = vpop.f32.mrb[91].mxu1  ;;  %v22609_v8 = vld [vmem:[%s23339_s14 + $0x348] sm:$0xff]  }
 0x20e   : > { %3218 = vst.msk [vmem:[#allocation2 + $0x150] sm:$0xff] %vm3175_vm1, %v3167_v12  ;;  %v3013_v19 = vmul.f32 0.1, %v2879_v13  ;;  %v2882_v20 = vadd.f32 %v23666_v11, %v2881_v18  ;;  %v22610_v12 = vld [vmem:[%s23339_s14 + $0x350] sm:$0xff]  }
 0x20f   : > { %v3016_v21 = vmul.f32 0.1, %v2890_v17  ;;  %19962 = vmatmul.mubr.msk.bf16.gmra.mrb[196].mxu1 %vm2341_vm0, %v22602_v2  ;;  %v3115_v23 = vmax.f32 %v2887_v9, %v3015_v16 }
 0x210   : > { %v3014_v22 = vmul.f32 0.1, %v2882_v20  ;;  %19967 = vmatprep.mubr.msk.bf16.mxu1 %vm2341_vm0, %v22603_v15  ;;  %v3113_v25 = vmax.f32 %v2879_v13, %v3013_v19 }
 0x211   : > { %v3116_v24 = vmax.f32 %v2890_v17, %v3016_v21 }
 0x212   : > { %v3114_v26 = vmax.f32 %v2882_v20, %v3014_v22  ;;  %v19857_v27 = vpop.f32.mrb[92].mxu1 }
 0x213   : > { %v3170_v28 = vpack.c.bf16 %v3116_v24, %v3115_v23  ;;  %v2903_v29 = vadd.f32 %v23666_v11, %v19857_v27  ;;  %v2894_v30 = vpop.f32.mrb[93].mxu1 }
 0x214   : > { %v3169_v32 = vpack.c.bf16 %v3114_v26, %v3113_v25  ;;  %v2895_v33 = vadd.f32 %v23666_v11, %v2894_v30  ;;  %v19858_v34 = vpop.f32.mrb[94].mxu1 }
 0x215   : > { %3221 = vst.msk [vmem:[#allocation2 + $0x168] sm:$0xff] %vm3175_vm1, %v3170_v28  ;;  %v3019_v36 = vmul.f32 0.1, %v2903_v29  ;;  %v2906_v37 = vadd.f32 %v23666_v11, %v19858_v34  ;;  %v2897_v38 = vpop.f32.mrb[95].mxu1  ;;  %v22611_v28 = vld [vmem:[%s23339_s14 + $0x358] sm:$0xff]  }
 0x216   : > { %3220 = vst.msk [vmem:[#allocation2 + $0x160] sm:$0xff] %vm3175_vm1, %v3169_v32  ;;  %v3017_v39 = vmul.f32 0.1, %v2895_v33  ;;  %v2898_v40 = vadd.f32 %v23666_v11, %v2897_v38  ;;  %v22612_v32 = vld [vmem:[%s23339_s14 + $0x360] sm:$0xff]  }
 0x217   : > { %v3020_v41 = vmul.f32 0.1, %v2906_v37  ;;  %19968 = vmatmul.mubr.msk.bf16.vlgmr.msra.gmra.mrb[200].mxu1 %vm2341_vm0, %v22605_v31  ;;  %v3119_v43 = vmax.f32 %v2903_v29, %v3019_v36 }
 0x218   : > { %v3018_v42 = vmul.f32 0.1, %v2898_v40  ;;  %20068 = vmatpush3.bf16.msra.mxu1 %v23552_v49  ;;  %19971 = vmatprep.mubr.msk.bf16.mxu1 %vm2341_vm0, %v22606_v35  ;;  %v3117_v45 = vmax.f32 %v2895_v33, %v3017_v39 }
 0x219   : > { %v3120_v44 = vmax.f32 %v2906_v37, %v3020_v41 }
 0x21a   : > { %v3118_v46 = vmax.f32 %v2898_v40, %v3018_v42  ;;  %v19861_v47 = vpop.f32.mrb[96].mxu1 }
 0x21b   : > { %v3172_v48 = vpack.c.bf16 %v3120_v44, %v3119_v43  ;;  %v2919_v50 = vadd.f32 %v23666_v11, %v19861_v47  ;;  %v2910_v51 = vpop.f32.mrb[97].mxu1 }
 0x21c   : > { %v3171_v53 = vpack.c.bf16 %v3118_v46, %v3117_v45  ;;  %v2911_v54 = vadd.f32 %v23666_v11, %v2910_v51  ;;  %v19862_v55 = vpop.f32.mrb[98].mxu1 }
 0x21d   : > { %3223 = vst.msk [vmem:[#allocation2 + $0x178] sm:$0xff] %vm3175_vm1, %v3172_v48  ;;  %v3023_v49 = vmul.f32 0.1, %v2919_v50  ;;  %v2922_v57 = vadd.f32 %v23666_v11, %v19862_v55  ;;  %v2913_v58 = vpop.f32.mrb[99].mxu1  ;;  %v22613_v48 = vld [vmem:[%s23339_s14 + $0x368] sm:$0xff]  }
 0x21e   : > { %3222 = vst.msk [vmem:[#allocation2 + $0x170] sm:$0xff] %vm3175_vm1, %v3171_v53  ;;  %v3021_v59 = vmul.f32 0.1, %v2911_v54  ;;  %v2914_v60 = vadd.f32 %v23666_v11, %v2913_v58  ;;  %v22616_v53 = vld [vmem:[%s23339_s14 + $0x370] sm:$0xff]  }
 0x21f   : > { %v3024_v61 = vmul.f32 0.1, %v2922_v57  ;;  %19972 = vmatmul.mubr.msk.bf16.gmra.mrb[204].mxu1 %vm2341_vm0, %v22607_v52  ;;  %v3123_v0 = vmax.f32 %v2919_v50, %v3023_v49 }
 0x220   : > { %v3022_v62 = vmul.f32 0.1, %v2914_v60  ;;  %19975 = vmatprep.mubr.msk.bf16.mxu1 %vm2341_vm0, %v22608_v56  ;;  %v3121_v3 = vmax.f32 %v2911_v54, %v3021_v59 }
 0x221   : > { %v3124_v1 = vmax.f32 %v2922_v57, %v3024_v61 }
 0x222   : > { %v3122_v4 = vmax.f32 %v2914_v60, %v3022_v62  ;;  %v19867_v5 = vpop.f32.mrb[100].mxu1 }
 0x223   : > { %v3174_v6 = vpack.c.bf16 %v3124_v1, %v3123_v0  ;;  %v3785_v11 = vadd.f32 %v19867_v5, %v23731_v63  ;;  %v3776_v7 = vpop.f32.mrb[101].mxu1 }
 0x224   : > { %v3173_v9 = vpack.c.bf16 %v3122_v4, %v3121_v3  ;;  %v3777_v10 = vadd.f32 %v23731_v63, %v3776_v7  ;;  %v19868_v2 = vpop.f32.mrb[102].mxu1 }
 0x225   : > { %3225 = vst.msk [vmem:[#allocation2 + $0x188] sm:$0xff] %vm3175_vm1, %v3174_v6  ;;  %v4177_v13 = vmul.f32 0.1, %v3785_v11  ;;  %v3788_v14 = vadd.f32 %v19868_v2, %v23731_v63  ;;  %v3779_v15 = vpop.f32.mrb[103].mxu1  ;;  %v22617_v6 = vld [vmem:[%s23339_s14 + $0x378] sm:$0xff]  }
 0x226   : > { %3224 = vst.msk [vmem:[#allocation2 + $0x180] sm:$0xff] %vm3175_vm1, %v3173_v9  ;;  %v4175_v16 = vmul.f32 0.1, %v3777_v10  ;;  %v3780_v17 = vadd.f32 %v23731_v63, %v3779_v15  ;;  %v22618_v9 = vld [vmem:[%s23339_s14 + $0x380] sm:$0xff]  }
 0x227   : > { %v4178_v18 = vmul.f32 0.1, %v3788_v14  ;;  %19976 = vmatmul.mubr.msk.bf16.gmra.mrb[208].mxu1 %vm2341_vm0, %v22609_v8  ;;  %v4277_v20 = vmax.f32 %v3785_v11, %v4177_v13 }
 0x228   : > { %v4176_v19 = vmul.f32 0.1, %v3780_v17  ;;  %19979 = vmatprep.mubr.msk.bf16.mxu1 %vm2341_vm0, %v22610_v12  ;;  %v4275_v22 = vmax.f32 %v3777_v10, %v4175_v16 }
 0x229   : > { %v4278_v21 = vmax.f32 %v3788_v14, %v4178_v18 }
 0x22a   : > { %v4276_v23 = vmax.f32 %v3780_v17, %v4176_v19  ;;  %v19871_v24 = vpop.f32.mrb[104].mxu1 }
 0x22b   : > { %v4376_v25 = vpack.c.bf16 %v4278_v21, %v4277_v20  ;;  %v3801_v26 = vadd.f32 %v19871_v24, %v23731_v63  ;;  %v3792_v27 = vpop.f32.mrb[105].mxu1 }
 0x22c   : > { %v4375_v29 = vpack.c.bf16 %v4276_v23, %v4275_v22  ;;  %v3793_v30 = vadd.f32 %v23731_v63, %v3792_v27  ;;  %v19872_v31 = vpop.f32.mrb[106].mxu1  ;;  %v22619_v27 = vld [vmem:[%s23339_s14 + $0x388] sm:$0xff]  }
 0x22d   : > { %4427 = vst.msk [vmem:[#allocation2 + $0x198] sm:$0xff] %vm3175_vm1, %v4376_v25  ;;  %v4181_v33 = vmul.f32 0.1, %v3801_v26  ;;  %v3804_v34 = vadd.f32 %v19872_v31, %v23731_v63  ;;  %v3795_v35 = vpop.f32.mrb[107].mxu1  ;;  %v22620_v31 = vld [vmem:[%s23339_s14 + $0x390] sm:$0xff]  }
 0x22e   : > { %4426 = vst.msk [vmem:[#allocation2 + $0x190] sm:$0xff] %vm3175_vm1, %v4375_v29  ;;  %v4179_v36 = vmul.f32 0.1, %v3793_v30  ;;  %v3796_v37 = vadd.f32 %v23731_v63, %v3795_v35 }
 0x22f   : > { %v4182_v38 = vmul.f32 0.1, %v3804_v34  ;;  %19980 = vmatmul.mubr.msk.bf16.gmra.mrb[212].mxu1 %vm2341_vm0, %v22611_v28  ;;  %v4281_v40 = vmax.f32 %v3801_v26, %v4181_v33 }
 0x230   : > { %v4180_v39 = vmul.f32 0.1, %v3796_v37  ;;  %19983 = vmatprep.mubr.msk.bf16.mxu1 %vm2341_vm0, %v22612_v32  ;;  %v4279_v42 = vmax.f32 %v3793_v30, %v4179_v36 }
 0x231   : > { %v4282_v41 = vmax.f32 %v3804_v34, %v4182_v38 }
 0x232   : > { %v4280_v43 = vmax.f32 %v3796_v37, %v4180_v39  ;;  %v19875_v44 = vpop.f32.mrb[108].mxu1 }
 0x233   : > { %v4378_v45 = vpack.c.bf16 %v4282_v41, %v4281_v40  ;;  %v3817_v46 = vadd.f32 %v19875_v44, %v23731_v63  ;;  %v3808_v47 = vpop.f32.mrb[109].mxu1 }
 0x234   : > { %v4377_v50 = vpack.c.bf16 %v4280_v43, %v4279_v42  ;;  %v3809_v51 = vadd.f32 %v23731_v63, %v3808_v47  ;;  %v19876_v52 = vpop.f32.mrb[110].mxu1 }
 0x235   : > { %4429 = vst.msk [vmem:[#allocation2 + $0x1a8] sm:$0xff] %vm3175_vm1, %v4378_v45  ;;  %v4185_v54 = vmul.f32 0.1, %v3817_v46  ;;  %v3820_v55 = vadd.f32 %v19876_v52, %v23731_v63  ;;  %v3811_v56 = vpop.f32.mrb[111].mxu1 }
 0x236   : > { %4428 = vst.msk [vmem:[#allocation2 + $0x1a0] sm:$0xff] %vm3175_vm1, %v4377_v50  ;;  %v4183_v49 = vmul.f32 0.1, %v3809_v51  ;;  %v3812_v57 = vadd.f32 %v23731_v63, %v3811_v56  ;;  %v22621_v50 = vld [vmem:[%s23339_s14 + $0x398] sm:$0xff]  }
 0x237   : > { %v4186_v58 = vmul.f32 0.1, %v3820_v55  ;;  %19984 = vmatmul.mubr.msk.bf16.gmra.mrb[216].mxu1 %vm2341_vm0, %v22613_v48  ;;  %v4285_v60 = vmax.f32 %v3817_v46, %v4185_v54  ;;  %v22622_v54 = vld [vmem:[%s23339_s14 + $0x3a0] sm:$0xff]  }
 0x238   : > { %v4184_v59 = vmul.f32 0.1, %v3812_v57  ;;  %19987 = vmatprep.mubr.msk.bf16.mxu1 %vm2341_vm0, %v22616_v53  ;;  %v4283_v62 = vmax.f32 %v3809_v51, %v4183_v49 }
 0x239   : > { %v4286_v61 = vmax.f32 %v3820_v55, %v4186_v58 }
 0x23a   : > { %v4284_v0 = vmax.f32 %v3812_v57, %v4184_v59  ;;  %v19879_v1 = vpop.f32.mrb[112].mxu1 }
 0x23b   : > { %v4380_v3 = vpack.c.bf16 %v4286_v61, %v4285_v60  ;;  %v3833_v4 = vadd.f32 %v19879_v1, %v23731_v63  ;;  %v3824_v5 = vpop.f32.mrb[113].mxu1 }
 0x23c   : > { %v4379_v11 = vpack.c.bf16 %v4284_v0, %v4283_v62  ;;  %v3825_v7 = vadd.f32 %v23731_v63, %v3824_v5  ;;  %v19880_v8 = vpop.f32.mrb[114].mxu1  ;;  %v8344_v16 = vld [vmem:[#allocation2 + $0x1a8] sm:$0xff] }
 0x23d   : > { %4431 = vst.msk [vmem:[#allocation2 + $0x1b8] sm:$0xff] %vm3175_vm1, %v4380_v3  ;;  %v4189_v10 = vmul.f32 0.1, %v3833_v4  ;;  %v3836_v2 = vadd.f32 %v19880_v8, %v23731_v63  ;;  %v3827_v12 = vpop.f32.mrb[115].mxu1  ;;  %v8343_v13 = vld [vmem:[#allocation2 + $0x1a0] sm:$0xff]  ;;  %v22623_v8 = vld [vmem:[%s23339_s14 + $0x3a8] sm:$0xff]  }
 0x23e   : > { %4430 = vst.msk [vmem:[#allocation2 + $0x1b0] sm:$0xff] %vm3175_vm1, %v4379_v11  ;;  %v4187_v14 = vmul.f32 0.1, %v3825_v7  ;;  %v3828_v15 = vadd.f32 %v23731_v63, %v3827_v12  ;;  %20377 = vmatprep.mubr.msk.bf16.mxu0 %vm3175_vm1, %v8343_v13  ;;  %v22624_v12 = vld [vmem:[%s23339_s14 + $0x3b0] sm:$0xff]  }
 0x23f   : > { %v4190_v17 = vmul.f32 0.1, %v3836_v2  ;;  %19988 = vmatmul.mubr.msk.bf16.gmra.mrb[220].mxu1 %vm2341_vm0, %v22617_v6  ;;  %20378 = vmatmul.mubr.msk.bf16.vlgmr.msra.gmra.mrb[0].mxu0 %vm3175_vm1, %v8344_v16  ;;  %v4289_v19 = vmax.f32 %v3833_v4, %v4189_v10 }
 0x240   : > { %v4188_v18 = vmul.f32 0.1, %v3828_v15  ;;  %19991 = vmatprep.mubr.msk.bf16.mxu1 %vm2341_vm0, %v22618_v9  ;;  %v4287_v21 = vmax.f32 %v3825_v7, %v4187_v14 }
 0x241   : > { %v4290_v20 = vmax.f32 %v3836_v2, %v4190_v17 }
 0x242   : > { %v4288_v22 = vmax.f32 %v3828_v15, %v4188_v18  ;;  %v19883_v23 = vpop.f32.mrb[116].mxu1 }
 0x243   : > { %v4382_v24 = vpack.c.bf16 %v4290_v20, %v4289_v19  ;;  %v3849_v25 = vadd.f32 %v19883_v23, %v23731_v63  ;;  %v3840_v26 = vpop.f32.mrb[117].mxu1 }
 0x244   : > { %v4381_v28 = vpack.c.bf16 %v4288_v22, %v4287_v21  ;;  %v3841_v29 = vadd.f32 %v23731_v63, %v3840_v26  ;;  %v19884_v30 = vpop.f32.mrb[118].mxu1  ;;  %v8346_v38 = vld [vmem:[#allocation2 + $0x1b8] sm:$0xff] }
 0x245   : > { %4433 = vst.msk [vmem:[#allocation2 + $0x1c8] sm:$0xff] %vm3175_vm1, %v4382_v24  ;;  %v4193_v32 = vmul.f32 0.1, %v3849_v25  ;;  %v3852_v33 = vadd.f32 %v19884_v30, %v23731_v63  ;;  %v3843_v34 = vpop.f32.mrb[119].mxu1  ;;  %v8345_v35 = vld [vmem:[#allocation2 + $0x1b0] sm:$0xff]  ;;  %v22625_v30 = vld [vmem:[%s23339_s14 + $0x3b8] sm:$0xff]  }
 0x246   : > { %4432 = vst.msk [vmem:[#allocation2 + $0x1c0] sm:$0xff] %vm3175_vm1, %v4381_v28  ;;  %v4191_v36 = vmul.f32 0.1, %v3841_v29  ;;  %v3844_v37 = vadd.f32 %v23731_v63, %v3843_v34  ;;  %20381 = vmatprep.mubr.msk.bf16.mxu0 %vm3175_vm1, %v8345_v35  ;;  %v22626_v34 = vld [vmem:[%s23339_s14 + $0x3c0] sm:$0xff]  }
 0x247   : > { %v4194_v39 = vmul.f32 0.1, %v3852_v33  ;;  %19992 = vmatmul.mubr.msk.bf16.gmra.mrb[224].mxu1 %vm2341_vm0, %v22619_v27  ;;  %20382 = vmatmul.mubr.msk.bf16.gmra.mrb[4].mxu0 %vm3175_vm1, %v8346_v38  ;;  %v4293_v41 = vmax.f32 %v3849_v25, %v4193_v32 }
 0x248   : > { %v4192_v40 = vmul.f32 0.1, %v3844_v37  ;;  %19995 = vmatprep.mubr.msk.bf16.mxu1 %vm2341_vm0, %v22620_v31  ;;  %v4291_v43 = vmax.f32 %v3841_v29, %v4191_v36 }
 0x249   : > { %v4294_v42 = vmax.f32 %v3852_v33, %v4194_v39 }
 0x24a   : > { %v4292_v44 = vmax.f32 %v3844_v37, %v4192_v40  ;;  %v19887_v45 = vpop.f32.mrb[120].mxu1 }
 0x24b   : > { %v4384_v46 = vpack.c.bf16 %v4294_v42, %v4293_v41  ;;  %v3865_v47 = vadd.f32 %v19887_v45, %v23731_v63  ;;  %v3856_v48 = vpop.f32.mrb[121].mxu1 }
 0x24c   : > { %v4383_v51 = vpack.c.bf16 %v4292_v44, %v4291_v43  ;;  %v3857_v52 = vadd.f32 %v23731_v63, %v3856_v48  ;;  %v19888_v53 = vpop.f32.mrb[122].mxu1  ;;  %v8348_v60 = vld [vmem:[#allocation2 + $0x1c8] sm:$0xff] }
 0x24d   : > { %4435 = vst.msk [vmem:[#allocation2 + $0x1d8] sm:$0xff] %vm3175_vm1, %v4384_v46  ;;  %v4197_v55 = vmul.f32 0.1, %v3865_v47  ;;  %v3868_v56 = vadd.f32 %v19888_v53, %v23731_v63  ;;  %v3859_v49 = vpop.f32.mrb[123].mxu1  ;;  %v8347_v57 = vld [vmem:[#allocation2 + $0x1c0] sm:$0xff] }
 0x24e   : > { %4434 = vst.msk [vmem:[#allocation2 + $0x1d0] sm:$0xff] %vm3175_vm1, %v4383_v51  ;;  %v4195_v58 = vmul.f32 0.1, %v3857_v52  ;;  %v3860_v59 = vadd.f32 %v23731_v63, %v3859_v49  ;;  %20385 = vmatprep.mubr.msk.bf16.mxu0 %vm3175_vm1, %v8347_v57  ;;  %v22627_v51 = vld [vmem:[%s23339_s14 + $0x3c8] sm:$0xff]  }
 0x24f   : > { %v4198_v61 = vmul.f32 0.1, %v3868_v56  ;;  %19996 = vmatmul.mubr.msk.bf16.gmra.mrb[228].mxu1 %vm2341_vm0, %v22621_v50  ;;  %20386 = vmatmul.mubr.msk.bf16.gmra.mrb[8].mxu0 %vm3175_vm1, %v8348_v60  ;;  %v4297_v0 = vmax.f32 %v3865_v47, %v4197_v55  ;;  %v22628_v55 = vld [vmem:[%s23339_s14 + $0x3d0] sm:$0xff]  }
 0x250   : > { %v4196_v62 = vmul.f32 0.1, %v3860_v59  ;;  %19999 = vmatprep.mubr.msk.bf16.mxu1 %vm2341_vm0, %v22622_v54  ;;  %v4295_v3 = vmax.f32 %v3857_v52, %v4195_v58 }
 0x251   : > { %v4298_v1 = vmax.f32 %v3868_v56, %v4198_v61 }
 0x252   : > { %v4296_v4 = vmax.f32 %v3860_v59, %v4196_v62  ;;  %v19891_v5 = vpop.f32.mrb[124].mxu1 }
 0x253   : > { %v4386_v6 = vpack.c.bf16 %v4298_v1, %v4297_v0  ;;  %v3881_v11 = vadd.f32 %v19891_v5, %v23731_v63  ;;  %v3872_v7 = vpop.f32.mrb[125].mxu1 }
 0x254   : > { %v4385_v9 = vpack.c.bf16 %v4296_v4, %v4295_v3  ;;  %v3873_v10 = vadd.f32 %v23731_v63, %v3872_v7  ;;  %v19892_v2 = vpop.f32.mrb[126].mxu1  ;;  %v8350_v19 = vld [vmem:[#allocation2 + $0x1d8] sm:$0xff] }
 0x255   : > { %4437 = vst.msk [vmem:[#allocation2 + $0x1e8] sm:$0xff] %vm3175_vm1, %v4386_v6  ;;  %v4201_v13 = vmul.f32 0.1, %v3881_v11  ;;  %v3884_v14 = vadd.f32 %v19892_v2, %v23731_v63  ;;  %v3875_v15 = vpop.f32.mrb[127].mxu1  ;;  %v8349_v16 = vld [vmem:[#allocation2 + $0x1d0] sm:$0xff] }
 0x256   : > { %4436 = vst.msk [vmem:[#allocation2 + $0x1e0] sm:$0xff] %vm3175_vm1, %v4385_v9  ;;  %v4199_v17 = vmul.f32 0.1, %v3873_v10  ;;  %v3876_v18 = vadd.f32 %v23731_v63, %v3875_v15  ;;  %20389 = vmatprep.mubr.msk.bf16.mxu0 %vm3175_vm1, %v8349_v16  ;;  %v22629_v9 = vld [vmem:[%s23339_s14 + $0x3d8] sm:$0xff]  }
 0x257   : > { %v4202_v20 = vmul.f32 0.1, %v3884_v14  ;;  %20000 = vmatmul.mubr.msk.bf16.gmra.mrb[232].mxu1 %vm2341_vm0, %v22623_v8  ;;  %20390 = vmatmul.mubr.msk.bf16.gmra.mrb[12].mxu0 %vm3175_vm1, %v8350_v19  ;;  %v4301_v22 = vmax.f32 %v3881_v11, %v4201_v13  ;;  %v22630_v13 = vld [vmem:[%s23339_s14 + $0x3e0] sm:$0xff]  }
 0x258   : > { %v4200_v21 = vmul.f32 0.1, %v3876_v18  ;;  %20003 = vmatprep.mubr.msk.bf16.mxu1 %vm2341_vm0, %v22624_v12  ;;  %v4299_v24 = vmax.f32 %v3873_v10, %v4199_v17 }
 0x259   : > { %v4302_v23 = vmax.f32 %v3884_v14, %v4202_v20 }
 0x25a   : > { %v4300_v25 = vmax.f32 %v3876_v18, %v4200_v21  ;;  %v19895_v26 = vpop.f32.mrb[128].mxu1 }
 0x25b   : > { %v4388_v27 = vpack.c.bf16 %v4302_v23, %v4301_v22  ;;  %v3897_v28 = vadd.f32 %v19895_v26, %v23731_v63  ;;  %v3888_v29 = vpop.f32.mrb[129].mxu1 }
 0x25c   : > { %v4387_v31 = vpack.c.bf16 %v4300_v25, %v4299_v24  ;;  %v3889_v32 = vadd.f32 %v23731_v63, %v3888_v29  ;;  %v19896_v33 = vpop.f32.mrb[130].mxu1 }
 0x25d   : > { %4439 = vst.msk [vmem:[#allocation2 + $0x1f8] sm:$0xff] %vm3175_vm1, %v4388_v27  ;;  %v4205_v35 = vmul.f32 0.1, %v3897_v28  ;;  %v3900_v36 = vadd.f32 %v19896_v33, %v23731_v63  ;;  %v3891_v37 = vpop.f32.mrb[131].mxu1 }
 0x25e   : > { %4438 = vst.msk [vmem:[#allocation2 + $0x1f0] sm:$0xff] %vm3175_vm1, %v4387_v31  ;;  %v4203_v38 = vmul.f32 0.1, %v3889_v32  ;;  %v3892_v39 = vadd.f32 %v23731_v63, %v3891_v37  ;;  %v22631_v31 = vld [vmem:[%s23339_s14 + $0x3e8] sm:$0xff]  }
 0x25f   : > { %v4206_v40 = vmul.f32 0.1, %v3900_v36  ;;  %20004 = vmatmul.mubr.msk.bf16.gmra.mrb[236].mxu1 %vm2341_vm0, %v22625_v30  ;;  %v4305_v42 = vmax.f32 %v3897_v28, %v4205_v35  ;;  %v22632_v35 = vld [vmem:[%s23339_s14 + $0x3f0] sm:$0xff]  }
 0x260   : > { %v4204_v41 = vmul.f32 0.1, %v3892_v39  ;;  %20007 = vmatprep.mubr.msk.bf16.mxu1 %vm2341_vm0, %v22626_v34  ;;  %v4303_v44 = vmax.f32 %v3889_v32, %v4203_v38 }
 0x261   : > { %v4306_v43 = vmax.f32 %v3900_v36, %v4206_v40  ;;  %v22664_v40 = vld [vmem:[%s26455_s2 + $0x40] sm:$0xff]  }
 0x262   : > { %v4304_v45 = vmax.f32 %v3892_v39, %v4204_v41  ;;  %v19899_v46 = vpop.f32.mrb[132].mxu1  ;;  %20441 = vmatprep.subr.bf16.mxu0 %v22664_v40 }
 0x263   : > { %v4390_v47 = vpack.c.bf16 %v4306_v43, %v4305_v42  ;;  %v3913_v48 = vadd.f32 %v19899_v46, %v23731_v63  ;;  %v3904_v50 = vpop.f32.mrb[133].mxu1  ;;  %20442 = vmatpush3.bf16.msra.mxu0 %v22664_v40 }
 0x264   : > { %v4389_v52 = vpack.c.bf16 %v4304_v45, %v4303_v44  ;;  %v3905_v53 = vadd.f32 %v23731_v63, %v3904_v50  ;;  %v19900_v54 = vpop.f32.mrb[134].mxu1  ;;  %v8352_v61 = vld [vmem:[#allocation2 + $0x1f8] sm:$0xff] }
 0x265   : > { %4441 = vst.msk [vmem:[#allocation2 + $0x208] sm:$0xff] %vm3175_vm1, %v4390_v47  ;;  %v4209_v56 = vmul.f32 0.1, %v3913_v48  ;;  %v3916_v49 = vadd.f32 %v19900_v54, %v23731_v63  ;;  %v3907_v57 = vpop.f32.mrb[135].mxu1  ;;  %v8351_v58 = vld [vmem:[#allocation2 + $0x1f0] sm:$0xff] }
 0x266   : > { %4440 = vst.msk [vmem:[#allocation2 + $0x200] sm:$0xff] %vm3175_vm1, %v4389_v52  ;;  %v4207_v59 = vmul.f32 0.1, %v3905_v53  ;;  %v3908_v60 = vadd.f32 %v23731_v63, %v3907_v57  ;;  %20393 = vmatprep.mubr.msk.bf16.mxu0 %vm3175_vm1, %v8351_v58 }
 0x267   : > { %v4210_v62 = vmul.f32 0.1, %v3916_v49  ;;  %20008 = vmatmul.mubr.msk.bf16.gmra.mrb[240].mxu1 %vm2341_vm0, %v22627_v51  ;;  %20394 = vmatmul.mubr.msk.bf16.gmra.mrb[16].mxu0 %vm3175_vm1, %v8352_v61  ;;  %v4309_v1 = vmax.f32 %v3913_v48, %v4209_v56  ;;  %v22665_v48 = vld [vmem:[%s26455_s2 + $0x48] sm:$0xff]   ;;  %v22633_v56 = vld [vmem:[%s23339_s14 + $0x3f8] sm:$0xff]  }
 0x268   : > { %v4208_v0 = vmul.f32 0.1, %v3908_v60  ;;  %20011 = vmatprep.mubr.msk.bf16.mxu1 %vm2341_vm0, %v22628_v55  ;;  %v4307_v4 = vmax.f32 %v3905_v53, %v4207_v59  ;;  %20443 = vmatprep.subr.bf16.mxu0 %v22665_v48  ;;  %v22634_v59 = vld [vmem:[%s23339_s14 + $0x400] sm:$0xff]  }
 0x269   : > { %v4310_v3 = vmax.f32 %v3916_v49, %v4210_v62  ;;  %20444 = vmatpush3.bf16.msra.mxu0 %v22665_v48 }
 0x26a   : > { %v4308_v5 = vmax.f32 %v3908_v60, %v4208_v0  ;;  %v19903_v6 = vpop.f32.mrb[136].mxu1 }
 0x26b   : > { %v4392_v11 = vpack.c.bf16 %v4310_v3, %v4309_v1  ;;  %v3929_v7 = vadd.f32 %v19903_v6, %v23731_v63  ;;  %v3920_v8 = vpop.f32.mrb[137].mxu1 }
 0x26c   : > { %v4391_v10 = vpack.c.bf16 %v4308_v5, %v4307_v4  ;;  %v3921_v2 = vadd.f32 %v23731_v63, %v3920_v8  ;;  %v19904_v12 = vpop.f32.mrb[138].mxu1  ;;  %v8354_v20 = vld [vmem:[#allocation2 + $0x208] sm:$0xff] }
 0x26d   : > { %4443 = vst.msk [vmem:[#allocation2 + $0x218] sm:$0xff] %vm3175_vm1, %v4392_v11  ;;  %v4213_v14 = vmul.f32 0.1, %v3929_v7  ;;  %v3932_v15 = vadd.f32 %v19904_v12, %v23731_v63  ;;  %v3923_v16 = vpop.f32.mrb[139].mxu1  ;;  %v8353_v17 = vld [vmem:[#allocation2 + $0x200] sm:$0xff] }
 0x26e   : > { %4442 = vst.msk [vmem:[#allocation2 + $0x210] sm:$0xff] %vm3175_vm1, %v4391_v10  ;;  %v4211_v18 = vmul.f32 0.1, %v3921_v2  ;;  %v3924_v19 = vadd.f32 %v23731_v63, %v3923_v16  ;;  %20397 = vmatprep.mubr.msk.bf16.mxu0 %vm3175_vm1, %v8353_v17 }
 0x26f   : > { %v4214_v21 = vmul.f32 0.1, %v3932_v15  ;;  %20012 = vmatmul.mubr.msk.bf16.gmra.mrb[244].mxu1 %vm2341_vm0, %v22629_v9  ;;  %20398 = vmatmul.mubr.msk.bf16.gmra.mrb[20].mxu0 %vm3175_vm1, %v8354_v20  ;;  %v4313_v23 = vmax.f32 %v3929_v7, %v4213_v14  ;;  %v22635_v14 = vld [vmem:[%s23339_s14 + $0x408] sm:$0xff]  }
 0x270   : > { %v4212_v22 = vmul.f32 0.1, %v3924_v19  ;;  %20015 = vmatprep.mubr.msk.bf16.mxu1 %vm2341_vm0, %v22630_v13  ;;  %v4311_v25 = vmax.f32 %v3921_v2, %v4211_v18  ;;  %v22636_v18 = vld [vmem:[%s23339_s14 + $0x410] sm:$0xff]  }
 0x271   : > { %v4314_v24 = vmax.f32 %v3932_v15, %v4214_v21 }
 0x272   : > { %v4312_v26 = vmax.f32 %v3924_v19, %v4212_v22  ;;  %v19907_v27 = vpop.f32.mrb[140].mxu1 }
 0x273   : > { %v4394_v28 = vpack.c.bf16 %v4314_v24, %v4313_v23  ;;  %v3945_v29 = vadd.f32 %v19907_v27, %v23731_v63  ;;  %v3936_v30 = vpop.f32.mrb[141].mxu1 }
 0x274   : > { %v4393_v32 = vpack.c.bf16 %v4312_v26, %v4311_v25  ;;  %v3937_v33 = vadd.f32 %v23731_v63, %v3936_v30  ;;  %v19908_v34 = vpop.f32.mrb[142].mxu1  ;;  %v8356_v43 = vld [vmem:[#allocation2 + $0x218] sm:$0xff] }
 0x275   : > { %4445 = vst.msk [vmem:[#allocation2 + $0x228] sm:$0xff] %vm3175_vm1, %v4394_v28  ;;  %v4217_v36 = vmul.f32 0.1, %v3945_v29  ;;  %v3948_v37 = vadd.f32 %v19908_v34, %v23731_v63  ;;  %v3939_v38 = vpop.f32.mrb[143].mxu1  ;;  %v8355_v39 = vld [vmem:[#allocation2 + $0x210] sm:$0xff]  ;;  %v22637_v34 = vld [vmem:[%s23339_s14 + $0x418] sm:$0xff]  }
 0x276   : > { %4444 = vst.msk [vmem:[#allocation2 + $0x220] sm:$0xff] %vm3175_vm1, %v4393_v32  ;;  %v4215_v41 = vmul.f32 0.1, %v3937_v33  ;;  %v3940_v42 = vadd.f32 %v23731_v63, %v3939_v38  ;;  %20401 = vmatprep.mubr.msk.bf16.mxu0 %vm3175_vm1, %v8355_v39  ;;  %v22638_v38 = vld [vmem:[%s23339_s14 + $0x420] sm:$0xff]  }
 0x277   : > { %v4218_v44 = vmul.f32 0.1, %v3948_v37  ;;  %20016 = vmatmul.mubr.msk.bf16.gmra.mrb[248].mxu1 %vm2341_vm0, %v22631_v31  ;;  %20402 = vmatmul.mubr.msk.bf16.gmra.mrb[24].mxu0 %vm3175_vm1, %v8356_v43  ;;  %v4317_v46 = vmax.f32 %v3945_v29, %v4217_v36 }
 0x278   : > { %v4216_v45 = vmul.f32 0.1, %v3940_v42  ;;  %20019 = vmatprep.mubr.msk.bf16.mxu1 %vm2341_vm0, %v22632_v35  ;;  %v4315_v50 = vmax.f32 %v3937_v33, %v4215_v41 }
 0x279   : > { %v4318_v47 = vmax.f32 %v3948_v37, %v4218_v44 }
 0x27a   : > { %v4316_v51 = vmax.f32 %v3940_v42, %v4216_v45  ;;  %v19911_v52 = vpop.f32.mrb[144].mxu1 }
 0x27b   : > { %v4396_v53 = vpack.c.bf16 %v4318_v47, %v4317_v46  ;;  %v3961_v54 = vadd.f32 %v19911_v52, %v23731_v63  ;;  %v3952_v55 = vpop.f32.mrb[145].mxu1 }
 0x27c   : > { %v4395_v49 = vpack.c.bf16 %v4316_v51, %v4315_v50  ;;  %v3953_v57 = vadd.f32 %v23731_v63, %v3952_v55  ;;  %v19912_v58 = vpop.f32.mrb[146].mxu1  ;;  %v8358_v4 = vld [vmem:[#allocation2 + $0x228] sm:$0xff] }
 0x27d   : > { %4447 = vst.msk [vmem:[#allocation2 + $0x238] sm:$0xff] %vm3175_vm1, %v4396_v53  ;;  %v4221_v60 = vmul.f32 0.1, %v3961_v54  ;;  %v3964_v61 = vadd.f32 %v19912_v58, %v23731_v63  ;;  %v3955_v62 = vpop.f32.mrb[147].mxu1  ;;  %v8357_v0 = vld [vmem:[#allocation2 + $0x220] sm:$0xff] }
 0x27e   : > { %4446 = vst.msk [vmem:[#allocation2 + $0x230] sm:$0xff] %vm3175_vm1, %v4395_v49  ;;  %v4219_v1 = vmul.f32 0.1, %v3953_v57  ;;  %v3956_v3 = vadd.f32 %v23731_v63, %v3955_v62  ;;  %20405 = vmatprep.mubr.msk.bf16.mxu0 %vm3175_vm1, %v8357_v0  ;;  %v22639_v49 = vld [vmem:[%s23339_s14 + $0x428] sm:$0xff]  }
 0x27f   : > { %v4222_v5 = vmul.f32 0.1, %v3964_v61  ;;  %20020 = vmatmul.mubr.msk.bf16.gmra.mrb[252].mxu1 %vm2341_vm0, %v22633_v56  ;;  %20406 = vmatmul.mubr.msk.bf16.gmra.mrb[28].mxu0 %vm3175_vm1, %v8358_v4  ;;  %v4321_v11 = vmax.f32 %v3961_v54, %v4221_v60  ;;  %v22640_v60 = vld [vmem:[%s23339_s14 + $0x430] sm:$0xff]  }
 0x280   : > { %v4220_v6 = vmul.f32 0.1, %v3956_v3  ;;  %20023 = vmatprep.mubr.msk.bf16.mxu1 %vm2341_vm0, %v22634_v59  ;;  %v4319_v8 = vmax.f32 %v3953_v57, %v4219_v1 }
 0x281   : > { %v4322_v7 = vmax.f32 %v3964_v61, %v4222_v5 }
 0x282   : > { %v4320_v9 = vmax.f32 %v3956_v3, %v4220_v6  ;;  %v19915_v10 = vpop.f32.mrb[148].mxu1 }
 0x283   : > { %v4398_v2 = vpack.c.bf16 %v4322_v7, %v4321_v11  ;;  %v3977_v12 = vadd.f32 %v19915_v10, %v23731_v63  ;;  %v3968_v13 = vpop.f32.mrb[149].mxu1 }
 0x284   : > { %v4397_v15 = vpack.c.bf16 %v4320_v9, %v4319_v8  ;;  %v3969_v16 = vadd.f32 %v23731_v63, %v3968_v13  ;;  %v19916_v17 = vpop.f32.mrb[150].mxu1 }
 0x285   : > { %4449 = vst.msk [vmem:[#allocation2 + $0x248] sm:$0xff] %vm3175_vm1, %v4398_v2  ;;  %v4225_v19 = vmul.f32 0.1, %v3977_v12  ;;  %v3980_v20 = vadd.f32 %v19916_v17, %v23731_v63  ;;  %v3971_v21 = vpop.f32.mrb[151].mxu1 }
 0x286   : > { %4448 = vst.msk [vmem:[#allocation2 + $0x240] sm:$0xff] %vm3175_vm1, %v4397_v15  ;;  %v4223_v22 = vmul.f32 0.1, %v3969_v16  ;;  %v3972_v23 = vadd.f32 %v23731_v63, %v3971_v21  ;;  %v22641_v15 = vld [vmem:[%s23339_s14 + $0x438] sm:$0xff]  }
 0x287   : > { %v4226_v24 = vmul.f32 0.1, %v3980_v20  ;;  %20024 = vmatmul.mubr.msk.bf16.gmra.mrb[0].mxu1 %vm2341_vm0, %v22635_v14  ;;  %v4325_v26 = vmax.f32 %v3977_v12, %v4225_v19  ;;  %v22642_v19 = vld [vmem:[%s23339_s14 + $0x440] sm:$0xff]  }
 0x288   : > { %v4224_v25 = vmul.f32 0.1, %v3972_v23  ;;  %20027 = vmatprep.mubr.msk.bf16.mxu1 %vm2341_vm0, %v22636_v18  ;;  %v4323_v28 = vmax.f32 %v3969_v16, %v4223_v22 }
 0x289   : > { %v4326_v27 = vmax.f32 %v3980_v20, %v4226_v24 }
 0x28a   : > { %v4324_v29 = vmax.f32 %v3972_v23, %v4224_v25  ;;  %v19919_v30 = vpop.f32.mrb[152].mxu1 }
 0x28b   : > { %v4400_v31 = vpack.c.bf16 %v4326_v27, %v4325_v26  ;;  %v3993_v32 = vadd.f32 %v19919_v30, %v23731_v63  ;;  %v3984_v33 = vpop.f32.mrb[153].mxu1 }
 0x28c   : > { %v4399_v35 = vpack.c.bf16 %v4324_v29, %v4323_v28  ;;  %v3985_v36 = vadd.f32 %v23731_v63, %v3984_v33  ;;  %v19920_v37 = vpop.f32.mrb[154].mxu1  ;;  %v8360_v45 = vld [vmem:[#allocation2 + $0x248] sm:$0xff] }
 0x28d   : > { %4451 = vst.msk [vmem:[#allocation2 + $0x258] sm:$0xff] %vm3175_vm1, %v4400_v31  ;;  %v4229_v39 = vmul.f32 0.1, %v3993_v32  ;;  %v3996_v40 = vadd.f32 %v19920_v37, %v23731_v63  ;;  %v3987_v41 = vpop.f32.mrb[155].mxu1  ;;  %v8359_v42 = vld [vmem:[#allocation2 + $0x240] sm:$0xff] }
 0x28e   : > { %4450 = vst.msk [vmem:[#allocation2 + $0x250] sm:$0xff] %vm3175_vm1, %v4399_v35  ;;  %v4227_v43 = vmul.f32 0.1, %v3985_v36  ;;  %v3988_v44 = vadd.f32 %v23731_v63, %v3987_v41  ;;  %20409 = vmatprep.mubr.msk.bf16.mxu0 %vm3175_vm1, %v8359_v42  ;;  %v22643_v35 = vld [vmem:[%s23339_s14 + $0x448] sm:$0xff]  }
 0x28f   : > { %v4230_v46 = vmul.f32 0.1, %v3996_v40  ;;  %20028 = vmatmul.mubr.msk.bf16.gmra.mrb[4].mxu1 %vm2341_vm0, %v22637_v34  ;;  %20410 = vmatmul.mubr.msk.bf16.gmra.mrb[32].mxu0 %vm3175_vm1, %v8360_v45  ;;  %v4329_v48 = vmax.f32 %v3993_v32, %v4229_v39  ;;  %v22644_v39 = vld [vmem:[%s23339_s14 + $0x450] sm:$0xff]  }
 0x290   : > { %v4228_v47 = vmul.f32 0.1, %v3988_v44  ;;  %20031 = vmatprep.mubr.msk.bf16.mxu1 %vm2341_vm0, %v22638_v38  ;;  %v4327_v51 = vmax.f32 %v3985_v36, %v4227_v43 }
 0x291   : > { %v4330_v50 = vmax.f32 %v3996_v40, %v4230_v46 }
 0x292   : > { %v4328_v52 = vmax.f32 %v3988_v44, %v4228_v47  ;;  %v19923_v53 = vpop.f32.mrb[156].mxu1 }
 0x293   : > { %v4402_v54 = vpack.c.bf16 %v4330_v50, %v4329_v48  ;;  %v4009_v55 = vadd.f32 %v19923_v53, %v23731_v63  ;;  %v4000_v56 = vpop.f32.mrb[157].mxu1 }
 0x294   : > { %v4401_v57 = vpack.c.bf16 %v4328_v52, %v4327_v51  ;;  %v4001_v58 = vadd.f32 %v23731_v63, %v4000_v56  ;;  %v19924_v59 = vpop.f32.mrb[158].mxu1  ;;  %v8362_v5 = vld [vmem:[#allocation2 + $0x258] sm:$0xff] }
 0x295   : > { %4453 = vst.msk [vmem:[#allocation2 + $0x268] sm:$0xff] %vm3175_vm1, %v4402_v54  ;;  %v4233_v61 = vmul.f32 0.1, %v4009_v55  ;;  %v4012_v62 = vadd.f32 %v19924_v59, %v23731_v63  ;;  %v4003_v0 = vpop.f32.mrb[159].mxu1  ;;  %v8361_v1 = vld [vmem:[#allocation2 + $0x250] sm:$0xff]  ;;  %v22645_v56 = vld [vmem:[%s23339_s14 + $0x458] sm:$0xff]  }
 0x296   : > { %4452 = vst.msk [vmem:[#allocation2 + $0x260] sm:$0xff] %vm3175_vm1, %v4401_v57  ;;  %v4231_v3 = vmul.f32 0.1, %v4001_v58  ;;  %v4004_v4 = vadd.f32 %v23731_v63, %v4003_v0  ;;  %20413 = vmatprep.mubr.msk.bf16.mxu0 %vm3175_vm1, %v8361_v1  ;;  %v22646_v59 = vld [vmem:[%s23339_s14 + $0x460] sm:$0xff]  }
 0x297   : > { %v4234_v6 = vmul.f32 0.1, %v4012_v62  ;;  %20032 = vmatmul.mubr.msk.bf16.gmra.mrb[8].mxu1 %vm2341_vm0, %v22639_v49  ;;  %20414 = vmatmul.mubr.msk.bf16.gmra.mrb[36].mxu0 %vm3175_vm1, %v8362_v5  ;;  %v4333_v7 = vmax.f32 %v4009_v55, %v4233_v61 }
 0x298   : > { %v4232_v11 = vmul.f32 0.1, %v4004_v4  ;;  %20035 = vmatprep.mubr.msk.bf16.mxu1 %vm2341_vm0, %v22640_v60  ;;  %v4331_v9 = vmax.f32 %v4001_v58, %v4231_v3 }
 0x299   : > { %v4334_v8 = vmax.f32 %v4012_v62, %v4234_v6 }
 0x29a   : > { %v4332_v10 = vmax.f32 %v4004_v4, %v4232_v11  ;;  %v19927_v2 = vpop.f32.mrb[160].mxu1 }
 0x29b   : > { %v4404_v12 = vpack.c.bf16 %v4334_v8, %v4333_v7  ;;  %v4025_v13 = vadd.f32 %v19927_v2, %v23731_v63  ;;  %v4016_v14 = vpop.f32.mrb[161].mxu1 }
 0x29c   : > { %v4403_v16 = vpack.c.bf16 %v4332_v10, %v4331_v9  ;;  %v4017_v17 = vadd.f32 %v23731_v63, %v4016_v14  ;;  %v19928_v18 = vpop.f32.mrb[162].mxu1 }
 0x29d   : > { %4455 = vst.msk [vmem:[#allocation2 + $0x278] sm:$0xff] %vm3175_vm1, %v4404_v12  ;;  %v4237_v20 = vmul.f32 0.1, %v4025_v13  ;;  %v4028_v21 = vadd.f32 %v19928_v18, %v23731_v63  ;;  %v4019_v22 = vpop.f32.mrb[163].mxu1  ;;  %v22647_v12 = vld [vmem:[%s23339_s14 + $0x468] sm:$0xff]  }
 0x29e   : > { %4454 = vst.msk [vmem:[#allocation2 + $0x270] sm:$0xff] %vm3175_vm1, %v4403_v16  ;;  %v4235_v23 = vmul.f32 0.1, %v4017_v17  ;;  %v4020_v24 = vadd.f32 %v23731_v63, %v4019_v22  ;;  %v22648_v16 = vld [vmem:[%s23339_s14 + $0x470] sm:$0xff]  }
 0x29f   : > { %v4238_v25 = vmul.f32 0.1, %v4028_v21  ;;  %20036 = vmatmul.mubr.msk.bf16.gmra.mrb[12].mxu1 %vm2341_vm0, %v22641_v15  ;;  %v4337_v27 = vmax.f32 %v4025_v13, %v4237_v20 }
 0x2a0   : > { %v4236_v26 = vmul.f32 0.1, %v4020_v24  ;;  %20039 = vmatprep.mubr.msk.bf16.mxu1 %vm2341_vm0, %v22642_v19  ;;  %v4335_v29 = vmax.f32 %v4017_v17, %v4235_v23 }
 0x2a1   : > { %v4338_v28 = vmax.f32 %v4028_v21, %v4238_v25 }
 0x2a2   : > { %v4336_v30 = vmax.f32 %v4020_v24, %v4236_v26  ;;  %v19931_v31 = vpop.f32.mrb[164].mxu1 }
 0x2a3   : > { %v4406_v32 = vpack.c.bf16 %v4338_v28, %v4337_v27  ;;  %v4041_v33 = vadd.f32 %v19931_v31, %v23731_v63  ;;  %v4032_v34 = vpop.f32.mrb[165].mxu1 }
 0x2a4   : > { %v4405_v36 = vpack.c.bf16 %v4336_v30, %v4335_v29  ;;  %v4033_v37 = vadd.f32 %v23731_v63, %v4032_v34  ;;  %v19932_v38 = vpop.f32.mrb[166].mxu1  ;;  %v23955_v34 = vld [vmem:[%s26458_s5] ss:$0 sm:$0xff] }
 0x2a5   : > { %4457 = vst.msk [vmem:[#allocation2 + $0x288] sm:$0xff] %vm3175_vm1, %v4406_v32  ;;  %v4241_v40 = vmul.f32 0.1, %v4041_v33  ;;  %v4044_v41 = vadd.f32 %v19932_v38, %v23731_v63  ;;  %v4035_v42 = vpop.f32.mrb[167].mxu1  ;;  %v22649_v32 = vld [vmem:[%s23339_s14 + $0x478] sm:$0xff]  }
 0x2a6   : > { %4456 = vst.msk [vmem:[#allocation2 + $0x280] sm:$0xff] %vm3175_vm1, %v4405_v36  ;;  %v4239_v43 = vmul.f32 0.1, %v4033_v37  ;;  %v4036_v44 = vadd.f32 %v23731_v63, %v4035_v42 }
 0x2a7   : > { %v4242_v45 = vmul.f32 0.1, %v4044_v41  ;;  %20040 = vmatmul.mubr.msk.bf16.gmra.mrb[16].mxu1 %vm2341_vm0, %v22643_v35  ;;  %v4341_v47 = vmax.f32 %v4041_v33, %v4241_v40 }
 0x2a8   : > { %v4240_v46 = vmul.f32 0.1, %v4036_v44  ;;  %20043 = vmatprep.mubr.msk.bf16.mxu1 %vm2341_vm0, %v22644_v39  ;;  %v4339_v50 = vmax.f32 %v4033_v37, %v4239_v43  ;;  %v22650_v37 = vld [vmem:[%s23339_s14 + $0x480] sm:$0xff]  }
 0x2a9   : > { %v4342_v48 = vmax.f32 %v4044_v41, %v4242_v45 }
 0x2aa   : > { %v4340_v51 = vmax.f32 %v4036_v44, %v4240_v46  ;;  %v19935_v52 = vpop.f32.mrb[168].mxu1 }
 0x2ab   : > { %v4408_v53 = vpack.c.bf16 %v4342_v48, %v4341_v47  ;;  %v4057_v54 = vadd.f32 %v19935_v52, %v23731_v63  ;;  %v4048_v55 = vpop.f32.mrb[169].mxu1 }
 0x2ac   : > { %v4407_v49 = vpack.c.bf16 %v4340_v51, %v4339_v50  ;;  %v4049_v57 = vadd.f32 %v23731_v63, %v4048_v55  ;;  %v19936_v58 = vpop.f32.mrb[170].mxu1 }
 0x2ad   : > { %4459 = vst.msk [vmem:[#allocation2 + $0x298] sm:$0xff] %vm3175_vm1, %v4408_v53  ;;  %v4245_v60 = vmul.f32 0.1, %v4057_v54  ;;  %v4060_v61 = vadd.f32 %v19936_v58, %v23731_v63  ;;  %v4051_v62 = vpop.f32.mrb[171].mxu1  ;;  %v22651_v53 = vld [vmem:[%s23339_s14 + $0x488] sm:$0xff]  }
 0x2ae   : > { %4458 = vst.msk [vmem:[#allocation2 + $0x290] sm:$0xff] %vm3175_vm1, %v4407_v49  ;;  %v4243_v0 = vmul.f32 0.1, %v4049_v57  ;;  %v4052_v1 = vadd.f32 %v23731_v63, %v4051_v62  ;;  %v22652_v49 = vld [vmem:[%s23339_s14 + $0x490] sm:$0xff]  }
 0x2af   : > { %v4246_v3 = vmul.f32 0.1, %v4060_v61  ;;  %20044 = vmatmul.mubr.msk.bf16.gmra.mrb[20].mxu1 %vm2341_vm0, %v22645_v56  ;;  %v4345_v5 = vmax.f32 %v4057_v54, %v4245_v60 }
 0x2b0   : > { %v4244_v4 = vmul.f32 0.1, %v4052_v1  ;;  %20047 = vmatprep.mubr.msk.bf16.mxu1 %vm2341_vm0, %v22646_v59  ;;  %v4343_v11 = vmax.f32 %v4049_v57, %v4243_v0 }
 0x2b1   : > { %v4346_v6 = vmax.f32 %v4060_v61, %v4246_v3 }
 0x2b2   : > { %v4344_v7 = vmax.f32 %v4052_v1, %v4244_v4  ;;  %v19939_v8 = vpop.f32.mrb[172].mxu1 }
 0x2b3   : > { %v4410_v9 = vpack.c.bf16 %v4346_v6, %v4345_v5  ;;  %v4073_v10 = vadd.f32 %v19939_v8, %v23731_v63  ;;  %v4064_v2 = vpop.f32.mrb[173].mxu1 }
 0x2b4   : > { %v4409_v13 = vpack.c.bf16 %v4344_v7, %v4343_v11  ;;  %v4065_v14 = vadd.f32 %v23731_v63, %v4064_v2  ;;  %v19940_v15 = vpop.f32.mrb[174].mxu1 }
 0x2b5   : > { %4461 = vst.msk [vmem:[#allocation2 + $0x2a8] sm:$0xff] %vm3175_vm1, %v4410_v9  ;;  %v4249_v17 = vmul.f32 0.1, %v4073_v10  ;;  %v4076_v18 = vadd.f32 %v19940_v15, %v23731_v63  ;;  %v4067_v19 = vpop.f32.mrb[175].mxu1  ;;  %v22653_v9 = vld [vmem:[%s23339_s14 + $0x498] sm:$0xff]  }
 0x2b6   : > { %4460 = vst.msk [vmem:[#allocation2 + $0x2a0] sm:$0xff] %vm3175_vm1, %v4409_v13  ;;  %v4247_v20 = vmul.f32 0.1, %v4065_v14  ;;  %v4068_v21 = vadd.f32 %v23731_v63, %v4067_v19  ;;  %v22654_v13 = vld [vmem:[%s23339_s14 + $0x4a0] sm:$0xff]  }
 0x2b7   : > { %v4250_v22 = vmul.f32 0.1, %v4076_v18  ;;  %20048 = vmatmul.mubr.msk.bf16.gmra.mrb[24].mxu1 %vm2341_vm0, %v22647_v12  ;;  %v4349_v24 = vmax.f32 %v4073_v10, %v4249_v17 }
 0x2b8   : > { %v4248_v23 = vmul.f32 0.1, %v4068_v21  ;;  %20051 = vmatprep.mubr.msk.bf16.mxu1 %vm2341_vm0, %v22648_v16  ;;  %v4347_v26 = vmax.f32 %v4065_v14, %v4247_v20 }
 0x2b9   : > { %v4350_v25 = vmax.f32 %v4076_v18, %v4250_v22 }
 0x2ba   : > { %v4348_v27 = vmax.f32 %v4068_v21, %v4248_v23  ;;  %v19943_v28 = vpop.f32.mrb[176].mxu1 }
 0x2bb   : > { %v4412_v29 = vpack.c.bf16 %v4350_v25, %v4349_v24  ;;  %v4089_v30 = vadd.f32 %v19943_v28, %v23731_v63  ;;  %v4080_v31 = vpop.f32.mrb[177].mxu1 }
 0x2bc   : > { %v4411_v33 = vpack.c.bf16 %v4348_v27, %v4347_v26  ;;  %v4081_v35 = vadd.f32 %v23955_v34, %v4080_v31  ;;  %v19944_v36 = vpop.f32.mrb[178].mxu1 }
 0x2bd   : > { %4463 = vst.msk [vmem:[#allocation2 + $0x2b8] sm:$0xff] %vm3175_vm1, %v4412_v29  ;;  %v4253_v38 = vmul.f32 0.1, %v4089_v30  ;;  %v4092_v39 = vadd.f32 %v23955_v34, %v19944_v36  ;;  %v4083_v40 = vpop.f32.mrb[179].mxu1  ;;  %v22655_v29 = vld [vmem:[%s23339_s14 + $0x4a8] sm:$0xff]  }
 0x2be   : > { %4462 = vst.msk [vmem:[#allocation2 + $0x2b0] sm:$0xff] %vm3175_vm1, %v4411_v33  ;;  %v4251_v63 = vmul.f32 0.1, %v4081_v35  ;;  %v4084_v41 = vadd.f32 %v23955_v34, %v4083_v40  ;;  %v22656_v33 = vld [vmem:[%s23339_s14 + $0x4b0] sm:$0xff]  }
 0x2bf   : > { %v4254_v42 = vmul.f32 0.1, %v4092_v39  ;;  %20052 = vmatmul.mubr.msk.bf16.gmra.mrb[28].mxu1 %vm2341_vm0, %v22649_v32  ;;  %v4353_v44 = vmax.f32 %v4089_v30, %v4253_v38 }
 0x2c0   : > { %v4252_v43 = vmul.f32 0.1, %v4084_v41  ;;  %20055 = vmatprep.mubr.msk.bf16.mxu1 %vm2341_vm0, %v22650_v37  ;;  %v4351_v46 = vmax.f32 %v4081_v35, %v4251_v63 }
 0x2c1   : > { %v4354_v45 = vmax.f32 %v4092_v39, %v4254_v42 }
 0x2c2   : > { %v4352_v47 = vmax.f32 %v4084_v41, %v4252_v43  ;;  %v19947_v48 = vpop.f32.mrb[180].mxu1 }
 0x2c3   : > { %v4414_v50 = vpack.c.bf16 %v4354_v45, %v4353_v44  ;;  %v4105_v51 = vadd.f32 %v23955_v34, %v19947_v48  ;;  %v4096_v52 = vpop.f32.mrb[181].mxu1 }
 0x2c4   : > { %v4413_v54 = vpack.c.bf16 %v4352_v47, %v4351_v46  ;;  %v4097_v55 = vadd.f32 %v23955_v34, %v4096_v52  ;;  %v19948_v56 = vpop.f32.mrb[182].mxu1 }
 0x2c5   : > { %4465 = vst.msk [vmem:[#allocation2 + $0x2c8] sm:$0xff] %vm3175_vm1, %v4414_v50  ;;  %v4257_v57 = vmul.f32 0.1, %v4105_v51  ;;  %v4108_v58 = vadd.f32 %v23955_v34, %v19948_v56  ;;  %v4099_v59 = vpop.f32.mrb[183].mxu1  ;;  %v22657_v50 = vld [vmem:[%s23339_s14 + $0x4b8] sm:$0xff]  }
 0x2c6   : > { %4464 = vst.msk [vmem:[#allocation2 + $0x2c0] sm:$0xff] %vm3175_vm1, %v4413_v54  ;;  %v4255_v60 = vmul.f32 0.1, %v4097_v55  ;;  %v4100_v61 = vadd.f32 %v23955_v34, %v4099_v59  ;;  %v22658_v54 = vld [vmem:[%s23339_s14 + $0x4c0] sm:$0xff]  }
 0x2c7   : > { %v4258_v62 = vmul.f32 0.1, %v4108_v58  ;;  %20056 = vmatmul.mubr.msk.bf16.gmra.mrb[32].mxu1 %vm2341_vm0, %v22651_v53  ;;  %v4357_v1 = vmax.f32 %v4105_v51, %v4257_v57 }
 0x2c8   : > { %v4256_v0 = vmul.f32 0.1, %v4100_v61  ;;  %20059 = vmatprep.mubr.msk.bf16.mxu1 %vm2341_vm0, %v22652_v49  ;;  %v4355_v4 = vmax.f32 %v4097_v55, %v4255_v60 }
 0x2c9   : > { %v4358_v3 = vmax.f32 %v4108_v58, %v4258_v62 }
 0x2ca   : > { %v4356_v5 = vmax.f32 %v4100_v61, %v4256_v0  ;;  %v19951_v6 = vpop.f32.mrb[184].mxu1 }
 0x2cb   : > { %v4416_v11 = vpack.c.bf16 %v4358_v3, %v4357_v1  ;;  %v4121_v7 = vadd.f32 %v23955_v34, %v19951_v6  ;;  %v4112_v8 = vpop.f32.mrb[185].mxu1 }
 0x2cc   : > { %v4415_v10 = vpack.c.bf16 %v4356_v5, %v4355_v4  ;;  %v4113_v2 = vadd.f32 %v23955_v34, %v4112_v8  ;;  %v19952_v12 = vpop.f32.mrb[186].mxu1 }
 0x2cd   : > { %4467 = vst.msk [vmem:[#allocation2 + $0x2d8] sm:$0xff] %vm3175_vm1, %v4416_v11  ;;  %v4261_v14 = vmul.f32 0.1, %v4121_v7  ;;  %v4124_v15 = vadd.f32 %v23955_v34, %v19952_v12  ;;  %v4115_v16 = vpop.f32.mrb[187].mxu1  ;;  %v22659_v11 = vld [vmem:[%s23339_s14 + $0x4c8] sm:$0xff]  }
 0x2ce   : > { %4466 = vst.msk [vmem:[#allocation2 + $0x2d0] sm:$0xff] %vm3175_vm1, %v4415_v10  ;;  %v4259_v17 = vmul.f32 0.1, %v4113_v2  ;;  %v4116_v18 = vadd.f32 %v23955_v34, %v4115_v16  ;;  %v22660_v10 = vld [vmem:[%s23339_s14 + $0x4d0] sm:$0xff]  }
 0x2cf   : > { %v4262_v19 = vmul.f32 0.1, %v4124_v15  ;;  %20060 = vmatmul.mubr.msk.bf16.gmra.mrb[36].mxu1 %vm2341_vm0, %v22653_v9  ;;  %v4361_v21 = vmax.f32 %v4121_v7, %v4261_v14  ;;  %v24016_v16 = vld [vmem:[%s26455_s2 + $0x50] sm:$0xff]  }
 0x2d0   : > { %v4260_v20 = vmul.f32 0.1, %v4116_v18  ;;  %20063 = vmatprep.mubr.msk.bf16.mxu1 %vm2341_vm0, %v22654_v13  ;;  %v4359_v23 = vmax.f32 %v4113_v2, %v4259_v17  ;;  %20509 = vmatprep.subr.bf16.mxu0 %v24016_v16 }
 0x2d1   : > { %v4362_v22 = vmax.f32 %v4124_v15, %v4262_v19  ;;  %v24022_v19 = vld [vmem:[%s26458_s5] ss:$0 sm:$0xff] }
 0x2d2   : > { %v4360_v24 = vmax.f32 %v4116_v18, %v4260_v20  ;;  %v19955_v25 = vpop.f32.mrb[188].mxu1 }
 0x2d3   : > { %v4418_v26 = vpack.c.bf16 %v4362_v22, %v4361_v21  ;;  %v4137_v27 = vadd.f32 %v23955_v34, %v19955_v25  ;;  %v4128_v28 = vpop.f32.mrb[189].mxu1 }
 0x2d4   : > { %v4417_v30 = vpack.c.bf16 %v4360_v24, %v4359_v23  ;;  %v4129_v31 = vadd.f32 %v23955_v34, %v4128_v28  ;;  %v19956_v32 = vpop.f32.mrb[190].mxu1 }
 0x2d5   : > { %4469 = vst.msk [vmem:[#allocation2 + $0x2e8] sm:$0xff] %vm3175_vm1, %v4418_v26  ;;  %v4265_v35 = vmul.f32 0.1, %v4137_v27  ;;  %v4140_v36 = vadd.f32 %v23955_v34, %v19956_v32  ;;  %v4131_v37 = vpop.f32.mrb[191].mxu1 }
 0x2d6   : > { %4468 = vst.msk [vmem:[#allocation2 + $0x2e0] sm:$0xff] %vm3175_vm1, %v4417_v30  ;;  %v4263_v38 = vmul.f32 0.1, %v4129_v31  ;;  %v4132_v39 = vadd.f32 %v23955_v34, %v4131_v37 }
 0x2d7   : > { %v4266_v40 = vmul.f32 0.1, %v4140_v36  ;;  %20064 = vmatmul.mubr.msk.bf16.gmra.mrb[40].mxu1 %vm2341_vm0, %v22655_v29  ;;  %v4365_v41 = vmax.f32 %v4137_v27, %v4265_v35  ;;  %v22661_v27 = vld [vmem:[%s23339_s14 + $0x4d8] sm:$0xff]  }
 0x2d8   : > { %v4264_v63 = vmul.f32 0.1, %v4132_v39  ;;  %20069 = vmatprep.mubr.msk.bf16.mxu1 %vm2341_vm0, %v22656_v33  ;;  %v4363_v43 = vmax.f32 %v4129_v31, %v4263_v38  ;;  %v22662_v31 = vld [vmem:[%s23339_s14 + $0x4e0] sm:$0xff]  }
 0x2d9   : > { %v4366_v42 = vmax.f32 %v4140_v36, %v4266_v40 }
 0x2da   : > { %v4364_v44 = vmax.f32 %v4132_v39, %v4264_v63  ;;  %v19959_v45 = vpop.f32.mrb[192].mxu1 }
 0x2db   : > { %v4420_v46 = vpack.c.bf16 %v4366_v42, %v4365_v41  ;;  %v4153_v47 = vadd.f32 %v23955_v34, %v19959_v45  ;;  %v4144_v48 = vpop.f32.mrb[193].mxu1 }
 0x2dc   : > { %v4419_v51 = vpack.c.bf16 %v4364_v44, %v4363_v43  ;;  %v4145_v52 = vadd.f32 %v23955_v34, %v4144_v48  ;;  %v19960_v53 = vpop.f32.mrb[194].mxu1 }
 0x2dd   : > { %4471 = vst.msk [vmem:[#allocation2 + $0x2f8] sm:$0xff] %vm3175_vm1, %v4420_v46  ;;  %v4269_v55 = vmul.f32 0.1, %v4153_v47  ;;  %v4156_v56 = vadd.f32 %v23955_v34, %v19960_v53  ;;  %v4147_v49 = vpop.f32.mrb[195].mxu1 }
 0x2de   : > { %4470 = vst.msk [vmem:[#allocation2 + $0x2f0] sm:$0xff] %vm3175_vm1, %v4419_v51  ;;  %v4267_v57 = vmul.f32 0.1, %v4145_v52  ;;  %v4148_v58 = vadd.f32 %v23955_v34, %v4147_v49 }
 0x2df   : > { %v4270_v59 = vmul.f32 0.1, %v4156_v56  ;;  %20070 = vmatmul.mubr.msk.bf16.vlgmr.msra.gmra.mrb[44].mxu1 %vm2341_vm0, %v22657_v50  ;;  %v4369_v61 = vmax.f32 %v4153_v47, %v4269_v55  ;;  %v22663_v47 = vld [vmem:[%s23339_s14 + $0x4e8] sm:$0xff]  }
 0x2e0   : > { %v4268_v60 = vmul.f32 0.1, %v4148_v58  ;;  %20073 = vmatprep.mubr.msk.bf16.mxu1 %vm2341_vm0, %v22658_v54  ;;  %v4367_v0 = vmax.f32 %v4145_v52, %v4267_v57  ;;  %v22666_v52 = vld [vmem:[%s23339_s14 + $0x4f0] sm:$0xff]  }
 0x2e1   : > { %v4370_v62 = vmax.f32 %v4156_v56, %v4270_v59 }
 0x2e2   : > { %v4368_v1 = vmax.f32 %v4148_v58, %v4268_v60  ;;  %v19963_v3 = vpop.f32.mrb[196].mxu1 }
 0x2e3   : > { %v4422_v4 = vpack.c.bf16 %v4370_v62, %v4369_v61  ;;  %v4169_v5 = vadd.f32 %v23955_v34, %v19963_v3  ;;  %v4160_v6 = vpop.f32.mrb[197].mxu1 }
 0x2e4   : > { %v4421_v7 = vpack.c.bf16 %v4368_v1, %v4367_v0  ;;  %v4161_v8 = vadd.f32 %v23955_v34, %v4160_v6  ;;  %v19964_v9 = vpop.f32.mrb[198].mxu1 }
 0x2e5   : > { %4473 = vst.msk [vmem:[#allocation2 + $0x308] sm:$0xff] %vm3175_vm1, %v4422_v4  ;;  %v4273_v2 = vmul.f32 0.1, %v4169_v5  ;;  %v4172_v12 = vadd.f32 %v23955_v34, %v19964_v9  ;;  %v4163_v13 = vpop.f32.mrb[199].mxu1  ;;  %v22667_v4 = vld [vmem:[%s23339_s14 + $0x4f8] sm:$0xff]  }
 0x2e6   : > { %4472 = vst.msk [vmem:[#allocation2 + $0x300] sm:$0xff] %vm3175_vm1, %v4421_v7  ;;  %v4271_v14 = vmul.f32 0.1, %v4161_v8  ;;  %v4164_v15 = vadd.f32 %v23955_v34, %v4163_v13  ;;  %v22668_v7 = vld [vmem:[%s23339_s14 + $0x500] sm:$0xff]  }
 0x2e7   : > { %v4274_v17 = vmul.f32 0.1, %v4172_v12  ;;  %20074 = vmatmul.mubr.msk.bf16.gmra.mrb[48].mxu1 %vm2341_vm0, %v22659_v11  ;;  %v4373_v34 = vmax.f32 %v4169_v5, %v4273_v2 }
 0x2e8   : > { %v4272_v18 = vmul.f32 0.1, %v4164_v15  ;;  %20077 = vmatprep.mubr.msk.bf16.mxu1 %vm2341_vm0, %v22660_v10  ;;  %v4371_v21 = vmax.f32 %v4161_v8, %v4271_v14 }
 0x2e9   : > { %v4374_v20 = vmax.f32 %v4172_v12, %v4274_v17 }
 0x2ea   : > { %v4372_v22 = vmax.f32 %v4164_v15, %v4272_v18  ;;  %v19969_v23 = vpop.f32.mrb[200].mxu1 }
 0x2eb   : > { %v4424_v24 = vpack.c.bf16 %v4374_v20, %v4373_v34  ;;  %v5035_v25 = vadd.f32 %v19969_v23, %v24022_v19  ;;  %v5026_v26 = vpop.f32.mrb[201].mxu1 }
 0x2ec   : > { %v4423_v28 = vpack.c.bf16 %v4372_v22, %v4371_v21  ;;  %v5027_v29 = vadd.f32 %v24022_v19, %v5026_v26  ;;  %v19970_v30 = vpop.f32.mrb[202].mxu1  ;;  %v22669_v26 = vld [vmem:[%s23339_s14 + $0x508] sm:$0xff]  }
 0x2ed   : > { %4475 = vst.msk [vmem:[#allocation2 + $0x318] sm:$0xff] %vm3175_vm1, %v4424_v24  ;;  %v5427_v32 = vmul.f32 0.1, %v5035_v25  ;;  %v5038_v33 = vadd.f32 %v19970_v30, %v24022_v19  ;;  %v5029_v35 = vpop.f32.mrb[203].mxu1  ;;  %v22670_v30 = vld [vmem:[%s23339_s14 + $0x510] sm:$0xff]  }
 0x2ee   : > { %4474 = vst.msk [vmem:[#allocation2 + $0x310] sm:$0xff] %vm3175_vm1, %v4423_v28  ;;  %v5425_v36 = vmul.f32 0.1, %v5027_v29  ;;  %v5030_v37 = vadd.f32 %v24022_v19, %v5029_v35 }
 0x2ef   : > { %v5428_v38 = vmul.f32 0.1, %v5038_v33  ;;  %20078 = vmatmul.mubr.msk.bf16.gmra.mrb[52].mxu1 %vm2341_vm0, %v22661_v27  ;;  %v5527_v40 = vmax.f32 %v5035_v25, %v5427_v32 }
 0x2f0   : > { %v5426_v39 = vmul.f32 0.1, %v5030_v37  ;;  %20081 = vmatprep.mubr.msk.bf16.mxu1 %vm2341_vm0, %v22662_v31  ;;  %v5525_v41 = vmax.f32 %v5027_v29, %v5425_v36 }
 0x2f1   : > { %v5528_v63 = vmax.f32 %v5038_v33, %v5428_v38 }
 0x2f2   : > { %v5526_v42 = vmax.f32 %v5030_v37, %v5426_v39  ;;  %v19973_v43 = vpop.f32.mrb[204].mxu1 }
 0x2f3   : > { %v5626_v44 = vpack.c.bf16 %v5528_v63, %v5527_v40  ;;  %v5051_v45 = vadd.f32 %v19973_v43, %v24022_v19  ;;  %v5042_v46 = vpop.f32.mrb[205].mxu1 }
 0x2f4   : > { %v5625_v48 = vpack.c.bf16 %v5526_v42, %v5525_v41  ;;  %v5043_v50 = vadd.f32 %v24022_v19, %v5042_v46  ;;  %v19974_v51 = vpop.f32.mrb[206].mxu1 }
 0x2f5   : > { %5677 = vst.msk [vmem:[#allocation2 + $0x328] sm:$0xff] %vm3175_vm1, %v5626_v44  ;;  %v5431_v53 = vmul.f32 0.1, %v5051_v45  ;;  %v5054_v54 = vadd.f32 %v19974_v51, %v24022_v19  ;;  %v5045_v55 = vpop.f32.mrb[207].mxu1 }
 0x2f6   : > { %5676 = vst.msk [vmem:[#allocation2 + $0x320] sm:$0xff] %vm3175_vm1, %v5625_v48  ;;  %v5429_v56 = vmul.f32 0.1, %v5043_v50  ;;  %v5046_v49 = vadd.f32 %v24022_v19, %v5045_v55  ;;  %v22671_v48 = vld [vmem:[%s23339_s14 + $0x518] sm:$0xff]  }
 0x2f7   : > { %v5432_v57 = vmul.f32 0.1, %v5054_v54  ;;  %20082 = vmatmul.mubr.msk.bf16.gmra.mrb[56].mxu1 %vm2341_vm0, %v22663_v47  ;;  %v5531_v59 = vmax.f32 %v5051_v45, %v5431_v53  ;;  %v22672_v53 = vld [vmem:[%s23339_s14 + $0x520] sm:$0xff]  }
 0x2f8   : > { %v5430_v58 = vmul.f32 0.1, %v5046_v49  ;;  %20085 = vmatprep.mubr.msk.bf16.mxu1 %vm2341_vm0, %v22666_v52  ;;  %v5529_v61 = vmax.f32 %v5043_v50, %v5429_v56 }
 0x2f9   : > { %v5532_v60 = vmax.f32 %v5054_v54, %v5432_v57 }
 0x2fa   : > { %v5530_v62 = vmax.f32 %v5046_v49, %v5430_v58  ;;  %v19977_v0 = vpop.f32.mrb[208].mxu1 }
 0x2fb   : > { %v5628_v1 = vpack.c.bf16 %v5532_v60, %v5531_v59  ;;  %v5058_v3 = vpop.f32.mrb[209].mxu1  ;;  %v5067_v5 = vadd.f32 %v19977_v0, %v24022_v19 }
 0x2fc   : > { %v5627_v6 = vpack.c.bf16 %v5530_v62, %v5529_v61  ;;  %v19978_v11 = vpop.f32.mrb[210].mxu1  ;;  %v5059_v8 = vadd.f32 %v24022_v19, %v5058_v3  ;;  %v8842_v13 = vld [vmem:[#allocation2 + $0x328] sm:$0xff] }
 0x2fd   : > { %5679 = vst.msk [vmem:[#allocation2 + $0x338] sm:$0xff] %vm3175_vm1, %v5628_v1  ;;  %v5061_v9 = vpop.f32.mrb[211].mxu1  ;;  %v8841_v10 = vld [vmem:[#allocation2 + $0x320] sm:$0xff]  ;;  %v5070_v2 = vadd.f32 %v19978_v11, %v24022_v19  ;;  %v5435_v12 = vmul.f32 0.1, %v5067_v5 }
 0x2fe   : > { %5678 = vst.msk [vmem:[#allocation2 + $0x330] sm:$0xff] %vm3175_vm1, %v5627_v6  ;;  %20445 = vmatprep.mubr.msk.bf16.mxu0 %vm3175_vm1, %v8841_v10  ;;  %v5062_v14 = vadd.f32 %v24022_v19, %v5061_v9  ;;  %v5433_v15 = vmul.f32 0.1, %v5059_v8 }
 0x2ff   : > { %20086 = vmatmul.mubr.msk.bf16.gmra.mrb[60].mxu1 %vm2341_vm0, %v22667_v4  ;;  %20446 = vmatmul.mubr.msk.bf16.vlgmr.msra.gmra.mrb[0].mxu0 %vm3175_vm1, %v8842_v13  ;;  %v5436_v17 = vmul.f32 0.1, %v5070_v2  ;;  %v5535_v34 = vmax.f32 %v5067_v5, %v5435_v12 }
 0x300   : > { %20089 = vmatprep.mubr.msk.bf16.mxu1 %vm2341_vm0, %v22668_v7  ;;  %v5434_v18 = vmul.f32 0.1, %v5062_v14  ;;  %20510 = vmatpush3.bf16.msra.mxu0 %v24016_v16  ;;  %v5533_v22 = vmax.f32 %v5059_v8, %v5433_v15  ;;  %v22673_v7 = vld [vmem:[%s23339_s14 + $0x528] sm:$0xff]  }
 0x301   : > { %v5536_v20 = vmax.f32 %v5070_v2, %v5436_v17  ;;  %v22674_v2 = vld [vmem:[%s23339_s14 + $0x530] sm:$0xff]  }
 0x302   : > { %v19981_v21 = vpop.f32.mrb[212].mxu1  ;;  %v5534_v23 = vmax.f32 %v5062_v14, %v5434_v18 }
 0x303   : > { %v5083_v24 = vadd.f32 %v19981_v21, %v24022_v19  ;;  %v5074_v25 = vpop.f32.mrb[213].mxu1  ;;  %v5630_v27 = vpack.c.bf16 %v5536_v20, %v5535_v34 }
 0x304   : > { %v5075_v28 = vadd.f32 %v24022_v19, %v5074_v25  ;;  %v19982_v29 = vpop.f32.mrb[214].mxu1  ;;  %v5629_v31 = vpack.c.bf16 %v5534_v23, %v5533_v22  ;;  %v8844_v38 = vld [vmem:[#allocation2 + $0x338] sm:$0xff] }
 0x305   : > { %v5439_v32 = vmul.f32 0.1, %v5083_v24  ;;  %v5086_v33 = vadd.f32 %v19982_v29, %v24022_v19  ;;  %v5077_v35 = vpop.f32.mrb[215].mxu1  ;;  %v8843_v16 = vld [vmem:[#allocation2 + $0x330] sm:$0xff]  ;;  %5681 = vst.msk [vmem:[#allocation2 + $0x348] sm:$0xff] %vm3175_vm1, %v5630_v27 }
 0x306   : > { %v5437_v36 = vmul.f32 0.1, %v5075_v28  ;;  %v5078_v37 = vadd.f32 %v24022_v19, %v5077_v35  ;;  %20449 = vmatprep.mubr.msk.bf16.mxu0 %vm3175_vm1, %v8843_v16  ;;  %5680 = vst.msk [vmem:[#allocation2 + $0x340] sm:$0xff] %vm3175_vm1, %v5629_v31  ;;  %v22676_v35 = vld [vmem:[%s23339_s14 + $0x540] sm:$0xff]  }
 0x307   : > { %v5440_v39 = vmul.f32 0.1, %v5086_v33  ;;  %20090 = vmatmul.mubr.msk.bf16.gmra.mrb[64].mxu1 %vm2341_vm0, %v22669_v26  ;;  %20450 = vmatmul.mubr.msk.bf16.gmra.mrb[4].mxu0 %vm3175_vm1, %v8844_v38  ;;  %v5539_v63 = vmax.f32 %v5083_v24, %v5439_v32  ;;  %v22710_v38 = vld [vmem:[%s26455_s2 + $0x10] sm:$0xff]  }
 0x308   : > { %v5438_v40 = vmul.f32 0.1, %v5078_v37  ;;  %20093 = vmatprep.mubr.msk.bf16.mxu1 %vm2341_vm0, %v22670_v30  ;;  %v5537_v42 = vmax.f32 %v5075_v28, %v5437_v36  ;;  %v22675_v30 = vld [vmem:[%s23339_s14 + $0x538] sm:$0xff]   ;;  %20169 = vmatprep.subr.bf16.mxu1 %v22710_v38 }
 0x309   : > { %v5540_v41 = vmax.f32 %v5086_v33, %v5440_v39  ;;  %20170 = vmatpush3.bf16.msra.mxu1 %v22710_v38  ;;  %v22682_v38 = vld [vmem:[%s23339_s14 + $0x570] sm:$0xff]  }
 0x30a   : > { %v5538_v43 = vmax.f32 %v5078_v37, %v5438_v40  ;;  %v19985_v44 = vpop.f32.mrb[216].mxu1 }
 0x30b   : > { %v5632_v45 = vpack.c.bf16 %v5540_v41, %v5539_v63  ;;  %v5099_v46 = vadd.f32 %v19985_v44, %v24022_v19  ;;  %v5090_v47 = vpop.f32.mrb[217].mxu1  ;;  %v22711_v44 = vld [vmem:[%s26455_s2 + $0x18] sm:$0xff]  }
 0x30c   : > { %v5631_v50 = vpack.c.bf16 %v5538_v43, %v5537_v42  ;;  %v5091_v51 = vadd.f32 %v24022_v19, %v5090_v47  ;;  %v19986_v52 = vpop.f32.mrb[218].mxu1  ;;  %v8846_v59 = vld [vmem:[#allocation2 + $0x348] sm:$0xff]  ;;  %20171 = vmatprep.subr.bf16.mxu1 %v22711_v44 }
 0x30d   : > { %5683 = vst.msk [vmem:[#allocation2 + $0x358] sm:$0xff] %vm3175_vm1, %v5632_v45  ;;  %v5443_v54 = vmul.f32 0.1, %v5099_v46  ;;  %v5102_v55 = vadd.f32 %v19986_v52, %v24022_v19  ;;  %v5093_v56 = vpop.f32.mrb[219].mxu1  ;;  %v8845_v49 = vld [vmem:[#allocation2 + $0x340] sm:$0xff]  ;;  %v22677_v52 = vld [vmem:[%s23339_s14 + $0x548] sm:$0xff]   ;;  %20172 = vmatpush3.bf16.msra.mxu1 %v22711_v44 }
 0x30e   : > { %5682 = vst.msk [vmem:[#allocation2 + $0x350] sm:$0xff] %vm3175_vm1, %v5631_v50  ;;  %v5441_v57 = vmul.f32 0.1, %v5091_v51  ;;  %v5094_v58 = vadd.f32 %v24022_v19, %v5093_v56  ;;  %20453 = vmatprep.mubr.msk.bf16.mxu0 %vm3175_vm1, %v8845_v49  ;;  %v22678_v56 = vld [vmem:[%s23339_s14 + $0x550] sm:$0xff]  }
 0x30f   : > { %v5444_v60 = vmul.f32 0.1, %v5102_v55  ;;  %20094 = vmatmul.mubr.msk.bf16.gmra.mrb[68].mxu1 %vm2341_vm0, %v22671_v48  ;;  %20454 = vmatmul.mubr.msk.bf16.gmra.mrb[8].mxu0 %vm3175_vm1, %v8846_v59  ;;  %v5543_v62 = vmax.f32 %v5099_v46, %v5443_v54 }
 0x310   : > { %v5442_v61 = vmul.f32 0.1, %v5094_v58  ;;  %20097 = vmatprep.mubr.msk.bf16.mxu1 %vm2341_vm0, %v22672_v53  ;;  %v5541_v1 = vmax.f32 %v5091_v51, %v5441_v57 }
 0x311   : > { %v5544_v0 = vmax.f32 %v5102_v55, %v5444_v60 }
 0x312   : > { %v5542_v3 = vmax.f32 %v5094_v58, %v5442_v61  ;;  %v19989_v4 = vpop.f32.mrb[220].mxu1 }
 0x313   : > { %v5634_v5 = vpack.c.bf16 %v5544_v0, %v5543_v62  ;;  %v5115_v6 = vadd.f32 %v19989_v4, %v24022_v19  ;;  %v5106_v11 = vpop.f32.mrb[221].mxu1  ;;  %v22708_v0 = vld [vmem:[%s26455_s2 + $0x58] sm:$0xff]  }
 0x314   : > { %v5633_v8 = vpack.c.bf16 %v5542_v3, %v5541_v1  ;;  %v5107_v9 = vadd.f32 %v24022_v19, %v5106_v11  ;;  %v19990_v10 = vpop.f32.mrb[222].mxu1  ;;  %v8848_v34 = vld [vmem:[#allocation2 + $0x358] sm:$0xff]  ;;  %20511 = vmatprep.subr.bf16.mxu0 %v22708_v0 }
 0x315   : > { %5685 = vst.msk [vmem:[#allocation2 + $0x368] sm:$0xff] %vm3175_vm1, %v5634_v5  ;;  %v5447_v12 = vmul.f32 0.1, %v5115_v6  ;;  %v5118_v13 = vadd.f32 %v19990_v10, %v24022_v19  ;;  %v5109_v14 = vpop.f32.mrb[223].mxu1  ;;  %v8847_v15 = vld [vmem:[#allocation2 + $0x350] sm:$0xff]  ;;  %20512 = vmatpush3.bf16.msra.mxu0 %v22708_v0 }
 0x316   : > { %5684 = vst.msk [vmem:[#allocation2 + $0x360] sm:$0xff] %vm3175_vm1, %v5633_v8  ;;  %v5445_v17 = vmul.f32 0.1, %v5107_v9  ;;  %v5110_v18 = vadd.f32 %v24022_v19, %v5109_v14  ;;  %20457 = vmatprep.mubr.msk.bf16.mxu0 %vm3175_vm1, %v8847_v15  ;;  %v22680_v15 = vld [vmem:[%s23339_s14 + $0x560] sm:$0xff]  }
 0x317   : > { %v5448_v20 = vmul.f32 0.1, %v5118_v13  ;;  %20098 = vmatmul.mubr.msk.bf16.gmra.mrb[72].mxu1 %vm2341_vm0, %v22673_v7  ;;  %20458 = vmatmul.mubr.msk.bf16.gmra.mrb[12].mxu0 %vm3175_vm1, %v8848_v34  ;;  %v5547_v22 = vmax.f32 %v5115_v6, %v5447_v12 }
 0x318   : > { %v5446_v21 = vmul.f32 0.1, %v5110_v18  ;;  %20101 = vmatprep.mubr.msk.bf16.mxu1 %vm2341_vm0, %v22674_v2  ;;  %v5545_v24 = vmax.f32 %v5107_v9, %v5445_v17  ;;  %v22679_v2 = vld [vmem:[%s23339_s14 + $0x558] sm:$0xff]  }
 0x319   : > { %v5548_v23 = vmax.f32 %v5118_v13, %v5448_v20 }
 0x31a   : > { %v5546_v25 = vmax.f32 %v5110_v18, %v5446_v21  ;;  %v19993_v26 = vpop.f32.mrb[224].mxu1 }
 0x31b   : > { %v5636_v27 = vpack.c.bf16 %v5548_v23, %v5547_v22  ;;  %v5131_v28 = vadd.f32 %v19993_v26, %v24022_v19  ;;  %v5122_v29 = vpop.f32.mrb[225].mxu1 }
 0x31c   : > { %v5635_v31 = vpack.c.bf16 %v5546_v25, %v5545_v24  ;;  %v5123_v32 = vadd.f32 %v24022_v19, %v5122_v29  ;;  %v19994_v33 = vpop.f32.mrb[226].mxu1 }
 0x31d   : > { %5687 = vst.msk [vmem:[#allocation2 + $0x378] sm:$0xff] %vm3175_vm1, %v5636_v27  ;;  %v5451_v16 = vmul.f32 0.1, %v5131_v28  ;;  %v5134_v36 = vadd.f32 %v19994_v33, %v24022_v19  ;;  %v5125_v37 = vpop.f32.mrb[227].mxu1 }
 0x31e   : > { %5686 = vst.msk [vmem:[#allocation2 + $0x370] sm:$0xff] %vm3175_vm1, %v5635_v31  ;;  %v5449_v39 = vmul.f32 0.1, %v5123_v32  ;;  %v5126_v40 = vadd.f32 %v24022_v19, %v5125_v37 }
 0x31f   : > { %v5452_v63 = vmul.f32 0.1, %v5134_v36  ;;  %20102 = vmatmul.mubr.msk.bf16.gmra.mrb[76].mxu1 %vm2341_vm0, %v22675_v30  ;;  %v5551_v42 = vmax.f32 %v5131_v28, %v5451_v16 }
 0x320   : > { %v5450_v41 = vmul.f32 0.1, %v5126_v40  ;;  %20105 = vmatprep.mubr.msk.bf16.mxu1 %vm2341_vm0, %v22676_v35  ;;  %v5549_v45 = vmax.f32 %v5123_v32, %v5449_v39  ;;  %v22681_v35 = vld [vmem:[%s23339_s14 + $0x568] sm:$0xff]  }
 0x321   : > { %v5552_v43 = vmax.f32 %v5134_v36, %v5452_v63 }
 0x322   : > { %v5550_v46 = vmax.f32 %v5126_v40, %v5450_v41  ;;  %v19997_v47 = vpop.f32.mrb[228].mxu1 }
 0x323   : > { %v5638_v48 = vpack.c.bf16 %v5552_v43, %v5551_v42  ;;  %v5147_v50 = vadd.f32 %v19997_v47, %v24022_v19  ;;  %v5138_v51 = vpop.f32.mrb[229].mxu1 }
 0x324   : > { %v5637_v53 = vpack.c.bf16 %v5550_v46, %v5549_v45  ;;  %v5139_v54 = vadd.f32 %v24022_v19, %v5138_v51  ;;  %v19998_v55 = vpop.f32.mrb[230].mxu1  ;;  %v8850_v62 = vld [vmem:[#allocation2 + $0x378] sm:$0xff] }
 0x325   : > { %5689 = vst.msk [vmem:[#allocation2 + $0x388] sm:$0xff] %vm3175_vm1, %v5638_v48  ;;  %v5455_v49 = vmul.f32 0.1, %v5147_v50  ;;  %v5150_v57 = vadd.f32 %v19998_v55, %v24022_v19  ;;  %v5141_v58 = vpop.f32.mrb[231].mxu1  ;;  %v8849_v59 = vld [vmem:[#allocation2 + $0x370] sm:$0xff] }
 0x326   : > { %5688 = vst.msk [vmem:[#allocation2 + $0x380] sm:$0xff] %vm3175_vm1, %v5637_v53  ;;  %v5453_v60 = vmul.f32 0.1, %v5139_v54  ;;  %v5142_v61 = vadd.f32 %v24022_v19, %v5141_v58  ;;  %20461 = vmatprep.mubr.msk.bf16.mxu0 %vm3175_vm1, %v8849_v59  ;;  %v22684_v59 = vld [vmem:[%s23339_s14 + $0x580] sm:$0xff]  }
 0x327   : > { %v5456_v1 = vmul.f32 0.1, %v5150_v57  ;;  %20106 = vmatmul.mubr.msk.bf16.gmra.mrb[80].mxu1 %vm2341_vm0, %v22677_v52  ;;  %20462 = vmatmul.mubr.msk.bf16.gmra.mrb[16].mxu0 %vm3175_vm1, %v8850_v62  ;;  %v5555_v4 = vmax.f32 %v5147_v50, %v5455_v49 }
 0x328   : > { %v5454_v3 = vmul.f32 0.1, %v5142_v61  ;;  %20109 = vmatprep.mubr.msk.bf16.mxu1 %vm2341_vm0, %v22678_v56  ;;  %v5553_v6 = vmax.f32 %v5139_v54, %v5453_v60  ;;  %v22683_v56 = vld [vmem:[%s23339_s14 + $0x578] sm:$0xff]  }
 0x329   : > { %v5556_v5 = vmax.f32 %v5150_v57, %v5456_v1 }
 0x32a   : > { %v5554_v11 = vmax.f32 %v5142_v61, %v5454_v3  ;;  %v20001_v7 = vpop.f32.mrb[232].mxu1 }
 0x32b   : > { %v5640_v8 = vpack.c.bf16 %v5556_v5, %v5555_v4  ;;  %v5163_v9 = vadd.f32 %v20001_v7, %v24022_v19  ;;  %v5154_v10 = vpop.f32.mrb[233].mxu1 }
 0x32c   : > { %v5639_v12 = vpack.c.bf16 %v5554_v11, %v5553_v6  ;;  %v5155_v13 = vadd.f32 %v24022_v19, %v5154_v10  ;;  %v20002_v14 = vpop.f32.mrb[234].mxu1  ;;  %v8852_v23 = vld [vmem:[#allocation2 + $0x388] sm:$0xff] }
 0x32d   : > { %5691 = vst.msk [vmem:[#allocation2 + $0x398] sm:$0xff] %vm3175_vm1, %v5640_v8  ;;  %v5459_v17 = vmul.f32 0.1, %v5163_v9  ;;  %v5166_v18 = vadd.f32 %v20002_v14, %v24022_v19  ;;  %v5157_v34 = vpop.f32.mrb[235].mxu1  ;;  %v8851_v20 = vld [vmem:[#allocation2 + $0x380] sm:$0xff]  ;;  %v22685_v14 = vld [vmem:[%s23339_s14 + $0x588] sm:$0xff]  }
 0x32e   : > { %5690 = vst.msk [vmem:[#allocation2 + $0x390] sm:$0xff] %vm3175_vm1, %v5639_v12  ;;  %v5457_v21 = vmul.f32 0.1, %v5155_v13  ;;  %v5158_v22 = vadd.f32 %v24022_v19, %v5157_v34  ;;  %20465 = vmatprep.mubr.msk.bf16.mxu0 %vm3175_vm1, %v8851_v20  ;;  %v22686_v34 = vld [vmem:[%s23339_s14 + $0x590] sm:$0xff]  }
 0x32f   : > { %v5460_v24 = vmul.f32 0.1, %v5166_v18  ;;  %20110 = vmatmul.mubr.msk.bf16.gmra.mrb[84].mxu1 %vm2341_vm0, %v22679_v2  ;;  %20466 = vmatmul.mubr.msk.bf16.gmra.mrb[20].mxu0 %vm3175_vm1, %v8852_v23  ;;  %v5559_v26 = vmax.f32 %v5163_v9, %v5459_v17 }
 0x330   : > { %v5458_v25 = vmul.f32 0.1, %v5158_v22  ;;  %20113 = vmatprep.mubr.msk.bf16.mxu1 %vm2341_vm0, %v22680_v15  ;;  %v5557_v28 = vmax.f32 %v5155_v13, %v5457_v21 }
 0x331   : > { %v5560_v27 = vmax.f32 %v5166_v18, %v5460_v24 }
 0x332   : > { %v5558_v29 = vmax.f32 %v5158_v22, %v5458_v25  ;;  %v20005_v30 = vpop.f32.mrb[236].mxu1 }
 0x333   : > { %v5642_v31 = vpack.c.bf16 %v5560_v27, %v5559_v26  ;;  %v5179_v32 = vadd.f32 %v20005_v30, %v24022_v19  ;;  %v5170_v33 = vpop.f32.mrb[237].mxu1 }
 0x334   : > { %v5641_v16 = vpack.c.bf16 %v5558_v29, %v5557_v28  ;;  %v5171_v36 = vadd.f32 %v24022_v19, %v5170_v33  ;;  %v20006_v37 = vpop.f32.mrb[238].mxu1  ;;  %v8854_v44 = vld [vmem:[#allocation2 + $0x398] sm:$0xff] }
 0x335   : > { %5693 = vst.msk [vmem:[#allocation2 + $0x3a8] sm:$0xff] %vm3175_vm1, %v5642_v31  ;;  %v5463_v39 = vmul.f32 0.1, %v5179_v32  ;;  %v5182_v40 = vadd.f32 %v20006_v37, %v24022_v19  ;;  %v5173_v63 = vpop.f32.mrb[239].mxu1  ;;  %v8853_v41 = vld [vmem:[#allocation2 + $0x390] sm:$0xff] }
 0x336   : > { %5692 = vst.msk [vmem:[#allocation2 + $0x3a0] sm:$0xff] %vm3175_vm1, %v5641_v16  ;;  %v5461_v42 = vmul.f32 0.1, %v5171_v36  ;;  %v5174_v43 = vadd.f32 %v24022_v19, %v5173_v63  ;;  %20469 = vmatprep.mubr.msk.bf16.mxu0 %vm3175_vm1, %v8853_v41  ;;  %v22687_v16 = vld [vmem:[%s23339_s14 + $0x598] sm:$0xff]  }
 0x337   : > { %v5464_v45 = vmul.f32 0.1, %v5182_v40  ;;  %20114 = vmatmul.mubr.msk.bf16.gmra.mrb[88].mxu1 %vm2341_vm0, %v22681_v35  ;;  %20470 = vmatmul.mubr.msk.bf16.gmra.mrb[24].mxu0 %vm3175_vm1, %v8854_v44  ;;  %v5563_v47 = vmax.f32 %v5179_v32, %v5463_v39  ;;  %v22688_v39 = vld [vmem:[%s23339_s14 + $0x5a0] sm:$0xff]  }
 0x338   : > { %v5462_v46 = vmul.f32 0.1, %v5174_v43  ;;  %20117 = vmatprep.mubr.msk.bf16.mxu1 %vm2341_vm0, %v22682_v38  ;;  %v5561_v50 = vmax.f32 %v5171_v36, %v5461_v42 }
 0x339   : > { %v5564_v48 = vmax.f32 %v5182_v40, %v5464_v45 }
 0x33a   : > { %v5562_v51 = vmax.f32 %v5174_v43, %v5462_v46  ;;  %v20009_v52 = vpop.f32.mrb[240].mxu1 }
 0x33b   : > { %v5644_v53 = vpack.c.bf16 %v5564_v48, %v5563_v47  ;;  %v5195_v54 = vadd.f32 %v20009_v52, %v24022_v19  ;;  %v5186_v55 = vpop.f32.mrb[241].mxu1 }
 0x33c   : > { %v5643_v49 = vpack.c.bf16 %v5562_v51, %v5561_v50  ;;  %v5187_v57 = vadd.f32 %v24022_v19, %v5186_v55  ;;  %v20010_v58 = vpop.f32.mrb[242].mxu1  ;;  %v8856_v4 = vld [vmem:[#allocation2 + $0x3a8] sm:$0xff] }
 0x33d   : > { %5695 = vst.msk [vmem:[#allocation2 + $0x3b8] sm:$0xff] %vm3175_vm1, %v5644_v53  ;;  %v5467_v60 = vmul.f32 0.1, %v5195_v54  ;;  %v5198_v61 = vadd.f32 %v20010_v58, %v24022_v19  ;;  %v5189_v62 = vpop.f32.mrb[243].mxu1  ;;  %v8855_v0 = vld [vmem:[#allocation2 + $0x3a0] sm:$0xff] }
 0x33e   : > { %5694 = vst.msk [vmem:[#allocation2 + $0x3b0] sm:$0xff] %vm3175_vm1, %v5643_v49  ;;  %v5465_v1 = vmul.f32 0.1, %v5187_v57  ;;  %v5190_v3 = vadd.f32 %v24022_v19, %v5189_v62  ;;  %20473 = vmatprep.mubr.msk.bf16.mxu0 %vm3175_vm1, %v8855_v0  ;;  %v22689_v49 = vld [vmem:[%s23339_s14 + $0x5a8] sm:$0xff]  }
 0x33f   : > { %v5468_v5 = vmul.f32 0.1, %v5198_v61  ;;  %20118 = vmatmul.mubr.msk.bf16.gmra.mrb[92].mxu1 %vm2341_vm0, %v22683_v56  ;;  %20474 = vmatmul.mubr.msk.bf16.gmra.mrb[28].mxu0 %vm3175_vm1, %v8856_v4  ;;  %v5567_v11 = vmax.f32 %v5195_v54, %v5467_v60  ;;  %v22690_v60 = vld [vmem:[%s23339_s14 + $0x5b0] sm:$0xff]  }
 0x340   : > { %v5466_v6 = vmul.f32 0.1, %v5190_v3  ;;  %20121 = vmatprep.mubr.msk.bf16.mxu1 %vm2341_vm0, %v22684_v59  ;;  %v5565_v8 = vmax.f32 %v5187_v57, %v5465_v1 }
 0x341   : > { %v5568_v7 = vmax.f32 %v5198_v61, %v5468_v5 }
 0x342   : > { %v5566_v9 = vmax.f32 %v5190_v3, %v5466_v6  ;;  %v20013_v10 = vpop.f32.mrb[244].mxu1 }
 0x343   : > { %v5646_v2 = vpack.c.bf16 %v5568_v7, %v5567_v11  ;;  %v5211_v12 = vadd.f32 %v20013_v10, %v24022_v19  ;;  %v5202_v13 = vpop.f32.mrb[245].mxu1 }
 0x344   : > { %v5645_v15 = vpack.c.bf16 %v5566_v9, %v5565_v8  ;;  %v5203_v17 = vadd.f32 %v24022_v19, %v5202_v13  ;;  %v20014_v18 = vpop.f32.mrb[246].mxu1 }
 0x345   : > { %5697 = vst.msk [vmem:[#allocation2 + $0x3c8] sm:$0xff] %vm3175_vm1, %v5646_v2  ;;  %v5471_v20 = vmul.f32 0.1, %v5211_v12  ;;  %v5214_v21 = vadd.f32 %v20014_v18, %v24022_v19  ;;  %v5205_v22 = vpop.f32.mrb[247].mxu1 }
 0x346   : > { %5696 = vst.msk [vmem:[#allocation2 + $0x3c0] sm:$0xff] %vm3175_vm1, %v5645_v15  ;;  %v5469_v23 = vmul.f32 0.1, %v5203_v17  ;;  %v5206_v24 = vadd.f32 %v24022_v19, %v5205_v22  ;;  %v22692_v15 = vld [vmem:[%s23339_s14 + $0x5b8] sm:$0xff]  }
 0x347   : > { %v5472_v25 = vmul.f32 0.1, %v5214_v21  ;;  %20122 = vmatmul.mubr.msk.bf16.gmra.mrb[96].mxu1 %vm2341_vm0, %v22685_v14  ;;  %v5571_v27 = vmax.f32 %v5211_v12, %v5471_v20  ;;  %v22693_v20 = vld [vmem:[%s23339_s14 + $0x5c0] sm:$0xff]  }
 0x348   : > { %v5470_v26 = vmul.f32 0.1, %v5206_v24  ;;  %20125 = vmatprep.mubr.msk.bf16.mxu1 %vm2341_vm0, %v22686_v34  ;;  %v5569_v29 = vmax.f32 %v5203_v17, %v5469_v23 }
 0x349   : > { %v5572_v28 = vmax.f32 %v5214_v21, %v5472_v25 }
 0x34a   : > { %v5570_v30 = vmax.f32 %v5206_v24, %v5470_v26  ;;  %v20017_v31 = vpop.f32.mrb[248].mxu1 }
 0x34b   : > { %v5648_v32 = vpack.c.bf16 %v5572_v28, %v5571_v27  ;;  %v5227_v33 = vadd.f32 %v20017_v31, %v24022_v19  ;;  %v5218_v35 = vpop.f32.mrb[249].mxu1 }
 0x34c   : > { %v5647_v36 = vpack.c.bf16 %v5570_v30, %v5569_v29  ;;  %v5219_v37 = vadd.f32 %v24022_v19, %v5218_v35  ;;  %v20018_v38 = vpop.f32.mrb[250].mxu1  ;;  %v8858_v45 = vld [vmem:[#allocation2 + $0x3c8] sm:$0xff] }
 0x34d   : > { %5699 = vst.msk [vmem:[#allocation2 + $0x3d8] sm:$0xff] %vm3175_vm1, %v5648_v32  ;;  %v5475_v40 = vmul.f32 0.1, %v5227_v33  ;;  %v5230_v63 = vadd.f32 %v20018_v38, %v24022_v19  ;;  %v5221_v41 = vpop.f32.mrb[251].mxu1  ;;  %v8857_v42 = vld [vmem:[#allocation2 + $0x3c0] sm:$0xff]  ;;  %v22694_v38 = vld [vmem:[%s23339_s14 + $0x5c8] sm:$0xff]  }
 0x34e   : > { %5698 = vst.msk [vmem:[#allocation2 + $0x3d0] sm:$0xff] %vm3175_vm1, %v5647_v36  ;;  %v5473_v43 = vmul.f32 0.1, %v5219_v37  ;;  %v5222_v44 = vadd.f32 %v24022_v19, %v5221_v41  ;;  %20477 = vmatprep.mubr.msk.bf16.mxu0 %vm3175_vm1, %v8857_v42  ;;  %v22695_v41 = vld [vmem:[%s23339_s14 + $0x5d0] sm:$0xff]  }
 0x34f   : > { %v5476_v46 = vmul.f32 0.1, %v5230_v63  ;;  %20126 = vmatmul.mubr.msk.bf16.gmra.mrb[100].mxu1 %vm2341_vm0, %v22687_v16  ;;  %20478 = vmatmul.mubr.msk.bf16.gmra.mrb[32].mxu0 %vm3175_vm1, %v8858_v45  ;;  %v5575_v48 = vmax.f32 %v5227_v33, %v5475_v40 }
 0x350   : > { %v5474_v47 = vmul.f32 0.1, %v5222_v44  ;;  %20129 = vmatprep.mubr.msk.bf16.mxu1 %vm2341_vm0, %v22688_v39  ;;  %v5573_v51 = vmax.f32 %v5219_v37, %v5473_v43 }
 0x351   : > { %v5576_v50 = vmax.f32 %v5230_v63, %v5476_v46 }
 0x352   : > { %v5574_v52 = vmax.f32 %v5222_v44, %v5474_v47  ;;  %v20021_v53 = vpop.f32.mrb[252].mxu1 }
 0x353   : > { %v5650_v54 = vpack.c.bf16 %v5576_v50, %v5575_v48  ;;  %v5243_v55 = vadd.f32 %v20021_v53, %v24022_v19  ;;  %v5234_v56 = vpop.f32.mrb[253].mxu1  ;;  %v24220_v50 = vld [vmem:[%s26455_s2 + $0x60] sm:$0xff]  }
 0x354   : > { %v5649_v57 = vpack.c.bf16 %v5574_v52, %v5573_v51  ;;  %v5235_v58 = vadd.f32 %v24022_v19, %v5234_v56  ;;  %v20022_v59 = vpop.f32.mrb[254].mxu1  ;;  %v8860_v5 = vld [vmem:[#allocation2 + $0x3d8] sm:$0xff]  ;;  %20577 = vmatprep.subr.bf16.mxu0 %v24220_v50 }
 0x355   : > { %5701 = vst.msk [vmem:[#allocation2 + $0x3e8] sm:$0xff] %vm3175_vm1, %v5650_v54  ;;  %v5479_v61 = vmul.f32 0.1, %v5243_v55  ;;  %v5246_v62 = vadd.f32 %v20022_v59, %v24022_v19  ;;  %v5237_v0 = vpop.f32.mrb[255].mxu1  ;;  %v8859_v1 = vld [vmem:[#allocation2 + $0x3d0] sm:$0xff] }
 0x356   : > { %5700 = vst.msk [vmem:[#allocation2 + $0x3e0] sm:$0xff] %vm3175_vm1, %v5649_v57  ;;  %v5477_v3 = vmul.f32 0.1, %v5235_v58  ;;  %v5238_v4 = vadd.f32 %v24022_v19, %v5237_v0  ;;  %20481 = vmatprep.mubr.msk.bf16.mxu0 %vm3175_vm1, %v8859_v1  ;;  %v22697_v1 = vld [vmem:[%s23339_s14 + $0x5e0] sm:$0xff]  }
 0x357   : > { %v5480_v6 = vmul.f32 0.1, %v5246_v62  ;;  %20130 = vmatmul.mubr.msk.bf16.gmra.mrb[104].mxu1 %vm2341_vm0, %v22689_v49  ;;  %20482 = vmatmul.mubr.msk.bf16.gmra.mrb[36].mxu0 %vm3175_vm1, %v8860_v5  ;;  %v5579_v7 = vmax.f32 %v5243_v55, %v5479_v61 }
 0x358   : > { %v5478_v11 = vmul.f32 0.1, %v5238_v4  ;;  %20133 = vmatprep.mubr.msk.bf16.mxu1 %vm2341_vm0, %v22690_v60  ;;  %v5577_v9 = vmax.f32 %v5235_v58, %v5477_v3  ;;  %v22696_v60 = vld [vmem:[%s23339_s14 + $0x5d8] sm:$0xff]  }
 0x359   : > { %v5580_v8 = vmax.f32 %v5246_v62, %v5480_v6 }
 0x35a   : > { %v5578_v10 = vmax.f32 %v5238_v4, %v5478_v11  ;;  %v20025_v2 = vpop.f32.mrb[0].mxu1 }
 0x35b   : > { %v5652_v12 = vpack.c.bf16 %v5580_v8, %v5579_v7  ;;  %v5259_v13 = vadd.f32 %v20025_v2, %v24022_v19  ;;  %v5250_v14 = vpop.f32.mrb[1].mxu1 }
 0x35c   : > { %v5651_v17 = vpack.c.bf16 %v5578_v10, %v5577_v9  ;;  %v5251_v18 = vadd.f32 %v24022_v19, %v5250_v14  ;;  %v20026_v34 = vpop.f32.mrb[2].mxu1  ;;  %v8862_v27 = vld [vmem:[#allocation2 + $0x3e8] sm:$0xff] }
 0x35d   : > { %5703 = vst.msk [vmem:[#allocation2 + $0x3f8] sm:$0xff] %vm3175_vm1, %v5652_v12  ;;  %v5483_v21 = vmul.f32 0.1, %v5259_v13  ;;  %v5262_v22 = vadd.f32 %v20026_v34, %v24022_v19  ;;  %v5253_v23 = vpop.f32.mrb[3].mxu1  ;;  %v8861_v24 = vld [vmem:[#allocation2 + $0x3e0] sm:$0xff] }
 0x35e   : > { %5702 = vst.msk [vmem:[#allocation2 + $0x3f0] sm:$0xff] %vm3175_vm1, %v5651_v17  ;;  %v5481_v25 = vmul.f32 0.1, %v5251_v18  ;;  %v5254_v26 = vadd.f32 %v24022_v19, %v5253_v23  ;;  %20485 = vmatprep.mubr.msk.bf16.mxu0 %vm3175_vm1, %v8861_v24 }
 0x35f   : > { %v5484_v28 = vmul.f32 0.1, %v5262_v22  ;;  %20134 = vmatmul.mubr.msk.bf16.gmra.mrb[108].mxu1 %vm2341_vm0, %v22692_v15  ;;  %20486 = vmatmul.mubr.msk.bf16.gmra.mrb[40].mxu0 %vm3175_vm1, %v8862_v27  ;;  %v5583_v30 = vmax.f32 %v5259_v13, %v5483_v21 }
 0x360   : > { %v5482_v29 = vmul.f32 0.1, %v5254_v26  ;;  %20137 = vmatprep.mubr.msk.bf16.mxu1 %vm2341_vm0, %v22693_v20  ;;  %v5581_v32 = vmax.f32 %v5251_v18, %v5481_v25  ;;  %v22698_v18 = vld [vmem:[%s23339_s14 + $0x5e8] sm:$0xff]  }
 0x361   : > { %v5584_v31 = vmax.f32 %v5262_v22, %v5484_v28  ;;  %v22699_v22 = vld [vmem:[%s23339_s14 + $0x5f0] sm:$0xff]  }
 0x362   : > { %v5582_v33 = vmax.f32 %v5254_v26, %v5482_v29  ;;  %v20029_v35 = vpop.f32.mrb[4].mxu1 }
 0x363   : > { %v5654_v16 = vpack.c.bf16 %v5584_v31, %v5583_v30  ;;  %v5275_v36 = vadd.f32 %v20029_v35, %v24022_v19  ;;  %v5266_v37 = vpop.f32.mrb[5].mxu1 }
 0x364   : > { %v5653_v39 = vpack.c.bf16 %v5582_v33, %v5581_v32  ;;  %v5267_v40 = vadd.f32 %v24022_v19, %v5266_v37  ;;  %v20030_v63 = vpop.f32.mrb[6].mxu1  ;;  %v8864_v48 = vld [vmem:[#allocation2 + $0x3f8] sm:$0xff] }
 0x365   : > { %5705 = vst.msk [vmem:[#allocation2 + $0x408] sm:$0xff] %vm3175_vm1, %v5654_v16  ;;  %v5487_v42 = vmul.f32 0.1, %v5275_v36  ;;  %v5278_v43 = vadd.f32 %v20030_v63, %v24022_v19  ;;  %v5269_v44 = vpop.f32.mrb[7].mxu1  ;;  %v8863_v45 = vld [vmem:[#allocation2 + $0x3f0] sm:$0xff] }
 0x366   : > { %5704 = vst.msk [vmem:[#allocation2 + $0x400] sm:$0xff] %vm3175_vm1, %v5653_v39  ;;  %v5485_v46 = vmul.f32 0.1, %v5267_v40  ;;  %v5270_v47 = vadd.f32 %v24022_v19, %v5269_v44  ;;  %20489 = vmatprep.mubr.msk.bf16.mxu0 %vm3175_vm1, %v8863_v45  ;;  %v24256_v45 = vld [vmem:[%s26458_s5] ss:$0 sm:$0xff] }
 0x367   : > { %v5488_v51 = vmul.f32 0.1, %v5278_v43  ;;  %20138 = vmatmul.mubr.msk.bf16.gmra.mrb[112].mxu1 %vm2341_vm0, %v22694_v38  ;;  %20490 = vmatmul.mubr.msk.bf16.gmra.mrb[44].mxu0 %vm3175_vm1, %v8864_v48  ;;  %v5587_v53 = vmax.f32 %v5275_v36, %v5487_v42 }
 0x368   : > { %v5486_v52 = vmul.f32 0.1, %v5270_v47  ;;  %20141 = vmatprep.mubr.msk.bf16.mxu1 %vm2341_vm0, %v22695_v41  ;;  %v5585_v55 = vmax.f32 %v5267_v40, %v5485_v46  ;;  %v22700_v40 = vld [vmem:[%s23339_s14 + $0x5f8] sm:$0xff]  }
 0x369   : > { %v5588_v54 = vmax.f32 %v5278_v43, %v5488_v51  ;;  %v22701_v43 = vld [vmem:[%s23339_s14 + $0x600] sm:$0xff]  }
 0x36a   : > { %v5586_v56 = vmax.f32 %v5270_v47, %v5486_v52  ;;  %v20033_v49 = vpop.f32.mrb[8].mxu1 }
 0x36b   : > { %v5656_v57 = vpack.c.bf16 %v5588_v54, %v5587_v53  ;;  %v5291_v58 = vadd.f32 %v20033_v49, %v24022_v19  ;;  %v5282_v59 = vpop.f32.mrb[9].mxu1 }
 0x36c   : > { %v5655_v61 = vpack.c.bf16 %v5586_v56, %v5585_v55  ;;  %v5283_v62 = vadd.f32 %v24022_v19, %v5282_v59  ;;  %v20034_v0 = vpop.f32.mrb[10].mxu1 }
 0x36d   : > { %5707 = vst.msk [vmem:[#allocation2 + $0x418] sm:$0xff] %vm3175_vm1, %v5656_v57  ;;  %v5491_v3 = vmul.f32 0.1, %v5291_v58  ;;  %v5294_v4 = vadd.f32 %v20034_v0, %v24022_v19  ;;  %v5285_v5 = vpop.f32.mrb[11].mxu1 }
 0x36e   : > { %5706 = vst.msk [vmem:[#allocation2 + $0x410] sm:$0xff] %vm3175_vm1, %v5655_v61  ;;  %v5489_v6 = vmul.f32 0.1, %v5283_v62  ;;  %v5286_v11 = vadd.f32 %v24022_v19, %v5285_v5 }
 0x36f   : > { %v5492_v7 = vmul.f32 0.1, %v5294_v4  ;;  %20142 = vmatmul.mubr.msk.bf16.gmra.mrb[116].mxu1 %vm2341_vm0, %v22696_v60  ;;  %v5591_v9 = vmax.f32 %v5291_v58, %v5491_v3 }
 0x370   : > { %v5490_v8 = vmul.f32 0.1, %v5286_v11  ;;  %20145 = vmatprep.mubr.msk.bf16.mxu1 %vm2341_vm0, %v22697_v1  ;;  %v5589_v2 = vmax.f32 %v5283_v62, %v5489_v6  ;;  %v22702_v62 = vld [vmem:[%s23339_s14 + $0x608] sm:$0xff]  }
 0x371   : > { %v5592_v10 = vmax.f32 %v5294_v4, %v5492_v7  ;;  %v22703_v4 = vld [vmem:[%s23339_s14 + $0x610] sm:$0xff]  }
 0x372   : > { %v5590_v12 = vmax.f32 %v5286_v11, %v5490_v8  ;;  %v20037_v13 = vpop.f32.mrb[12].mxu1 }
 0x373   : > { %v5658_v14 = vpack.c.bf16 %v5592_v10, %v5591_v9  ;;  %v5307_v15 = vadd.f32 %v20037_v13, %v24022_v19  ;;  %v5298_v17 = vpop.f32.mrb[13].mxu1 }
 0x374   : > { %v5657_v34 = vpack.c.bf16 %v5590_v12, %v5589_v2  ;;  %v5299_v20 = vadd.f32 %v24022_v19, %v5298_v17  ;;  %v20038_v21 = vpop.f32.mrb[14].mxu1  ;;  %v8866_v29 = vld [vmem:[#allocation2 + $0x418] sm:$0xff] }
 0x375   : > { %5709 = vst.msk [vmem:[#allocation2 + $0x428] sm:$0xff] %vm3175_vm1, %v5658_v14  ;;  %v5495_v23 = vmul.f32 0.1, %v5307_v15  ;;  %v5310_v24 = vadd.f32 %v20038_v21, %v24022_v19  ;;  %v5301_v25 = vpop.f32.mrb[15].mxu1  ;;  %v8865_v26 = vld [vmem:[#allocation2 + $0x410] sm:$0xff] }
 0x376   : > { %5708 = vst.msk [vmem:[#allocation2 + $0x420] sm:$0xff] %vm3175_vm1, %v5657_v34  ;;  %v5493_v27 = vmul.f32 0.1, %v5299_v20  ;;  %v5302_v28 = vadd.f32 %v24022_v19, %v5301_v25  ;;  %20493 = vmatprep.mubr.msk.bf16.mxu0 %vm3175_vm1, %v8865_v26  ;;  %v22705_v26 = vld [vmem:[%s23339_s14 + $0x620] sm:$0xff]  }
 0x377   : > { %v5496_v30 = vmul.f32 0.1, %v5310_v24  ;;  %20146 = vmatmul.mubr.msk.bf16.gmra.mrb[120].mxu1 %vm2341_vm0, %v22698_v18  ;;  %20494 = vmatmul.mubr.msk.bf16.gmra.mrb[48].mxu0 %vm3175_vm1, %v8866_v29  ;;  %v5595_v32 = vmax.f32 %v5307_v15, %v5495_v23 }
 0x378   : > { %v5494_v31 = vmul.f32 0.1, %v5302_v28  ;;  %20149 = vmatprep.mubr.msk.bf16.mxu1 %vm2341_vm0, %v22699_v22  ;;  %v5593_v35 = vmax.f32 %v5299_v20, %v5493_v27  ;;  %v22704_v22 = vld [vmem:[%s23339_s14 + $0x618] sm:$0xff]  }
 0x379   : > { %v5596_v33 = vmax.f32 %v5310_v24, %v5496_v30 }
 0x37a   : > { %v5594_v16 = vmax.f32 %v5302_v28, %v5494_v31  ;;  %v20041_v36 = vpop.f32.mrb[16].mxu1 }
 0x37b   : > { %v5660_v37 = vpack.c.bf16 %v5596_v33, %v5595_v32  ;;  %v5323_v38 = vadd.f32 %v20041_v36, %v24022_v19  ;;  %v5314_v39 = vpop.f32.mrb[17].mxu1 }
 0x37c   : > { %v5659_v63 = vpack.c.bf16 %v5594_v16, %v5593_v35  ;;  %v5315_v41 = vadd.f32 %v24022_v19, %v5314_v39  ;;  %v20042_v42 = vpop.f32.mrb[18].mxu1  ;;  %v8868_v19 = vld [vmem:[#allocation2 + $0x428] sm:$0xff] }
 0x37d   : > { %5711 = vst.msk [vmem:[#allocation2 + $0x438] sm:$0xff] %vm3175_vm1, %v5660_v37  ;;  %v5499_v44 = vmul.f32 0.1, %v5323_v38  ;;  %v5326_v46 = vadd.f32 %v24256_v45, %v20042_v42  ;;  %v5317_v47 = vpop.f32.mrb[19].mxu1  ;;  %v8867_v48 = vld [vmem:[#allocation2 + $0x420] sm:$0xff] }
 0x37e   : > { %5710 = vst.msk [vmem:[#allocation2 + $0x430] sm:$0xff] %vm3175_vm1, %v5659_v63  ;;  %v5497_v51 = vmul.f32 0.1, %v5315_v41  ;;  %v5318_v52 = vadd.f32 %v24256_v45, %v5317_v47  ;;  %20497 = vmatprep.mubr.msk.bf16.mxu0 %vm3175_vm1, %v8867_v48  ;;  %v22707_v48 = vld [vmem:[%s23339_s14 + $0x630] sm:$0xff]  }
 0x37f   : > { %v5500_v53 = vmul.f32 0.1, %v5326_v46  ;;  %20150 = vmatmul.mubr.msk.bf16.gmra.mrb[124].mxu1 %vm2341_vm0, %v22700_v40  ;;  %20498 = vmatmul.mubr.msk.bf16.gmra.mrb[52].mxu0 %vm3175_vm1, %v8868_v19  ;;  %v5599_v55 = vmax.f32 %v5323_v38, %v5499_v44 }
 0x380   : > { %v5498_v54 = vmul.f32 0.1, %v5318_v52  ;;  %20153 = vmatprep.mubr.msk.bf16.mxu1 %vm2341_vm0, %v22701_v43  ;;  %v5597_v49 = vmax.f32 %v5315_v41, %v5497_v51  ;;  %v22706_v43 = vld [vmem:[%s23339_s14 + $0x628] sm:$0xff]  }
 0x381   : > { %v5600_v56 = vmax.f32 %v5326_v46, %v5500_v53 }
 0x382   : > { %v5598_v57 = vmax.f32 %v5318_v52, %v5498_v54  ;;  %v20045_v58 = vpop.f32.mrb[20].mxu1 }
 0x383   : > { %v5662_v59 = vpack.c.bf16 %v5600_v56, %v5599_v55  ;;  %v5339_v60 = vadd.f32 %v24256_v45, %v20045_v58  ;;  %v5330_v61 = vpop.f32.mrb[21].mxu1 }
 0x384   : > { %v5661_v0 = vpack.c.bf16 %v5598_v57, %v5597_v49  ;;  %v5331_v1 = vadd.f32 %v24256_v45, %v5330_v61  ;;  %v20046_v3 = vpop.f32.mrb[22].mxu1  ;;  %v8870_v10 = vld [vmem:[#allocation2 + $0x438] sm:$0xff] }
 0x385   : > { %5713 = vst.msk [vmem:[#allocation2 + $0x448] sm:$0xff] %vm3175_vm1, %v5662_v59  ;;  %v5503_v5 = vmul.f32 0.1, %v5339_v60  ;;  %v5342_v6 = vadd.f32 %v24256_v45, %v20046_v3  ;;  %v5333_v11 = vpop.f32.mrb[23].mxu1  ;;  %v8869_v7 = vld [vmem:[#allocation2 + $0x430] sm:$0xff] }
 0x386   : > { %5712 = vst.msk [vmem:[#allocation2 + $0x440] sm:$0xff] %vm3175_vm1, %v5661_v0  ;;  %v5501_v8 = vmul.f32 0.1, %v5331_v1  ;;  %v5334_v9 = vadd.f32 %v24256_v45, %v5333_v11  ;;  %20501 = vmatprep.mubr.msk.bf16.mxu0 %vm3175_vm1, %v8869_v7 }
 0x387   : > { %v5504_v2 = vmul.f32 0.1, %v5342_v6  ;;  %20154 = vmatmul.mubr.msk.bf16.gmra.mrb[128].mxu1 %vm2341_vm0, %v22702_v62  ;;  %20502 = vmatmul.mubr.msk.bf16.gmra.mrb[56].mxu0 %vm3175_vm1, %v8870_v10  ;;  %v5603_v13 = vmax.f32 %v5339_v60, %v5503_v5  ;;  %v22714_v10 = vld [vmem:[%s26455_s2] sm:$0xff]  }
 0x388   : > { %v5502_v12 = vmul.f32 0.1, %v5334_v9  ;;  %20157 = vmatprep.mubr.msk.bf16.mxu1 %vm2341_vm0, %v22703_v4  ;;  %v5601_v15 = vmax.f32 %v5331_v1, %v5501_v8  ;;  %v22709_v1 = vld [vmem:[%s23339_s14 + $0x638] sm:$0xff]   ;;  %20237 = vmatprep.subr.bf16.mxu1 %v22714_v10 }
 0x389   : > { %v5604_v14 = vmax.f32 %v5342_v6, %v5504_v2 }
 0x38a   : > { %v5602_v17 = vmax.f32 %v5334_v9, %v5502_v12  ;;  %v20049_v18 = vpop.f32.mrb[24].mxu1  ;;  %v7012_v12 = vld [vmem:[#allocation2 + $0x190] sm:$0xff] }
 0x38b   : > { %v5664_v34 = vpack.c.bf16 %v5604_v14, %v5603_v13  ;;  %v5355_v20 = vadd.f32 %v24256_v45, %v20049_v18  ;;  %v5346_v21 = vpop.f32.mrb[25].mxu1 }
 0x38c   : > { %v5663_v23 = vpack.c.bf16 %v5602_v17, %v5601_v15  ;;  %v5347_v24 = vadd.f32 %v24256_v45, %v5346_v21  ;;  %v20050_v25 = vpop.f32.mrb[26].mxu1  ;;  %v8872_v33 = vld [vmem:[#allocation2 + $0x448] sm:$0xff] }
 0x38d   : > { %5715 = vst.msk [vmem:[#allocation2 + $0x458] sm:$0xff] %vm3175_vm1, %v5664_v34  ;;  %v5507_v27 = vmul.f32 0.1, %v5355_v20  ;;  %v5358_v28 = vadd.f32 %v24256_v45, %v20050_v25  ;;  %v5349_v29 = vpop.f32.mrb[27].mxu1  ;;  %v8871_v30 = vld [vmem:[#allocation2 + $0x440] sm:$0xff] }
 0x38e   : > { %5714 = vst.msk [vmem:[#allocation2 + $0x450] sm:$0xff] %vm3175_vm1, %v5663_v23  ;;  %v5505_v31 = vmul.f32 0.1, %v5347_v24  ;;  %v5350_v32 = vadd.f32 %v24256_v45, %v5349_v29  ;;  %20505 = vmatprep.mubr.msk.bf16.mxu0 %vm3175_vm1, %v8871_v30  ;;  %v22715_v29 = vld [vmem:[%s26455_s2 + $0x8] sm:$0xff]  }
 0x38f   : > { %v5508_v35 = vmul.f32 0.1, %v5358_v28  ;;  %20158 = vmatmul.mubr.msk.bf16.gmra.mrb[132].mxu1 %vm2341_vm0, %v22704_v22  ;;  %20506 = vmatmul.mubr.msk.bf16.gmra.mrb[60].mxu0 %vm3175_vm1, %v8872_v33  ;;  %v5607_v36 = vmax.f32 %v5355_v20, %v5507_v27 }
 0x390   : > { %v5506_v16 = vmul.f32 0.1, %v5350_v32  ;;  %20161 = vmatprep.mubr.msk.bf16.mxu1 %vm2341_vm0, %v22705_v26  ;;  %v5605_v38 = vmax.f32 %v5347_v24, %v5505_v31 }
 0x391   : > { %v5608_v37 = vmax.f32 %v5358_v28, %v5508_v35  ;;  %v7014_v35 = vld [vmem:[#allocation2 + $0x1a0] sm:$0xff] }
 0x392   : > { %v5606_v39 = vmax.f32 %v5350_v32, %v5506_v16  ;;  %v20053_v40 = vpop.f32.mrb[28].mxu1  ;;  %v7013_v32 = vld [vmem:[#allocation2 + $0x198] sm:$0xff] }
 0x393   : > { %v5666_v63 = vpack.c.bf16 %v5608_v37, %v5607_v36  ;;  %v5371_v41 = vadd.f32 %v24256_v45, %v20053_v40  ;;  %v5362_v42 = vpop.f32.mrb[29].mxu1 }
 0x394   : > { %v5665_v44 = vpack.c.bf16 %v5606_v39, %v5605_v38  ;;  %v5363_v46 = vadd.f32 %v24256_v45, %v5362_v42  ;;  %v20054_v47 = vpop.f32.mrb[30].mxu1 }
 0x395   : > { %5717 = vst.msk [vmem:[#allocation2 + $0x468] sm:$0xff] %vm3175_vm1, %v5666_v63  ;;  %v5511_v51 = vmul.f32 0.1, %v5371_v41  ;;  %v5374_v52 = vadd.f32 %v24256_v45, %v20054_v47  ;;  %v5365_v19 = vpop.f32.mrb[31].mxu1 }
 0x396   : > { %5716 = vst.msk [vmem:[#allocation2 + $0x460] sm:$0xff] %vm3175_vm1, %v5665_v44  ;;  %v5509_v53 = vmul.f32 0.1, %v5363_v46  ;;  %v5366_v54 = vadd.f32 %v24256_v45, %v5365_v19 }
 0x397   : > { %v5512_v55 = vmul.f32 0.1, %v5374_v52  ;;  %20162 = vmatmul.mubr.msk.bf16.gmra.mrb[136].mxu1 %vm2341_vm0, %v22706_v43  ;;  %v5611_v49 = vmax.f32 %v5371_v41, %v5511_v51 }
 0x398   : > { %v5510_v56 = vmul.f32 0.1, %v5366_v54  ;;  %20165 = vmatprep.mubr.msk.bf16.mxu1 %vm2341_vm0, %v22707_v48  ;;  %v5609_v58 = vmax.f32 %v5363_v46, %v5509_v53  ;;  %v7015_v53 = vld [vmem:[#allocation2 + $0x1a8] sm:$0xff] }
 0x399   : > { %v5612_v57 = vmax.f32 %v5374_v52, %v5512_v55  ;;  %v7016_v55 = vld [vmem:[#allocation2 + $0x1b0] sm:$0xff] }
 0x39a   : > { %v5610_v59 = vmax.f32 %v5366_v54, %v5510_v56  ;;  %v20057_v60 = vpop.f32.mrb[32].mxu1 }
 0x39b   : > { %v5668_v61 = vpack.c.bf16 %v5612_v57, %v5611_v49  ;;  %v5387_v62 = vadd.f32 %v24256_v45, %v20057_v60  ;;  %v5378_v0 = vpop.f32.mrb[33].mxu1  ;;  %v24333_v49 = vld [vmem:[%s26458_s5] ss:$0 sm:$0xff] }
 0x39c   : > { %v5667_v3 = vpack.c.bf16 %v5610_v59, %v5609_v58  ;;  %v5379_v4 = vadd.f32 %v24256_v45, %v5378_v0  ;;  %v20058_v5 = vpop.f32.mrb[34].mxu1 }
 0x39d   : > { %5719 = vst.msk [vmem:[#allocation2 + $0x478] sm:$0xff] %vm3175_vm1, %v5668_v61  ;;  %v5515_v6 = vmul.f32 0.1, %v5387_v62  ;;  %v5390_v11 = vadd.f32 %v24256_v45, %v20058_v5  ;;  %v5381_v7 = vpop.f32.mrb[35].mxu1 }
 0x39e   : > { %5718 = vst.msk [vmem:[#allocation2 + $0x470] sm:$0xff] %vm3175_vm1, %v5667_v3  ;;  %v5513_v8 = vmul.f32 0.1, %v5379_v4  ;;  %v5382_v9 = vadd.f32 %v24256_v45, %v5381_v7 }
 0x39f   : > { %v5516_v2 = vmul.f32 0.1, %v5390_v11  ;;  %20166 = vmatmul.mubr.msk.bf16.gmra.mrb[140].mxu1 %vm2341_vm0, %v22709_v1  ;;  %v5615_v14 = vmax.f32 %v5387_v62, %v5515_v6 }
 0x3a0   : > { %v5514_v13 = vmul.f32 0.1, %v5382_v9  ;;  %20173 = vmatprep.mubr.msk.bf16.mxu1 %vm3175_vm1, %v7012_v12  ;;  %v5613_v17 = vmax.f32 %v5379_v4, %v5513_v8 }
 0x3a1   : > { %v5616_v15 = vmax.f32 %v5390_v11, %v5516_v2  ;;  %v7018_v2 = vld [vmem:[#allocation2 + $0x1c0] sm:$0xff] }
 0x3a2   : > { %v5614_v18 = vmax.f32 %v5382_v9, %v5514_v13  ;;  %v20061_v34 = vpop.f32.mrb[36].mxu1  ;;  %v7017_v9 = vld [vmem:[#allocation2 + $0x1b8] sm:$0xff] }
 0x3a3   : > { %v5670_v20 = vpack.c.bf16 %v5616_v15, %v5615_v14  ;;  %v5403_v21 = vadd.f32 %v24256_v45, %v20061_v34  ;;  %v5394_v22 = vpop.f32.mrb[37].mxu1 }
 0x3a4   : > { %v5669_v23 = vpack.c.bf16 %v5614_v18, %v5613_v17  ;;  %v5395_v24 = vadd.f32 %v24256_v45, %v5394_v22  ;;  %v20062_v25 = vpop.f32.mrb[38].mxu1 }
 0x3a5   : > { %5721 = vst.msk [vmem:[#allocation2 + $0x488] sm:$0xff] %vm3175_vm1, %v5670_v20  ;;  %v5519_v26 = vmul.f32 0.1, %v5403_v21  ;;  %v5406_v27 = vadd.f32 %v24256_v45, %v20062_v25  ;;  %v5397_v28 = vpop.f32.mrb[39].mxu1 }
 0x3a6   : > { %5720 = vst.msk [vmem:[#allocation2 + $0x480] sm:$0xff] %vm3175_vm1, %v5669_v23  ;;  %v5517_v30 = vmul.f32 0.1, %v5395_v24  ;;  %v5398_v31 = vadd.f32 %v24256_v45, %v5397_v28 }
 0x3a7   : > { %v5520_v33 = vmul.f32 0.1, %v5406_v27  ;;  %20174 = vmatmul.mubr.msk.bf16.vlgmr.msra.gmra.mrb[144].mxu1 %vm3175_vm1, %v7013_v32  ;;  %v5619_v36 = vmax.f32 %v5403_v21, %v5519_v26  ;;  %v7020_v32 = vld [vmem:[#allocation2 + $0x1e0] sm:$0xff] }
 0x3a8   : > { %v5518_v16 = vmul.f32 0.1, %v5398_v31  ;;  %20177 = vmatprep.mubr.msk.bf16.mxu1 %vm3175_vm1, %v7014_v35  ;;  %20238 = vmatpush3.bf16.msra.mxu1 %v22714_v10  ;;  %v5617_v38 = vmax.f32 %v5395_v24, %v5517_v30  ;;  %v7019_v30 = vld [vmem:[#allocation2 + $0x1c8] sm:$0xff] }
 0x3a9   : > { %v5620_v37 = vmax.f32 %v5406_v27, %v5520_v33  ;;  %20239 = vmatprep.subr.bf16.mxu1 %v22715_v29 }
 0x3aa   : > { %v5618_v39 = vmax.f32 %v5398_v31, %v5518_v16  ;;  %v20065_v40 = vpop.f32.mrb[40].mxu1 }
 0x3ab   : > { %v5672_v63 = vpack.c.bf16 %v5620_v37, %v5619_v36  ;;  %v5419_v41 = vadd.f32 %v24256_v45, %v20065_v40  ;;  %v5410_v42 = vpop.f32.mrb[41].mxu1 }
 0x3ac   : > { %v5671_v43 = vpack.c.bf16 %v5618_v39, %v5617_v38  ;;  %v5411_v44 = vadd.f32 %v24256_v45, %v5410_v42  ;;  %v20066_v46 = vpop.f32.mrb[42].mxu1  ;;  %20240 = vmatpush3.bf16.msra.mxu1 %v22715_v29 }
 0x3ad   : > { %5723 = vst.msk [vmem:[#allocation2 + $0x498] sm:$0xff] %vm3175_vm1, %v5672_v63  ;;  %v5523_v47 = vmul.f32 0.1, %v5419_v41  ;;  %v5422_v48 = vadd.f32 %v24256_v45, %v20066_v46  ;;  %v5413_v51 = vpop.f32.mrb[43].mxu1 }
 0x3ae   : > { %5722 = vst.msk [vmem:[#allocation2 + $0x490] sm:$0xff] %vm3175_vm1, %v5671_v43  ;;  %v5521_v52 = vmul.f32 0.1, %v5411_v44  ;;  %v5414_v19 = vadd.f32 %v24256_v45, %v5413_v51  ;;  %v22713_v51 = vld [vmem:[%s26455_s2 + $0x68] sm:$0xff]  }
 0x3af   : > { %v5524_v54 = vmul.f32 0.1, %v5422_v48  ;;  %20178 = vmatmul.mubr.msk.bf16.gmra.mrb[148].mxu1 %vm3175_vm1, %v7015_v53  ;;  %v5623_v57 = vmax.f32 %v5419_v41, %v5523_v47  ;;  %v7021_v53 = vld [vmem:[#allocation2 + $0x1e8] sm:$0xff] }
 0x3b0   : > { %v5522_v56 = vmul.f32 0.1, %v5414_v19  ;;  %20181 = vmatprep.mubr.msk.bf16.mxu1 %vm3175_vm1, %v7016_v55  ;;  %v5621_v59 = vmax.f32 %v5411_v44, %v5521_v52 }
 0x3b1   : > { %v5624_v58 = vmax.f32 %v5422_v48, %v5524_v54 }
 0x3b2   : > { %v5622_v60 = vmax.f32 %v5414_v19, %v5522_v56  ;;  %v20071_v61 = vpop.f32.mrb[44].mxu1  ;;  %v7022_v56 = vld [vmem:[#allocation2 + $0x1f0] sm:$0xff] }
 0x3b3   : > { %v5674_v62 = vpack.c.bf16 %v5624_v58, %v5623_v57  ;;  %v6285_v45 = vadd.f32 %v20071_v61, %v24333_v49  ;;  %v6276_v0 = vpop.f32.mrb[45].mxu1 }
 0x3b4   : > { %v5673_v1 = vpack.c.bf16 %v5622_v60, %v5621_v59  ;;  %v6277_v3 = vadd.f32 %v24333_v49, %v6276_v0  ;;  %v20072_v4 = vpop.f32.mrb[46].mxu1 }
 0x3b5   : > { %5725 = vst.msk [vmem:[#allocation2 + $0x4a8] sm:$0xff] %vm3175_vm1, %v5674_v62  ;;  %v6677_v5 = vmul.f32 0.1, %v6285_v45  ;;  %v6288_v6 = vadd.f32 %v20072_v4, %v24333_v49  ;;  %v6279_v11 = vpop.f32.mrb[47].mxu1 }
 0x3b6   : > { %5724 = vst.msk [vmem:[#allocation2 + $0x4a0] sm:$0xff] %vm3175_vm1, %v5673_v1  ;;  %v6675_v7 = vmul.f32 0.1, %v6277_v3  ;;  %v6280_v8 = vadd.f32 %v24333_v49, %v6279_v11 }
 0x3b7   : > { %v6678_v10 = vmul.f32 0.1, %v6288_v6  ;;  %20182 = vmatmul.mubr.msk.bf16.gmra.mrb[152].mxu1 %vm3175_vm1, %v7017_v9  ;;  %v6777_v13 = vmax.f32 %v6285_v45, %v6677_v5 }
 0x3b8   : > { %v6676_v12 = vmul.f32 0.1, %v6280_v8  ;;  %20185 = vmatprep.mubr.msk.bf16.mxu1 %vm3175_vm1, %v7018_v2  ;;  %v6775_v15 = vmax.f32 %v6277_v3, %v6675_v7 }
 0x3b9   : > { %v6778_v14 = vmax.f32 %v6288_v6, %v6678_v10  ;;  %v7023_v10 = vld [vmem:[#allocation2 + $0x1f8] sm:$0xff] }
 0x3ba   : > { %v6776_v17 = vmax.f32 %v6280_v8, %v6676_v12  ;;  %v20075_v18 = vpop.f32.mrb[48].mxu1 }
 0x3bb   : > { %v6876_v34 = vpack.c.bf16 %v6778_v14, %v6777_v13  ;;  %v6301_v20 = vadd.f32 %v20075_v18, %v24333_v49  ;;  %v6292_v21 = vpop.f32.mrb[49].mxu1  ;;  %v7024_v13 = vld [vmem:[#allocation2 + $0x200] sm:$0xff] }
 0x3bc   : > { %v6875_v22 = vpack.c.bf16 %v6776_v17, %v6775_v15  ;;  %v6293_v23 = vadd.f32 %v24333_v49, %v6292_v21  ;;  %v20076_v24 = vpop.f32.mrb[50].mxu1 }
 0x3bd   : > { %6927 = vst.msk [vmem:[#allocation2 + $0x4b8] sm:$0xff] %vm3175_vm1, %v6876_v34  ;;  %v6681_v25 = vmul.f32 0.1, %v6301_v20  ;;  %v6304_v26 = vadd.f32 %v20076_v24, %v24333_v49  ;;  %v6295_v27 = vpop.f32.mrb[51].mxu1 }
 0x3be   : > { %6926 = vst.msk [vmem:[#allocation2 + $0x4b0] sm:$0xff] %vm3175_vm1, %v6875_v22  ;;  %v6679_v28 = vmul.f32 0.1, %v6293_v23  ;;  %v6296_v29 = vadd.f32 %v24333_v49, %v6295_v27 }
 0x3bf   : > { %v6682_v31 = vmul.f32 0.1, %v6304_v26  ;;  %20186 = vmatmul.mubr.msk.bf16.gmra.mrb[156].mxu1 %vm3175_vm1, %v7019_v30  ;;  %v6781_v35 = vmax.f32 %v6301_v20, %v6681_v25 }
 0x3c0   : > { %v6680_v33 = vmul.f32 0.1, %v6296_v29  ;;  %20189 = vmatprep.mubr.msk.bf16.mxu1 %vm3175_vm1, %v7020_v32  ;;  %v6779_v36 = vmax.f32 %v6293_v23, %v6679_v28 }
 0x3c1   : > { %v6782_v16 = vmax.f32 %v6304_v26, %v6682_v31 }
 0x3c2   : > { %v6780_v37 = vmax.f32 %v6296_v29, %v6680_v33  ;;  %v20079_v38 = vpop.f32.mrb[52].mxu1  ;;  %v7025_v33 = vld [vmem:[#allocation2 + $0x208] sm:$0xff] }
 0x3c3   : > { %v6878_v39 = vpack.c.bf16 %v6782_v16, %v6781_v35  ;;  %v6317_v40 = vadd.f32 %v20079_v38, %v24333_v49  ;;  %v6308_v63 = vpop.f32.mrb[53].mxu1  ;;  %v24388_v38 = vld [vmem:[%s26455_s2 + $0x70] sm:$0xff]  }
 0x3c4   : > { %v6877_v41 = vpack.c.bf16 %v6780_v37, %v6779_v36  ;;  %v6309_v42 = vadd.f32 %v24333_v49, %v6308_v63  ;;  %v20080_v43 = vpop.f32.mrb[54].mxu1  ;;  %v9340_v54 = vld [vmem:[#allocation2 + $0x4b8] sm:$0xff]  ;;  %v7026_v36 = vld [vmem:[#allocation2 + $0x210] sm:$0xff] }
 0x3c5   : > { %6929 = vst.msk [vmem:[#allocation2 + $0x4c8] sm:$0xff] %vm3175_vm1, %v6878_v39  ;;  %v6685_v44 = vmul.f32 0.1, %v6317_v40  ;;  %v6320_v46 = vadd.f32 %v20080_v43, %v24333_v49  ;;  %v6311_v47 = vpop.f32.mrb[55].mxu1  ;;  %v9339_v48 = vld [vmem:[#allocation2 + $0x4b0] sm:$0xff] }
 0x3c6   : > { %6928 = vst.msk [vmem:[#allocation2 + $0x4c0] sm:$0xff] %vm3175_vm1, %v6877_v41  ;;  %v6683_v52 = vmul.f32 0.1, %v6309_v42  ;;  %v6312_v19 = vadd.f32 %v24333_v49, %v6311_v47  ;;  %20513 = vmatprep.mubr.msk.bf16.mxu0 %vm3175_vm1, %v9339_v48 }
 0x3c7   : > { %v6686_v55 = vmul.f32 0.1, %v6320_v46  ;;  %20190 = vmatmul.mubr.msk.bf16.gmra.mrb[160].mxu1 %vm3175_vm1, %v7021_v53  ;;  %20514 = vmatmul.mubr.msk.bf16.vlgmr.msra.gmra.mrb[0].mxu0 %vm3175_vm1, %v9340_v54  ;;  %v6785_v58 = vmax.f32 %v6317_v40, %v6685_v44 }
 0x3c8   : > { %v6684_v57 = vmul.f32 0.1, %v6312_v19  ;;  %20193 = vmatprep.mubr.msk.bf16.mxu1 %vm3175_vm1, %v7022_v56  ;;  %20578 = vmatpush3.bf16.msra.mxu0 %v24220_v50  ;;  %v6783_v60 = vmax.f32 %v6309_v42, %v6683_v52 }
 0x3c9   : > { %v6786_v59 = vmax.f32 %v6320_v46, %v6686_v55  ;;  %20579 = vmatprep.subr.bf16.mxu0 %v22713_v51 }
 0x3ca   : > { %v6784_v61 = vmax.f32 %v6312_v19, %v6684_v57  ;;  %v20083_v62 = vpop.f32.mrb[56].mxu1  ;;  %v7027_v57 = vld [vmem:[#allocation2 + $0x218] sm:$0xff] }
 0x3cb   : > { %v6880_v45 = vpack.c.bf16 %v6786_v59, %v6785_v58  ;;  %v6333_v0 = vadd.f32 %v20083_v62, %v24333_v49  ;;  %v6324_v1 = vpop.f32.mrb[57].mxu1 }
 0x3cc   : > { %v6879_v3 = vpack.c.bf16 %v6784_v61, %v6783_v60  ;;  %v6325_v4 = vadd.f32 %v24333_v49, %v6324_v1  ;;  %v20084_v5 = vpop.f32.mrb[58].mxu1  ;;  %20580 = vmatpush3.bf16.msra.mxu0 %v22713_v51  ;;  %v9342_v2 = vld [vmem:[#allocation2 + $0x4c8] sm:$0xff]  ;;  %v7028_v60 = vld [vmem:[#allocation2 + $0x230] sm:$0xff] }
 0x3cd   : > { %6931 = vst.msk [vmem:[#allocation2 + $0x4d8] sm:$0xff] %vm3175_vm1, %v6880_v45  ;;  %v6689_v6 = vmul.f32 0.1, %v6333_v0  ;;  %v6336_v50 = vadd.f32 %v20084_v5, %v24333_v49  ;;  %v6327_v11 = vpop.f32.mrb[59].mxu1  ;;  %v9341_v7 = vld [vmem:[#allocation2 + $0x4c0] sm:$0xff]  ;;  %20645 = vmatprep.subr.bf16.mxu0 %v24388_v38 }
 0x3ce   : > { %6930 = vst.msk [vmem:[#allocation2 + $0x4d0] sm:$0xff] %vm3175_vm1, %v6879_v3  ;;  %v6687_v8 = vmul.f32 0.1, %v6325_v4  ;;  %v6328_v9 = vadd.f32 %v24333_v49, %v6327_v11  ;;  %20517 = vmatprep.mubr.msk.bf16.mxu0 %vm3175_vm1, %v9341_v7 }
 0x3cf   : > { %v6690_v12 = vmul.f32 0.1, %v6336_v50  ;;  %20194 = vmatmul.mubr.msk.bf16.gmra.mrb[164].mxu1 %vm3175_vm1, %v7023_v10  ;;  %20518 = vmatmul.mubr.msk.bf16.gmra.mrb[4].mxu0 %vm3175_vm1, %v9342_v2  ;;  %v6789_v15 = vmax.f32 %v6333_v0, %v6689_v6 }
 0x3d0   : > { %v6688_v14 = vmul.f32 0.1, %v6328_v9  ;;  %20197 = vmatprep.mubr.msk.bf16.mxu1 %vm3175_vm1, %v7024_v13  ;;  %v6787_v18 = vmax.f32 %v6325_v4, %v6687_v8  ;;  %v7029_v13 = vld [vmem:[#allocation2 + $0x238] sm:$0xff] }
 0x3d1   : > { %v6790_v17 = vmax.f32 %v6336_v50, %v6690_v12 }
 0x3d2   : > { %v6788_v34 = vmax.f32 %v6328_v9, %v6688_v14  ;;  %v20087_v20 = vpop.f32.mrb[60].mxu1 }
 0x3d3   : > { %v6882_v21 = vpack.c.bf16 %v6790_v17, %v6789_v15  ;;  %v6349_v22 = vadd.f32 %v20087_v20, %v24333_v49  ;;  %v6340_v23 = vpop.f32.mrb[61].mxu1  ;;  %v7030_v15 = vld [vmem:[#allocation2 + $0x240] sm:$0xff] }
 0x3d4   : > { %v6881_v24 = vpack.c.bf16 %v6788_v34, %v6787_v18  ;;  %v6341_v25 = vadd.f32 %v24333_v49, %v6340_v23  ;;  %v20088_v26 = vpop.f32.mrb[62].mxu1  ;;  %v9344_v35 = vld [vmem:[#allocation2 + $0x4d8] sm:$0xff] }
 0x3d5   : > { %6933 = vst.msk [vmem:[#allocation2 + $0x4e8] sm:$0xff] %vm3175_vm1, %v6882_v21  ;;  %v6693_v27 = vmul.f32 0.1, %v6349_v22  ;;  %v6352_v28 = vadd.f32 %v20088_v26, %v24333_v49  ;;  %v6343_v29 = vpop.f32.mrb[63].mxu1  ;;  %v9343_v30 = vld [vmem:[#allocation2 + $0x4d0] sm:$0xff] }
 0x3d6   : > { %6932 = vst.msk [vmem:[#allocation2 + $0x4e0] sm:$0xff] %vm3175_vm1, %v6881_v24  ;;  %v6691_v31 = vmul.f32 0.1, %v6341_v25  ;;  %v6344_v32 = vadd.f32 %v24333_v49, %v6343_v29  ;;  %20521 = vmatprep.mubr.msk.bf16.mxu0 %vm3175_vm1, %v9343_v30 }
 0x3d7   : > { %v6694_v16 = vmul.f32 0.1, %v6352_v28  ;;  %20198 = vmatmul.mubr.msk.bf16.gmra.mrb[168].mxu1 %vm3175_vm1, %v7025_v33  ;;  %20522 = vmatmul.mubr.msk.bf16.gmra.mrb[8].mxu0 %vm3175_vm1, %v9344_v35  ;;  %v6793_v39 = vmax.f32 %v6349_v22, %v6693_v27 }
 0x3d8   : > { %v6692_v37 = vmul.f32 0.1, %v6344_v32  ;;  %20201 = vmatprep.mubr.msk.bf16.mxu1 %vm3175_vm1, %v7026_v36  ;;  %v6791_v63 = vmax.f32 %v6341_v25, %v6691_v31 }
 0x3d9   : > { %v6794_v40 = vmax.f32 %v6352_v28, %v6694_v16  ;;  %v7031_v16 = vld [vmem:[#allocation2 + $0x248] sm:$0xff] }
 0x3da   : > { %v6792_v41 = vmax.f32 %v6344_v32, %v6692_v37  ;;  %v20091_v42 = vpop.f32.mrb[64].mxu1 }
 0x3db   : > { %v6884_v43 = vpack.c.bf16 %v6794_v40, %v6793_v39  ;;  %v6365_v44 = vadd.f32 %v20091_v42, %v24333_v49  ;;  %v6356_v46 = vpop.f32.mrb[65].mxu1  ;;  %v7032_v39 = vld [vmem:[#allocation2 + $0x250] sm:$0xff] }
 0x3dc   : > { %v6883_v47 = vpack.c.bf16 %v6792_v41, %v6791_v63  ;;  %v6357_v48 = vadd.f32 %v24333_v49, %v6356_v46  ;;  %v20092_v51 = vpop.f32.mrb[66].mxu1  ;;  %v9346_v58 = vld [vmem:[#allocation2 + $0x4e8] sm:$0xff] }
 0x3dd   : > { %6935 = vst.msk [vmem:[#allocation2 + $0x4f8] sm:$0xff] %vm3175_vm1, %v6884_v43  ;;  %v6697_v52 = vmul.f32 0.1, %v6365_v44  ;;  %v6368_v19 = vadd.f32 %v20092_v51, %v24333_v49  ;;  %v6359_v53 = vpop.f32.mrb[67].mxu1  ;;  %v9345_v54 = vld [vmem:[#allocation2 + $0x4e0] sm:$0xff] }
 0x3de   : > { %6934 = vst.msk [vmem:[#allocation2 + $0x4f0] sm:$0xff] %vm3175_vm1, %v6883_v47  ;;  %v6695_v55 = vmul.f32 0.1, %v6357_v48  ;;  %v6360_v56 = vadd.f32 %v24333_v49, %v6359_v53  ;;  %20525 = vmatprep.mubr.msk.bf16.mxu0 %vm3175_vm1, %v9345_v54 }
 0x3df   : > { %v6698_v59 = vmul.f32 0.1, %v6368_v19  ;;  %20202 = vmatmul.mubr.msk.bf16.gmra.mrb[172].mxu1 %vm3175_vm1, %v7027_v57  ;;  %20526 = vmatmul.mubr.msk.bf16.gmra.mrb[12].mxu0 %vm3175_vm1, %v9346_v58  ;;  %v6797_v62 = vmax.f32 %v6365_v44, %v6697_v52 }
 0x3e0   : > { %v6696_v61 = vmul.f32 0.1, %v6360_v56  ;;  %20205 = vmatprep.mubr.msk.bf16.mxu1 %vm3175_vm1, %v7028_v60  ;;  %v6795_v0 = vmax.f32 %v6357_v48, %v6695_v55 }
 0x3e1   : > { %v6798_v45 = vmax.f32 %v6368_v19, %v6698_v59  ;;  %v7033_v59 = vld [vmem:[#allocation2 + $0x258] sm:$0xff] }
 0x3e2   : > { %v6796_v1 = vmax.f32 %v6360_v56, %v6696_v61  ;;  %v20095_v3 = vpop.f32.mrb[68].mxu1 }
 0x3e3   : > { %v6886_v4 = vpack.c.bf16 %v6798_v45, %v6797_v62  ;;  %v6381_v5 = vadd.f32 %v20095_v3, %v24333_v49  ;;  %v6372_v6 = vpop.f32.mrb[69].mxu1  ;;  %v7034_v62 = vld [vmem:[#allocation2 + $0x260] sm:$0xff] }
 0x3e4   : > { %v6885_v50 = vpack.c.bf16 %v6796_v1, %v6795_v0  ;;  %v6373_v11 = vadd.f32 %v24333_v49, %v6372_v6  ;;  %v20096_v7 = vpop.f32.mrb[70].mxu1 }
 0x3e5   : > { %6937 = vst.msk [vmem:[#allocation2 + $0x508] sm:$0xff] %vm3175_vm1, %v6886_v4  ;;  %v6701_v8 = vmul.f32 0.1, %v6381_v5  ;;  %v6384_v9 = vadd.f32 %v20096_v7, %v24333_v49  ;;  %v6375_v10 = vpop.f32.mrb[71].mxu1 }
 0x3e6   : > { %6936 = vst.msk [vmem:[#allocation2 + $0x500] sm:$0xff] %vm3175_vm1, %v6885_v50  ;;  %v6699_v2 = vmul.f32 0.1, %v6373_v11  ;;  %v6376_v12 = vadd.f32 %v24333_v49, %v6375_v10 }
 0x3e7   : > { %v6702_v14 = vmul.f32 0.1, %v6384_v9  ;;  %20206 = vmatmul.mubr.msk.bf16.gmra.mrb[176].mxu1 %vm3175_vm1, %v7029_v13  ;;  %v6801_v18 = vmax.f32 %v6381_v5, %v6701_v8 }
 0x3e8   : > { %v6700_v17 = vmul.f32 0.1, %v6376_v12  ;;  %20209 = vmatprep.mubr.msk.bf16.mxu1 %vm3175_vm1, %v7030_v15  ;;  %v6799_v20 = vmax.f32 %v6373_v11, %v6699_v2 }
 0x3e9   : > { %v6802_v34 = vmax.f32 %v6384_v9, %v6702_v14 }
 0x3ea   : > { %v6800_v21 = vmax.f32 %v6376_v12, %v6700_v17  ;;  %v20099_v22 = vpop.f32.mrb[72].mxu1  ;;  %v7035_v17 = vld [vmem:[#allocation2 + $0x268] sm:$0xff] }
 0x3eb   : > { %v6888_v23 = vpack.c.bf16 %v6802_v34, %v6801_v18  ;;  %v6397_v24 = vadd.f32 %v20099_v22, %v24333_v49  ;;  %v6388_v25 = vpop.f32.mrb[73].mxu1 }
 0x3ec   : > { %v6887_v26 = vpack.c.bf16 %v6800_v21, %v6799_v20  ;;  %v6389_v27 = vadd.f32 %v24333_v49, %v6388_v25  ;;  %v20100_v28 = vpop.f32.mrb[74].mxu1  ;;  %v9348_v36 = vld [vmem:[#allocation2 + $0x508] sm:$0xff]  ;;  %v7036_v20 = vld [vmem:[#allocation2 + $0x280] sm:$0xff] }
 0x3ed   : > { %6939 = vst.msk [vmem:[#allocation2 + $0x518] sm:$0xff] %vm3175_vm1, %v6888_v23  ;;  %v6705_v29 = vmul.f32 0.1, %v6397_v24  ;;  %v6400_v30 = vadd.f32 %v20100_v28, %v24333_v49  ;;  %v6391_v31 = vpop.f32.mrb[75].mxu1  ;;  %v9347_v32 = vld [vmem:[#allocation2 + $0x500] sm:$0xff] }
 0x3ee   : > { %6938 = vst.msk [vmem:[#allocation2 + $0x510] sm:$0xff] %vm3175_vm1, %v6887_v26  ;;  %v6703_v33 = vmul.f32 0.1, %v6389_v27  ;;  %v6392_v35 = vadd.f32 %v24333_v49, %v6391_v31  ;;  %20529 = vmatprep.mubr.msk.bf16.mxu0 %vm3175_vm1, %v9347_v32 }
 0x3ef   : > { %v6706_v37 = vmul.f32 0.1, %v6400_v30  ;;  %20210 = vmatmul.mubr.msk.bf16.gmra.mrb[180].mxu1 %vm3175_vm1, %v7031_v16  ;;  %20530 = vmatmul.mubr.msk.bf16.gmra.mrb[16].mxu0 %vm3175_vm1, %v9348_v36  ;;  %v6805_v63 = vmax.f32 %v6397_v24, %v6705_v29 }
 0x3f0   : > { %v6704_v40 = vmul.f32 0.1, %v6392_v35  ;;  %20213 = vmatprep.mubr.msk.bf16.mxu1 %vm3175_vm1, %v7032_v39  ;;  %v6803_v42 = vmax.f32 %v6389_v27, %v6703_v33 }
 0x3f1   : > { %v6806_v41 = vmax.f32 %v6400_v30, %v6706_v37 }
 0x3f2   : > { %v6804_v43 = vmax.f32 %v6392_v35, %v6704_v40  ;;  %v20103_v44 = vpop.f32.mrb[76].mxu1  ;;  %v7037_v40 = vld [vmem:[#allocation2 + $0x288] sm:$0xff] }
 0x3f3   : > { %v6890_v46 = vpack.c.bf16 %v6806_v41, %v6805_v63  ;;  %v6413_v47 = vadd.f32 %v20103_v44, %v24333_v49  ;;  %v6404_v48 = vpop.f32.mrb[77].mxu1 }
 0x3f4   : > { %v6889_v51 = vpack.c.bf16 %v6804_v43, %v6803_v42  ;;  %v6405_v52 = vadd.f32 %v24333_v49, %v6404_v48  ;;  %v20104_v19 = vpop.f32.mrb[78].mxu1  ;;  %v9350_v60 = vld [vmem:[#allocation2 + $0x518] sm:$0xff]  ;;  %v7038_v42 = vld [vmem:[#allocation2 + $0x290] sm:$0xff] }
 0x3f5   : > { %6941 = vst.msk [vmem:[#allocation2 + $0x528] sm:$0xff] %vm3175_vm1, %v6890_v46  ;;  %v6709_v53 = vmul.f32 0.1, %v6413_v47  ;;  %v6416_v54 = vadd.f32 %v20104_v19, %v24333_v49  ;;  %v6407_v55 = vpop.f32.mrb[79].mxu1  ;;  %v9349_v56 = vld [vmem:[#allocation2 + $0x510] sm:$0xff] }
 0x3f6   : > { %6940 = vst.msk [vmem:[#allocation2 + $0x520] sm:$0xff] %vm3175_vm1, %v6889_v51  ;;  %v6707_v57 = vmul.f32 0.1, %v6405_v52  ;;  %v6408_v58 = vadd.f32 %v24333_v49, %v6407_v55  ;;  %20533 = vmatprep.mubr.msk.bf16.mxu0 %vm3175_vm1, %v9349_v56 }
 0x3f7   : > { %v6710_v61 = vmul.f32 0.1, %v6416_v54  ;;  %20214 = vmatmul.mubr.msk.bf16.gmra.mrb[184].mxu1 %vm3175_vm1, %v7033_v59  ;;  %20534 = vmatmul.mubr.msk.bf16.gmra.mrb[20].mxu0 %vm3175_vm1, %v9350_v60  ;;  %v6809_v0 = vmax.f32 %v6413_v47, %v6709_v53 }
 0x3f8   : > { %v6708_v45 = vmul.f32 0.1, %v6408_v58  ;;  %20217 = vmatprep.mubr.msk.bf16.mxu1 %vm3175_vm1, %v7034_v62  ;;  %v6807_v3 = vmax.f32 %v6405_v52, %v6707_v57  ;;  %v7039_v62 = vld [vmem:[#allocation2 + $0x298] sm:$0xff] }
 0x3f9   : > { %v6810_v1 = vmax.f32 %v6416_v54, %v6710_v61 }
 0x3fa   : > { %v6808_v4 = vmax.f32 %v6408_v58, %v6708_v45  ;;  %v20107_v5 = vpop.f32.mrb[80].mxu1 }
 0x3fb   : > { %v6892_v6 = vpack.c.bf16 %v6810_v1, %v6809_v0  ;;  %v6429_v50 = vadd.f32 %v20107_v5, %v24333_v49  ;;  %v6420_v11 = vpop.f32.mrb[81].mxu1  ;;  %v7040_v0 = vld [vmem:[#allocation2 + $0x2a0] sm:$0xff] }
 0x3fc   : > { %v6891_v7 = vpack.c.bf16 %v6808_v4, %v6807_v3  ;;  %v6421_v8 = vadd.f32 %v24333_v49, %v6420_v11  ;;  %v20108_v9 = vpop.f32.mrb[82].mxu1  ;;  %v9352_v18 = vld [vmem:[#allocation2 + $0x528] sm:$0xff] }
 0x3fd   : > { %6943 = vst.msk [vmem:[#allocation2 + $0x538] sm:$0xff] %vm3175_vm1, %v6892_v6  ;;  %v6713_v10 = vmul.f32 0.1, %v6429_v50  ;;  %v6432_v2 = vadd.f32 %v20108_v9, %v24333_v49  ;;  %v6423_v12 = vpop.f32.mrb[83].mxu1  ;;  %v9351_v13 = vld [vmem:[#allocation2 + $0x520] sm:$0xff] }
 0x3fe   : > { %6942 = vst.msk [vmem:[#allocation2 + $0x530] sm:$0xff] %vm3175_vm1, %v6891_v7  ;;  %v6711_v14 = vmul.f32 0.1, %v6421_v8  ;;  %v6424_v15 = vadd.f32 %v24333_v49, %v6423_v12  ;;  %20537 = vmatprep.mubr.msk.bf16.mxu0 %vm3175_vm1, %v9351_v13 }
 0x3ff   : > { %v6714_v34 = vmul.f32 0.1, %v6432_v2  ;;  %20218 = vmatmul.mubr.msk.bf16.gmra.mrb[188].mxu1 %vm3175_vm1, %v7035_v17  ;;  %20538 = vmatmul.mubr.msk.bf16.gmra.mrb[24].mxu0 %vm3175_vm1, %v9352_v18  ;;  %v6813_v22 = vmax.f32 %v6429_v50, %v6713_v10 }
 0x400   : > { %v6712_v21 = vmul.f32 0.1, %v6424_v15  ;;  %20221 = vmatprep.mubr.msk.bf16.mxu1 %vm3175_vm1, %v7036_v20  ;;  %v6811_v24 = vmax.f32 %v6421_v8, %v6711_v14 }
 0x401   : > { %v6814_v23 = vmax.f32 %v6432_v2, %v6714_v34  ;;  %v7041_v34 = vld [vmem:[#allocation2 + $0x2a8] sm:$0xff] }
 0x402   : > { %v6812_v25 = vmax.f32 %v6424_v15, %v6712_v21  ;;  %v20111_v26 = vpop.f32.mrb[84].mxu1 }
 0x403   : > { %v6894_v27 = vpack.c.bf16 %v6814_v23, %v6813_v22  ;;  %v6445_v28 = vadd.f32 %v20111_v26, %v24333_v49  ;;  %v6436_v29 = vpop.f32.mrb[85].mxu1  ;;  %v7042_v22 = vld [vmem:[#allocation2 + $0x2b0] sm:$0xff] }
 0x404   : > { %v6893_v30 = vpack.c.bf16 %v6812_v25, %v6811_v24  ;;  %v6437_v31 = vadd.f32 %v24333_v49, %v6436_v29  ;;  %v20112_v32 = vpop.f32.mrb[86].mxu1  ;;  %v9354_v63 = vld [vmem:[#allocation2 + $0x538] sm:$0xff] }
 0x405   : > { %6945 = vst.msk [vmem:[#allocation2 + $0x548] sm:$0xff] %vm3175_vm1, %v6894_v27  ;;  %v6717_v33 = vmul.f32 0.1, %v6445_v28  ;;  %v6448_v35 = vadd.f32 %v20112_v32, %v24333_v49  ;;  %v6439_v16 = vpop.f32.mrb[87].mxu1  ;;  %v9353_v36 = vld [vmem:[#allocation2 + $0x530] sm:$0xff] }
 0x406   : > { %6944 = vst.msk [vmem:[#allocation2 + $0x540] sm:$0xff] %vm3175_vm1, %v6893_v30  ;;  %v6715_v37 = vmul.f32 0.1, %v6437_v31  ;;  %v6440_v39 = vadd.f32 %v24333_v49, %v6439_v16  ;;  %20541 = vmatprep.mubr.msk.bf16.mxu0 %vm3175_vm1, %v9353_v36 }
 0x407   : > { %v6718_v41 = vmul.f32 0.1, %v6448_v35  ;;  %20222 = vmatmul.mubr.msk.bf16.gmra.mrb[192].mxu1 %vm3175_vm1, %v7037_v40  ;;  %20542 = vmatmul.mubr.msk.bf16.gmra.mrb[28].mxu0 %vm3175_vm1, %v9354_v63  ;;  %v6817_v44 = vmax.f32 %v6445_v28, %v6717_v33 }
 0x408   : > { %v6716_v43 = vmul.f32 0.1, %v6440_v39  ;;  %20225 = vmatprep.mubr.msk.bf16.mxu1 %vm3175_vm1, %v7038_v42  ;;  %v6815_v47 = vmax.f32 %v6437_v31, %v6715_v37 }
 0x409   : > { %v6818_v46 = vmax.f32 %v6448_v35, %v6718_v41  ;;  %v24477_v41 = vld [vmem:[#allocation2 + $0x2b8] sm:$0xff] }
 0x40a   : > { %v6816_v48 = vmax.f32 %v6440_v39, %v6716_v43  ;;  %v20115_v51 = vpop.f32.mrb[88].mxu1  ;;  %v22718_v43 = vld [vmem:[%s26455_s2 + $0x20] sm:$0xff]  }
 0x40b   : > { %v6896_v52 = vpack.c.bf16 %v6818_v46, %v6817_v44  ;;  %v6461_v19 = vadd.f32 %v20115_v51, %v24333_v49  ;;  %v6452_v53 = vpop.f32.mrb[89].mxu1  ;;  %v6976_v46 = vld [vmem:[#allocation2] sm:$0xff]  ;;  %20305 = vmatprep.subr.bf16.mxu1 %v22718_v43 }
 0x40c   : > { %v6895_v54 = vpack.c.bf16 %v6816_v48, %v6815_v47  ;;  %v6453_v55 = vadd.f32 %v24333_v49, %v6452_v53  ;;  %v20116_v56 = vpop.f32.mrb[90].mxu1 }
 0x40d   : > { %6947 = vst.msk [vmem:[#allocation2 + $0x558] sm:$0xff] %vm3175_vm1, %v6896_v52  ;;  %v6721_v57 = vmul.f32 0.1, %v6461_v19  ;;  %v6464_v58 = vadd.f32 %v20116_v56, %v24333_v49  ;;  %v6455_v59 = vpop.f32.mrb[91].mxu1 }
 0x40e   : > { %6946 = vst.msk [vmem:[#allocation2 + $0x550] sm:$0xff] %vm3175_vm1, %v6895_v54  ;;  %v6719_v60 = vmul.f32 0.1, %v6453_v55  ;;  %v6456_v61 = vadd.f32 %v24333_v49, %v6455_v59 }
 0x40f   : > { %v6722_v45 = vmul.f32 0.1, %v6464_v58  ;;  %20226 = vmatmul.mubr.msk.bf16.gmra.mrb[196].mxu1 %vm3175_vm1, %v7039_v62  ;;  %v6821_v3 = vmax.f32 %v6461_v19, %v6721_v57 }
 0x410   : > { %v6720_v1 = vmul.f32 0.1, %v6456_v61  ;;  %20229 = vmatprep.mubr.msk.bf16.mxu1 %vm3175_vm1, %v7040_v0  ;;  %v6819_v5 = vmax.f32 %v6453_v55, %v6719_v60  ;;  %v22719_v0 = vld [vmem:[%s26455_s2 + $0x28] sm:$0xff]  }
 0x411   : > { %v6822_v4 = vmax.f32 %v6464_v58, %v6722_v45 }
 0x412   : > { %v6820_v6 = vmax.f32 %v6456_v61, %v6720_v1  ;;  %v20119_v50 = vpop.f32.mrb[92].mxu1 }
 0x413   : > { %v6898_v11 = vpack.c.bf16 %v6822_v4, %v6821_v3  ;;  %v6477_v7 = vadd.f32 %v20119_v50, %v24333_v49  ;;  %v6468_v8 = vpop.f32.mrb[93].mxu1  ;;  %v6977_v4 = vld [vmem:[#allocation2 + $0x8] sm:$0xff]  ;;  %v24507_v50 = vld [vmem:[#allocation2 + $0x10] sm:$0xff] }
 0x414   : > { %v6897_v9 = vpack.c.bf16 %v6820_v6, %v6819_v5  ;;  %v6469_v10 = vadd.f32 %v24333_v49, %v6468_v8  ;;  %v20120_v2 = vpop.f32.mrb[94].mxu1  ;;  %v9356_v20 = vld [vmem:[#allocation2 + $0x558] sm:$0xff] }
 0x415   : > { %6949 = vst.msk [vmem:[#allocation2 + $0x568] sm:$0xff] %vm3175_vm1, %v6898_v11  ;;  %v6725_v12 = vmul.f32 0.1, %v6477_v7  ;;  %v6480_v13 = vadd.f32 %v20120_v2, %v24333_v49  ;;  %v6471_v14 = vpop.f32.mrb[95].mxu1  ;;  %v9355_v15 = vld [vmem:[#allocation2 + $0x550] sm:$0xff] }
 0x416   : > { %6948 = vst.msk [vmem:[#allocation2 + $0x560] sm:$0xff] %vm3175_vm1, %v6897_v9  ;;  %v6723_v17 = vmul.f32 0.1, %v6469_v10  ;;  %v6472_v18 = vadd.f32 %v24333_v49, %v6471_v14  ;;  %20545 = vmatprep.mubr.msk.bf16.mxu0 %vm3175_vm1, %v9355_v15 }
 0x417   : > { %v6726_v21 = vmul.f32 0.1, %v6480_v13  ;;  %20230 = vmatmul.mubr.msk.bf16.gmra.mrb[200].mxu1 %vm3175_vm1, %v7041_v34  ;;  %20546 = vmatmul.mubr.msk.bf16.gmra.mrb[32].mxu0 %vm3175_vm1, %v9356_v20  ;;  %v6825_v24 = vmax.f32 %v6477_v7, %v6725_v12 }
 0x418   : > { %v6724_v23 = vmul.f32 0.1, %v6472_v18  ;;  %20233 = vmatprep.mubr.msk.bf16.mxu1 %vm3175_vm1, %v7042_v22  ;;  %v6823_v26 = vmax.f32 %v6469_v10, %v6723_v17 }
 0x419   : > { %v6826_v25 = vmax.f32 %v6480_v13, %v6726_v21 }
 0x41a   : > { %v6824_v27 = vmax.f32 %v6472_v18, %v6724_v23  ;;  %v20123_v28 = vpop.f32.mrb[96].mxu1  ;;  %v24520_v23 = vld [vmem:[%s26455_s2 + $0x30] sm:$0xff]  }
 0x41b   : > { %v6900_v29 = vpack.c.bf16 %v6826_v25, %v6825_v24  ;;  %v6493_v30 = vadd.f32 %v20123_v28, %v24333_v49  ;;  %v6484_v31 = vpop.f32.mrb[97].mxu1 }
 0x41c   : > { %v6899_v32 = vpack.c.bf16 %v6824_v27, %v6823_v26  ;;  %v6485_v33 = vadd.f32 %v24333_v49, %v6484_v31  ;;  %v20124_v35 = vpop.f32.mrb[98].mxu1  ;;  %v24479_v42 = vld [vmem:[#allocation2 + $0x568] sm:$0xff]  ;;  %v24527_v26 = vld [vmem:[#allocation2 + $0x18] sm:$0xff] }
 0x41d   : > { %6951 = vst.msk [vmem:[#allocation2 + $0x578] sm:$0xff] %vm3175_vm1, %v6900_v29  ;;  %v6729_v16 = vmul.f32 0.1, %v6493_v30  ;;  %v6496_v36 = vadd.f32 %v20124_v35, %v24333_v49  ;;  %v6487_v37 = vpop.f32.mrb[99].mxu1  ;;  %v24471_v39 = vld [vmem:[#allocation2 + $0x560] sm:$0xff] }
 0x41e   : > { %6950 = vst.msk [vmem:[#allocation2 + $0x570] sm:$0xff] %vm3175_vm1, %v6899_v32  ;;  %v6727_v40 = vmul.f32 0.1, %v6485_v33  ;;  %v6488_v63 = vadd.f32 %v24333_v49, %v6487_v37  ;;  %20549 = vmatprep.mubr.msk.bf16.mxu0 %vm3175_vm1, %v24471_v39  ;;  %v24535_v29 = vld [vmem:[#allocation2 + $0x20] sm:$0xff] }
 0x41f   : > { %v6730_v44 = vmul.f32 0.1, %v6496_v36  ;;  %20234 = vmatmul.mubr.msk.bf16.gmra.mrb[204].mxu1 %vm3175_vm1, %v24477_v41  ;;  %20550 = vmatmul.mubr.msk.bf16.gmra.mrb[36].mxu0 %vm3175_vm1, %v24479_v42  ;;  %v6829_v48 = vmax.f32 %v6493_v30, %v6729_v16 }
 0x420   : > { %v6728_v47 = vmul.f32 0.1, %v6488_v63  ;;  %20241 = vmatprep.mubr.msk.bf16.mxu1 %vm3175_vm1, %v6976_v46  ;;  %v6827_v52 = vmax.f32 %v6485_v33, %v6727_v40 }
 0x421   : > { %v6830_v51 = vmax.f32 %v6496_v36, %v6730_v44 }
 0x422   : > { %v6828_v19 = vmax.f32 %v6488_v63, %v6728_v47  ;;  %v20127_v53 = vpop.f32.mrb[100].mxu1 }
 0x423   : > { %v6902_v54 = vpack.c.bf16 %v6830_v51, %v6829_v48  ;;  %v6509_v55 = vadd.f32 %v20127_v53, %v24333_v49  ;;  %v6500_v56 = vpop.f32.mrb[101].mxu1 }
 0x424   : > { %v6901_v57 = vpack.c.bf16 %v6828_v19, %v6827_v52  ;;  %v6501_v58 = vadd.f32 %v24333_v49, %v6500_v56  ;;  %v20128_v59 = vpop.f32.mrb[102].mxu1  ;;  %v24502_v5 = vld [vmem:[#allocation2 + $0x578] sm:$0xff]  ;;  %v24545_v19 = vld [vmem:[#allocation2 + $0x28] sm:$0xff] }
 0x425   : > { %6953 = vst.msk [vmem:[#allocation2 + $0x588] sm:$0xff] %vm3175_vm1, %v6902_v54  ;;  %v6733_v60 = vmul.f32 0.1, %v6509_v55  ;;  %v6512_v61 = vadd.f32 %v20128_v59, %v24333_v49  ;;  %v6503_v62 = vpop.f32.mrb[103].mxu1  ;;  %v24493_v45 = vld [vmem:[#allocation2 + $0x570] sm:$0xff] }
 0x426   : > { %6952 = vst.msk [vmem:[#allocation2 + $0x580] sm:$0xff] %vm3175_vm1, %v6901_v57  ;;  %v6731_v1 = vmul.f32 0.1, %v6501_v58  ;;  %v6504_v3 = vadd.f32 %v24333_v49, %v6503_v62  ;;  %20553 = vmatprep.mubr.msk.bf16.mxu0 %vm3175_vm1, %v24493_v45  ;;  %v24549_v54 = vld [vmem:[#allocation2 + $0x30] sm:$0xff] }
 0x427   : > { %v6734_v6 = vmul.f32 0.1, %v6512_v61  ;;  %20242 = vmatmul.mubr.msk.bf16.vlgmr.msra.gmra.mrb[144].mxu1 %vm3175_vm1, %v6977_v4  ;;  %20554 = vmatmul.mubr.msk.bf16.gmra.mrb[40].mxu0 %vm3175_vm1, %v24502_v5  ;;  %v6833_v7 = vmax.f32 %v6509_v55, %v6733_v60 }
 0x428   : > { %v6732_v11 = vmul.f32 0.1, %v6504_v3  ;;  %20245 = vmatprep.mubr.msk.bf16.mxu1 %vm3175_vm1, %v24507_v50  ;;  %20306 = vmatpush3.bf16.msra.mxu1 %v22718_v43  ;;  %v6831_v9 = vmax.f32 %v6501_v58, %v6731_v1 }
 0x429   : > { %v6834_v8 = vmax.f32 %v6512_v61, %v6734_v6  ;;  %20307 = vmatprep.subr.bf16.mxu1 %v22719_v0 }
 0x42a   : > { %v6832_v10 = vmax.f32 %v6504_v3, %v6732_v11  ;;  %v20131_v2 = vpop.f32.mrb[104].mxu1 }
 0x42b   : > { %v6904_v12 = vpack.c.bf16 %v6834_v8, %v6833_v7  ;;  %v6525_v13 = vadd.f32 %v20131_v2, %v24333_v49  ;;  %v6516_v14 = vpop.f32.mrb[105].mxu1  ;;  %v24560_v2 = vld [vmem:[#allocation2 + $0x38] sm:$0xff] }
 0x42c   : > { %v6903_v15 = vpack.c.bf16 %v6832_v10, %v6831_v9  ;;  %v6517_v17 = vadd.f32 %v24333_v49, %v6516_v14  ;;  %v20132_v18 = vpop.f32.mrb[106].mxu1  ;;  %20308 = vmatpush3.bf16.msra.mxu1 %v22719_v0  ;;  %v24529_v27 = vld [vmem:[#allocation2 + $0x588] sm:$0xff]  ;;  %v24565_v14 = vld [vmem:[#allocation2 + $0x50] sm:$0xff] }
 0x42d   : > { %6955 = vst.msk [vmem:[#allocation2 + $0x598] sm:$0xff] %vm3175_vm1, %v6904_v12  ;;  %v6737_v34 = vmul.f32 0.1, %v6525_v13  ;;  %v6528_v20 = vadd.f32 %v20132_v18, %v24333_v49  ;;  %v6519_v21 = vpop.f32.mrb[107].mxu1  ;;  %v24515_v22 = vld [vmem:[#allocation2 + $0x580] sm:$0xff]  ;;  %21449 = vmatprep.subr.bf16.mxu1 %v24520_v23 }
 0x42e   : > { %6954 = vst.msk [vmem:[#allocation2 + $0x590] sm:$0xff] %vm3175_vm1, %v6903_v15  ;;  %v6735_v24 = vmul.f32 0.1, %v6517_v17  ;;  %v6520_v25 = vadd.f32 %v24333_v49, %v6519_v21  ;;  %20557 = vmatprep.mubr.msk.bf16.mxu0 %vm3175_vm1, %v24515_v22 }
 0x42f   : > { %v6738_v28 = vmul.f32 0.1, %v6528_v20  ;;  %20246 = vmatmul.mubr.msk.bf16.gmra.mrb[148].mxu1 %vm3175_vm1, %v24527_v26  ;;  %20558 = vmatmul.mubr.msk.bf16.gmra.mrb[44].mxu0 %vm3175_vm1, %v24529_v27  ;;  %v6837_v31 = vmax.f32 %v6525_v13, %v6737_v34 }
 0x430   : > { %v6736_v30 = vmul.f32 0.1, %v6520_v25  ;;  %20249 = vmatprep.mubr.msk.bf16.mxu1 %vm3175_vm1, %v24535_v29  ;;  %v6835_v33 = vmax.f32 %v6517_v17, %v6735_v24 }
 0x431   : > { %v6838_v32 = vmax.f32 %v6528_v20, %v6738_v28 }
 0x432   : > { %v6836_v35 = vmax.f32 %v6520_v25, %v6736_v30  ;;  %v20135_v16 = vpop.f32.mrb[108].mxu1 }
 0x433   : > { %v6906_v36 = vpack.c.bf16 %v6838_v32, %v6837_v31  ;;  %v6541_v37 = vadd.f32 %v20135_v16, %v24333_v49  ;;  %v6532_v40 = vpop.f32.mrb[109].mxu1 }
 0x434   : > { %v6905_v63 = vpack.c.bf16 %v6836_v35, %v6835_v33  ;;  %v6533_v43 = vadd.f32 %v24333_v49, %v6532_v40  ;;  %v20136_v44 = vpop.f32.mrb[110].mxu1  ;;  %v24579_v40 = vld [vmem:[%s26458_s5] ss:$0 sm:$0xff] }
 0x435   : > { %6957 = vst.msk [vmem:[#allocation2 + $0x5a8] sm:$0xff] %vm3175_vm1, %v6906_v36  ;;  %v6741_v46 = vmul.f32 0.1, %v6541_v37  ;;  %v6544_v47 = vadd.f32 %v20136_v44, %v24333_v49  ;;  %v6535_v48 = vpop.f32.mrb[111].mxu1 }
 0x436   : > { %6956 = vst.msk [vmem:[#allocation2 + $0x5a0] sm:$0xff] %vm3175_vm1, %v6905_v63  ;;  %v6739_v51 = vmul.f32 0.1, %v6533_v43  ;;  %v6536_v52 = vadd.f32 %v24333_v49, %v6535_v48 }
 0x437   : > { %v6742_v53 = vmul.f32 0.1, %v6544_v47  ;;  %20250 = vmatmul.mubr.msk.bf16.gmra.mrb[152].mxu1 %vm3175_vm1, %v24545_v19  ;;  %v6841_v56 = vmax.f32 %v6541_v37, %v6741_v46  ;;  %v24592_v46 = vld [vmem:[#allocation2 + $0x60] sm:$0xff] }
 0x438   : > { %v6740_v55 = vmul.f32 0.1, %v6536_v52  ;;  %20253 = vmatprep.mubr.msk.bf16.mxu1 %vm3175_vm1, %v24549_v54  ;;  %v6839_v58 = vmax.f32 %v6533_v43, %v6739_v51  ;;  %v24584_v43 = vld [vmem:[#allocation2 + $0x58] sm:$0xff] }
 0x439   : > { %v6842_v57 = vmax.f32 %v6544_v47, %v6742_v53 }
 0x43a   : > { %v6840_v59 = vmax.f32 %v6536_v52, %v6740_v55  ;;  %v20139_v60 = vpop.f32.mrb[112].mxu1 }
 0x43b   : > { %v6908_v61 = vpack.c.bf16 %v6842_v57, %v6841_v56  ;;  %v6557_v62 = vadd.f32 %v20139_v60, %v24333_v49  ;;  %v6548_v0 = vpop.f32.mrb[113].mxu1  ;;  %v24610_v60 = vld [vmem:[#allocation2 + $0x70] sm:$0xff] }
 0x43c   : > { %v6907_v1 = vpack.c.bf16 %v6840_v59, %v6839_v58  ;;  %v6549_v3 = vadd.f32 %v24333_v49, %v6548_v0  ;;  %v20140_v4 = vpop.f32.mrb[114].mxu1  ;;  %v9364_v12 = vld [vmem:[#allocation2 + $0x5a8] sm:$0xff] }
 0x43d   : > { %6959 = vst.msk [vmem:[#allocation2 + $0x5b8] sm:$0xff] %vm3175_vm1, %v6908_v61  ;;  %v6745_v6 = vmul.f32 0.1, %v6557_v62  ;;  %v6560_v11 = vadd.f32 %v20140_v4, %v24333_v49  ;;  %v6551_v7 = vpop.f32.mrb[115].mxu1  ;;  %v9363_v8 = vld [vmem:[#allocation2 + $0x5a0] sm:$0xff]  ;;  %v24602_v58 = vld [vmem:[#allocation2 + $0x68] sm:$0xff] }
 0x43e   : > { %6958 = vst.msk [vmem:[#allocation2 + $0x5b0] sm:$0xff] %vm3175_vm1, %v6907_v1  ;;  %v6743_v9 = vmul.f32 0.1, %v6549_v3  ;;  %v6552_v10 = vadd.f32 %v24333_v49, %v6551_v7  ;;  %20561 = vmatprep.mubr.msk.bf16.mxu0 %vm3175_vm1, %v9363_v8  ;;  %v24626_v1 = vld [vmem:[#allocation2 + $0x80] sm:$0xff]  ;;  %v22717_v4 = vld [vmem:[%s26455_s2 + $0x78] sm:$0xff]  }
 0x43f   : > { %v6746_v13 = vmul.f32 0.1, %v6560_v11  ;;  %20254 = vmatmul.mubr.msk.bf16.gmra.mrb[156].mxu1 %vm3175_vm1, %v24560_v2  ;;  %20562 = vmatmul.mubr.msk.bf16.gmra.mrb[48].mxu0 %vm3175_vm1, %v9364_v12  ;;  %v6845_v17 = vmax.f32 %v6557_v62, %v6745_v6  ;;  %v24618_v62 = vld [vmem:[#allocation2 + $0x78] sm:$0xff]  ;;  %v24634_v6 = vld [vmem:[#allocation2 + $0x88] sm:$0xff]  ;;  %v24639_v7 = vld [vmem:[#allocation2 + $0xa0] sm:$0xff] }
 0x440   : > { %v6744_v15 = vmul.f32 0.1, %v6552_v10  ;;  %20257 = vmatprep.mubr.msk.bf16.mxu1 %vm3175_vm1, %v24565_v14  ;;  %v6843_v34 = vmax.f32 %v6549_v3, %v6743_v9  ;;  %v9838_v3 = vld [vmem:[#allocation2 + $0x330] sm:$0xff]  ;;  %v9840_v8 = vld [vmem:[#allocation2 + $0x340] sm:$0xff]  ;;  %v9841_v12 = vld [vmem:[#allocation2 + $0x348] sm:$0xff] }
 0x441   : > { %v6846_v18 = vmax.f32 %v6560_v11, %v6746_v13  ;;  %v9839_v11 = vld [vmem:[#allocation2 + $0x338] sm:$0xff]  ;;  %v24648_v9 = vld [vmem:[%s26455_s2 + $0x80] sm:$0xff]   ;;  %v9842_v13 = vld [vmem:[#allocation2 + $0x350] sm:$0xff] }
 0x442   : > { %v6844_v20 = vmax.f32 %v6552_v10, %v6744_v15  ;;  %v20143_v21 = vpop.f32.mrb[116].mxu1  ;;  %v24651_v10 = vld [vmem:[#allocation2 + $0xa8] sm:$0xff]  ;;  %v24661_v15 = vld [vmem:[#allocation2 + $0xb8] sm:$0xff] }
 0x443   : > { %v6910_v24 = vpack.c.bf16 %v6846_v18, %v6845_v17  ;;  %v6573_v25 = vadd.f32 %v20143_v21, %v24333_v49  ;;  %v6564_v28 = vpop.f32.mrb[117].mxu1  ;;  %v9843_v17 = vld [vmem:[#allocation2 + $0x358] sm:$0xff]  ;;  %v24666_v18 = vld [vmem:[#allocation2 + $0xc0] sm:$0xff]  ;;  %v9845_v21 = vld [vmem:[#allocation2 + $0x368] sm:$0xff] }
 0x444   : > { %v6909_v30 = vpack.c.bf16 %v6844_v20, %v6843_v34  ;;  %v6565_v31 = vadd.f32 %v24333_v49, %v6564_v28  ;;  %v20144_v32 = vpop.f32.mrb[118].mxu1  ;;  %v24586_v44 = vld [vmem:[#allocation2 + $0x5b8] sm:$0xff]  ;;  %v9844_v34 = vld [vmem:[#allocation2 + $0x360] sm:$0xff]  ;;  %v24671_v20 = vld [vmem:[#allocation2 + $0xc8] sm:$0xff] }
 0x445   : > { %6961 = vst.msk [vmem:[#allocation2 + $0x5c8] sm:$0xff] %vm3175_vm1, %v6910_v24  ;;  %v6749_v33 = vmul.f32 0.1, %v6573_v25  ;;  %v6576_v35 = vadd.f32 %v20144_v32, %v24333_v49  ;;  %v6567_v16 = vpop.f32.mrb[119].mxu1  ;;  %v24573_v36 = vld [vmem:[#allocation2 + $0x5b0] sm:$0xff]  ;;  %v24681_v28 = vld [vmem:[#allocation2 + $0xd8] sm:$0xff] }
 0x446   : > { %6960 = vst.msk [vmem:[#allocation2 + $0x5c0] sm:$0xff] %vm3175_vm1, %v6909_v30  ;;  %v6747_v37 = vmul.f32 0.1, %v6565_v31  ;;  %v6568_v63 = vadd.f32 %v24579_v40, %v6567_v16  ;;  %20565 = vmatprep.mubr.msk.bf16.mxu0 %vm3175_vm1, %v24573_v36  ;;  %v24676_v24 = vld [vmem:[#allocation2 + $0xd0] sm:$0xff]  ;;  %v9847_v30 = vld [vmem:[#allocation2 + $0x388] sm:$0xff]  ;;  %v24696_v16 = vld [vmem:[#allocation2 + $0x100] sm:$0xff] }
 0x447   : > { %v6750_v49 = vmul.f32 0.1, %v6576_v35  ;;  %20258 = vmatmul.mubr.msk.bf16.gmra.mrb[160].mxu1 %vm3175_vm1, %v24584_v43  ;;  %20566 = vmatmul.mubr.msk.bf16.gmra.mrb[52].mxu0 %vm3175_vm1, %v24586_v44  ;;  %v6849_v48 = vmax.f32 %v6573_v25, %v6749_v33  ;;  %v9846_v25 = vld [vmem:[#allocation2 + $0x380] sm:$0xff]  ;;  %v9848_v32 = vld [vmem:[#allocation2 + $0x390] sm:$0xff]  ;;  %v24691_v33 = vld [vmem:[#allocation2 + $0xf8] sm:$0xff] }
 0x448   : > { %v6748_v47 = vmul.f32 0.1, %v6568_v63  ;;  %20261 = vmatprep.mubr.msk.bf16.mxu1 %vm3175_vm1, %v24592_v46  ;;  %v6847_v52 = vmax.f32 %v6565_v31, %v6747_v37  ;;  %v24686_v31 = vld [vmem:[#allocation2 + $0xf0] sm:$0xff]  ;;  %v9850_v37 = vld [vmem:[#allocation2 + $0x3a0] sm:$0xff] }
 0x449   : > { %v6850_v51 = vmax.f32 %v6576_v35, %v6750_v49  ;;  %v9849_v35 = vld [vmem:[#allocation2 + $0x398] sm:$0xff]  ;;  %v9851_v49 = vld [vmem:[#allocation2 + $0x3a8] sm:$0xff] }
 0x44a   : > { %v6848_v53 = vmax.f32 %v6568_v63, %v6748_v47  ;;  %v24701_v63 = vld [vmem:[#allocation2 + $0x108] sm:$0xff]  ;;  %v24706_v47 = vld [vmem:[#allocation2 + $0x110] sm:$0xff] }
 0x44b   : > { %v6912_v55 = vpack.c.bf16 %v6850_v51, %v6849_v48  ;;  %v9852_v48 = vld [vmem:[#allocation2 + $0x3b0] sm:$0xff]  ;;  %v24711_v51 = vld [vmem:[#allocation2 + $0x118] sm:$0xff] }
 0x44c   : > { %v6911_v56 = vpack.c.bf16 %v6848_v53, %v6847_v52  ;;  %v24604_v59 = vld [vmem:[#allocation2 + $0x5c8] sm:$0xff]  ;;  %v9853_v52 = vld [vmem:[#allocation2 + $0x3b8] sm:$0xff]  ;;  %v24716_v53 = vld [vmem:[#allocation2 + $0x120] sm:$0xff] }
 0x44d   : > { %6963 = vst.msk [vmem:[#allocation2 + $0x5d8] sm:$0xff] %vm3175_vm1, %v6912_v55  ;;  %v24597_v57 = vld [vmem:[#allocation2 + $0x5c0] sm:$0xff]  ;;  %v9854_v55 = vld [vmem:[#allocation2 + $0x3d0] sm:$0xff] }
 0x44e   : > { %6962 = vst.msk [vmem:[#allocation2 + $0x5d0] sm:$0xff] %vm3175_vm1, %v6911_v56  ;;  %20569 = vmatprep.mubr.msk.bf16.mxu0 %vm3175_vm1, %v24597_v57  ;;  %v24721_v56 = vld [vmem:[#allocation2 + $0x128] sm:$0xff] }
 0x44f   : > { %20262 = vmatmul.mubr.msk.bf16.gmra.mrb[164].mxu1 %vm3175_vm1, %v24602_v58  ;;  %20570 = vmatmul.mubr.msk.bf16.gmra.mrb[56].mxu0 %vm3175_vm1, %v24604_v59 }
 0x450   : > { %20265 = vmatprep.mubr.msk.bf16.mxu1 %vm3175_vm1, %v24610_v60 }
 0x454   : > { %v24620_v0 = vld [vmem:[#allocation2 + $0x5d8] sm:$0xff] }
 0x455   : > { %v24614_v61 = vld [vmem:[#allocation2 + $0x5d0] sm:$0xff] }
 0x456   : > { %20573 = vmatprep.mubr.msk.bf16.mxu0 %vm3175_vm1, %v24614_v61 }
 0x457   : > { %20266 = vmatmul.mubr.msk.bf16.gmra.mrb[168].mxu1 %vm3175_vm1, %v24618_v62  ;;  %20574 = vmatmul.mubr.msk.bf16.gmra.mrb[60].mxu0 %vm3175_vm1, %v24620_v0 }
 0x458   : > { %20269 = vmatprep.mubr.msk.bf16.mxu1 %vm3175_vm1, %v24626_v1  ;;  %20581 = vmatprep.mubr.msk.bf16.mxu0 %vm3175_vm1, %v9838_v3  ;;  %v9855_v3 = vld [vmem:[#allocation2 + $0x3d8] sm:$0xff] }
 0x45f   : > { %20270 = vmatmul.mubr.msk.bf16.gmra.mrb[172].mxu1 %vm3175_vm1, %v24634_v6  ;;  %20582 = vmatmul.mubr.msk.bf16.vlgmr.msra.gmra.mrb[0].mxu0 %vm3175_vm1, %v9839_v11  ;;  %v9857_v11 = vld [vmem:[#allocation2 + $0x3e8] sm:$0xff] }
 0x460   : > { %20646 = vmatpush3.bf16.msra.mxu0 %v24388_v38  ;;  %20273 = vmatprep.mubr.msk.bf16.mxu1 %vm3175_vm1, %v24639_v7  ;;  %v24656_v38 = vld [vmem:[#allocation2 + $0xb0] sm:$0xff] }
 0x461   : > { %20585 = vmatprep.mubr.msk.bf16.mxu0 %vm3175_vm1, %v9840_v8  ;;  %20647 = vmatprep.subr.bf16.mxu0 %v22717_v4  ;;  %v9858_v8 = vld [vmem:[#allocation2 + $0x3f0] sm:$0xff] }
 0x464   : > { %20648 = vmatpush3.bf16.msra.mxu0 %v22717_v4  ;;  %v9856_v4 = vld [vmem:[#allocation2 + $0x3e0] sm:$0xff] }
 0x465   : > { %20713 = vmatprep.subr.bf16.mxu0 %v24648_v9 }
 0x467   : > { %20274 = vmatmul.mubr.msk.bf16.gmra.mrb[176].mxu1 %vm3175_vm1, %v24651_v10  ;;  %20586 = vmatmul.mubr.msk.bf16.gmra.mrb[4].mxu0 %vm3175_vm1, %v9841_v12  ;;  %v9859_v12 = vld [vmem:[#allocation2 + $0x3f8] sm:$0xff] }
 0x468   : > { %20277 = vmatprep.mubr.msk.bf16.mxu1 %vm3175_vm1, %v24656_v38  ;;  %20589 = vmatprep.mubr.msk.bf16.mxu0 %vm3175_vm1, %v9842_v13  ;;  %v9862_v13 = vld [vmem:[#allocation2 + $0x420] sm:$0xff] }
 0x46f   : > { %20278 = vmatmul.mubr.msk.bf16.gmra.mrb[180].mxu1 %vm3175_vm1, %v24661_v15  ;;  %20590 = vmatmul.mubr.msk.bf16.gmra.mrb[8].mxu0 %vm3175_vm1, %v9843_v17 }
 0x470   : > { %20281 = vmatprep.mubr.msk.bf16.mxu1 %vm3175_vm1, %v24666_v18  ;;  %20593 = vmatprep.mubr.msk.bf16.mxu0 %vm3175_vm1, %v9844_v34 }
 0x477   : > { %20282 = vmatmul.mubr.msk.bf16.gmra.mrb[184].mxu1 %vm3175_vm1, %v24671_v20  ;;  %20594 = vmatmul.mubr.msk.bf16.gmra.mrb[12].mxu0 %vm3175_vm1, %v9845_v21 }
 0x478   : > { %20285 = vmatprep.mubr.msk.bf16.mxu1 %vm3175_vm1, %v24676_v24  ;;  %20597 = vmatprep.mubr.msk.bf16.mxu0 %vm3175_vm1, %v9846_v25 }
 0x47f   : > { %20286 = vmatmul.mubr.msk.bf16.gmra.mrb[188].mxu1 %vm3175_vm1, %v24681_v28  ;;  %20598 = vmatmul.mubr.msk.bf16.gmra.mrb[16].mxu0 %vm3175_vm1, %v9847_v30 }
 0x480   : > { %20289 = vmatprep.mubr.msk.bf16.mxu1 %vm3175_vm1, %v24686_v31  ;;  %20601 = vmatprep.mubr.msk.bf16.mxu0 %vm3175_vm1, %v9848_v32 }
 0x487   : > { %20290 = vmatmul.mubr.msk.bf16.gmra.mrb[192].mxu1 %vm3175_vm1, %v24691_v33  ;;  %20602 = vmatmul.mubr.msk.bf16.gmra.mrb[20].mxu0 %vm3175_vm1, %v9849_v35  ;;  %v7851_v35 = vld [vmem:[#allocation2 + $0x48] sm:$0xff] }
 0x488   : > { %20293 = vmatprep.mubr.msk.bf16.mxu1 %vm3175_vm1, %v24696_v16  ;;  %20605 = vmatprep.mubr.msk.bf16.mxu0 %vm3175_vm1, %v9850_v37  ;;  %v9863_v37 = vld [vmem:[#allocation2 + $0x428] sm:$0xff] }
 0x48f   : > { %20294 = vmatmul.mubr.msk.bf16.gmra.mrb[196].mxu1 %vm3175_vm1, %v24701_v63  ;;  %20606 = vmatmul.mubr.msk.bf16.gmra.mrb[24].mxu0 %vm3175_vm1, %v9851_v49 }
 0x490   : > { %20297 = vmatprep.mubr.msk.bf16.mxu1 %vm3175_vm1, %v24706_v47  ;;  %20609 = vmatprep.mubr.msk.bf16.mxu0 %vm3175_vm1, %v9852_v48  ;;  %v9864_v48 = vld [vmem:[#allocation2 + $0x430] sm:$0xff] }
 0x497   : > { %20298 = vmatmul.mubr.msk.bf16.gmra.mrb[200].mxu1 %vm3175_vm1, %v24711_v51  ;;  %20610 = vmatmul.mubr.msk.bf16.gmra.mrb[28].mxu0 %vm3175_vm1, %v9853_v52 }
 0x498   : > { %20301 = vmatprep.mubr.msk.bf16.mxu1 %vm3175_vm1, %v24716_v53  ;;  %20613 = vmatprep.mubr.msk.bf16.mxu0 %vm3175_vm1, %v9854_v55 }
 0x49f   : > { %20302 = vmatmul.mubr.msk.bf16.gmra.mrb[204].mxu1 %vm3175_vm1, %v24721_v56  ;;  %20614 = vmatmul.mubr.msk.bf16.gmra.mrb[32].mxu0 %vm3175_vm1, %v9855_v3 }
 0x4a0   : > { %20309 = vmatprep.mubr.msk.bf16.mxu1 %vm3175_vm1, %v24507_v50  ;;  %20617 = vmatprep.mubr.msk.bf16.mxu0 %vm3175_vm1, %v9856_v4  ;;  %v22805_v50 = vld [vmem:[%s26455_s2 + $0x38] sm:$0xff]  }
 0x4a7   : > { %20310 = vmatmul.mubr.msk.bf16.vlgmr.msra.gmra.mrb[144].mxu1 %vm3175_vm1, %v24527_v26  ;;  %20618 = vmatmul.mubr.msk.bf16.gmra.mrb[36].mxu0 %vm3175_vm1, %v9857_v11  ;;  %v9860_v26 = vld [vmem:[#allocation2 + $0x400] sm:$0xff] }
 0x4a8   : > { %20313 = vmatprep.mubr.msk.bf16.mxu1 %vm3175_vm1, %v24535_v29  ;;  %20621 = vmatprep.mubr.msk.bf16.mxu0 %vm3175_vm1, %v9858_v8  ;;  %v9861_v29 = vld [vmem:[#allocation2 + $0x408] sm:$0xff] }
 0x4a9   : > { %21451 = vmatpush3.bf16.msra.mxu1 %v24520_v23  ;;  %v7850_v23 = vld [vmem:[#allocation2 + $0x40] sm:$0xff] }
 0x4aa   : > { %21450 = vmatprep.subr.bf16.mxu1 %v22805_v50 }
 0x4ad   : > { %21452 = vmatpush3.bf16.msra.mxu1 %v22805_v50 }
 0x4af   : > { %20314 = vmatmul.mubr.msk.bf16.gmra.mrb[148].mxu1 %vm3175_vm1, %v24545_v19  ;;  %20622 = vmatmul.mubr.msk.bf16.gmra.mrb[40].mxu0 %vm3175_vm1, %v9859_v12  ;;  %v20147_v19 = vpop.f32.mrb[120].mxu1  ;;  %v9865_v12 = vld [vmem:[#allocation2 + $0x438] sm:$0xff] }
 0x4b0   : > { %20317 = vmatprep.mubr.msk.bf16.mxu1 %vm3175_vm1, %v24549_v54  ;;  %20625 = vmatprep.mubr.msk.bf16.mxu0 %vm3175_vm1, %v9860_v26  ;;  %v6589_v17 = vadd.f32 %v24579_v40, %v20147_v19  ;;  %v6580_v34 = vpop.f32.mrb[121].mxu1  ;;  %v9869_v19 = vld [vmem:[#allocation2 + $0x458] sm:$0xff] }
 0x4b1   : > { %v6581_v54 = vadd.f32 %v24579_v40, %v6580_v34  ;;  %v20148_v21 = vpop.f32.mrb[122].mxu1  ;;  %v10337_v34 = vld [vmem:[#allocation2 + $0x4c0] sm:$0xff] }
 0x4b2   : > { %v6753_v25 = vmul.f32 0.1, %v6589_v17  ;;  %v6592_v30 = vadd.f32 %v24579_v40, %v20148_v21  ;;  %v6583_v55 = vpop.f32.mrb[123].mxu1  ;;  %v24784_v21 = vld [vmem:[#allocation2 + $0x98] sm:$0xff] }
 0x4b3   : > { %v6751_v49 = vmul.f32 0.1, %v6581_v54  ;;  %v6584_v3 = vadd.f32 %v24579_v40, %v6583_v55  ;;  %26467 = vst [vmem:[#allocation5_spill] sm:$0xff] %v24784_v21 }
 0x4b4   : > { %v6853_v32 = vmax.f32 %v6589_v17, %v6753_v25  ;;  %v24776_v17 = vld [vmem:[#allocation2 + $0x90] sm:$0xff]  ;;  %v10338_v25 = vld [vmem:[#allocation2 + $0x4c8] sm:$0xff] }
 0x4b5   : > { %v6851_v11 = vmax.f32 %v6581_v54, %v6751_v49  ;;  %v6752_v8 = vmul.f32 0.1, %v6584_v3  ;;  %26466 = vst [vmem:[#allocation4_spill] sm:$0xff] %v24776_v17  ;;  %v22721_v54 = vld [vmem:[%s26455_s2 + $0x88] sm:$0xff]  }
 0x4b7   : > { %20318 = vmatmul.mubr.msk.bf16.gmra.mrb[152].mxu1 %vm3175_vm1, %v24560_v2  ;;  %20626 = vmatmul.mubr.msk.bf16.gmra.mrb[44].mxu0 %vm3175_vm1, %v9861_v29  ;;  %v6754_v2 = vmul.f32 0.1, %v6592_v30  ;;  %v6852_v50 = vmax.f32 %v6584_v3, %v6752_v8  ;;  %v9866_v29 = vld [vmem:[#allocation2 + $0x440] sm:$0xff] }
 0x4b8   : > { %20321 = vmatprep.mubr.msk.bf16.mxu1 %vm3175_vm1, %v7850_v23  ;;  %20629 = vmatprep.mubr.msk.bf16.mxu0 %vm3175_vm1, %v9862_v13  ;;  %v9867_v23 = vld [vmem:[#allocation2 + $0x448] sm:$0xff]  ;;  %v9868_v13 = vld [vmem:[#allocation2 + $0x450] sm:$0xff] }
 0x4b9   : > { %v6854_v52 = vmax.f32 %v6592_v30, %v6754_v2  ;;  %v6913_v26 = vpack.c.bf16 %v6852_v50, %v6851_v11  ;;  %v10339_v30 = vld [vmem:[#allocation2 + $0x4d0] sm:$0xff] }
 0x4ba   : > { %v24796_v2 = vld [vmem:[%s26455_s2 + $0x90] sm:$0xff]  }
 0x4bb   : > { %v6914_v4 = vpack.c.bf16 %v6854_v52, %v6853_v32  ;;  %6964 = vst.msk [vmem:[#allocation2 + $0x5e0] sm:$0xff] %vm3175_vm1, %v6913_v26  ;;  %v20151_v32 = vpop.f32.mrb[124].mxu1  ;;  %v10341_v52 = vld [vmem:[#allocation2 + $0x4e0] sm:$0xff] }
 0x4bd   : > { %6965 = vst.msk [vmem:[#allocation2 + $0x5e8] sm:$0xff] %vm3175_vm1, %v6914_v4 }
 0x4bf   : > { %20322 = vmatmul.mubr.msk.bf16.gmra.mrb[156].mxu1 %vm3175_vm1, %v7851_v35  ;;  %20630 = vmatmul.mubr.msk.bf16.gmra.mrb[48].mxu0 %vm3175_vm1, %v9863_v37  ;;  %v6596_v35 = vpop.f32.mrb[125].mxu1  ;;  %v6605_v37 = vadd.f32 %v24579_v40, %v20151_v32 }
 0x4c0   : > { %20325 = vmatprep.mubr.msk.bf16.mxu1 %vm3175_vm1, %v24592_v46  ;;  %20633 = vmatprep.mubr.msk.bf16.mxu0 %vm3175_vm1, %v9864_v48  ;;  %v6597_v49 = vadd.f32 %v24579_v40, %v6596_v35  ;;  %v20152_v3 = vpop.f32.mrb[126].mxu1 }
 0x4c1   : > { %v6757_v48 = vmul.f32 0.1, %v6605_v37  ;;  %v6608_v4 = vadd.f32 %v24579_v40, %v20152_v3  ;;  %v6599_v11 = vpop.f32.mrb[127].mxu1 }
 0x4c2   : > { %v6755_v55 = vmul.f32 0.1, %v6597_v49  ;;  %v6600_v8 = vadd.f32 %v24579_v40, %v6599_v11  ;;  %v20155_v50 = vpop.f32.mrb[128].mxu1 }
 0x4c3   : > { %v6758_v26 = vmul.f32 0.1, %v6608_v4 }
 0x4c7   : > { %20326 = vmatmul.mubr.msk.bf16.gmra.mrb[160].mxu1 %vm3175_vm1, %v24602_v58  ;;  %20634 = vmatmul.mubr.msk.bf16.gmra.mrb[52].mxu0 %vm3175_vm1, %v9865_v12  ;;  %v6857_v12 = vmax.f32 %v6605_v37, %v6757_v48  ;;  %v10342_v37 = vld [vmem:[#allocation2 + $0x4e8] sm:$0xff] }
 0x4c8   : > { %20329 = vmatprep.mubr.msk.bf16.mxu1 %vm3175_vm1, %v24610_v60  ;;  %20637 = vmatprep.mubr.msk.bf16.mxu0 %vm3175_vm1, %v9866_v29  ;;  %v6621_v29 = vadd.f32 %v24579_v40, %v20155_v50 }
 0x4cf   : > { %20330 = vmatmul.mubr.msk.bf16.gmra.mrb[164].mxu1 %vm3175_vm1, %v24618_v62  ;;  %20638 = vmatmul.mubr.msk.bf16.gmra.mrb[56].mxu0 %vm3175_vm1, %v9867_v23  ;;  %v6612_v23 = vpop.f32.mrb[129].mxu1 }
 0x4d0   : > { %20333 = vmatprep.mubr.msk.bf16.mxu1 %vm3175_vm1, %v24626_v1  ;;  %20641 = vmatprep.mubr.msk.bf16.mxu0 %vm3175_vm1, %v9868_v13  ;;  %v6855_v13 = vmax.f32 %v6597_v49, %v6755_v55 }
 0x4d7   : > { %20334 = vmatmul.mubr.msk.bf16.gmra.mrb[168].mxu1 %vm3175_vm1, %v24634_v6  ;;  %20642 = vmatmul.mubr.msk.bf16.gmra.mrb[60].mxu0 %vm3175_vm1, %v9869_v19  ;;  %v6756_v19 = vmul.f32 0.1, %v6600_v8 }
 0x4d8   : > { %20337 = vmatprep.mubr.msk.bf16.mxu1 %vm3175_vm1, %v24776_v17  ;;  %20649 = vmatprep.mubr.msk.bf16.mxu0 %vm3175_vm1, %v10337_v34  ;;  %v6613_v34 = vadd.f32 %v24579_v40, %v6612_v23 }
 0x4df   : > { %20338 = vmatmul.mubr.msk.bf16.gmra.mrb[172].mxu1 %vm3175_vm1, %v24784_v21  ;;  %20650 = vmatmul.mubr.msk.bf16.vlgmr.msra.gmra.mrb[0].mxu0 %vm3175_vm1, %v10338_v25  ;;  %v6858_v25 = vmax.f32 %v6608_v4, %v6758_v26  ;;  %v10343_v4 = vld [vmem:[#allocation2 + $0x4f0] sm:$0xff] }
 0x4e0   : > { %20714 = vmatpush3.bf16.msra.mxu0 %v24648_v9  ;;  %20341 = vmatprep.mubr.msk.bf16.mxu1 %vm3175_vm1, %v24656_v38  ;;  %v10340_v9 = vld [vmem:[#allocation2 + $0x4d8] sm:$0xff] }
 0x4e1   : > { %20653 = vmatprep.mubr.msk.bf16.mxu0 %vm3175_vm1, %v10339_v30  ;;  %20715 = vmatprep.subr.bf16.mxu0 %v22721_v54  ;;  %v6761_v30 = vmul.f32 0.1, %v6621_v29  ;;  %v6916_v48 = vpack.c.bf16 %v6858_v25, %v6857_v12 }
 0x4e3   : > { %v6861_v21 = vmax.f32 %v6621_v29, %v6761_v30  ;;  %6967 = vst.msk [vmem:[#allocation2 + $0x5f8] sm:$0xff] %vm3175_vm1, %v6916_v48 }
 0x4e4   : > { %20716 = vmatpush3.bf16.msra.mxu0 %v22721_v54  ;;  %v20156_v54 = vpop.f32.mrb[130].mxu1 }
 0x4e5   : > { %20781 = vmatprep.subr.bf16.mxu0 %v24796_v2  ;;  %v6624_v32 = vadd.f32 %v24579_v40, %v20156_v54  ;;  %v6615_v35 = vpop.f32.mrb[131].mxu1 }
 0x4e6   : > { %v6616_v3 = vadd.f32 %v24579_v40, %v6615_v35  ;;  %v20159_v11 = vpop.f32.mrb[132].mxu1 }
 0x4e7   : > { %20342 = vmatmul.mubr.msk.bf16.gmra.mrb[176].mxu1 %vm3175_vm1, %v24661_v15  ;;  %20654 = vmatmul.mubr.msk.bf16.gmra.mrb[4].mxu0 %vm3175_vm1, %v10340_v9  ;;  %v6856_v9 = vmax.f32 %v6600_v8, %v6756_v19  ;;  %v6762_v50 = vmul.f32 0.1, %v6624_v32  ;;  %v6637_v49 = vadd.f32 %v24579_v40, %v20159_v11  ;;  %v6628_v55 = vpop.f32.mrb[133].mxu1 }
 0x4e8   : > { %20345 = vmatprep.mubr.msk.bf16.mxu1 %vm3175_vm1, %v24666_v18  ;;  %20657 = vmatprep.mubr.msk.bf16.mxu0 %vm3175_vm1, %v10341_v52  ;;  %v6759_v52 = vmul.f32 0.1, %v6613_v34  ;;  %v6760_v8 = vmul.f32 0.1, %v6616_v3  ;;  %v6629_v19 = vadd.f32 %v24579_v40, %v6628_v55  ;;  %v20160_v54 = vpop.f32.mrb[134].mxu1 }
 0x4e9   : > { %v6915_v26 = vpack.c.bf16 %v6856_v9, %v6855_v13  ;;  %v6862_v12 = vmax.f32 %v6624_v32, %v6762_v50  ;;  %v6765_v29 = vmul.f32 0.1, %v6637_v49  ;;  %v6640_v25 = vadd.f32 %v24579_v40, %v20160_v54  ;;  %v6631_v30 = vpop.f32.mrb[135].mxu1 }
 0x4ea   : > { %v6859_v23 = vmax.f32 %v6613_v34, %v6759_v52  ;;  %v6860_v13 = vmax.f32 %v6616_v3, %v6760_v8  ;;  %v6763_v34 = vmul.f32 0.1, %v6629_v19  ;;  %v6632_v35 = vadd.f32 %v24579_v40, %v6631_v30  ;;  %v20163_v9 = vpop.f32.mrb[136].mxu1 }
 0x4eb   : > { %6966 = vst.msk [vmem:[#allocation2 + $0x5f0] sm:$0xff] %vm3175_vm1, %v6915_v26  ;;  %v6918_v52 = vpack.c.bf16 %v6862_v12, %v6861_v21  ;;  %v6865_v11 = vmax.f32 %v6637_v49, %v6765_v29  ;;  %v6653_v55 = vadd.f32 %v24579_v40, %v20163_v9 }
 0x4ec   : > { %v6917_v17 = vpack.c.bf16 %v6860_v13, %v6859_v23  ;;  %v6863_v48 = vmax.f32 %v6629_v19, %v6763_v34  ;;  %v6764_v32 = vmul.f32 0.1, %v6632_v35  ;;  %v10344_v23 = vld [vmem:[#allocation2 + $0x4f8] sm:$0xff] }
 0x4ed   : > { %6969 = vst.msk [vmem:[#allocation2 + $0x608] sm:$0xff] %vm3175_vm1, %v6918_v52  ;;  %v6769_v3 = vmul.f32 0.1, %v6653_v55 }
 0x4ee   : > { %6968 = vst.msk [vmem:[#allocation2 + $0x600] sm:$0xff] %vm3175_vm1, %v6917_v17  ;;  %v6864_v21 = vmax.f32 %v6632_v35, %v6764_v32 }
 0x4ef   : > { %20346 = vmatmul.mubr.msk.bf16.gmra.mrb[180].mxu1 %vm3175_vm1, %v24671_v20  ;;  %20658 = vmatmul.mubr.msk.bf16.gmra.mrb[8].mxu0 %vm3175_vm1, %v10342_v37  ;;  %v6766_v37 = vmul.f32 0.1, %v6640_v25  ;;  %v6869_v13 = vmax.f32 %v6653_v55, %v6769_v3 }
 0x4f0   : > { %20349 = vmatprep.mubr.msk.bf16.mxu1 %vm3175_vm1, %v24676_v24  ;;  %20661 = vmatprep.mubr.msk.bf16.mxu0 %vm3175_vm1, %v10343_v4  ;;  %v6644_v4 = vpop.f32.mrb[137].mxu1  ;;  %v6919_v17 = vpack.c.bf16 %v6864_v21, %v6863_v48 }
 0x4f1   : > { %v6645_v50 = vadd.f32 %v24579_v40, %v6644_v4  ;;  %v20164_v54 = vpop.f32.mrb[138].mxu1  ;;  %v6866_v26 = vmax.f32 %v6640_v25, %v6766_v37  ;;  %v24835_v25 = vld [vmem:[#allocation2 + $0xe0] sm:$0xff] }
 0x4f2   : > { %v6656_v8 = vadd.f32 %v24579_v40, %v20164_v54  ;;  %v6647_v30 = vpop.f32.mrb[139].mxu1  ;;  %26468 = vst [vmem:[#allocation6_spill] sm:$0xff] %v24835_v25  ;;  %6970 = vst.msk [vmem:[#allocation2 + $0x610] sm:$0xff] %vm3175_vm1, %v6919_v17  ;;  %v22811_v17 = vld [vmem:[#allocation2 + $0x538] sm:$0xff] }
 0x4f3   : > { %v6767_v49 = vmul.f32 0.1, %v6645_v50  ;;  %v6648_v12 = vadd.f32 %v24579_v40, %v6647_v30  ;;  %v20167_v29 = vpop.f32.mrb[140].mxu1  ;;  %v6920_v19 = vpack.c.bf16 %v6866_v26, %v6865_v11  ;;  %v22806_v11 = vld [vmem:[#allocation2 + $0x510] sm:$0xff] }
 0x4f4   : > { %v6770_v34 = vmul.f32 0.1, %v6656_v8  ;;  %v6669_v9 = vadd.f32 %v24579_v40, %v20167_v29  ;;  %v6660_v4 = vpop.f32.mrb[141].mxu1 }
 0x4f5   : > { %v6867_v35 = vmax.f32 %v6645_v50, %v6767_v49  ;;  %v6768_v52 = vmul.f32 0.1, %v6648_v12  ;;  %v6661_v37 = vadd.f32 %v24579_v40, %v6660_v4  ;;  %v20168_v32 = vpop.f32.mrb[142].mxu1  ;;  %6971 = vst.msk [vmem:[#allocation2 + $0x618] sm:$0xff] %vm3175_vm1, %v6920_v19 }
 0x4f6   : > { %v6870_v55 = vmax.f32 %v6656_v8, %v6770_v34  ;;  %v6773_v54 = vmul.f32 0.1, %v6669_v9  ;;  %v6672_v26 = vadd.f32 %v24579_v40, %v20168_v32  ;;  %v6663_v3 = vpop.f32.mrb[143].mxu1  ;;  %v24847_v34 = vld [vmem:[#allocation2 + $0xe8] sm:$0xff] }
 0x4f7   : > { %20350 = vmatmul.mubr.msk.bf16.gmra.mrb[184].mxu1 %vm3175_vm1, %v24681_v28  ;;  %20662 = vmatmul.mubr.msk.bf16.gmra.mrb[12].mxu0 %vm3175_vm1, %v10344_v23  ;;  %v6868_v48 = vmax.f32 %v6648_v12, %v6768_v52  ;;  %v6771_v50 = vmul.f32 0.1, %v6661_v37  ;;  %v6664_v30 = vadd.f32 %v24579_v40, %v6663_v3  ;;  %v22807_v12 = vld [vmem:[#allocation2 + $0x518] sm:$0xff]  ;;  %v10352_v52 = vld [vmem:[#allocation2 + $0x548] sm:$0xff] }
 0x4f8   : > { %20353 = vmatprep.mubr.msk.bf16.mxu1 %vm3175_vm1, %v24835_v25  ;;  %20665 = vmatprep.mubr.msk.bf16.mxu0 %vm3175_vm1, %v22806_v11  ;;  %v6922_v21 = vpack.c.bf16 %v6870_v55, %v6869_v13  ;;  %v6873_v49 = vmax.f32 %v6669_v9, %v6773_v54  ;;  %v6774_v29 = vmul.f32 0.1, %v6672_v26  ;;  %v22808_v13 = vld [vmem:[#allocation2 + $0x520] sm:$0xff]  ;;  %v22809_v9 = vld [vmem:[#allocation2 + $0x528] sm:$0xff]  ;;  %v24878_v11 = vld [vmem:[#allocation2 + $0x138] sm:$0xff] }
 0x4f9   : > { %v6921_v23 = vpack.c.bf16 %v6868_v48, %v6867_v35  ;;  %v6871_v4 = vmax.f32 %v6661_v37, %v6771_v50  ;;  %v6772_v25 = vmul.f32 0.1, %v6664_v30  ;;  %v10351_v35 = vld [vmem:[#allocation2 + $0x540] sm:$0xff]  ;;  %v24872_v37 = vld [vmem:[#allocation2 + $0x130] sm:$0xff]  ;;  %v24890_v54 = vld [vmem:[#allocation2 + $0x268] sm:$0xff] }
 0x4fa   : > { %6973 = vst.msk [vmem:[#allocation2 + $0x628] sm:$0xff] %vm3175_vm1, %v6922_v21  ;;  %v6874_v19 = vmax.f32 %v6672_v26, %v6774_v29  ;;  %v24884_v55 = vld [vmem:[#allocation2 + $0x260] sm:$0xff]  ;;  %v22812_v26 = vld [vmem:[#allocation2 + $0x290] sm:$0xff]  ;;  %v22813_v3 = vld [vmem:[#allocation2 + $0x298] sm:$0xff] }
 0x4fb   : > { %6972 = vst.msk [vmem:[#allocation2 + $0x620] sm:$0xff] %vm3175_vm1, %v6921_v23  ;;  %v6872_v8 = vmax.f32 %v6664_v30, %v6772_v25  ;;  %v22810_v25 = vld [vmem:[#allocation2 + $0x530] sm:$0xff]  ;;  %v22815_v48 = vld [vmem:[#allocation2 + $0x2a8] sm:$0xff]  ;;  %v24925_v50 = vld [vmem:[#allocation2 + $0x2c0] sm:$0xff] }
 0x4fc   : > { %v6924_v32 = vpack.c.bf16 %v6874_v19, %v6873_v49 }
 0x4fd   : > { %v6923_v40 = vpack.c.bf16 %v6872_v8, %v6871_v4 }
 0x4fe   : > { %6975 = vst.msk [vmem:[#allocation2 + $0x638] sm:$0xff] %vm3175_vm1, %v6924_v32  ;;  %v10860_v32 = vld [vmem:[#allocation2 + $0x140] sm:$0xff] }
 0x4ff   : > { %20354 = vmatmul.mubr.msk.bf16.gmra.mrb[188].mxu1 %vm3175_vm1, %v24847_v34  ;;  %20666 = vmatmul.mubr.msk.bf16.gmra.mrb[16].mxu0 %vm3175_vm1, %v22807_v12  ;;  %6974 = vst.msk [vmem:[#allocation2 + $0x630] sm:$0xff] %vm3175_vm1, %v6923_v40 }
 0x500   : > { %20357 = vmatprep.mubr.msk.bf16.mxu1 %vm3175_vm1, %v24696_v16  ;;  %20669 = vmatprep.mubr.msk.bf16.mxu0 %vm3175_vm1, %v22808_v13  ;;  %v10861_v13 = vld [vmem:[#allocation2 + $0x148] sm:$0xff] }
 0x507   : > { %20358 = vmatmul.mubr.msk.bf16.gmra.mrb[192].mxu1 %vm3175_vm1, %v24701_v63  ;;  %20670 = vmatmul.mubr.msk.bf16.gmra.mrb[20].mxu0 %vm3175_vm1, %v22809_v9  ;;  %v25071_v9 = vld [vmem:[#allocation2 + $0x150] sm:$0xff] }
 0x508   : > { %20361 = vmatprep.mubr.msk.bf16.mxu1 %vm3175_vm1, %v24706_v47  ;;  %20673 = vmatprep.mubr.msk.bf16.mxu0 %vm3175_vm1, %v22810_v25 }
 0x50f   : > { %20362 = vmatmul.mubr.msk.bf16.gmra.mrb[196].mxu1 %vm3175_vm1, %v24711_v51  ;;  %20674 = vmatmul.mubr.msk.bf16.gmra.mrb[24].mxu0 %vm3175_vm1, %v22811_v17 }
 0x510   : > { %20365 = vmatprep.mubr.msk.bf16.mxu1 %vm3175_vm1, %v24716_v53  ;;  %20677 = vmatprep.mubr.msk.bf16.mxu0 %vm3175_vm1, %v10351_v35 }
 0x517   : > { %20366 = vmatmul.mubr.msk.bf16.gmra.mrb[200].mxu1 %vm3175_vm1, %v24721_v56  ;;  %20678 = vmatmul.mubr.msk.bf16.gmra.mrb[28].mxu0 %vm3175_vm1, %v10352_v52  ;;  %v25083_v52 = vld [vmem:[#allocation2 + $0x158] sm:$0xff] }
 0x518   : > { %20369 = vmatprep.mubr.msk.bf16.mxu1 %vm3175_vm1, %v24872_v37  ;;  %20681 = vmatprep.mubr.msk.bf16.mxu0 %vm3175_vm1, %v24471_v39  ;;  %v24896_v39 = vld [vmem:[#allocation2 + $0x270] sm:$0xff] }
 0x51f   : > { %20370 = vmatmul.mubr.msk.bf16.gmra.mrb[204].mxu1 %vm3175_vm1, %v24878_v11  ;;  %20682 = vmatmul.mubr.msk.bf16.gmra.mrb[32].mxu0 %vm3175_vm1, %v24479_v42  ;;  %v24902_v42 = vld [vmem:[#allocation2 + $0x278] sm:$0xff] }
 0x520   : > { %20417 = vmatprep.mubr.msk.bf16.mxu1 %vm3175_vm1, %v24884_v55  ;;  %20685 = vmatprep.mubr.msk.bf16.mxu0 %vm3175_vm1, %v24493_v45  ;;  %v10359_v45 = vld [vmem:[#allocation2 + $0x590] sm:$0xff] }
 0x527   : > { %20418 = vmatmul.mubr.msk.bf16.vlgmr.msra.gmra.mrb[184].mxu1 %vm3175_vm1, %v24890_v54  ;;  %20686 = vmatmul.mubr.msk.bf16.gmra.mrb[36].mxu0 %vm3175_vm1, %v24502_v5  ;;  %v10360_v5 = vld [vmem:[#allocation2 + $0x598] sm:$0xff] }
 0x528   : > { %20421 = vmatprep.mubr.msk.bf16.mxu1 %vm3175_vm1, %v24896_v39  ;;  %20689 = vmatprep.mubr.msk.bf16.mxu0 %vm3175_vm1, %v24515_v22  ;;  %v22814_v22 = vld [vmem:[#allocation2 + $0x2a0] sm:$0xff] }
 0x52f   : > { %20422 = vmatmul.mubr.msk.bf16.gmra.mrb[188].mxu1 %vm3175_vm1, %v24902_v42  ;;  %20690 = vmatmul.mubr.msk.bf16.gmra.mrb[40].mxu0 %vm3175_vm1, %v24529_v27  ;;  %v22816_v27 = vld [vmem:[#allocation2 + $0x2b0] sm:$0xff] }
 0x530   : > { %20425 = vmatprep.mubr.msk.bf16.mxu1 %vm3175_vm1, %v22812_v26  ;;  %20693 = vmatprep.mubr.msk.bf16.mxu0 %vm3175_vm1, %v10359_v45  ;;  %v25087_v45 = vld [vmem:[#allocation2 + $0x160] sm:$0xff]  ;;  %v25091_v26 = vld [vmem:[#allocation2 + $0x168] sm:$0xff] }
 0x537   : > { %20426 = vmatmul.mubr.msk.bf16.gmra.mrb[192].mxu1 %vm3175_vm1, %v22813_v3  ;;  %20694 = vmatmul.mubr.msk.bf16.gmra.mrb[44].mxu0 %vm3175_vm1, %v10360_v5  ;;  %v25095_v5 = vld [vmem:[#allocation2 + $0x170] sm:$0xff]  ;;  %v25099_v3 = vld [vmem:[#allocation2 + $0x178] sm:$0xff] }
 0x538   : > { %20429 = vmatprep.mubr.msk.bf16.mxu1 %vm3175_vm1, %v22814_v22  ;;  %20697 = vmatprep.mubr.msk.bf16.mxu0 %vm3175_vm1, %v24573_v36  ;;  %v10367_v36 = vld [vmem:[#allocation2 + $0x5e0] sm:$0xff] }
 0x539   : > { %v11335_v22 = vld [vmem:[#allocation2 + $0x1e0] sm:$0xff] }
 0x53f   : > { %20430 = vmatmul.mubr.msk.bf16.gmra.mrb[196].mxu1 %vm3175_vm1, %v22815_v48  ;;  %20698 = vmatmul.mubr.msk.bf16.gmra.mrb[48].mxu0 %vm3175_vm1, %v24586_v44  ;;  %v24931_v44 = vld [vmem:[#allocation2 + $0x2c8] sm:$0xff] }
 0x540   : > { %20433 = vmatprep.mubr.msk.bf16.mxu1 %vm3175_vm1, %v22816_v27  ;;  %20701 = vmatprep.mubr.msk.bf16.mxu0 %vm3175_vm1, %v24597_v57  ;;  %v22723_v57 = vld [vmem:[%s26455_s2 + $0x98] sm:$0xff]   ;;  %v22725_v48 = vld [vmem:[%s26455_s2 + $0xa8] sm:$0xff]  }
 0x541   : > { %v11336_v27 = vld [vmem:[#allocation2 + $0x1e8] sm:$0xff] }
 0x547   : > { %20434 = vmatmul.mubr.msk.bf16.gmra.mrb[200].mxu1 %vm3175_vm1, %v24477_v41  ;;  %20702 = vmatmul.mubr.msk.bf16.gmra.mrb[52].mxu0 %vm3175_vm1, %v24604_v59  ;;  %v10368_v41 = vld [vmem:[#allocation2 + $0x5e8] sm:$0xff]  ;;  %v24952_v59 = vld [vmem:[%s26455_s2 + $0xa0] sm:$0xff]  }
 0x548   : > { %20437 = vmatprep.mubr.msk.bf16.mxu1 %vm3175_vm1, %v24925_v50  ;;  %20705 = vmatprep.mubr.msk.bf16.mxu0 %vm3175_vm1, %v24614_v61 }
 0x54f   : > { %20438 = vmatmul.mubr.msk.bf16.gmra.mrb[204].mxu1 %vm3175_vm1, %v24931_v44  ;;  %20706 = vmatmul.mubr.msk.bf16.gmra.mrb[56].mxu0 %vm3175_vm1, %v24620_v0 }
 0x550   : > { %20709 = vmatprep.mubr.msk.bf16.mxu0 %vm3175_vm1, %v10367_v36  ;;  %v25108_v36 = vld [vmem:[#allocation2 + $0x1f0] sm:$0xff] }
 0x557   : > { %20710 = vmatmul.mubr.msk.bf16.gmra.mrb[60].mxu0 %vm3175_vm1, %v10368_v41  ;;  %v25116_v41 = vld [vmem:[%s26455_s2 + $0xb0] sm:$0xff]  }
 0x558   : > { %20717 = vmatprep.mubr.msk.bf16.mxu0 %vm3175_vm1, %v24565_v14 }
 0x55f   : > { %20718 = vmatmul.mubr.msk.bf16.vlgmr.msra.gmra.mrb[0].mxu0 %vm3175_vm1, %v24584_v43 }
 0x560   : > { %20782 = vmatpush3.bf16.msra.mxu0 %v24796_v2  ;;  %20721 = vmatprep.mubr.msk.bf16.mxu0 %vm3175_vm1, %v24592_v46 }
 0x561   : > { %20783 = vmatprep.subr.bf16.mxu0 %v22723_v57 }
 0x564   : > { %20784 = vmatpush3.bf16.msra.mxu0 %v22723_v57  ;;  %v25119_v57 = vld [vmem:[#allocation2 + $0x1f8] sm:$0xff] }
 0x565   : > { %20849 = vmatprep.subr.bf16.mxu0 %v24952_v59 }
 0x567   : > { %20722 = vmatmul.mubr.msk.bf16.gmra.mrb[4].mxu0 %vm3175_vm1, %v24602_v58 }
 0x568   : > { %20725 = vmatprep.mubr.msk.bf16.mxu0 %vm3175_vm1, %v24610_v60 }
 0x56f   : > { %20726 = vmatmul.mubr.msk.bf16.gmra.mrb[8].mxu0 %vm3175_vm1, %v24618_v62 }
 0x570   : > { %20729 = vmatprep.mubr.msk.bf16.mxu0 %vm3175_vm1, %v24626_v1 }
 0x577   : > { %20730 = vmatmul.mubr.msk.bf16.gmra.mrb[12].mxu0 %vm3175_vm1, %v24634_v6 }
 0x578   : > { %20733 = vmatprep.mubr.msk.bf16.mxu0 %vm3175_vm1, %v24639_v7 }
 0x57a   : > { %v24967_v14 = vpop.f32.mrb[144].mxu1 }
 0x57b   : > { %v24969_v43 = vpop.f32.mrb[145].mxu1 }
 0x57c   : > { %v24971_v46 = vpop.f32.mrb[146].mxu1 }
 0x57d   : > { %v24973_v58 = vpop.f32.mrb[147].mxu1 }
 0x57f   : > { %20734 = vmatmul.mubr.msk.bf16.gmra.mrb[16].mxu0 %vm3175_vm1, %v24651_v10 }
 0x580   : > { %20737 = vmatprep.mubr.msk.bf16.mxu0 %vm3175_vm1, %v24656_v38 }
 0x582   : > { %v24979_v60 = vpop.f32.mrb[148].mxu1 }
 0x583   : > { %v24981_v61 = vpop.f32.mrb[149].mxu1 }
 0x584   : > { %v24983_v62 = vpop.f32.mrb[150].mxu1 }
 0x585   : > { %v24985_v0 = vpop.f32.mrb[151].mxu1 }
 0x587   : > { %20738 = vmatmul.mubr.msk.bf16.gmra.mrb[20].mxu0 %vm3175_vm1, %v24661_v15 }
 0x588   : > { %20741 = vmatprep.mubr.msk.bf16.mxu0 %vm3175_vm1, %v24666_v18 }
 0x58a   : > { %v24991_v1 = vpop.f32.mrb[152].mxu1 }
 0x58b   : > { %v24993_v6 = vpop.f32.mrb[153].mxu1 }
 0x58c   : > { %v24995_v7 = vpop.f32.mrb[154].mxu1 }
 0x58d   : > { %v24997_v10 = vpop.f32.mrb[155].mxu1 }
 0x58f   : > { %20742 = vmatmul.mubr.msk.bf16.gmra.mrb[24].mxu0 %vm3175_vm1, %v24671_v20 }
 0x590   : > { %20745 = vmatprep.mubr.msk.bf16.mxu0 %vm3175_vm1, %v24676_v24 }
 0x592   : > { %v25003_v38 = vpop.f32.mrb[156].mxu1 }
 0x593   : > { %v25005_v15 = vpop.f32.mrb[157].mxu1 }
 0x594   : > { %v25007_v2 = vpop.f32.mrb[158].mxu1 }
 0x595   : > { %26469 = vst [vmem:[#allocation7_spill] sm:$0xff] %v25007_v2  ;;  %v25009_v18 = vpop.f32.mrb[159].mxu1  ;;  %v22735_v2 = vld [vmem:[%s26455_s2 + $0xf8] sm:$0xff]  }
 0x596   : > { %26470 = vst [vmem:[#allocation8_spill] sm:$0xff] %v25009_v18  ;;  %v25593_v18 = vld [vmem:[#allocation2 + $0x620] sm:$0xff] }
 0x597   : > { %20746 = vmatmul.mubr.msk.bf16.gmra.mrb[28].mxu0 %vm3175_vm1, %v24681_v28 }
 0x598   : > { %20749 = vmatprep.mubr.msk.bf16.mxu0 %vm3175_vm1, %v24686_v31 }
 0x59a   : > { %v25015_v30 = vpop.f32.mrb[160].mxu1 }
 0x59b   : > { %26471 = vst [vmem:[#allocation9_spill] sm:$0xff] %v25015_v30  ;;  %v25017_v20 = vpop.f32.mrb[161].mxu1  ;;  %v25587_v30 = vld [vmem:[#allocation2 + $0x608] sm:$0xff] }
 0x59c   : > { %26472 = vst [vmem:[#allocation10_spill] sm:$0xff] %v25017_v20  ;;  %v25019_v21 = vpop.f32.mrb[162].mxu1  ;;  %v25585_v20 = vld [vmem:[#allocation2 + $0x610] sm:$0xff] }
 0x59d   : > { %26473 = vst [vmem:[#allocation11_spill] sm:$0xff] %v25019_v21  ;;  %v25021_v24 = vpop.f32.mrb[163].mxu1  ;;  %v11844_v21 = vld [vmem:[#allocation2 + $0xc0] sm:$0xff] }
 0x59e   : > { %26474 = vst [vmem:[#allocation12_spill] sm:$0xff] %v25021_v24  ;;  %v11839_v24 = vld [vmem:[#allocation2 + $0x88] sm:$0xff] }
 0x59f   : > { %20750 = vmatmul.mubr.msk.bf16.gmra.mrb[32].mxu0 %vm3175_vm1, %v24691_v33 }
 0x5a0   : > { %20753 = vmatprep.mubr.msk.bf16.mxu0 %vm3175_vm1, %v24696_v16 }
 0x5a2   : > { %v25027_v49 = vpop.f32.mrb[164].mxu1 }
 0x5a3   : > { %26475 = vst [vmem:[#allocation13_spill] sm:$0xff] %v25027_v49  ;;  %v25029_v28 = vpop.f32.mrb[165].mxu1  ;;  %v11838_v49 = vld [vmem:[#allocation2 + $0x80] sm:$0xff] }
 0x5a4   : > { %26476 = vst [vmem:[#allocation14_spill] sm:$0xff] %v25029_v28  ;;  %v25031_v29 = vpop.f32.mrb[166].mxu1  ;;  %v22728_v28 = vld [vmem:[%s26455_s2 + $0xc0] sm:$0xff]  }
 0x5a5   : > { %26477 = vst [vmem:[#allocation15_spill] sm:$0xff] %v25031_v29  ;;  %v25033_v31 = vpop.f32.mrb[167].mxu1  ;;  %v11836_v29 = vld [vmem:[#allocation2 + $0x70] sm:$0xff] }
 0x5a6   : > { %26478 = vst [vmem:[#allocation16_spill] sm:$0xff] %v25033_v31  ;;  %v11835_v31 = vld [vmem:[#allocation2 + $0x68] sm:$0xff] }
 0x5a7   : > { %20754 = vmatmul.mubr.msk.bf16.gmra.mrb[36].mxu0 %vm3175_vm1, %v24701_v63 }
 0x5a8   : > { %20757 = vmatprep.mubr.msk.bf16.mxu0 %vm3175_vm1, %v24706_v47 }
 0x5aa   : > { %v25039_v23 = vpop.f32.mrb[168].mxu1 }
 0x5ab   : > { %26479 = vst [vmem:[#allocation17_spill] sm:$0xff] %v25039_v23  ;;  %v25041_v33 = vpop.f32.mrb[169].mxu1  ;;  %v22727_v23 = vld [vmem:[%s26455_s2 + $0xb8] sm:$0xff]  }
 0x5ac   : > { %26480 = vst [vmem:[#allocation18_spill] sm:$0xff] %v25041_v33  ;;  %v25043_v4 = vpop.f32.mrb[170].mxu1  ;;  %v11834_v33 = vld [vmem:[#allocation2 + $0x60] sm:$0xff] }
 0x5ad   : > { %26481 = vst [vmem:[#allocation19_spill] sm:$0xff] %v25043_v4  ;;  %v25045_v16 = vpop.f32.mrb[171].mxu1  ;;  %v25249_v4 = vld [vmem:[#allocation2 + $0x2f8] sm:$0xff] }
 0x5ae   : > { %26482 = vst [vmem:[#allocation20_spill] sm:$0xff] %v25045_v16  ;;  %v25245_v16 = vld [vmem:[#allocation2 + $0x2f0] sm:$0xff] }
 0x5af   : > { %20758 = vmatmul.mubr.msk.bf16.gmra.mrb[40].mxu0 %vm3175_vm1, %v24711_v51 }
 0x5b0   : > { %20761 = vmatprep.mubr.msk.bf16.mxu0 %vm3175_vm1, %v24716_v53 }
 0x5b2   : > { %v25051_v19 = vpop.f32.mrb[172].mxu1 }
 0x5b3   : > { %26483 = vst [vmem:[#allocation21_spill] sm:$0xff] %v25051_v19  ;;  %v25053_v63 = vpop.f32.mrb[173].mxu1  ;;  %v25241_v19 = vld [vmem:[#allocation2 + $0x2e8] sm:$0xff] }
 0x5b4   : > { %26484 = vst [vmem:[#allocation22_spill] sm:$0xff] %v25053_v63  ;;  %v25055_v8 = vpop.f32.mrb[174].mxu1 }
 0x5b5   : > { %26485 = vst [vmem:[#allocation23_spill] sm:$0xff] %v25055_v8  ;;  %v25057_v47 = vpop.f32.mrb[175].mxu1 }
 0x5b6   : > { %26486 = vst [vmem:[#allocation24_spill] sm:$0xff] %v25057_v47 }
 0x5b7   : > { %20762 = vmatmul.mubr.msk.bf16.gmra.mrb[44].mxu0 %vm3175_vm1, %v24721_v56 }
 0x5b8   : > { %20765 = vmatprep.mubr.msk.bf16.mxu0 %vm3175_vm1, %v10860_v32  ;;  %v25123_v32 = vld [vmem:[#allocation2 + $0x200] sm:$0xff] }
 0x5ba   : > { %v25062_v12 = vpop.f32.mrb[176].mxu1 }
 0x5bb   : > { %26487 = vst [vmem:[#allocation25_spill] sm:$0xff] %v25062_v12  ;;  %v25064_v51 = vpop.f32.mrb[177].mxu1 }
 0x5bc   : > { %26488 = vst [vmem:[#allocation26_spill] sm:$0xff] %v25064_v51  ;;  %v25066_v40 = vpop.f32.mrb[178].mxu1 }
 0x5bd   : > { %26489 = vst [vmem:[#allocation27_spill] sm:$0xff] %v25066_v40  ;;  %v25068_v53 = vpop.f32.mrb[179].mxu1 }
 0x5be   : > { %26490 = vst [vmem:[#allocation28_spill] sm:$0xff] %v25068_v53  ;;  %v25149_v53 = vld [vmem:[#allocation2 + $0x240] sm:$0xff] }
 0x5bf   : > { %20766 = vmatmul.mubr.msk.bf16.gmra.mrb[48].mxu0 %vm3175_vm1, %v10861_v13  ;;  %v25131_v13 = vld [vmem:[#allocation2 + $0x210] sm:$0xff] }
 0x5c0   : > { %20769 = vmatprep.mubr.msk.bf16.mxu0 %vm3175_vm1, %v25071_v9 }
 0x5c2   : > { %v25075_v56 = vpop.f32.mrb[180].mxu1 }
 0x5c3   : > { %26491 = vst [vmem:[#allocation29_spill] sm:$0xff] %v25075_v56  ;;  %v25077_v25 = vpop.f32.mrb[181].mxu1  ;;  %v11344_v56 = vld [vmem:[#allocation2 + $0x238] sm:$0xff] }
 0x5c4   : > { %26492 = vst [vmem:[#allocation30_spill] sm:$0xff] %v25077_v25  ;;  %v25079_v17 = vpop.f32.mrb[182].mxu1 }
 0x5c5   : > { %26493 = vst [vmem:[#allocation31_spill] sm:$0xff] %v25079_v17  ;;  %v25081_v35 = vpop.f32.mrb[183].mxu1 }
 0x5c6   : > { %26494 = vst [vmem:[#allocation32_spill] sm:$0xff] %v25081_v35 }
 0x5c7   : > { %20770 = vmatmul.mubr.msk.bf16.gmra.mrb[52].mxu0 %vm3175_vm1, %v25083_v52 }
 0x5c8   : > { %20773 = vmatprep.mubr.msk.bf16.mxu0 %vm3175_vm1, %v25087_v45 }
 0x5cf   : > { %20774 = vmatmul.mubr.msk.bf16.gmra.mrb[56].mxu0 %vm3175_vm1, %v25091_v26 }
 0x5d0   : > { %20777 = vmatprep.mubr.msk.bf16.mxu0 %vm3175_vm1, %v25095_v5 }
 0x5d7   : > { %20778 = vmatmul.mubr.msk.bf16.gmra.mrb[60].mxu0 %vm3175_vm1, %v25099_v3 }
 0x5d8   : > { %20785 = vmatprep.mubr.msk.bf16.mxu0 %vm3175_vm1, %v11335_v22  ;;  %v25135_v22 = vld [vmem:[#allocation2 + $0x218] sm:$0xff] }
 0x5df   : > { %20786 = vmatmul.mubr.msk.bf16.vlgmr.msra.gmra.mrb[0].mxu0 %vm3175_vm1, %v11336_v27 }
 0x5e0   : > { %20850 = vmatpush3.bf16.msra.mxu0 %v24952_v59  ;;  %20789 = vmatprep.mubr.msk.bf16.mxu0 %vm3175_vm1, %v25108_v36  ;;  %v25127_v59 = vld [vmem:[#allocation2 + $0x208] sm:$0xff] }
 0x5e1   : > { %20851 = vmatprep.subr.bf16.mxu0 %v22725_v48 }
 0x5e4   : > { %20852 = vmatpush3.bf16.msra.mxu0 %v22725_v48  ;;  %v11343_v48 = vld [vmem:[#allocation2 + $0x230] sm:$0xff] }
 0x5e5   : > { %20917 = vmatprep.subr.bf16.mxu0 %v25116_v41 }
 0x5e7   : > { %20790 = vmatmul.mubr.msk.bf16.gmra.mrb[4].mxu0 %vm3175_vm1, %v25119_v57 }
 0x5e8   : > { %20793 = vmatprep.mubr.msk.bf16.mxu0 %vm3175_vm1, %v25123_v32 }
 0x5ef   : > { %20794 = vmatmul.mubr.msk.bf16.gmra.mrb[8].mxu0 %vm3175_vm1, %v25127_v59 }
 0x5f0   : > { %20797 = vmatprep.mubr.msk.bf16.mxu0 %vm3175_vm1, %v25131_v13 }
 0x5f7   : > { %20798 = vmatmul.mubr.msk.bf16.gmra.mrb[12].mxu0 %vm3175_vm1, %v25135_v22 }
 0x5f8   : > { %20801 = vmatprep.mubr.msk.bf16.mxu0 %vm3175_vm1, %v11343_v48 }
 0x5fa   : > { %v25140_v27 = vpop.f32.mrb[184].mxu1 }
 0x5fb   : > { %26495 = vst [vmem:[#allocation33_spill] sm:$0xff] %v25140_v27  ;;  %v25142_v35 = vpop.f32.mrb[185].mxu1 }
 0x5fc   : > { %26496 = vst [vmem:[#allocation34_spill] sm:$0xff] %v25142_v35  ;;  %v25144_v17 = vpop.f32.mrb[186].mxu1  ;;  %v25161_v35 = vld [vmem:[#allocation2 + $0x248] sm:$0xff] }
 0x5fd   : > { %26497 = vst [vmem:[#allocation35_spill] sm:$0xff] %v25144_v17  ;;  %v25146_v25 = vpop.f32.mrb[187].mxu1 }
 0x5fe   : > { %26498 = vst [vmem:[#allocation36_spill] sm:$0xff] %v25146_v25  ;;  %v25165_v25 = vld [vmem:[#allocation2 + $0x250] sm:$0xff] }
 0x5ff   : > { %20802 = vmatmul.mubr.msk.bf16.gmra.mrb[16].mxu0 %vm3175_vm1, %v11344_v56 }
 0x600   : > { %20805 = vmatprep.mubr.msk.bf16.mxu0 %vm3175_vm1, %v25149_v53 }
 0x602   : > { %v25153_v40 = vpop.f32.mrb[188].mxu1 }
 0x603   : > { %26499 = vst [vmem:[#allocation37_spill] sm:$0xff] %v25153_v40  ;;  %v25155_v51 = vpop.f32.mrb[189].mxu1 }
 0x604   : > { %26500 = vst [vmem:[#allocation38_spill] sm:$0xff] %v25155_v51  ;;  %v25157_v48 = vpop.f32.mrb[190].mxu1 }
 0x605   : > { %26501 = vst [vmem:[#allocation39_spill] sm:$0xff] %v25157_v48  ;;  %v25159_v27 = vpop.f32.mrb[191].mxu1  ;;  %v25177_v48 = vld [vmem:[#allocation2 + $0x258] sm:$0xff] }
 0x606   : > { %26502 = vst [vmem:[#allocation40_spill] sm:$0xff] %v25159_v27 }
 0x607   : > { %20806 = vmatmul.mubr.msk.bf16.gmra.mrb[20].mxu0 %vm3175_vm1, %v25161_v35 }
 0x608   : > { %20809 = vmatprep.mubr.msk.bf16.mxu0 %vm3175_vm1, %v25165_v25 }
 0x60a   : > { %v25169_v56 = vpop.f32.mrb[192].mxu1 }
 0x60b   : > { %26503 = vst [vmem:[#allocation41_spill] sm:$0xff] %v25169_v56  ;;  %v25171_v17 = vpop.f32.mrb[193].mxu1 }
 0x60c   : > { %26504 = vst [vmem:[#allocation42_spill] sm:$0xff] %v25171_v17  ;;  %v25173_v40 = vpop.f32.mrb[194].mxu1 }
 0x60d   : > { %26505 = vst [vmem:[#allocation43_spill] sm:$0xff] %v25173_v40  ;;  %v25175_v51 = vpop.f32.mrb[195].mxu1 }
 0x60e   : > { %26506 = vst [vmem:[#allocation44_spill] sm:$0xff] %v25175_v51  ;;  %v11351_v51 = vld [vmem:[#allocation2 + $0x280] sm:$0xff] }
 0x60f   : > { %20810 = vmatmul.mubr.msk.bf16.gmra.mrb[24].mxu0 %vm3175_vm1, %v25177_v48 }
 0x610   : > { %20813 = vmatprep.mubr.msk.bf16.mxu0 %vm3175_vm1, %v24884_v55 }
 0x612   : > { %v25183_v27 = vpop.f32.mrb[196].mxu1 }
 0x613   : > { %26507 = vst [vmem:[#allocation45_spill] sm:$0xff] %v25183_v27  ;;  %v25185_v12 = vpop.f32.mrb[197].mxu1  ;;  %v11352_v27 = vld [vmem:[#allocation2 + $0x288] sm:$0xff] }
 0x614   : > { %26508 = vst [vmem:[#allocation46_spill] sm:$0xff] %v25185_v12  ;;  %v25187_v47 = vpop.f32.mrb[198].mxu1 }
 0x615   : > { %26509 = vst [vmem:[#allocation47_spill] sm:$0xff] %v25187_v47  ;;  %v25189_v56 = vpop.f32.mrb[199].mxu1  ;;  %v25203_v47 = vld [vmem:[#allocation2 + $0x290] sm:$0xff] }
 0x616   : > { %26510 = vst [vmem:[#allocation48_spill] sm:$0xff] %v25189_v56 }
 0x617   : > { %20814 = vmatmul.mubr.msk.bf16.gmra.mrb[28].mxu0 %vm3175_vm1, %v24890_v54 }
 0x618   : > { %20817 = vmatprep.mubr.msk.bf16.mxu0 %vm3175_vm1, %v11351_v51 }
 0x61a   : > { %v25194_v40 = vpop.f32.mrb[200].mxu1 }
 0x61b   : > { %26511 = vst [vmem:[#allocation49_spill] sm:$0xff] %v25194_v40  ;;  %v25196_v17 = vpop.f32.mrb[201].mxu1 }
 0x61c   : > { %26512 = vst [vmem:[#allocation50_spill] sm:$0xff] %v25196_v17  ;;  %v25198_v8 = vpop.f32.mrb[202].mxu1  ;;  %v25215_v17 = vld [vmem:[#allocation2 + $0x298] sm:$0xff] }
 0x61d   : > { %26513 = vst [vmem:[#allocation51_spill] sm:$0xff] %v25198_v8  ;;  %v25200_v63 = vpop.f32.mrb[203].mxu1  ;;  %v25237_v8 = vld [vmem:[#allocation2 + $0x2e0] sm:$0xff] }
 0x61e   : > { %26514 = vst [vmem:[#allocation52_spill] sm:$0xff] %v25200_v63  ;;  %v25219_v63 = vld [vmem:[#allocation2 + $0x2a0] sm:$0xff] }
 0x61f   : > { %20818 = vmatmul.mubr.msk.bf16.gmra.mrb[32].mxu0 %vm3175_vm1, %v11352_v27  ;;  %v25223_v27 = vld [vmem:[#allocation2 + $0x2a8] sm:$0xff] }
 0x620   : > { %20821 = vmatprep.mubr.msk.bf16.mxu0 %vm3175_vm1, %v25203_v47 }
 0x622   : > { %v25207_v56 = vpop.f32.mrb[204].mxu1 }
 0x623   : > { %26515 = vst [vmem:[#allocation53_spill] sm:$0xff] %v25207_v56  ;;  %v25209_v12 = vpop.f32.mrb[205].mxu1  ;;  %v11360_v56 = vld [vmem:[#allocation2 + $0x2d8] sm:$0xff] }
 0x624   : > { %26516 = vst [vmem:[#allocation54_spill] sm:$0xff] %v25209_v12  ;;  %v25211_v51 = vpop.f32.mrb[206].mxu1  ;;  %v25227_v12 = vld [vmem:[#allocation2 + $0x2b0] sm:$0xff] }
 0x625   : > { %26517 = vst [vmem:[#allocation55_spill] sm:$0xff] %v25211_v51  ;;  %v25213_v40 = vpop.f32.mrb[207].mxu1  ;;  %v11359_v51 = vld [vmem:[#allocation2 + $0x2d0] sm:$0xff] }
 0x626   : > { %26518 = vst [vmem:[#allocation56_spill] sm:$0xff] %v25213_v40  ;;  %v25231_v40 = vld [vmem:[#allocation2 + $0x2b8] sm:$0xff] }
 0x627   : > { %20822 = vmatmul.mubr.msk.bf16.gmra.mrb[36].mxu0 %vm3175_vm1, %v25215_v17 }
 0x628   : > { %20825 = vmatprep.mubr.msk.bf16.mxu0 %vm3175_vm1, %v25219_v63 }
 0x62f   : > { %20826 = vmatmul.mubr.msk.bf16.gmra.mrb[40].mxu0 %vm3175_vm1, %v25223_v27 }
 0x630   : > { %20829 = vmatprep.mubr.msk.bf16.mxu0 %vm3175_vm1, %v25227_v12 }
 0x637   : > { %20830 = vmatmul.mubr.msk.bf16.gmra.mrb[44].mxu0 %vm3175_vm1, %v25231_v40 }
 0x638   : > { %20833 = vmatprep.mubr.msk.bf16.mxu0 %vm3175_vm1, %v11359_v51  ;;  %v25257_v51 = vld [vmem:[#allocation2 + $0x308] sm:$0xff] }
 0x63f   : > { %20834 = vmatmul.mubr.msk.bf16.gmra.mrb[48].mxu0 %vm3175_vm1, %v11360_v56  ;;  %v25253_v56 = vld [vmem:[#allocation2 + $0x300] sm:$0xff] }
 0x640   : > { %20837 = vmatprep.mubr.msk.bf16.mxu0 %vm3175_vm1, %v25237_v8 }
 0x647   : > { %20838 = vmatmul.mubr.msk.bf16.gmra.mrb[52].mxu0 %vm3175_vm1, %v25241_v19 }
 0x648   : > { %20841 = vmatprep.mubr.msk.bf16.mxu0 %vm3175_vm1, %v25245_v16 }
 0x64f   : > { %20842 = vmatmul.mubr.msk.bf16.gmra.mrb[56].mxu0 %vm3175_vm1, %v25249_v4 }
 0x650   : > { %20845 = vmatprep.mubr.msk.bf16.mxu0 %vm3175_vm1, %v25253_v56 }
 0x657   : > { %20846 = vmatmul.mubr.msk.bf16.gmra.mrb[60].mxu0 %vm3175_vm1, %v25257_v51 }
 0x658   : > { %20853 = vmatprep.mubr.msk.bf16.mxu0 %vm3175_vm1, %v11834_v33  ;;  %v11837_v33 = vld [vmem:[#allocation2 + $0x78] sm:$0xff] }
 0x65f   : > { %20854 = vmatmul.mubr.msk.bf16.vlgmr.msra.gmra.mrb[0].mxu0 %vm3175_vm1, %v11835_v31  ;;  %v26519_v31 = vld [vmem:[#allocation4_spill] sm:$0xff] }
 0x660   : > { %20918 = vmatpush3.bf16.msra.mxu0 %v25116_v41  ;;  %20857 = vmatprep.mubr.msk.bf16.mxu0 %vm3175_vm1, %v11836_v29  ;;  %v26520_v29 = vld [vmem:[#allocation5_spill] sm:$0xff]  ;;  %v11842_v41 = vld [vmem:[#allocation2 + $0xb0] sm:$0xff] }
 0x661   : > { %20919 = vmatprep.subr.bf16.mxu0 %v22727_v23 }
 0x664   : > { %20920 = vmatpush3.bf16.msra.mxu0 %v22727_v23  ;;  %v11843_v23 = vld [vmem:[#allocation2 + $0xb8] sm:$0xff] }
 0x665   : > { %20985 = vmatprep.subr.bf16.mxu0 %v22728_v28 }
 0x667   : > { %20858 = vmatmul.mubr.msk.bf16.gmra.mrb[4].mxu0 %vm3175_vm1, %v11837_v33  ;;  %v11845_v33 = vld [vmem:[#allocation2 + $0xc8] sm:$0xff] }
 0x668   : > { %20861 = vmatprep.mubr.msk.bf16.mxu0 %vm3175_vm1, %v11838_v49  ;;  %v11846_v49 = vld [vmem:[#allocation2 + $0xd0] sm:$0xff] }
 0x66f   : > { %20862 = vmatmul.mubr.msk.bf16.gmra.mrb[8].mxu0 %vm3175_vm1, %v11839_v24  ;;  %v11847_v24 = vld [vmem:[#allocation2 + $0xd8] sm:$0xff] }
 0x670   : > { %20865 = vmatprep.mubr.msk.bf16.mxu0 %vm3175_vm1, %v26519_v31  ;;  %v26521_v31 = vld [vmem:[#allocation6_spill] sm:$0xff] }
 0x677   : > { %20866 = vmatmul.mubr.msk.bf16.gmra.mrb[12].mxu0 %vm3175_vm1, %v26520_v29  ;;  %v11850_v29 = vld [vmem:[#allocation2 + $0x100] sm:$0xff] }
 0x678   : > { %20869 = vmatprep.mubr.msk.bf16.mxu0 %vm3175_vm1, %v11842_v41  ;;  %v11851_v41 = vld [vmem:[#allocation2 + $0x108] sm:$0xff] }
 0x67f   : > { %20870 = vmatmul.mubr.msk.bf16.gmra.mrb[16].mxu0 %vm3175_vm1, %v11843_v23  ;;  %v11853_v23 = vld [vmem:[#allocation2 + $0x118] sm:$0xff] }
 0x680   : > { %20873 = vmatprep.mubr.msk.bf16.mxu0 %vm3175_vm1, %v11844_v21  ;;  %v11852_v21 = vld [vmem:[#allocation2 + $0x110] sm:$0xff] }
 0x687   : > { %20874 = vmatmul.mubr.msk.bf16.gmra.mrb[20].mxu0 %vm3175_vm1, %v11845_v33  ;;  %v11854_v33 = vld [vmem:[#allocation2 + $0x120] sm:$0xff] }
 0x688   : > { %20877 = vmatprep.mubr.msk.bf16.mxu0 %vm3175_vm1, %v11846_v49  ;;  %v11855_v49 = vld [vmem:[#allocation2 + $0x128] sm:$0xff] }
 0x68f   : > { %20878 = vmatmul.mubr.msk.bf16.gmra.mrb[24].mxu0 %vm3175_vm1, %v11847_v24  ;;  %v25475_v24 = vld [vmem:[#allocation2 + $0x480] sm:$0xff] }
 0x690   : > { %20881 = vmatprep.mubr.msk.bf16.mxu0 %vm3175_vm1, %v26521_v31  ;;  %v25479_v31 = vld [vmem:[#allocation2 + $0x488] sm:$0xff] }
 0x697   : > { %20882 = vmatmul.mubr.msk.bf16.gmra.mrb[28].mxu0 %vm3175_vm1, %v24847_v34  ;;  %v11864_v34 = vld [vmem:[#allocation2 + $0x180] sm:$0xff] }
 0x698   : > { %20885 = vmatprep.mubr.msk.bf16.mxu0 %vm3175_vm1, %v11850_v29  ;;  %v25483_v29 = vld [vmem:[#allocation2 + $0x490] sm:$0xff] }
 0x69f   : > { %20886 = vmatmul.mubr.msk.bf16.gmra.mrb[32].mxu0 %vm3175_vm1, %v11851_v41  ;;  %v25487_v41 = vld [vmem:[#allocation2 + $0x498] sm:$0xff] }
 0x6a0   : > { %20889 = vmatprep.mubr.msk.bf16.mxu0 %vm3175_vm1, %v11852_v21  ;;  %v13331_v21 = vld [vmem:[#allocation2 + $0x500] sm:$0xff] }
 0x6a7   : > { %20890 = vmatmul.mubr.msk.bf16.gmra.mrb[36].mxu0 %vm3175_vm1, %v11853_v23  ;;  %v22733_v23 = vld [vmem:[%s26455_s2 + $0xe8] sm:$0xff]  }
 0x6a8   : > { %20893 = vmatprep.mubr.msk.bf16.mxu0 %vm3175_vm1, %v11854_v33  ;;  %v13332_v33 = vld [vmem:[#allocation2 + $0x508] sm:$0xff] }
 0x6af   : > { %20894 = vmatmul.mubr.msk.bf16.gmra.mrb[40].mxu0 %vm3175_vm1, %v11855_v49  ;;  %v25496_v49 = vld [vmem:[#allocation2 + $0x510] sm:$0xff] }
 0x6b0   : > { %20897 = vmatprep.mubr.msk.bf16.mxu0 %vm3175_vm1, %v24872_v37  ;;  %v11865_v37 = vld [vmem:[#allocation2 + $0x188] sm:$0xff] }
 0x6b7   : > { %20898 = vmatmul.mubr.msk.bf16.gmra.mrb[44].mxu0 %vm3175_vm1, %v24878_v11  ;;  %v22729_v11 = vld [vmem:[%s26455_s2 + $0xc8] sm:$0xff]  }
 0x6b8   : > { %20901 = vmatprep.mubr.msk.bf16.mxu0 %vm3175_vm1, %v25071_v9  ;;  %v22730_v9 = vld [vmem:[%s26455_s2 + $0xd0] sm:$0xff]  }
 0x6bf   : > { %20902 = vmatmul.mubr.msk.bf16.gmra.mrb[48].mxu0 %vm3175_vm1, %v25083_v52  ;;  %v12340_v52 = vld [vmem:[#allocation2 + $0x228] sm:$0xff] }
 0x6c0   : > { %20905 = vmatprep.mubr.msk.bf16.mxu0 %vm3175_vm1, %v25087_v45  ;;  %v25431_v45 = vld [vmem:[#allocation2 + $0x3f0] sm:$0xff] }
 0x6c7   : > { %20906 = vmatmul.mubr.msk.bf16.gmra.mrb[52].mxu0 %vm3175_vm1, %v25091_v26  ;;  %v25435_v26 = vld [vmem:[#allocation2 + $0x3f8] sm:$0xff] }
 0x6c8   : > { %20909 = vmatprep.mubr.msk.bf16.mxu0 %vm3175_vm1, %v25095_v5  ;;  %v12848_v5 = vld [vmem:[#allocation2 + $0x410] sm:$0xff] }
 0x6cf   : > { %20910 = vmatmul.mubr.msk.bf16.gmra.mrb[56].mxu0 %vm3175_vm1, %v25099_v3  ;;  %v12849_v3 = vld [vmem:[#allocation2 + $0x418] sm:$0xff] }
 0x6d0   : > { %20913 = vmatprep.mubr.msk.bf16.mxu0 %vm3175_vm1, %v11864_v34  ;;  %v25504_v34 = vld [vmem:[%s26455_s2 + $0xf0] sm:$0xff]  }
 0x6d7   : > { %20914 = vmatmul.mubr.msk.bf16.gmra.mrb[60].mxu0 %vm3175_vm1, %v11865_v37  ;;  %v25507_v37 = vld [vmem:[#allocation2 + $0x518] sm:$0xff] }
 0x6d8   : > { %20921 = vmatprep.mubr.msk.bf16.mxu0 %vm3175_vm1, %v25108_v36  ;;  %v25441_v36 = vld [vmem:[#allocation2 + $0x420] sm:$0xff] }
 0x6df   : > { %20922 = vmatmul.mubr.msk.bf16.vlgmr.msra.gmra.mrb[0].mxu0 %vm3175_vm1, %v25119_v57  ;;  %v25445_v57 = vld [vmem:[#allocation2 + $0x428] sm:$0xff] }
 0x6e0   : > { %20986 = vmatpush3.bf16.msra.mxu0 %v22728_v28  ;;  %20925 = vmatprep.mubr.msk.bf16.mxu0 %vm3175_vm1, %v25123_v32  ;;  %v12339_v28 = vld [vmem:[#allocation2 + $0x220] sm:$0xff]  ;;  %v25449_v32 = vld [vmem:[#allocation2 + $0x430] sm:$0xff] }
 0x6e1   : > { %20987 = vmatprep.subr.bf16.mxu0 %v22729_v11 }
 0x6e4   : > { %20988 = vmatpush3.bf16.msra.mxu0 %v22729_v11  ;;  %v25511_v11 = vld [vmem:[#allocation2 + $0x520] sm:$0xff] }
 0x6e5   : > { %21053 = vmatprep.subr.bf16.mxu0 %v22730_v9 }
 0x6e7   : > { %20926 = vmatmul.mubr.msk.bf16.gmra.mrb[4].mxu0 %vm3175_vm1, %v25127_v59  ;;  %v25453_v59 = vld [vmem:[#allocation2 + $0x438] sm:$0xff] }
 0x6e8   : > { %20929 = vmatprep.mubr.msk.bf16.mxu0 %vm3175_vm1, %v25131_v13  ;;  %v25457_v13 = vld [vmem:[#allocation2 + $0x440] sm:$0xff] }
 0x6ef   : > { %20930 = vmatmul.mubr.msk.bf16.gmra.mrb[8].mxu0 %vm3175_vm1, %v25135_v22  ;;  %v25461_v22 = vld [vmem:[#allocation2 + $0x448] sm:$0xff] }
 0x6f0   : > { %20933 = vmatprep.mubr.msk.bf16.mxu0 %vm3175_vm1, %v12339_v28  ;;  %v25519_v28 = vld [vmem:[#allocation2 + $0x530] sm:$0xff] }
 0x6f7   : > { %20934 = vmatmul.mubr.msk.bf16.gmra.mrb[12].mxu0 %vm3175_vm1, %v12340_v52  ;;  %v25523_v52 = vld [vmem:[#allocation2 + $0x538] sm:$0xff] }
 0x6f8   : > { %20937 = vmatprep.mubr.msk.bf16.mxu0 %vm3175_vm1, %v25149_v53  ;;  %v25415_v53 = vld [vmem:[#allocation2 + $0x3d0] sm:$0xff] }
 0x6ff   : > { %20938 = vmatmul.mubr.msk.bf16.gmra.mrb[16].mxu0 %vm3175_vm1, %v25161_v35  ;;  %v25427_v35 = vld [vmem:[#allocation2 + $0x3e8] sm:$0xff] }
 0x700   : > { %20941 = vmatprep.mubr.msk.bf16.mxu0 %vm3175_vm1, %v25165_v25  ;;  %v25419_v25 = vld [vmem:[#allocation2 + $0x3d8] sm:$0xff] }
 0x707   : > { %20942 = vmatmul.mubr.msk.bf16.gmra.mrb[20].mxu0 %vm3175_vm1, %v25177_v48  ;;  %v12856_v48 = vld [vmem:[#allocation2 + $0x460] sm:$0xff] }
 0x708   : > { %20945 = vmatprep.mubr.msk.bf16.mxu0 %vm3175_vm1, %v24884_v55  ;;  %v12363_v55 = vld [vmem:[#allocation2 + $0x310] sm:$0xff] }
 0x70f   : > { %20946 = vmatmul.mubr.msk.bf16.gmra.mrb[24].mxu0 %vm3175_vm1, %v24890_v54  ;;  %v12364_v54 = vld [vmem:[#allocation2 + $0x318] sm:$0xff] }
 0x710   : > { %20949 = vmatprep.mubr.msk.bf16.mxu0 %vm3175_vm1, %v24896_v39  ;;  %v12832_v39 = vld [vmem:[#allocation2 + $0x370] sm:$0xff] }
 0x717   : > { %20950 = vmatmul.mubr.msk.bf16.gmra.mrb[28].mxu0 %vm3175_vm1, %v24902_v42  ;;  %v22731_v42 = vld [vmem:[%s26455_s2 + $0xd8] sm:$0xff]  }
 0x718   : > { %20953 = vmatprep.mubr.msk.bf16.mxu0 %vm3175_vm1, %v25203_v47  ;;  %v25409_v47 = vld [vmem:[#allocation2 + $0x3a8] sm:$0xff] }
 0x71f   : > { %20954 = vmatmul.mubr.msk.bf16.gmra.mrb[32].mxu0 %vm3175_vm1, %v25215_v17  ;;  %v25423_v17 = vld [vmem:[#allocation2 + $0x3e0] sm:$0xff] }
 0x720   : > { %20957 = vmatprep.mubr.msk.bf16.mxu0 %vm3175_vm1, %v25219_v63  ;;  %v25401_v63 = vld [vmem:[#allocation2 + $0x398] sm:$0xff] }
 0x727   : > { %20958 = vmatmul.mubr.msk.bf16.gmra.mrb[36].mxu0 %vm3175_vm1, %v25223_v27  ;;  %v12857_v27 = vld [vmem:[#allocation2 + $0x468] sm:$0xff] }
 0x728   : > { %20961 = vmatprep.mubr.msk.bf16.mxu0 %vm3175_vm1, %v25227_v12  ;;  %v12840_v12 = vld [vmem:[#allocation2 + $0x3c0] sm:$0xff] }
 0x72f   : > { %20962 = vmatmul.mubr.msk.bf16.gmra.mrb[40].mxu0 %vm3175_vm1, %v25231_v40  ;;  %v12841_v40 = vld [vmem:[#allocation2 + $0x3c8] sm:$0xff] }
 0x730   : > { %20965 = vmatprep.mubr.msk.bf16.mxu0 %vm3175_vm1, %v24925_v50  ;;  %v12833_v50 = vld [vmem:[#allocation2 + $0x378] sm:$0xff] }
 0x737   : > { %20966 = vmatmul.mubr.msk.bf16.gmra.mrb[44].mxu0 %vm3175_vm1, %v24931_v44  ;;  %v25383_v44 = vld [vmem:[#allocation2 + $0x380] sm:$0xff] }
 0x738   : > { %20969 = vmatprep.mubr.msk.bf16.mxu0 %vm3175_vm1, %v25237_v8  ;;  %v25405_v8 = vld [vmem:[#allocation2 + $0x3a0] sm:$0xff] }
 0x73f   : > { %20970 = vmatmul.mubr.msk.bf16.gmra.mrb[48].mxu0 %vm3175_vm1, %v25241_v19  ;;  %v25397_v19 = vld [vmem:[#allocation2 + $0x390] sm:$0xff] }
 0x740   : > { %20973 = vmatprep.mubr.msk.bf16.mxu0 %vm3175_vm1, %v25245_v16  ;;  %v25393_v16 = vld [vmem:[#allocation2 + $0x388] sm:$0xff] }
 0x747   : > { %20974 = vmatmul.mubr.msk.bf16.gmra.mrb[52].mxu0 %vm3175_vm1, %v25249_v4  ;;  %v25390_v4 = vld [vmem:[%s26455_s2 + $0xe0] sm:$0xff]  }
 0x748   : > { %20977 = vmatprep.mubr.msk.bf16.mxu0 %vm3175_vm1, %v25253_v56  ;;  %v25467_v56 = vld [vmem:[#allocation2 + $0x470] sm:$0xff] }
 0x74f   : > { %20978 = vmatmul.mubr.msk.bf16.gmra.mrb[56].mxu0 %vm3175_vm1, %v25257_v51  ;;  %v25471_v51 = vld [vmem:[#allocation2 + $0x478] sm:$0xff] }
 0x750   : > { %20981 = vmatprep.mubr.msk.bf16.mxu0 %vm3175_vm1, %v12363_v55  ;;  %v13339_v55 = vld [vmem:[#allocation2 + $0x550] sm:$0xff] }
 0x757   : > { %20982 = vmatmul.mubr.msk.bf16.gmra.mrb[60].mxu0 %vm3175_vm1, %v12364_v54  ;;  %v13340_v54 = vld [vmem:[#allocation2 + $0x558] sm:$0xff] }
 0x758   : > { %20989 = vmatprep.mubr.msk.bf16.mxu0 %vm3175_vm1, %v12832_v39  ;;  %v25529_v39 = vld [vmem:[#allocation2 + $0x560] sm:$0xff] }
 0x75f   : > { %20990 = vmatmul.mubr.msk.bf16.vlgmr.msra.gmra.mrb[0].mxu0 %vm3175_vm1, %v12833_v50  ;;  %v25537_v50 = vld [vmem:[#allocation2 + $0x570] sm:$0xff] }
 0x760   : > { %21054 = vmatpush3.bf16.msra.mxu0 %v22730_v9  ;;  %20993 = vmatprep.mubr.msk.bf16.mxu0 %vm3175_vm1, %v25383_v44  ;;  %v25515_v9 = vld [vmem:[#allocation2 + $0x528] sm:$0xff] }
 0x761   : > { %21055 = vmatprep.subr.bf16.mxu0 %v22731_v42 }
 0x764   : > { %21056 = vmatpush3.bf16.msra.mxu0 %v22731_v42  ;;  %v25533_v42 = vld [vmem:[#allocation2 + $0x568] sm:$0xff] }
 0x765   : > { %21121 = vmatprep.subr.bf16.mxu0 %v25390_v4 }
 0x767   : > { %20994 = vmatmul.mubr.msk.bf16.gmra.mrb[4].mxu0 %vm3175_vm1, %v25393_v16 }
 0x768   : > { %20997 = vmatprep.mubr.msk.bf16.mxu0 %vm3175_vm1, %v25397_v19 }
 0x76f   : > { %20998 = vmatmul.mubr.msk.bf16.gmra.mrb[8].mxu0 %vm3175_vm1, %v25401_v63 }
 0x770   : > { %21001 = vmatprep.mubr.msk.bf16.mxu0 %vm3175_vm1, %v25405_v8 }
 0x777   : > { %21002 = vmatmul.mubr.msk.bf16.gmra.mrb[12].mxu0 %vm3175_vm1, %v25409_v47 }
 0x778   : > { %21005 = vmatprep.mubr.msk.bf16.mxu0 %vm3175_vm1, %v12840_v12  ;;  %v25545_v12 = vld [vmem:[#allocation2 + $0x580] sm:$0xff] }
 0x77f   : > { %21006 = vmatmul.mubr.msk.bf16.gmra.mrb[16].mxu0 %vm3175_vm1, %v12841_v40  ;;  %v25549_v40 = vld [vmem:[#allocation2 + $0x588] sm:$0xff] }
 0x780   : > { %21009 = vmatprep.mubr.msk.bf16.mxu0 %vm3175_vm1, %v25415_v53 }
 0x787   : > { %21010 = vmatmul.mubr.msk.bf16.gmra.mrb[20].mxu0 %vm3175_vm1, %v25419_v25 }
 0x788   : > { %21013 = vmatprep.mubr.msk.bf16.mxu0 %vm3175_vm1, %v25423_v17 }
 0x78f   : > { %21014 = vmatmul.mubr.msk.bf16.gmra.mrb[24].mxu0 %vm3175_vm1, %v25427_v35 }
 0x790   : > { %21017 = vmatprep.mubr.msk.bf16.mxu0 %vm3175_vm1, %v25431_v45 }
 0x797   : > { %21018 = vmatmul.mubr.msk.bf16.gmra.mrb[28].mxu0 %vm3175_vm1, %v25435_v26 }
 0x798   : > { %21021 = vmatprep.mubr.msk.bf16.mxu0 %vm3175_vm1, %v12848_v5  ;;  %v13347_v5 = vld [vmem:[#allocation2 + $0x5a0] sm:$0xff] }
 0x79f   : > { %21022 = vmatmul.mubr.msk.bf16.gmra.mrb[32].mxu0 %vm3175_vm1, %v12849_v3  ;;  %v13348_v3 = vld [vmem:[#allocation2 + $0x5a8] sm:$0xff] }
 0x7a0   : > { %21025 = vmatprep.mubr.msk.bf16.mxu0 %vm3175_vm1, %v25441_v36 }
 0x7a7   : > { %21026 = vmatmul.mubr.msk.bf16.gmra.mrb[36].mxu0 %vm3175_vm1, %v25445_v57 }
 0x7a8   : > { %21029 = vmatprep.mubr.msk.bf16.mxu0 %vm3175_vm1, %v25449_v32 }
 0x7af   : > { %21030 = vmatmul.mubr.msk.bf16.gmra.mrb[40].mxu0 %vm3175_vm1, %v25453_v59 }
 0x7b0   : > { %21033 = vmatprep.mubr.msk.bf16.mxu0 %vm3175_vm1, %v25457_v13 }
 0x7b7   : > { %21034 = vmatmul.mubr.msk.bf16.gmra.mrb[44].mxu0 %vm3175_vm1, %v25461_v22 }
 0x7b8   : > { %21037 = vmatprep.mubr.msk.bf16.mxu0 %vm3175_vm1, %v12856_v48  ;;  %v25555_v48 = vld [vmem:[#allocation2 + $0x5b0] sm:$0xff] }
 0x7bf   : > { %21038 = vmatmul.mubr.msk.bf16.gmra.mrb[48].mxu0 %vm3175_vm1, %v12857_v27  ;;  %v25559_v27 = vld [vmem:[#allocation2 + $0x5b8] sm:$0xff] }
 0x7c0   : > { %21041 = vmatprep.mubr.msk.bf16.mxu0 %vm3175_vm1, %v25467_v56 }
 0x7c7   : > { %21042 = vmatmul.mubr.msk.bf16.gmra.mrb[52].mxu0 %vm3175_vm1, %v25471_v51 }
 0x7c8   : > { %21045 = vmatprep.mubr.msk.bf16.mxu0 %vm3175_vm1, %v25475_v24 }
 0x7cf   : > { %21046 = vmatmul.mubr.msk.bf16.gmra.mrb[56].mxu0 %vm3175_vm1, %v25479_v31 }
 0x7d0   : > { %21049 = vmatprep.mubr.msk.bf16.mxu0 %vm3175_vm1, %v25483_v29 }
 0x7d7   : > { %21050 = vmatmul.mubr.msk.bf16.gmra.mrb[60].mxu0 %vm3175_vm1, %v25487_v41 }
 0x7d8   : > { %21057 = vmatprep.mubr.msk.bf16.mxu0 %vm3175_vm1, %v13331_v21  ;;  %v25563_v21 = vld [vmem:[#allocation2 + $0x5c0] sm:$0xff] }
 0x7df   : > { %21058 = vmatmul.mubr.msk.bf16.vlgmr.msra.gmra.mrb[0].mxu0 %vm3175_vm1, %v13332_v33  ;;  %v25571_v33 = vld [vmem:[#allocation2 + $0x5d0] sm:$0xff] }
 0x7e0   : > { %21122 = vmatpush3.bf16.msra.mxu0 %v25390_v4  ;;  %21061 = vmatprep.mubr.msk.bf16.mxu0 %vm3175_vm1, %v25496_v49  ;;  %v25541_v4 = vld [vmem:[#allocation2 + $0x578] sm:$0xff] }
 0x7e1   : > { %21123 = vmatprep.subr.bf16.mxu0 %v22733_v23 }
 0x7e4   : > { %21124 = vmatpush3.bf16.msra.mxu0 %v22733_v23  ;;  %v25567_v23 = vld [vmem:[#allocation2 + $0x5c8] sm:$0xff] }
 0x7e5   : > { %21189 = vmatprep.subr.bf16.mxu0 %v25504_v34 }
 0x7e7   : > { %21062 = vmatmul.mubr.msk.bf16.gmra.mrb[4].mxu0 %vm3175_vm1, %v25507_v37 }
 0x7e8   : > { %21065 = vmatprep.mubr.msk.bf16.mxu0 %vm3175_vm1, %v25511_v11 }
 0x7ef   : > { %21066 = vmatmul.mubr.msk.bf16.gmra.mrb[8].mxu0 %vm3175_vm1, %v25515_v9 }
 0x7f0   : > { %21069 = vmatprep.mubr.msk.bf16.mxu0 %vm3175_vm1, %v25519_v28 }
 0x7f7   : > { %21070 = vmatmul.mubr.msk.bf16.gmra.mrb[12].mxu0 %vm3175_vm1, %v25523_v52 }
 0x7f8   : > { %21073 = vmatprep.mubr.msk.bf16.mxu0 %vm3175_vm1, %v13339_v55  ;;  %v13355_v55 = vld [vmem:[#allocation2 + $0x5f0] sm:$0xff] }
 0x7ff   : > { %21074 = vmatmul.mubr.msk.bf16.gmra.mrb[16].mxu0 %vm3175_vm1, %v13340_v54  ;;  %v25575_v54 = vld [vmem:[#allocation2 + $0x5d8] sm:$0xff] }
 0x800   : > { %21077 = vmatprep.mubr.msk.bf16.mxu0 %vm3175_vm1, %v25529_v39 }
 0x807   : > { %21078 = vmatmul.mubr.msk.bf16.gmra.mrb[20].mxu0 %vm3175_vm1, %v25533_v42 }
 0x808   : > { %21081 = vmatprep.mubr.msk.bf16.mxu0 %vm3175_vm1, %v25537_v50 }
 0x80f   : > { %21082 = vmatmul.mubr.msk.bf16.gmra.mrb[24].mxu0 %vm3175_vm1, %v25541_v4 }
 0x810   : > { %21085 = vmatprep.mubr.msk.bf16.mxu0 %vm3175_vm1, %v25545_v12 }
 0x817   : > { %21086 = vmatmul.mubr.msk.bf16.gmra.mrb[28].mxu0 %vm3175_vm1, %v25549_v40 }
 0x818   : > { %21089 = vmatprep.mubr.msk.bf16.mxu0 %vm3175_vm1, %v13347_v5  ;;  %v25580_v5 = vld [vmem:[#allocation2 + $0x600] sm:$0xff] }
 0x81f   : > { %21090 = vmatmul.mubr.msk.bf16.gmra.mrb[32].mxu0 %vm3175_vm1, %v13348_v3  ;;  %v13356_v3 = vld [vmem:[#allocation2 + $0x5f8] sm:$0xff] }
 0x820   : > { %21093 = vmatprep.mubr.msk.bf16.mxu0 %vm3175_vm1, %v25555_v48 }
 0x827   : > { %21094 = vmatmul.mubr.msk.bf16.gmra.mrb[36].mxu0 %vm3175_vm1, %v25559_v27 }
 0x828   : > { %21097 = vmatprep.mubr.msk.bf16.mxu0 %vm3175_vm1, %v25563_v21 }
 0x82f   : > { %21098 = vmatmul.mubr.msk.bf16.gmra.mrb[40].mxu0 %vm3175_vm1, %v25567_v23 }
 0x830   : > { %21101 = vmatprep.mubr.msk.bf16.mxu0 %vm3175_vm1, %v25571_v33 }
 0x837   : > { %21102 = vmatmul.mubr.msk.bf16.gmra.mrb[44].mxu0 %vm3175_vm1, %v25575_v54 }
 0x838   : > { %21105 = vmatprep.mubr.msk.bf16.mxu0 %vm3175_vm1, %v13355_v55  ;;  %v25595_v55 = vld [vmem:[#allocation2 + $0x618] sm:$0xff] }
 0x83f   : > { %21106 = vmatmul.mubr.msk.bf16.gmra.mrb[48].mxu0 %vm3175_vm1, %v13356_v3  ;;  %v25601_v3 = vld [vmem:[#allocation2 + $0x628] sm:$0xff] }
 0x840   : > { %21109 = vmatprep.mubr.msk.bf16.mxu0 %vm3175_vm1, %v25580_v5 }
 0x847   : > { %21110 = vmatmul.mubr.msk.bf16.gmra.mrb[52].mxu0 %vm3175_vm1, %v25587_v30 }
 0x848   : > { %21113 = vmatprep.mubr.msk.bf16.mxu0 %vm3175_vm1, %v25585_v20 }
 0x84f   : > { %21114 = vmatmul.mubr.msk.bf16.gmra.mrb[56].mxu0 %vm3175_vm1, %v25595_v55 }
 0x850   : > { %21117 = vmatprep.mubr.msk.bf16.mxu0 %vm3175_vm1, %v25593_v18 }
 0x857   : > { %21118 = vmatmul.mubr.msk.bf16.gmra.mrb[60].mxu0 %vm3175_vm1, %v25601_v3 }
 0x858   : > { %21125 = vmatprep.mubr.msk.bf16.mxu0 %vm3175_vm1, %v25383_v44  ;;  %v13836_v44 = vld [vmem:[#allocation2 + $0x3b0] sm:$0xff] }
 0x85f   : > { %21126 = vmatmul.mubr.msk.bf16.vlgmr.msra.gmra.mrb[0].mxu0 %vm3175_vm1, %v25393_v16  ;;  %v13837_v16 = vld [vmem:[#allocation2 + $0x3b8] sm:$0xff] }
 0x860   : > { %21190 = vmatpush3.bf16.msra.mxu0 %v25504_v34  ;;  %21129 = vmatprep.mubr.msk.bf16.mxu0 %vm3175_vm1, %v25397_v19  ;;  %v13845_v19 = vld [vmem:[#allocation2 + $0x408] sm:$0xff] }
 0x861   : > { %21191 = vmatprep.subr.bf16.mxu0 %v22735_v2 }
 0x864   : > { %21192 = vmatpush3.bf16.msra.mxu0 %v22735_v2  ;;  %v13844_v2 = vld [vmem:[#allocation2 + $0x400] sm:$0xff] }
 0x867   : > { %21130 = vmatmul.mubr.msk.bf16.gmra.mrb[4].mxu0 %vm3175_vm1, %v25401_v63  ;;  %v13852_v63 = vld [vmem:[#allocation2 + $0x450] sm:$0xff] }
 0x868   : > { %21133 = vmatprep.mubr.msk.bf16.mxu0 %vm3175_vm1, %v25405_v8  ;;  %v13853_v8 = vld [vmem:[#allocation2 + $0x458] sm:$0xff] }
 0x86f   : > { %21134 = vmatmul.mubr.msk.bf16.gmra.mrb[8].mxu0 %vm3175_vm1, %v25409_v47  ;;  %v13860_v47 = vld [vmem:[#allocation2 + $0x4a0] sm:$0xff] }
 0x870   : > { %21137 = vmatprep.mubr.msk.bf16.mxu0 %vm3175_vm1, %v13836_v44 }
 0x877   : > { %21138 = vmatmul.mubr.msk.bf16.gmra.mrb[12].mxu0 %vm3175_vm1, %v13837_v16 }
 0x878   : > { %21141 = vmatprep.mubr.msk.bf16.mxu0 %vm3175_vm1, %v25415_v53  ;;  %v13861_v53 = vld [vmem:[#allocation2 + $0x4a8] sm:$0xff] }
 0x87f   : > { %21142 = vmatmul.mubr.msk.bf16.gmra.mrb[16].mxu0 %vm3175_vm1, %v25419_v25  ;;  %v22736_v25 = vld [vmem:[%s26456_s3 + $0x20] sm:$0xff]  }
 0x880   : > { %21145 = vmatprep.mubr.msk.bf16.mxu0 %vm3175_vm1, %v25423_v17  ;;  %v22737_v17 = vld [vmem:[%s26456_s3 + $0x28] sm:$0xff]   ;;  %21257 = vmatprep.subr.bf16.mxu1 %v22736_v25 }
 0x881   : > { %21258 = vmatpush3.bf16.msra.mxu1 %v22736_v25 }
 0x882   : > { %21259 = vmatprep.subr.bf16.mxu1 %v22737_v17 }
 0x885   : > { %21260 = vmatpush3.bf16.msra.mxu1 %v22737_v17 }
 0x887   : > { %21146 = vmatmul.mubr.msk.bf16.gmra.mrb[20].mxu0 %vm3175_vm1, %v25427_v35  ;;  %v22738_v35 = vld [vmem:[%s26456_s3 + $0x30] sm:$0xff]  }
 0x888   : > { %21149 = vmatprep.mubr.msk.bf16.mxu0 %vm3175_vm1, %v25431_v45  ;;  %21261 = vmatprep.subr.bf16.mxu1 %v22738_v35  ;;  %v14335_v45 = vld [vmem:[#allocation2 + $0x540] sm:$0xff] }
 0x889   : > { %21262 = vmatpush3.bf16.msra.mxu1 %v22738_v35 }
 0x88f   : > { %21150 = vmatmul.mubr.msk.bf16.gmra.mrb[24].mxu0 %vm3175_vm1, %v25435_v26  ;;  %v14336_v26 = vld [vmem:[#allocation2 + $0x548] sm:$0xff] }
 0x890   : > { %21153 = vmatprep.mubr.msk.bf16.mxu0 %vm3175_vm1, %v13844_v2 }
 0x897   : > { %21154 = vmatmul.mubr.msk.bf16.gmra.mrb[28].mxu0 %vm3175_vm1, %v13845_v19 }
 0x898   : > { %21157 = vmatprep.mubr.msk.bf16.mxu0 %vm3175_vm1, %v25441_v36  ;;  %v14343_v36 = vld [vmem:[#allocation2 + $0x590] sm:$0xff] }
 0x89f   : > { %21158 = vmatmul.mubr.msk.bf16.gmra.mrb[32].mxu0 %vm3175_vm1, %v25445_v57  ;;  %v14344_v57 = vld [vmem:[#allocation2 + $0x598] sm:$0xff] }
 0x8a0   : > { %21161 = vmatprep.mubr.msk.bf16.mxu0 %vm3175_vm1, %v25449_v32  ;;  %v14351_v32 = vld [vmem:[#allocation2 + $0x5e0] sm:$0xff] }
 0x8a7   : > { %21162 = vmatmul.mubr.msk.bf16.gmra.mrb[36].mxu0 %vm3175_vm1, %v25453_v59  ;;  %v14352_v59 = vld [vmem:[#allocation2 + $0x5e8] sm:$0xff] }
 0x8a8   : > { %21165 = vmatprep.mubr.msk.bf16.mxu0 %vm3175_vm1, %v25457_v13  ;;  %v22739_v13 = vld [vmem:[%s26456_s3 + $0x38] sm:$0xff]  }
 0x8a9   : > { %21263 = vmatprep.subr.bf16.mxu1 %v22739_v13 }
 0x8aa   : > { %21264 = vmatpush3.bf16.msra.mxu1 %v22739_v13 }
 0x8af   : > { %21166 = vmatmul.mubr.msk.bf16.gmra.mrb[40].mxu0 %vm3175_vm1, %v25461_v22  ;;  %v25732_v22 = vld [vmem:[%s26456_s3] sm:$0xff]  }
 0x8b0   : > { %21169 = vmatprep.mubr.msk.bf16.mxu0 %vm3175_vm1, %v13852_v63  ;;  %21269 = vmatprep.subr.bf16.mxu1 %v25732_v22 }
 0x8b7   : > { %21170 = vmatmul.mubr.msk.bf16.gmra.mrb[44].mxu0 %vm3175_vm1, %v13853_v8 }
 0x8b8   : > { %21173 = vmatprep.mubr.msk.bf16.mxu0 %vm3175_vm1, %v25467_v56 }
 0x8bf   : > { %21174 = vmatmul.mubr.msk.bf16.gmra.mrb[48].mxu0 %vm3175_vm1, %v25471_v51 }
 0x8c0   : > { %21177 = vmatprep.mubr.msk.bf16.mxu0 %vm3175_vm1, %v25475_v24 }
 0x8c7   : > { %21178 = vmatmul.mubr.msk.bf16.gmra.mrb[52].mxu0 %vm3175_vm1, %v25479_v31 }
 0x8c8   : > { %21181 = vmatprep.mubr.msk.bf16.mxu0 %vm3175_vm1, %v25483_v29 }
 0x8cf   : > { %21182 = vmatmul.mubr.msk.bf16.gmra.mrb[56].mxu0 %vm3175_vm1, %v25487_v41 }
 0x8d0   : > { %21185 = vmatprep.mubr.msk.bf16.mxu0 %vm3175_vm1, %v13860_v47 }
 0x8d7   : > { %21186 = vmatmul.mubr.msk.bf16.gmra.mrb[60].mxu0 %vm3175_vm1, %v13861_v53 }
 0x8d8   : > { %21193 = vmatprep.mubr.msk.bf16.mxu0 %vm3175_vm1, %v25496_v49 }
 0x8df   : > { %21194 = vmatmul.mubr.msk.bf16.vlgmr.msra.gmra.mrb[0].mxu0 %vm3175_vm1, %v25507_v37 }
 0x8e0   : > { %21197 = vmatprep.mubr.msk.bf16.mxu0 %vm3175_vm1, %v25511_v11 }
 0x8e7   : > { %21198 = vmatmul.mubr.msk.bf16.gmra.mrb[4].mxu0 %vm3175_vm1, %v25515_v9 }
 0x8e8   : > { %21201 = vmatprep.mubr.msk.bf16.mxu0 %vm3175_vm1, %v25519_v28 }
 0x8ef   : > { %21202 = vmatmul.mubr.msk.bf16.gmra.mrb[8].mxu0 %vm3175_vm1, %v25523_v52 }
 0x8f0   : > { %21205 = vmatprep.mubr.msk.bf16.mxu0 %vm3175_vm1, %v14335_v45 }
 0x8f7   : > { %21206 = vmatmul.mubr.msk.bf16.gmra.mrb[12].mxu0 %vm3175_vm1, %v14336_v26 }
 0x8f8   : > { %21209 = vmatprep.mubr.msk.bf16.mxu0 %vm3175_vm1, %v25529_v39 }
 0x8ff   : > { %21210 = vmatmul.mubr.msk.bf16.gmra.mrb[16].mxu0 %vm3175_vm1, %v25533_v42 }
 0x900   : > { %21213 = vmatprep.mubr.msk.bf16.mxu0 %vm3175_vm1, %v25537_v50 }
 0x907   : > { %21214 = vmatmul.mubr.msk.bf16.gmra.mrb[20].mxu0 %vm3175_vm1, %v25541_v4 }
 0x908   : > { %21217 = vmatprep.mubr.msk.bf16.mxu0 %vm3175_vm1, %v25545_v12 }
 0x90f   : > { %21218 = vmatmul.mubr.msk.bf16.gmra.mrb[24].mxu0 %vm3175_vm1, %v25549_v40 }
 0x910   : > { %21221 = vmatprep.mubr.msk.bf16.mxu0 %vm3175_vm1, %v14343_v36 }
 0x917   : > { %21222 = vmatmul.mubr.msk.bf16.gmra.mrb[28].mxu0 %vm3175_vm1, %v14344_v57 }
 0x918   : > { %21225 = vmatprep.mubr.msk.bf16.mxu0 %vm3175_vm1, %v25555_v48 }
 0x91f   : > { %21226 = vmatmul.mubr.msk.bf16.gmra.mrb[32].mxu0 %vm3175_vm1, %v25559_v27 }
 0x920   : > { %21229 = vmatprep.mubr.msk.bf16.mxu0 %vm3175_vm1, %v25563_v21 }
 0x927   : > { %21230 = vmatmul.mubr.msk.bf16.gmra.mrb[36].mxu0 %vm3175_vm1, %v25567_v23 }
 0x928   : > { %21233 = vmatprep.mubr.msk.bf16.mxu0 %vm3175_vm1, %v25571_v33 }
 0x92f   : > { %21234 = vmatmul.mubr.msk.bf16.gmra.mrb[40].mxu0 %vm3175_vm1, %v25575_v54 }
 0x930   : > { %21237 = vmatprep.mubr.msk.bf16.mxu0 %vm3175_vm1, %v14351_v32 }
 0x937   : > { %21238 = vmatmul.mubr.msk.bf16.gmra.mrb[44].mxu0 %vm3175_vm1, %v14352_v59 }
 0x938   : > { %21241 = vmatprep.mubr.msk.bf16.mxu0 %vm3175_vm1, %v25580_v5 }
 0x93f   : > { %21242 = vmatmul.mubr.msk.bf16.gmra.mrb[48].mxu0 %vm3175_vm1, %v25587_v30  ;;  %v14359_v30 = vld [vmem:[#allocation2 + $0x630] sm:$0xff] }
 0x940   : > { %21245 = vmatprep.mubr.msk.bf16.mxu0 %vm3175_vm1, %v25585_v20  ;;  %v14360_v20 = vld [vmem:[#allocation2 + $0x638] sm:$0xff] }
 0x947   : > { %21246 = vmatmul.mubr.msk.bf16.gmra.mrb[52].mxu0 %vm3175_vm1, %v25595_v55 }
 0x948   : > { %21249 = vmatprep.mubr.msk.bf16.mxu0 %vm3175_vm1, %v25593_v18  ;;  %v25742_v18 = vld [vmem:[%s26459_s6] ss:$0 sm:$0xff] }
 0x94f   : > { %21250 = vmatmul.mubr.msk.bf16.gmra.mrb[56].mxu0 %vm3175_vm1, %v25601_v3 }
 0x950   : > { %21253 = vmatprep.mubr.msk.bf16.mxu0 %vm3175_vm1, %v14359_v30 }
 0x957   : > { %21254 = vmatmul.mubr.msk.bf16.gmra.mrb[60].mxu0 %vm3175_vm1, %v14360_v20 }
 0x9b2   : > { %v21195_v56 = vpop.f32.mrb[0].mxu0 }
 0x9b3   : > { %v21453_v51 = vadd.f32 %v21195_v56, %v24967_v14  ;;  %v14508_v24 = vpop.f32.mrb[1].mxu0 }
 0x9b4   : > { %v21454_v31 = vadd.f32 %v14508_v24, %v24969_v43  ;;  %v21196_v29 = vpop.f32.mrb[2].mxu0 }
 0x9b5   : > { %v14836_v41 = vadd.f32 %v21453_v51, %v25742_v18  ;;  %v21455_v49 = vadd.f32 %v21196_v29, %v24971_v46  ;;  %v14511_v34 = vpop.f32.mrb[3].mxu0 }
 0x9b6   : > { %v14834_v37 = vadd.f32 %v21454_v31, %v25742_v18  ;;  %v21456_v11 = vadd.f32 %v14511_v34, %v24973_v58 }
 0x9b7   : > { %v14900_v9 = vmul.f32 0.1, %v14836_v41  ;;  %v14837_v28 = vadd.f32 %v21455_v49, %v25742_v18  ;;  %v22742_v49 = vld [vmem:[%s26456_s3 + $0x10] sm:$0xff]  }
 0x9b8   : > { %v14898_v52 = vmul.f32 0.1, %v14834_v37  ;;  %v14835_v39 = vadd.f32 %v21456_v11, %v25742_v18 }
 0x9b9   : > { %v14901_v14 = vmul.f32 0.1, %v14837_v28  ;;  %v14964_v43 = vmax.f32 %v14836_v41, %v14900_v9 }
 0x9ba   : > { %v14899_v42 = vmul.f32 0.1, %v14835_v39  ;;  %v21199_v50 = vpop.f32.mrb[4].mxu0  ;;  %v14962_v46 = vmax.f32 %v14834_v37, %v14898_v52  ;;  %v26522_v52 = vld [vmem:[#allocation7_spill] sm:$0xff] }
 0x9bb   : > { %v14965_v4 = vmax.f32 %v14837_v28, %v14901_v14  ;;  %v21457_v12 = vadd.f32 %v21199_v50, %v24979_v60  ;;  %v14524_v40 = vpop.f32.mrb[5].mxu0  ;;  %v26523_v50 = vld [vmem:[#allocation8_spill] sm:$0xff] }
 0x9bc   : > { %v14963_v48 = vmax.f32 %v14835_v39, %v14899_v42  ;;  %v21458_v27 = vadd.f32 %v14524_v40, %v24981_v61  ;;  %v21200_v21 = vpop.f32.mrb[6].mxu0 }
 0x9bd   : > { %v25754_v58 = vpack.c.bf16 %v14965_v4, %v14964_v43  ;;  %v14840_v23 = vadd.f32 %v21457_v12, %v25742_v18  ;;  %v21459_v33 = vadd.f32 %v21200_v21, %v24983_v62  ;;  %v14527_v54 = vpop.f32.mrb[7].mxu0 }
 0x9be   : > { %v15026_v5 = vpack.c.bf16 %v14963_v48, %v14962_v46  ;;  %v14838_v55 = vadd.f32 %v21458_v27, %v25742_v18  ;;  %v21460_v3 = vadd.f32 %v14527_v54, %v24985_v0  ;;  %v26524_v54 = vld [vmem:[#allocation9_spill] sm:$0xff] }
 0x9bf   : > { %v14904_v44 = vmul.f32 0.1, %v14840_v23  ;;  %v14841_v60 = vadd.f32 %v21459_v33, %v25742_v18 }
 0x9c0   : > { %v14902_v16 = vmul.f32 0.1, %v14838_v55  ;;  %v14839_v2 = vadd.f32 %v21460_v3, %v25742_v18  ;;  %v22744_v3 = vld [vmem:[%s26456_s3 + $0x40] sm:$0xff]  }
 0x9c1   : > { %v14905_v61 = vmul.f32 0.1, %v14841_v60  ;;  %v14968_v8 = vmax.f32 %v14840_v23, %v14904_v44 }
 0x9c2   : > { %v14903_v19 = vmul.f32 0.1, %v14839_v2  ;;  %v21203_v63 = vpop.f32.mrb[8].mxu0  ;;  %v14966_v25 = vmax.f32 %v14838_v55, %v14902_v16  ;;  %v26525_v16 = vld [vmem:[#allocation10_spill] sm:$0xff] }
 0x9c3   : > { %v14969_v47 = vmax.f32 %v14841_v60, %v14905_v61  ;;  %v21461_v53 = vadd.f32 %v21203_v63, %v24991_v1  ;;  %v14540_v62 = vpop.f32.mrb[9].mxu0 }
 0x9c4   : > { %v14967_v17 = vmax.f32 %v14839_v2, %v14903_v19  ;;  %v21462_v35 = vadd.f32 %v14540_v62, %v24993_v6  ;;  %v21204_v45 = vpop.f32.mrb[10].mxu0  ;;  %v22741_v6 = vld [vmem:[%s26456_s3 + $0x8] sm:$0xff]  }
 0x9c5   : > { %v15029_v0 = vpack.c.bf16 %v14969_v47, %v14968_v8  ;;  %v14844_v26 = vadd.f32 %v21461_v53, %v25742_v18  ;;  %v21463_v36 = vadd.f32 %v21204_v45, %v24995_v7  ;;  %v14543_v57 = vpop.f32.mrb[11].mxu0  ;;  %v26526_v8 = vld [vmem:[#allocation11_spill] sm:$0xff] }
 0x9c6   : > { %v15028_v32 = vpack.c.bf16 %v14967_v17, %v14966_v25  ;;  %v14842_v59 = vadd.f32 %v21462_v35, %v25742_v18  ;;  %v21464_v13 = vadd.f32 %v14543_v57, %v24997_v10  ;;  %v26527_v17 = vld [vmem:[#allocation12_spill] sm:$0xff] }
 0x9c7   : > { %v14908_v30 = vmul.f32 0.1, %v14844_v26  ;;  %v14845_v1 = vadd.f32 %v21463_v36, %v25742_v18 }
 0x9c8   : > { %v14906_v20 = vmul.f32 0.1, %v14842_v59  ;;  %v14843_v56 = vadd.f32 %v21464_v13, %v25742_v18  ;;  %21265 = vmatprep.mubr.msk.bf16.mxu1 %vm15099_vm2, %v15028_v32 }
 0x9c9   : > { %v14909_v7 = vmul.f32 0.1, %v14845_v1  ;;  %21266 = vmatmul.mubr.msk.bf16.vlgmr.msra.gmra.mrb[208].mxu1 %vm15099_vm2, %v15029_v0  ;;  %v14972_v10 = vmax.f32 %v14844_v26, %v14908_v30  ;;  %v22745_v26 = vld [vmem:[%s26456_s3 + $0x48] sm:$0xff]  }
 0x9ca   : > { %v14907_v51 = vmul.f32 0.1, %v14843_v56  ;;  %21270 = vmatpush3.bf16.msra.mxu1 %v25732_v22  ;;  %v21207_v24 = vpop.f32.mrb[12].mxu0  ;;  %21277 = vmatprep.mubr.msk.bf16.mxu1 %vm15099_vm2, %v15026_v5  ;;  %v14970_v34 = vmax.f32 %v14842_v59, %v14906_v20 }
 0x9cb   : > { %v14973_v31 = vmax.f32 %v14845_v1, %v14909_v7  ;;  %v21465_v29 = vadd.f32 %v21207_v24, %v25003_v38  ;;  %v14556_v41 = vpop.f32.mrb[13].mxu0  ;;  %21271 = vmatprep.subr.bf16.mxu1 %v22741_v6  ;;  %v22746_v7 = vld [vmem:[%s26456_s3 + $0x50] sm:$0xff]  }
 0x9cc   : > { %v14971_v37 = vmax.f32 %v14843_v56, %v14907_v51  ;;  %v21466_v11 = vadd.f32 %v14556_v41, %v25005_v15  ;;  %v21208_v9 = vpop.f32.mrb[14].mxu0  ;;  %v22743_v15 = vld [vmem:[%s26456_s3 + $0x18] sm:$0xff]  }
 0x9cd   : > { %v25782_v28 = vpack.c.bf16 %v14973_v31, %v14972_v10  ;;  %v14848_v22 = vadd.f32 %v21465_v29, %v25742_v18  ;;  %v21467_v39 = vadd.f32 %v21208_v9, %v26522_v52  ;;  %v14559_v14 = vpop.f32.mrb[15].mxu0  ;;  %v26529_v10 = vld [vmem:[#allocation14_spill] sm:$0xff] }
 0x9ce   : > { %v15030_v42 = vpack.c.bf16 %v14971_v37, %v14970_v34  ;;  %v14846_v38 = vadd.f32 %v21466_v11, %v25742_v18  ;;  %v21468_v43 = vadd.f32 %v14559_v14, %v26523_v50  ;;  %21272 = vmatpush3.bf16.msra.mxu1 %v22741_v6  ;;  %v26528_v6 = vld [vmem:[#allocation13_spill] sm:$0xff] }
 0x9cf   : > { %v14912_v4 = vmul.f32 0.1, %v14848_v22  ;;  %v14849_v12 = vadd.f32 %v21467_v39, %v25742_v18  ;;  %21273 = vmatprep.subr.bf16.mxu1 %v22742_v49 }
 0x9d0   : > { %v14910_v40 = vmul.f32 0.1, %v14846_v38  ;;  %v14847_v46 = vadd.f32 %v21468_v43, %v25742_v18 }
 0x9d1   : > { %v14913_v48 = vmul.f32 0.1, %v14849_v12  ;;  %v14976_v23 = vmax.f32 %v14848_v22, %v14912_v4  ;;  %v26531_v22 = vld [vmem:[#allocation16_spill] sm:$0xff] }
 0x9d2   : > { %v14911_v27 = vmul.f32 0.1, %v14847_v46  ;;  %21274 = vmatpush3.bf16.msra.mxu1 %v22742_v49  ;;  %v21211_v21 = vpop.f32.mrb[16].mxu0  ;;  %v14974_v44 = vmax.f32 %v14846_v38, %v14910_v40  ;;  %v26530_v49 = vld [vmem:[#allocation15_spill] sm:$0xff] }
 0x9d3   : > { %v14977_v33 = vmax.f32 %v14849_v12, %v14913_v48  ;;  %v21469_v5 = vadd.f32 %v21211_v21, %v26524_v54  ;;  %v14572_v55 = vpop.f32.mrb[17].mxu0  ;;  %21275 = vmatprep.subr.bf16.mxu1 %v22743_v15  ;;  %v22748_v21 = vld [vmem:[%s26456_s3 + $0x60] sm:$0xff]   ;;  %v26533_v54 = vld [vmem:[#allocation18_spill] sm:$0xff] }
 0x9d4   : > { %v14975_v60 = vmax.f32 %v14847_v46, %v14911_v27  ;;  %v21470_v2 = vadd.f32 %v14572_v55, %v26525_v16  ;;  %v21212_v61 = vpop.f32.mrb[18].mxu0  ;;  %v26532_v46 = vld [vmem:[#allocation17_spill] sm:$0xff] }
 0x9d5   : > { %v25798_v19 = vpack.c.bf16 %v14977_v33, %v14976_v23  ;;  %v14852_v63 = vadd.f32 %v21469_v5, %v25742_v18  ;;  %v21471_v47 = vadd.f32 %v21212_v61, %v26526_v8  ;;  %v14575_v53 = vpop.f32.mrb[19].mxu0  ;;  %v26535_v8 = vld [vmem:[#allocation20_spill] sm:$0xff] }
 0x9d6   : > { %v25802_v62 = vpack.c.bf16 %v14975_v60, %v14974_v44  ;;  %v14850_v25 = vadd.f32 %v21470_v2, %v25742_v18  ;;  %v21472_v35 = vadd.f32 %v14575_v53, %v26527_v17  ;;  %21276 = vmatpush3.bf16.msra.mxu1 %v22743_v15  ;;  %v26534_v60 = vld [vmem:[#allocation19_spill] sm:$0xff]  ;;  %v22749_v17 = vld [vmem:[%s26456_s3 + $0x68] sm:$0xff]  }
 0x9d7   : > { %v14916_v45 = vmul.f32 0.1, %v14852_v63  ;;  %v14853_v0 = vadd.f32 %v21471_v47, %v25742_v18  ;;  %21281 = vmatprep.subr.bf16.mxu1 %v22744_v3 }
 0x9d8   : > { %v14914_v36 = vmul.f32 0.1, %v14850_v25  ;;  %v14851_v57 = vadd.f32 %v21472_v35, %v25742_v18 }
 0x9d9   : > { %v14917_v32 = vmul.f32 0.1, %v14853_v0  ;;  %21278 = vmatmul.mubr.msk.bf16.vlgmr.msra.gmra.mrb[208].mxu1 %vm15099_vm2, %v25754_v58  ;;  %v14980_v30 = vmax.f32 %v14852_v63, %v14916_v45 }
 0x9da   : > { %v14915_v59 = vmul.f32 0.1, %v14851_v57  ;;  %21282 = vmatpush3.bf16.msra.mxu1 %v22744_v3  ;;  %21289 = vmatprep.mubr.msk.bf16.mxu1 %vm15099_vm2, %v15030_v42  ;;  %v21215_v13 = vpop.f32.mrb[20].mxu0  ;;  %v14978_v51 = vmax.f32 %v14850_v25, %v14914_v36  ;;  %v22747_v42 = vld [vmem:[%s26456_s3 + $0x58] sm:$0xff]  }
 0x9db   : > { %v14981_v1 = vmax.f32 %v14853_v0, %v14917_v32  ;;  %v21473_v20 = vadd.f32 %v21215_v13, %v26528_v6  ;;  %v14588_v56 = vpop.f32.mrb[21].mxu0  ;;  %21283 = vmatprep.subr.bf16.mxu1 %v22745_v26 }
 0x9dc   : > { %v14979_v24 = vmax.f32 %v14851_v57, %v14915_v59  ;;  %v21474_v31 = vadd.f32 %v14588_v56, %v26529_v10  ;;  %v21216_v58 = vpop.f32.mrb[22].mxu0  ;;  %v26536_v59 = vld [vmem:[#allocation21_spill] sm:$0xff]  ;;  %v26537_v56 = vld [vmem:[#allocation22_spill] sm:$0xff] }
 0x9dd   : > { %v25819_v29 = vpack.c.bf16 %v14981_v1, %v14980_v30  ;;  %v14856_v41 = vadd.f32 %v21473_v20, %v25742_v18  ;;  %v21475_v34 = vadd.f32 %v21216_v58, %v26530_v49  ;;  %v14591_v37 = vpop.f32.mrb[23].mxu0  ;;  %v22750_v1 = vld [vmem:[%s26456_s3 + $0x70] sm:$0xff]   ;;  %v26539_v49 = vld [vmem:[#allocation24_spill] sm:$0xff] }
 0x9de   : > { %v25823_v11 = vpack.c.bf16 %v14979_v24, %v14978_v51  ;;  %v14854_v9 = vadd.f32 %v21474_v31, %v25742_v18  ;;  %v21476_v52 = vadd.f32 %v14591_v37, %v26531_v22  ;;  %21284 = vmatpush3.bf16.msra.mxu1 %v22745_v26  ;;  %v26538_v24 = vld [vmem:[#allocation23_spill] sm:$0xff] }
 0x9df   : > { %v14920_v39 = vmul.f32 0.1, %v14856_v41  ;;  %v14857_v14 = vadd.f32 %v21475_v34, %v25742_v18  ;;  %21285 = vmatprep.subr.bf16.mxu1 %v22746_v7  ;;  %v22751_v22 = vld [vmem:[%s26456_s3 + $0x78] sm:$0xff]  }
 0x9e0   : > { %v14918_v38 = vmul.f32 0.1, %v14854_v9  ;;  %v14855_v50 = vadd.f32 %v21476_v52, %v25742_v18 }
 0x9e1   : > { %v14921_v43 = vmul.f32 0.1, %v14857_v14  ;;  %v14984_v15 = vmax.f32 %v14856_v41, %v14920_v39 }
 0x9e2   : > { %v14919_v4 = vmul.f32 0.1, %v14855_v50  ;;  %21286 = vmatpush3.bf16.msra.mxu1 %v22746_v7  ;;  %v21219_v12 = vpop.f32.mrb[24].mxu0  ;;  %v14982_v23 = vmax.f32 %v14854_v9, %v14918_v38 }
 0x9e3   : > { %v14985_v40 = vmax.f32 %v14857_v14, %v14921_v43  ;;  %v21477_v48 = vadd.f32 %v21219_v12, %v26532_v46  ;;  %v14604_v27 = vpop.f32.mrb[25].mxu0  ;;  %21287 = vmatprep.subr.bf16.mxu1 %v22747_v42 }
 0x9e4   : > { %v14983_v33 = vmax.f32 %v14855_v50, %v14919_v4  ;;  %v21478_v5 = vadd.f32 %v14604_v27, %v26533_v54  ;;  %v21220_v55 = vpop.f32.mrb[26].mxu0  ;;  %v26540_v4 = vld [vmem:[#allocation25_spill] sm:$0xff]  ;;  %v26541_v27 = vld [vmem:[#allocation26_spill] sm:$0xff] }
 0x9e5   : > { %v25837_v3 = vpack.c.bf16 %v14985_v40, %v14984_v15  ;;  %v14860_v44 = vadd.f32 %v21477_v48, %v25742_v18  ;;  %v21479_v16 = vadd.f32 %v21220_v55, %v26534_v60  ;;  %v14607_v2 = vpop.f32.mrb[27].mxu0  ;;  %v22752_v40 = vld [vmem:[%s26456_s3 + $0x80] sm:$0xff]  }
 0x9e6   : > { %v25841_v61 = vpack.c.bf16 %v14983_v33, %v14982_v23  ;;  %v14858_v63 = vadd.f32 %v21478_v5, %v25742_v18  ;;  %v21480_v47 = vadd.f32 %v14607_v2, %v26535_v8  ;;  %21288 = vmatpush3.bf16.msra.mxu1 %v22747_v42  ;;  %v26542_v5 = vld [vmem:[#allocation27_spill] sm:$0xff]  ;;  %v26543_v2 = vld [vmem:[#allocation28_spill] sm:$0xff] }
 0x9e7   : > { %v14924_v53 = vmul.f32 0.1, %v14860_v44  ;;  %v14861_v25 = vadd.f32 %v21479_v16, %v25742_v18  ;;  %21293 = vmatprep.subr.bf16.mxu1 %v22748_v21 }
 0x9e8   : > { %v14922_v35 = vmul.f32 0.1, %v14858_v63  ;;  %v14859_v45 = vadd.f32 %v21480_v47, %v25742_v18 }
 0x9e9   : > { %v14925_v0 = vmul.f32 0.1, %v14861_v25  ;;  %21290 = vmatmul.mubr.msk.bf16.vlgmr.msra.gmra.mrb[208].mxu1 %vm15099_vm2, %v25782_v28  ;;  %v14988_v57 = vmax.f32 %v14860_v44, %v14924_v53  ;;  %v22753_v53 = vld [vmem:[%s26456_s3 + $0x88] sm:$0xff]  }
 0x9ea   : > { %v14923_v26 = vmul.f32 0.1, %v14859_v45  ;;  %21294 = vmatpush3.bf16.msra.mxu1 %v22748_v21  ;;  %21301 = vmatprep.mubr.msk.bf16.mxu1 %vm15099_vm2, %v25802_v62  ;;  %v21223_v36 = vpop.f32.mrb[28].mxu0  ;;  %v14986_v6 = vmax.f32 %v14858_v63, %v14922_v35 }
 0x9eb   : > { %v14989_v32 = vmax.f32 %v14861_v25, %v14925_v0  ;;  %v21481_v13 = vadd.f32 %v21223_v36, %v26536_v59  ;;  %v14620_v30 = vpop.f32.mrb[29].mxu0  ;;  %21295 = vmatprep.subr.bf16.mxu1 %v22749_v17 }
 0x9ec   : > { %v14987_v20 = vmax.f32 %v14859_v45, %v14923_v26  ;;  %v21482_v28 = vadd.f32 %v14620_v30, %v26537_v56  ;;  %v21224_v7 = vpop.f32.mrb[30].mxu0 }
 0x9ed   : > { %v25859_v51 = vpack.c.bf16 %v14989_v32, %v14988_v57  ;;  %v14864_v62 = vadd.f32 %v21481_v13, %v25742_v18  ;;  %v21483_v10 = vadd.f32 %v21224_v7, %v26538_v24  ;;  %v14623_v31 = vpop.f32.mrb[31].mxu0  ;;  %v26544_v57 = vld [vmem:[#allocation29_spill] sm:$0xff]  ;;  %v22754_v13 = vld [vmem:[%s26456_s3 + $0x90] sm:$0xff]  }
 0x9ee   : > { %v25863_v58 = vpack.c.bf16 %v14987_v20, %v14986_v6  ;;  %v14862_v41 = vadd.f32 %v21482_v28, %v25742_v18  ;;  %v21484_v34 = vadd.f32 %v14623_v31, %v26539_v49  ;;  %21296 = vmatpush3.bf16.msra.mxu1 %v22749_v17  ;;  %v26545_v6 = vld [vmem:[#allocation30_spill] sm:$0xff]  ;;  %v26546_v28 = vld [vmem:[#allocation31_spill] sm:$0xff]  ;;  %v26547_v31 = vld [vmem:[#allocation32_spill] sm:$0xff] }
 0x9ef   : > { %v14928_v37 = vmul.f32 0.1, %v14864_v62  ;;  %v14865_v9 = vadd.f32 %v21483_v10, %v25742_v18  ;;  %21297 = vmatprep.subr.bf16.mxu1 %v22750_v1 }
 0x9f0   : > { %v14926_v52 = vmul.f32 0.1, %v14862_v41  ;;  %v14863_v39 = vadd.f32 %v21484_v34, %v25742_v18 }
 0x9f1   : > { %v14929_v14 = vmul.f32 0.1, %v14865_v9  ;;  %v14992_v50 = vmax.f32 %v14864_v62, %v14928_v37  ;;  %v22755_v37 = vld [vmem:[%s26456_s3 + $0x98] sm:$0xff]  }
 0x9f2   : > { %v14927_v42 = vmul.f32 0.1, %v14863_v39  ;;  %21298 = vmatpush3.bf16.msra.mxu1 %v22750_v1  ;;  %v21227_v38 = vpop.f32.mrb[32].mxu0  ;;  %v14990_v46 = vmax.f32 %v14862_v41, %v14926_v52 }
 0x9f3   : > { %v14993_v43 = vmax.f32 %v14865_v9, %v14929_v14  ;;  %v21485_v12 = vadd.f32 %v21227_v38, %v26540_v4  ;;  %v14636_v15 = vpop.f32.mrb[33].mxu0  ;;  %21299 = vmatprep.subr.bf16.mxu1 %v22751_v22 }
 0x9f4   : > { %v14991_v48 = vmax.f32 %v14863_v39, %v14927_v42  ;;  %v21486_v21 = vadd.f32 %v14636_v15, %v26541_v27  ;;  %v21228_v23 = vpop.f32.mrb[34].mxu0 }
 0x9f5   : > { %v25877_v33 = vpack.c.bf16 %v14993_v43, %v14992_v50  ;;  %v14868_v54 = vadd.f32 %v21485_v12, %v25742_v18  ;;  %v21487_v55 = vadd.f32 %v21228_v23, %v26542_v5  ;;  %v14639_v44 = vpop.f32.mrb[35].mxu0  ;;  %v26548_v50 = vld [vmem:[#allocation33_spill] sm:$0xff]  ;;  %v22756_v12 = vld [vmem:[%s26456_s3 + $0xa0] sm:$0xff]  }
 0x9f6   : > { %v25881_v60 = vpack.c.bf16 %v14991_v48, %v14990_v46  ;;  %v14866_v16 = vadd.f32 %v21486_v21, %v25742_v18  ;;  %v21488_v63 = vadd.f32 %v14639_v44, %v26543_v2  ;;  %21300 = vmatpush3.bf16.msra.mxu1 %v22751_v22  ;;  %v26549_v46 = vld [vmem:[#allocation34_spill] sm:$0xff]  ;;  %v26551_v2 = vld [vmem:[#allocation36_spill] sm:$0xff] }
 0x9f7   : > { %v14932_v8 = vmul.f32 0.1, %v14868_v54  ;;  %v14869_v47 = vadd.f32 %v21487_v55, %v25742_v18  ;;  %21305 = vmatprep.subr.bf16.mxu1 %v22752_v40 }
 0x9f8   : > { %v14930_v25 = vmul.f32 0.1, %v14866_v16  ;;  %v14867_v17 = vadd.f32 %v21488_v63, %v25742_v18 }
 0x9f9   : > { %v14933_v35 = vmul.f32 0.1, %v14869_v47  ;;  %21302 = vmatmul.mubr.msk.bf16.vlgmr.msra.gmra.mrb[208].mxu1 %vm15099_vm2, %v25798_v19  ;;  %v14996_v26 = vmax.f32 %v14868_v54, %v14932_v8  ;;  %v26550_v54 = vld [vmem:[#allocation35_spill] sm:$0xff] }
 0x9fa   : > { %v14931_v45 = vmul.f32 0.1, %v14867_v17  ;;  %21306 = vmatpush3.bf16.msra.mxu1 %v22752_v40  ;;  %21313 = vmatprep.mubr.msk.bf16.mxu1 %vm15099_vm2, %v25823_v11  ;;  %v21231_v0 = vpop.f32.mrb[36].mxu0  ;;  %v14994_v30 = vmax.f32 %v14866_v16, %v14930_v25 }
 0x9fb   : > { %v14997_v36 = vmax.f32 %v14869_v47, %v14933_v35  ;;  %v21489_v32 = vadd.f32 %v21231_v0, %v26544_v57  ;;  %v14652_v59 = vpop.f32.mrb[37].mxu0  ;;  %21307 = vmatprep.subr.bf16.mxu1 %v22753_v53  ;;  %v26552_v57 = vld [vmem:[#allocation37_spill] sm:$0xff] }
 0x9fc   : > { %v14995_v1 = vmax.f32 %v14867_v17, %v14931_v45  ;;  %v21490_v19 = vadd.f32 %v14652_v59, %v26545_v6  ;;  %v21232_v20 = vpop.f32.mrb[38].mxu0  ;;  %v26553_v6 = vld [vmem:[#allocation38_spill] sm:$0xff] }
 0x9fd   : > { %v25899_v56 = vpack.c.bf16 %v14997_v36, %v14996_v26  ;;  %v14872_v11 = vadd.f32 %v21489_v32, %v25742_v18  ;;  %v21491_v7 = vadd.f32 %v21232_v20, %v26546_v28  ;;  %v14655_v62 = vpop.f32.mrb[39].mxu0 }
 0x9fe   : > { %v25903_v24 = vpack.c.bf16 %v14995_v1, %v14994_v30  ;;  %v14870_v10 = vadd.f32 %v21490_v19, %v25742_v18  ;;  %v21492_v41 = vadd.f32 %v14655_v62, %v26547_v31  ;;  %21308 = vmatpush3.bf16.msra.mxu1 %v22753_v53  ;;  %v22757_v53 = vld [vmem:[%s26456_s3 + $0xa8] sm:$0xff]   ;;  %v26555_v31 = vld [vmem:[#allocation40_spill] sm:$0xff] }
 0x9ff   : > { %v14936_v49 = vmul.f32 0.1, %v14872_v11  ;;  %v14873_v34 = vadd.f32 %v21491_v7, %v25742_v18  ;;  %21309 = vmatprep.subr.bf16.mxu1 %v22754_v13 }
 0xa00   : > { %v14934_v9 = vmul.f32 0.1, %v14870_v10  ;;  %v14871_v22 = vadd.f32 %v21492_v41, %v25742_v18 }
 0xa01   : > { %v14937_v52 = vmul.f32 0.1, %v14873_v34  ;;  %v15000_v42 = vmax.f32 %v14872_v11, %v14936_v49  ;;  %v26554_v11 = vld [vmem:[#allocation39_spill] sm:$0xff] }
 0xa02   : > { %v14935_v39 = vmul.f32 0.1, %v14871_v22  ;;  %21310 = vmatpush3.bf16.msra.mxu1 %v22754_v13  ;;  %v21235_v14 = vpop.f32.mrb[40].mxu0  ;;  %v14998_v15 = vmax.f32 %v14870_v10, %v14934_v9  ;;  %v22758_v13 = vld [vmem:[%s26456_s3 + $0xb0] sm:$0xff]  }
 0xa03   : > { %v15001_v38 = vmax.f32 %v14873_v34, %v14937_v52  ;;  %v21493_v43 = vadd.f32 %v21235_v14, %v26548_v50  ;;  %v14668_v4 = vpop.f32.mrb[41].mxu0  ;;  %21311 = vmatprep.subr.bf16.mxu1 %v22755_v37  ;;  %v26556_v50 = vld [vmem:[#allocation41_spill] sm:$0xff] }
 0xa04   : > { %v14999_v40 = vmax.f32 %v14871_v22, %v14935_v39  ;;  %v21494_v48 = vadd.f32 %v14668_v4, %v26549_v46  ;;  %v21236_v27 = vpop.f32.mrb[42].mxu0  ;;  %v26557_v46 = vld [vmem:[#allocation42_spill] sm:$0xff] }
 0xa05   : > { %v25917_v21 = vpack.c.bf16 %v15001_v38, %v15000_v42  ;;  %v14876_v23 = vadd.f32 %v21493_v43, %v25742_v18  ;;  %v21495_v5 = vadd.f32 %v21236_v27, %v26550_v54  ;;  %v14671_v55 = vpop.f32.mrb[43].mxu0 }
 0xa06   : > { %v25921_v44 = vpack.c.bf16 %v14999_v40, %v14998_v15  ;;  %v14874_v16 = vadd.f32 %v21494_v48, %v25742_v18  ;;  %v21496_v63 = vadd.f32 %v14671_v55, %v26551_v2  ;;  %21312 = vmatpush3.bf16.msra.mxu1 %v22755_v37  ;;  %v22759_v37 = vld [vmem:[%s26456_s3 + $0xb8] sm:$0xff]  }
 0xa07   : > { %v14940_v8 = vmul.f32 0.1, %v14876_v23  ;;  %v14877_v47 = vadd.f32 %v21495_v5, %v25742_v18  ;;  %21317 = vmatprep.subr.bf16.mxu1 %v22756_v12  ;;  %v26558_v5 = vld [vmem:[#allocation43_spill] sm:$0xff] }
 0xa08   : > { %v14938_v25 = vmul.f32 0.1, %v14874_v16  ;;  %v14875_v17 = vadd.f32 %v21496_v63, %v25742_v18 }
 0xa09   : > { %v14941_v35 = vmul.f32 0.1, %v14877_v47  ;;  %21314 = vmatmul.mubr.msk.bf16.vlgmr.msra.gmra.mrb[208].mxu1 %vm15099_vm2, %v25819_v29  ;;  %v15004_v26 = vmax.f32 %v14876_v23, %v14940_v8  ;;  %v26559_v8 = vld [vmem:[#allocation44_spill] sm:$0xff] }
 0xa0a   : > { %v14939_v45 = vmul.f32 0.1, %v14875_v17  ;;  %21318 = vmatpush3.bf16.msra.mxu1 %v22756_v12  ;;  %21325 = vmatprep.mubr.msk.bf16.mxu1 %vm15099_vm2, %v25841_v61  ;;  %v21239_v0 = vpop.f32.mrb[44].mxu0  ;;  %v15002_v30 = vmax.f32 %v14874_v16, %v14938_v25  ;;  %v22760_v12 = vld [vmem:[%s26456_s3 + $0xc0] sm:$0xff]  }
 0xa0b   : > { %v15005_v36 = vmax.f32 %v14877_v47, %v14941_v35  ;;  %v21497_v32 = vadd.f32 %v21239_v0, %v26552_v57  ;;  %v14684_v59 = vpop.f32.mrb[45].mxu0  ;;  %21319 = vmatprep.subr.bf16.mxu1 %v22757_v53 }
 0xa0c   : > { %v15003_v1 = vmax.f32 %v14875_v17, %v14939_v45  ;;  %v21498_v29 = vadd.f32 %v14684_v59, %v26553_v6  ;;  %v21240_v19 = vpop.f32.mrb[46].mxu0  ;;  %v22761_v17 = vld [vmem:[%s26456_s3 + $0xc8] sm:$0xff]  }
 0xa0d   : > { %v25939_v20 = vpack.c.bf16 %v15005_v36, %v15004_v26  ;;  %v14880_v61 = vadd.f32 %v21497_v32, %v25742_v18  ;;  %v21499_v28 = vadd.f32 %v21240_v19, %v26554_v11  ;;  %v14687_v7 = vpop.f32.mrb[47].mxu0  ;;  %v26560_v59 = vld [vmem:[#allocation45_spill] sm:$0xff]  ;;  %v26561_v19 = vld [vmem:[#allocation46_spill] sm:$0xff] }
 0xa0e   : > { %v25943_v62 = vpack.c.bf16 %v15003_v1, %v15002_v30  ;;  %v14878_v10 = vadd.f32 %v21498_v29, %v25742_v18  ;;  %v21500_v41 = vadd.f32 %v14687_v7, %v26555_v31  ;;  %21320 = vmatpush3.bf16.msra.mxu1 %v22757_v53  ;;  %v22762_v1 = vld [vmem:[%s26456_s3 + $0xd0] sm:$0xff]  }
 0xa0f   : > { %v14944_v49 = vmul.f32 0.1, %v14880_v61  ;;  %v14881_v34 = vadd.f32 %v21499_v28, %v25742_v18  ;;  %21321 = vmatprep.subr.bf16.mxu1 %v22758_v13  ;;  %v26562_v28 = vld [vmem:[#allocation47_spill] sm:$0xff] }
 0xa10   : > { %v14942_v9 = vmul.f32 0.1, %v14878_v10  ;;  %v14879_v22 = vadd.f32 %v21500_v41, %v25742_v18 }
 0xa11   : > { %v14945_v52 = vmul.f32 0.1, %v14881_v34  ;;  %v15008_v42 = vmax.f32 %v14880_v61, %v14944_v49  ;;  %v26563_v49 = vld [vmem:[#allocation48_spill] sm:$0xff] }
 0xa12   : > { %v14943_v39 = vmul.f32 0.1, %v14879_v22  ;;  %21322 = vmatpush3.bf16.msra.mxu1 %v22758_v13  ;;  %v21243_v14 = vpop.f32.mrb[48].mxu0  ;;  %v15006_v15 = vmax.f32 %v14878_v10, %v14942_v9 }
 0xa13   : > { %v15009_v38 = vmax.f32 %v14881_v34, %v14945_v52  ;;  %v21501_v43 = vadd.f32 %v21243_v14, %v26556_v50  ;;  %v14700_v4 = vpop.f32.mrb[49].mxu0  ;;  %21323 = vmatprep.subr.bf16.mxu1 %v22759_v37 }
 0xa14   : > { %v15007_v40 = vmax.f32 %v14879_v22, %v14943_v39  ;;  %v21502_v48 = vadd.f32 %v14700_v4, %v26557_v46  ;;  %v21244_v27 = vpop.f32.mrb[50].mxu0  ;;  %v22763_v22 = vld [vmem:[%s26456_s3 + $0xd8] sm:$0xff]   ;;  %v26564_v4 = vld [vmem:[#allocation49_spill] sm:$0xff] }
 0xa15   : > { %v25957_v23 = vpack.c.bf16 %v15009_v38, %v15008_v42  ;;  %v14884_v54 = vadd.f32 %v21501_v43, %v25742_v18  ;;  %v21503_v55 = vadd.f32 %v21244_v27, %v26558_v5  ;;  %v14703_v16 = vpop.f32.mrb[51].mxu0  ;;  %v26565_v27 = vld [vmem:[#allocation50_spill] sm:$0xff] }
 0xa16   : > { %v25961_v2 = vpack.c.bf16 %v15007_v40, %v15006_v15  ;;  %v14882_v63 = vadd.f32 %v21502_v48, %v25742_v18  ;;  %v21504_v47 = vadd.f32 %v14703_v16, %v26559_v8  ;;  %21324 = vmatpush3.bf16.msra.mxu1 %v22759_v37  ;;  %v22764_v40 = vld [vmem:[%s26456_s3 + $0xe0] sm:$0xff]  }
 0xa17   : > { %v14948_v53 = vmul.f32 0.1, %v14884_v54  ;;  %v14885_v25 = vadd.f32 %v21503_v55, %v25742_v18  ;;  %21329 = vmatprep.subr.bf16.mxu1 %v22760_v12 }
 0xa18   : > { %v14946_v35 = vmul.f32 0.1, %v14882_v63  ;;  %v14883_v45 = vadd.f32 %v21504_v47, %v25742_v18 }
 0xa19   : > { %v14949_v0 = vmul.f32 0.1, %v14885_v25  ;;  %21326 = vmatmul.mubr.msk.bf16.vlgmr.msra.gmra.mrb[208].mxu1 %vm15099_vm2, %v25837_v3  ;;  %v15012_v57 = vmax.f32 %v14884_v54, %v14948_v53 }
 0xa1a   : > { %v14947_v26 = vmul.f32 0.1, %v14883_v45  ;;  %21330 = vmatpush3.bf16.msra.mxu1 %v22760_v12  ;;  %21337 = vmatprep.mubr.msk.bf16.mxu1 %vm15099_vm2, %v25863_v58  ;;  %v21247_v36 = vpop.f32.mrb[52].mxu0  ;;  %v15010_v6 = vmax.f32 %v14882_v63, %v14946_v35  ;;  %v26566_v63 = vld [vmem:[#allocation51_spill] sm:$0xff] }
 0xa1b   : > { %v15013_v32 = vmax.f32 %v14885_v25, %v14949_v0  ;;  %v21505_v13 = vadd.f32 %v21247_v36, %v26560_v59  ;;  %v14716_v30 = vpop.f32.mrb[53].mxu0  ;;  %21331 = vmatprep.subr.bf16.mxu1 %v22761_v17 }
 0xa1c   : > { %v15011_v29 = vmax.f32 %v14883_v45, %v14947_v26  ;;  %v21506_v3 = vadd.f32 %v14716_v30, %v26561_v19  ;;  %v21248_v61 = vpop.f32.mrb[54].mxu0  ;;  %v22765_v26 = vld [vmem:[%s26456_s3 + $0xe8] sm:$0xff]  }
 0xa1d   : > { %v25979_v11 = vpack.c.bf16 %v15013_v32, %v15012_v57  ;;  %v14888_v58 = vadd.f32 %v21505_v13, %v25742_v18  ;;  %v21507_v7 = vadd.f32 %v21248_v61, %v26562_v28  ;;  %v14719_v10 = vpop.f32.mrb[55].mxu0  ;;  %v26569_v28 = vld [vmem:[#allocation54_spill] sm:$0xff] }
 0xa1e   : > { %v25983_v31 = vpack.c.bf16 %v15011_v29, %v15010_v6  ;;  %v14886_v41 = vadd.f32 %v21506_v3, %v25742_v18  ;;  %v21508_v34 = vadd.f32 %v14719_v10, %v26563_v49  ;;  %21332 = vmatpush3.bf16.msra.mxu1 %v22761_v17  ;;  %v26567_v17 = vld [vmem:[#allocation52_spill] sm:$0xff]  ;;  %v26568_v6 = vld [vmem:[#allocation53_spill] sm:$0xff]  ;;  %v22766_v3 = vld [vmem:[%s26456_s3 + $0xf0] sm:$0xff]  }
 0xa1f   : > { %v14952_v37 = vmul.f32 0.1, %v14888_v58  ;;  %v14889_v9 = vadd.f32 %v21507_v7, %v25742_v18  ;;  %21333 = vmatprep.subr.bf16.mxu1 %v22762_v1 }
 0xa20   : > { %v14950_v52 = vmul.f32 0.1, %v14886_v41  ;;  %v14887_v39 = vadd.f32 %v21508_v34, %v25742_v18 }
 0xa21   : > { %v14953_v14 = vmul.f32 0.1, %v14889_v9  ;;  %v15016_v50 = vmax.f32 %v14888_v58, %v14952_v37 }
 0xa22   : > { %v14951_v42 = vmul.f32 0.1, %v14887_v39  ;;  %21334 = vmatpush3.bf16.msra.mxu1 %v22762_v1  ;;  %v21251_v38 = vpop.f32.mrb[56].mxu0  ;;  %v15014_v46 = vmax.f32 %v14886_v41, %v14950_v52  ;;  %v26570_v41 = vld [vmem:[#allocation55_spill] sm:$0xff] }
 0xa23   : > { %v15017_v43 = vmax.f32 %v14889_v9, %v14953_v14  ;;  %v21509_v12 = vadd.f32 %v21251_v38, %v26564_v4  ;;  %v14732_v15 = vpop.f32.mrb[57].mxu0  ;;  %21335 = vmatprep.subr.bf16.mxu1 %v22763_v22 }
 0xa24   : > { %v15015_v48 = vmax.f32 %v14887_v39, %v14951_v42  ;;  %v21510_v54 = vadd.f32 %v14732_v15, %v26565_v27  ;;  %v21252_v5 = vpop.f32.mrb[58].mxu0  ;;  %v22767_v42 = vld [vmem:[%s26456_s3 + $0xf8] sm:$0xff]  }
 0xa25   : > { %v25997_v55 = vpack.c.bf16 %v15017_v43, %v15016_v50  ;;  %v14892_v16 = vadd.f32 %v21509_v12, %v25742_v18  ;;  %v21511_v8 = vadd.f32 %v21252_v5, %v26566_v63  ;;  %v14735_v47 = vpop.f32.mrb[59].mxu0  ;;  %v22770_v5 = vld [vmem:[%s26456_s3 + $0x110] sm:$0xff]  }
 0xa26   : > { %v26001_v53 = vpack.c.bf16 %v15015_v48, %v15014_v46  ;;  %v14890_v25 = vadd.f32 %v21510_v54, %v25742_v18  ;;  %v21512_v35 = vadd.f32 %v14735_v47, %v26567_v17  ;;  %21336 = vmatpush3.bf16.msra.mxu1 %v22763_v22  ;;  %v26571_v22 = vld [vmem:[#allocation56_spill] sm:$0xff]  ;;  %v22774_v63 = vld [vmem:[%s26456_s3 + $0x130] sm:$0xff]  }
 0xa27   : > { %v14956_v45 = vmul.f32 0.1, %v14892_v16  ;;  %v14893_v0 = vadd.f32 %v21511_v8, %v25742_v18  ;;  %21341 = vmatprep.subr.bf16.mxu1 %v22764_v40  ;;  %v22775_v8 = vld [vmem:[%s26456_s3 + $0x138] sm:$0xff]   ;;  %v22778_v47 = vld [vmem:[%s26456_s3 + $0x150] sm:$0xff]  }
 0xa28   : > { %v14954_v36 = vmul.f32 0.1, %v14890_v25  ;;  %v14891_v57 = vadd.f32 %v21512_v35, %v25742_v18  ;;  %v22782_v17 = vld [vmem:[%s26456_s3 + $0x170] sm:$0xff]   ;;  %v22783_v35 = vld [vmem:[%s26456_s3 + $0x178] sm:$0xff]  }
 0xa29   : > { %v14957_v32 = vmul.f32 0.1, %v14893_v0  ;;  %21338 = vmatmul.mubr.msk.bf16.vlgmr.msra.gmra.mrb[208].mxu1 %vm15099_vm2, %v25859_v51  ;;  %v15020_v30 = vmax.f32 %v14892_v16, %v14956_v45  ;;  %v22771_v16 = vld [vmem:[%s26456_s3 + $0x118] sm:$0xff]   ;;  %v22786_v45 = vld [vmem:[%s26456_s3 + $0x190] sm:$0xff]  }
 0xa2a   : > { %v14955_v59 = vmul.f32 0.1, %v14891_v57  ;;  %21342 = vmatpush3.bf16.msra.mxu1 %v22764_v40  ;;  %21349 = vmatprep.mubr.msk.bf16.mxu1 %vm15099_vm2, %v25881_v60  ;;  %v21255_v13 = vpop.f32.mrb[60].mxu0  ;;  %v15018_v61 = vmax.f32 %v14890_v25, %v14954_v36  ;;  %v22768_v40 = vld [vmem:[%s26456_s3 + $0x100] sm:$0xff]   ;;  %v22779_v25 = vld [vmem:[%s26456_s3 + $0x158] sm:$0xff]  }
 0xa2b   : > { %v15021_v1 = vmax.f32 %v14893_v0, %v14957_v32  ;;  %v21513_v29 = vadd.f32 %v21255_v13, %v26568_v6  ;;  %v14748_v19 = vpop.f32.mrb[61].mxu0  ;;  %21343 = vmatprep.subr.bf16.mxu1 %v22765_v26  ;;  %v22787_v0 = vld [vmem:[%s26456_s3 + $0x198] sm:$0xff]   ;;  %v22798_v13 = vld [vmem:[%s26456_s3 + $0x1f0] sm:$0xff]   ;;  %v16547_v6 = vld [vmem:[%s26457_s4 + $0x20] sm:$0xff] }
 0xa2c   : > { %v15019_v58 = vmax.f32 %v14891_v57, %v14955_v59  ;;  %v21514_v51 = vadd.f32 %v14748_v19, %v26569_v28  ;;  %v21256_v7 = vpop.f32.mrb[62].mxu0  ;;  %v22791_v36 = vld [vmem:[%s26456_s3 + $0x1b8] sm:$0xff]   ;;  %v22794_v57 = vld [vmem:[%s26456_s3 + $0x1d0] sm:$0xff]   ;;  %v22797_v59 = vld [vmem:[%s26456_s3 + $0x1e8] sm:$0xff]  }
 0xa2d   : > { %v26019_v10 = vpack.c.bf16 %v15021_v1, %v15020_v30  ;;  %v14896_v60 = vadd.f32 %v21513_v29, %v25742_v18  ;;  %v21515_v49 = vadd.f32 %v21256_v7, %v26570_v41  ;;  %v14751_v34 = vpop.f32.mrb[63].mxu0  ;;  %v22795_v32 = vld [vmem:[%s26456_s3 + $0x1d8] sm:$0xff]   ;;  %v16543_v1 = vld [vmem:[%s26457_s4] sm:$0xff] }
 0xa2e   : > { %v26023_v37 = vpack.c.bf16 %v15019_v58, %v15018_v61  ;;  %v14894_v9 = vadd.f32 %v21514_v51, %v25742_v18  ;;  %v21516_v52 = vadd.f32 %v14751_v34, %v26571_v22  ;;  %21344 = vmatpush3.bf16.msra.mxu1 %v22765_v26  ;;  %v22790_v26 = vld [vmem:[%s26456_s3 + $0x1b0] sm:$0xff]   ;;  %v22799_v30 = vld [vmem:[%s26456_s3 + $0x1f8] sm:$0xff]   ;;  %v18850_v29 = vcombine.high %v16543_v1, %v16547_v6  ;;  %v16551_v19 = vld [vmem:[%s26457_s4 + $0x40] sm:$0xff] }
 0xa2f   : > { %v14960_v39 = vmul.f32 0.1, %v14896_v60  ;;  %v14897_v14 = vadd.f32 %v21515_v49, %v25742_v18  ;;  %21345 = vmatprep.subr.bf16.mxu1 %v22766_v3  ;;  %v18849_v61 = vcombine.low %v16543_v1, %v16547_v6  ;;  %v16559_v28 = vld [vmem:[%s26457_s4 + $0x80] sm:$0xff]  ;;  %v16572_v1 = vld [vmem:[%s26457_s4 + $0xe8] sm:$0xff] }
 0xa30   : > { %v14958_v38 = vmul.f32 0.1, %v14894_v9  ;;  %v14895_v50 = vadd.f32 %v21516_v52, %v25742_v18  ;;  %v22769_v18 = vld [vmem:[%s26456_s3 + $0x108] sm:$0xff]   ;;  %v16563_v51 = vld [vmem:[%s26457_s4 + $0xa0] sm:$0xff] }
 0xa31   : > { %v14961_v43 = vmul.f32 0.1, %v14897_v14  ;;  %v15024_v12 = vmax.f32 %v14896_v60, %v14960_v39  ;;  %v16567_v60 = vld [vmem:[%s26457_s4 + $0xc0] sm:$0xff]  ;;  %v18865_v49 = vcombine.low %v16559_v28, %v16563_v51 }
 0xa32   : > { %v14959_v4 = vmul.f32 0.1, %v14895_v50  ;;  %21346 = vmatpush3.bf16.msra.mxu1 %v22766_v3  ;;  %v15022_v46 = vmax.f32 %v14894_v9, %v14958_v38  ;;  %v16555_v3 = vld [vmem:[%s26457_s4 + $0x60] sm:$0xff] }
 0xa33   : > { %v15025_v15 = vmax.f32 %v14897_v14, %v14961_v43  ;;  %21347 = vmatprep.subr.bf16.mxu1 %v22767_v42  ;;  %v18858_v58 = vcombine.high %v16551_v19, %v16555_v3  ;;  %v18857_v7 = vcombine.low %v16551_v19, %v16555_v3  ;;  %v16571_v41 = vld [vmem:[%s26457_s4 + $0xe0] sm:$0xff]  ;;  %v16576_v19 = vld [vmem:[%s26457_s4 + $0x108] sm:$0xff] }
 0xa34   : > { %v15023_v48 = vmax.f32 %v14895_v50, %v14959_v4  ;;  %v18874_v34 = vcombine.high %v16567_v60, %v16571_v41  ;;  %v16579_v9 = vld [vmem:[%s26457_s4 + $0x120] sm:$0xff]  ;;  %v18873_v22 = vcombine.low %v16567_v60, %v16571_v41  ;;  %v16580_v3 = vld [vmem:[%s26457_s4 + $0x128] sm:$0xff] }
 0xa35   : > { %v26035_v27 = vpack.c.bf16 %v15025_v15, %v15024_v12  ;;  %v16583_v39 = vld [vmem:[%s26457_s4 + $0x140] sm:$0xff]  ;;  %v16592_v60 = vld [vmem:[%s26457_s4 + $0x188] sm:$0xff] }
 0xa36   : > { %v26037_v54 = vpack.c.bf16 %v15023_v48, %v15022_v46  ;;  %21348 = vmatpush3.bf16.msra.mxu1 %v22767_v42  ;;  %v16587_v14 = vld [vmem:[%s26457_s4 + $0x160] sm:$0xff]  ;;  %v16596_v41 = vld [vmem:[%s26457_s4 + $0x1a8] sm:$0xff] }
 0xa37   : > { %21353 = vmatprep.subr.bf16.mxu1 %v22768_v40  ;;  %v18890_v38 = vcombine.high %v16583_v39, %v16587_v14  ;;  %v18889_v50 = vcombine.low %v16583_v39, %v16587_v14  ;;  %v16591_v43 = vld [vmem:[%s26457_s4 + $0x180] sm:$0xff]  ;;  %v16545_v39 = vld [vmem:[%s26457_s4 + $0x10] sm:$0xff] }
 0xa38   : > { %v16595_v4 = vld [vmem:[%s26457_s4 + $0x1a0] sm:$0xff]  ;;  %v16549_v14 = vld [vmem:[%s26457_s4 + $0x30] sm:$0xff] }
 0xa39   : > { %21350 = vmatmul.mubr.msk.bf16.vlgmr.msra.gmra.mrb[208].mxu1 %vm15099_vm2, %v25877_v33  ;;  %v22772_v33 = vld [vmem:[%s26456_s3 + $0x120] sm:$0xff]   ;;  %v18898_v12 = vcombine.high %v16591_v43, %v16595_v4  ;;  %v18897_v15 = vcombine.low %v16591_v43, %v16595_v4  ;;  %v16557_v43 = vld [vmem:[%s26457_s4 + $0x70] sm:$0xff]  ;;  %v18853_v4 = vcombine.low %v16545_v39, %v16549_v14 }
 0xa3a   : > { %21354 = vmatpush3.bf16.msra.mxu1 %v22768_v40  ;;  %21361 = vmatprep.mubr.msk.bf16.mxu1 %vm15099_vm2, %v25903_v24  ;;  %v22773_v24 = vld [vmem:[%s26456_s3 + $0x128] sm:$0xff]   ;;  %v16599_v40 = vld [vmem:[%s26457_s4 + $0x1c0] sm:$0xff] }
 0xa3b   : > { %21355 = vmatprep.subr.bf16.mxu1 %v22769_v18  ;;  %v16603_v46 = vld [vmem:[%s26457_s4 + $0x1e0] sm:$0xff] }
 0xa3c   : > { %v18906_v48 = vcombine.high %v16599_v40, %v16603_v46 }
 0xa3e   : > { %21356 = vmatpush3.bf16.msra.mxu1 %v22769_v18  ;;  %v16548_v18 = vld [vmem:[%s26457_s4 + $0x28] sm:$0xff] }
 0xa3f   : > { %21357 = vmatprep.subr.bf16.mxu1 %v22770_v5 }
 0xa42   : > { %21358 = vmatpush3.bf16.msra.mxu1 %v22770_v5 }
 0xa43   : > { %21359 = vmatprep.subr.bf16.mxu1 %v22771_v16 }
 0xa46   : > { %21360 = vmatpush3.bf16.msra.mxu1 %v22771_v16 }
 0xa47   : > { %21365 = vmatprep.subr.bf16.mxu1 %v22772_v33 }
 0xa49   : > { %21362 = vmatmul.mubr.msk.bf16.vlgmr.msra.gmra.mrb[208].mxu1 %vm15099_vm2, %v25899_v56  ;;  %v22776_v56 = vld [vmem:[%s26456_s3 + $0x140] sm:$0xff]  }
 0xa4a   : > { %21366 = vmatpush3.bf16.msra.mxu1 %v22772_v33  ;;  %21373 = vmatprep.mubr.msk.bf16.mxu1 %vm15099_vm2, %v25921_v44  ;;  %v22777_v44 = vld [vmem:[%s26456_s3 + $0x148] sm:$0xff]   ;;  %v22841_v33 = vmov 0  }
 0xa4b   : > { %21367 = vmatprep.subr.bf16.mxu1 %v22773_v24 }
 0xa4e   : > { %21368 = vmatpush3.bf16.msra.mxu1 %v22773_v24  ;;  %v18848_v24 = vld [vmem:[%s26460_s7] ss:$0 sm:$0xff] }
 0xa4f   : > { %21369 = vmatprep.subr.bf16.mxu1 %v22774_v63 }
 0xa52   : > { %21370 = vmatpush3.bf16.msra.mxu1 %v22774_v63 }
 0xa53   : > { %21371 = vmatprep.subr.bf16.mxu1 %v22775_v8 }
 0xa56   : > { %21372 = vmatpush3.bf16.msra.mxu1 %v22775_v8 }
 0xa57   : > { %21377 = vmatprep.subr.bf16.mxu1 %v22776_v56 }
 0xa59   : > { %21374 = vmatmul.mubr.msk.bf16.vlgmr.msra.gmra.mrb[208].mxu1 %vm15099_vm2, %v25917_v21  ;;  %v22780_v21 = vld [vmem:[%s26456_s3 + $0x160] sm:$0xff]  }
 0xa5a   : > { %21378 = vmatpush3.bf16.msra.mxu1 %v22776_v56  ;;  %21385 = vmatprep.mubr.msk.bf16.mxu1 %vm15099_vm2, %v25943_v62  ;;  %v22781_v62 = vld [vmem:[%s26456_s3 + $0x168] sm:$0xff]  }
 0xa5b   : > { %21379 = vmatprep.subr.bf16.mxu1 %v22777_v44 }
 0xa5e   : > { %21380 = vmatpush3.bf16.msra.mxu1 %v22777_v44 }
 0xa5f   : > { %21381 = vmatprep.subr.bf16.mxu1 %v22778_v47 }
 0xa62   : > { %21382 = vmatpush3.bf16.msra.mxu1 %v22778_v47 }
 0xa63   : > { %21383 = vmatprep.subr.bf16.mxu1 %v22779_v25 }
 0xa66   : > { %21384 = vmatpush3.bf16.msra.mxu1 %v22779_v25 }
 0xa67   : > { %21389 = vmatprep.subr.bf16.mxu1 %v22780_v21 }
 0xa69   : > { %21386 = vmatmul.mubr.msk.bf16.vlgmr.msra.gmra.mrb[208].mxu1 %vm15099_vm2, %v25939_v20  ;;  %v22784_v20 = vld [vmem:[%s26456_s3 + $0x180] sm:$0xff]  }
 0xa6a   : > { %21390 = vmatpush3.bf16.msra.mxu1 %v22780_v21  ;;  %21397 = vmatprep.mubr.msk.bf16.mxu1 %vm15099_vm2, %v25961_v2  ;;  %v22785_v2 = vld [vmem:[%s26456_s3 + $0x188] sm:$0xff]  }
 0xa6b   : > { %21391 = vmatprep.subr.bf16.mxu1 %v22781_v62 }
 0xa6e   : > { %21392 = vmatpush3.bf16.msra.mxu1 %v22781_v62 }
 0xa6f   : > { %21393 = vmatprep.subr.bf16.mxu1 %v22782_v17 }
 0xa72   : > { %21394 = vmatpush3.bf16.msra.mxu1 %v22782_v17 }
 0xa73   : > { %21395 = vmatprep.subr.bf16.mxu1 %v22783_v35 }
 0xa76   : > { %21396 = vmatpush3.bf16.msra.mxu1 %v22783_v35 }
 0xa77   : > { %21401 = vmatprep.subr.bf16.mxu1 %v22784_v20 }
 0xa79   : > { %21398 = vmatmul.mubr.msk.bf16.vlgmr.msra.gmra.mrb[208].mxu1 %vm15099_vm2, %v25957_v23  ;;  %v22788_v23 = vld [vmem:[%s26456_s3 + $0x1a0] sm:$0xff]  }
 0xa7a   : > { %21402 = vmatpush3.bf16.msra.mxu1 %v22784_v20  ;;  %21409 = vmatprep.mubr.msk.bf16.mxu1 %vm15099_vm2, %v25983_v31  ;;  %v22789_v31 = vld [vmem:[%s26456_s3 + $0x1a8] sm:$0xff]  }
 0xa7b   : > { %21403 = vmatprep.subr.bf16.mxu1 %v22785_v2 }
 0xa7e   : > { %21404 = vmatpush3.bf16.msra.mxu1 %v22785_v2 }
 0xa7f   : > { %21405 = vmatprep.subr.bf16.mxu1 %v22786_v45 }
 0xa82   : > { %21406 = vmatpush3.bf16.msra.mxu1 %v22786_v45 }
 0xa83   : > { %21407 = vmatprep.subr.bf16.mxu1 %v22787_v0 }
 0xa86   : > { %21408 = vmatpush3.bf16.msra.mxu1 %v22787_v0 }
 0xa87   : > { %21413 = vmatprep.subr.bf16.mxu1 %v22788_v23 }
 0xa89   : > { %21410 = vmatmul.mubr.msk.bf16.vlgmr.msra.gmra.mrb[208].mxu1 %vm15099_vm2, %v25979_v11  ;;  %v22792_v11 = vld [vmem:[%s26456_s3 + $0x1c0] sm:$0xff]  }
 0xa8a   : > { %21414 = vmatpush3.bf16.msra.mxu1 %v22788_v23  ;;  %21421 = vmatprep.mubr.msk.bf16.mxu1 %vm15099_vm2, %v26001_v53  ;;  %v22793_v53 = vld [vmem:[%s26456_s3 + $0x1c8] sm:$0xff]  }
 0xa8b   : > { %21415 = vmatprep.subr.bf16.mxu1 %v22789_v31  ;;  %v16552_v23 = vld [vmem:[%s26457_s4 + $0x48] sm:$0xff] }
 0xa8e   : > { %21416 = vmatpush3.bf16.msra.mxu1 %v22789_v31  ;;  %v16556_v31 = vld [vmem:[%s26457_s4 + $0x68] sm:$0xff] }
 0xa8f   : > { %21417 = vmatprep.subr.bf16.mxu1 %v22790_v26 }
 0xa92   : > { %21418 = vmatpush3.bf16.msra.mxu1 %v22790_v26 }
 0xa93   : > { %21419 = vmatprep.subr.bf16.mxu1 %v22791_v36 }
 0xa96   : > { %21420 = vmatpush3.bf16.msra.mxu1 %v22791_v36 }
 0xa97   : > { %21425 = vmatprep.subr.bf16.mxu1 %v22792_v11 }
 0xa99   : > { %21422 = vmatmul.mubr.msk.bf16.vlgmr.msra.gmra.mrb[208].mxu1 %vm15099_vm2, %v25997_v55  ;;  %v22796_v55 = vld [vmem:[%s26456_s3 + $0x1e0] sm:$0xff]  }
 0xa9a   : > { %21426 = vmatpush3.bf16.msra.mxu1 %v22792_v11  ;;  %21433 = vmatprep.mubr.msk.bf16.mxu1 %vm15099_vm2, %v26023_v37  ;;  %v16575_v37 = vld [vmem:[%s26457_s4 + $0x100] sm:$0xff] }
 0xa9b   : > { %21427 = vmatprep.subr.bf16.mxu1 %v22793_v53  ;;  %v18882_v52 = vcombine.high %v16575_v37, %v16579_v9  ;;  %v18881_v42 = vcombine.low %v16575_v37, %v16579_v9  ;;  %v16600_v37 = vld [vmem:[%s26457_s4 + $0x1c8] sm:$0xff] }
 0xa9c   : > { %v16604_v9 = vld [vmem:[%s26457_s4 + $0x1e8] sm:$0xff] }
 0xa9e   : > { %21428 = vmatpush3.bf16.msra.mxu1 %v22793_v53 }
 0xa9f   : > { %21429 = vmatprep.subr.bf16.mxu1 %v22794_v57 }
 0xaa2   : > { %21430 = vmatpush3.bf16.msra.mxu1 %v22794_v57  ;;  %v18860_v57 = vcombine.high %v16552_v23, %v16556_v31 }
 0xaa3   : > { %21431 = vmatprep.subr.bf16.mxu1 %v22795_v32 }
 0xaa6   : > { %21432 = vmatpush3.bf16.msra.mxu1 %v22795_v32  ;;  %v16560_v32 = vld [vmem:[%s26457_s4 + $0x88] sm:$0xff] }
 0xaa7   : > { %21437 = vmatprep.subr.bf16.mxu1 %v22796_v55 }
 0xaa9   : > { %21434 = vmatmul.mubr.msk.bf16.vlgmr.msra.gmra.mrb[208].mxu1 %vm15099_vm2, %v26019_v10  ;;  %v18866_v10 = vcombine.high %v16559_v28, %v16563_v51  ;;  %v16584_v28 = vld [vmem:[%s26457_s4 + $0x148] sm:$0xff] }
 0xaaa   : > { %21438 = vmatpush3.bf16.msra.mxu1 %v22796_v55  ;;  %21445 = vmatprep.mubr.msk.bf16.mxu1 %vm15099_vm2, %v26037_v54  ;;  %v16544_v54 = vld [vmem:[%s26457_s4 + $0x8] sm:$0xff] }
 0xaab   : > { %21439 = vmatprep.subr.bf16.mxu1 %v22797_v59  ;;  %v18851_v5 = vcombine.low %v16544_v54, %v16548_v18  ;;  %v18852_v16 = vcombine.high %v16544_v54, %v16548_v18  ;;  %v16564_v55 = vld [vmem:[%s26457_s4 + $0xa8] sm:$0xff]  ;;  %v16573_v54 = vld [vmem:[%s26457_s4 + $0xf0] sm:$0xff] }
 0xaac   : > { %v18867_v6 = vcombine.low %v16560_v32, %v16564_v55  ;;  %v16588_v51 = vld [vmem:[%s26457_s4 + $0x168] sm:$0xff] }
 0xaae   : > { %21440 = vmatpush3.bf16.msra.mxu1 %v22797_v59  ;;  %v18859_v59 = vcombine.low %v16552_v23, %v16556_v31  ;;  %v16546_v23 = vld [vmem:[%s26457_s4 + $0x18] sm:$0xff] }
 0xaaf   : > { %21441 = vmatprep.subr.bf16.mxu1 %v22798_v13  ;;  %v16550_v31 = vld [vmem:[%s26457_s4 + $0x38] sm:$0xff] }
 0xab2   : > { %21442 = vmatpush3.bf16.msra.mxu1 %v22798_v13  ;;  %v18868_v13 = vcombine.high %v16560_v32, %v16564_v55  ;;  %v16558_v32 = vld [vmem:[%s26457_s4 + $0x78] sm:$0xff]  ;;  %v18855_v55 = vcombine.low %v16546_v23, %v16550_v31 }
 0xab3   : > { %21443 = vmatprep.subr.bf16.mxu1 %v22799_v30 }
 0xab6   : > { %21444 = vmatpush3.bf16.msra.mxu1 %v22799_v30  ;;  %v16568_v30 = vld [vmem:[%s26457_s4 + $0xc8] sm:$0xff] }
 0xab7   : > { %16969 = vmatprep.subr.bf16.mxu1 %v18850_v29  ;;  %v18876_v29 = vcombine.high %v16568_v30, %v16572_v1 }
 0xab9   : > { %21446 = vmatmul.mubr.msk.bf16.vlgmr.msra.gmra.mrb[208].mxu1 %vm15099_vm2, %v26035_v27  ;;  %v18905_v27 = vcombine.low %v16599_v40, %v16603_v46  ;;  %v16565_v40 = vld [vmem:[%s26457_s4 + $0xb0] sm:$0xff] }
 0xaba   : > { %16970 = vmatpush1.bf16.msra.mxu1 %v18849_v61  ;;  %17001 = vmatprep.mubr.bf16.mxu1 %v22841_v33  ;;  %v18875_v61 = vcombine.low %v16568_v30, %v16572_v1  ;;  %v16566_v30 = vld [vmem:[%s26457_s4 + $0xb8] sm:$0xff] }
 0xabb   : > { %16971 = vmatprep.subr.bf16.mxu1 %v18858_v58  ;;  %v18884_v58 = vcombine.high %v16576_v19, %v16580_v3 }
 0xabe   : > { %16972 = vmatpush1.bf16.msra.mxu1 %v18857_v7  ;;  %v18883_v7 = vcombine.low %v16576_v19, %v16580_v3  ;;  %v16574_v19 = vld [vmem:[%s26457_s4 + $0xf8] sm:$0xff] }
 0xabf   : > { %16973 = vmatprep.subr.bf16.mxu1 %v18866_v10  ;;  %v18892_v10 = vcombine.high %v16584_v28, %v16588_v51 }
 0xac2   : > { %16974 = vmatpush1.bf16.msra.mxu1 %v18865_v49  ;;  %v18891_v49 = vcombine.low %v16584_v28, %v16588_v51  ;;  %v16582_v28 = vld [vmem:[%s26457_s4 + $0x138] sm:$0xff] }
 0xac3   : > { %16975 = vmatprep.subr.bf16.mxu1 %v18874_v34  ;;  %v18900_v34 = vcombine.high %v16592_v60, %v16596_v41 }
 0xac6   : > { %16976 = vmatpush1.bf16.msra.mxu1 %v18873_v22  ;;  %v18899_v22 = vcombine.low %v16592_v60, %v16596_v41  ;;  %v16590_v60 = vld [vmem:[%s26457_s4 + $0x178] sm:$0xff] }
 0xac7   : > { %16977 = vmatprep.subr.bf16.mxu1 %v18882_v52  ;;  %v18908_v52 = vcombine.high %v16600_v37, %v16604_v9 }
 0xaca   : > { %16978 = vmatpush1.bf16.msra.mxu1 %v18881_v42  ;;  %v18907_v42 = vcombine.low %v16600_v37, %v16604_v9  ;;  %v16598_v37 = vld [vmem:[%s26457_s4 + $0x1b8] sm:$0xff] }
 0xacb   : > { %16979 = vmatprep.subr.bf16.mxu1 %v18890_v38  ;;  %v18854_v38 = vcombine.high %v16545_v39, %v16549_v14  ;;  %v16606_v39 = vld [vmem:[%s26457_s4 + $0x1f8] sm:$0xff] }
 0xace   : > { %16980 = vmatpush1.bf16.msra.mxu1 %v18889_v50  ;;  %v16553_v50 = vld [vmem:[%s26457_s4 + $0x50] sm:$0xff] }
 0xacf   : > { %16981 = vmatprep.subr.bf16.mxu1 %v18898_v12  ;;  %v18862_v12 = vcombine.high %v16553_v50, %v16557_v43  ;;  %v18861_v46 = vcombine.low %v16553_v50, %v16557_v43  ;;  %v16609_v50 = vlaneseq }
 0xad1   : > { %v26383_v43 = vshrl.u32 %v16609_v50, 7 }
 0xad2   : > { %16982 = vmatpush1.bf16.msra.mxu1 %v18897_v15  ;;  %v16561_v15 = vld [vmem:[%s26457_s4 + $0x90] sm:$0xff] }
 0xad3   : > { %16983 = vmatprep.subr.bf16.mxu1 %v18906_v48  ;;  %v18870_v48 = vcombine.high %v16561_v15, %v16565_v40  ;;  %v18869_v18 = vcombine.low %v16561_v15, %v16565_v40  ;;  %v16615_v15 = vsub.s32 1, %v26383_v43 }
 0xad6   : > { %16984 = vmatpush1.bf16.msra.mxu1 %v18905_v27  ;;  %v16569_v27 = vld [vmem:[%s26457_s4 + $0xd0] sm:$0xff] }
 0xad7   : > { %17022 = vmatprep.subr.bf16.mxu1 %v18852_v16  ;;  %v16577_v16 = vld [vmem:[%s26457_s4 + $0x110] sm:$0xff] }
 0xb8c   : > { %v21447_v63 = vpop.f32.mrb[208].mxu1 }
 0xb8d   : > { %v16531_v8 = vadd.f32 %v21447_v63, %v18848_v24  ;;  %v16503_v56 = vpop.f32.mrb[209].mxu1  ;;  %v18877_v63 = vcombine.low %v16569_v27, %v16573_v54 }
 0xb8e   : > { %v16529_v44 = vadd.f32 %v18848_v24, %v16503_v56  ;;  %v21448_v47 = vpop.f32.mrb[210].mxu1  ;;  %v16585_v56 = vld [vmem:[%s26457_s4 + $0x150] sm:$0xff] }
 0xb8f   : > { %v16535_v25 = vmul.f32 0.1, %v16531_v8  ;;  %v16532_v21 = vadd.f32 %v21448_v47, %v18848_v24  ;;  %v16506_v62 = vpop.f32.mrb[211].mxu1 }
 0xb90   : > { %v16533_v17 = vmul.f32 0.1, %v16529_v44  ;;  %v16530_v35 = vadd.f32 %v18848_v24, %v16506_v62  ;;  %v16581_v24 = vld [vmem:[%s26457_s4 + $0x130] sm:$0xff] }
 0xb91   : > { %v16536_v20 = vmul.f32 0.1, %v16532_v21  ;;  %v16539_v45 = vmax.f32 %v16531_v8, %v16535_v25  ;;  %v18886_v8 = vcombine.high %v16577_v16, %v16581_v24  ;;  %v18885_v47 = vcombine.low %v16577_v16, %v16581_v24  ;;  %v16597_v62 = vld [vmem:[%s26457_s4 + $0x1b0] sm:$0xff] }
 0xb92   : > { %v16534_v2 = vmul.f32 0.1, %v16530_v35  ;;  %v16537_v26 = vmax.f32 %v16529_v44, %v16533_v17  ;;  %v16589_v44 = vld [vmem:[%s26457_s4 + $0x170] sm:$0xff] }
 0xb93   : > { %v16540_v0 = vmax.f32 %v16532_v21, %v16536_v20  ;;  %v18894_v25 = vcombine.high %v16585_v56, %v16589_v44  ;;  %v16593_v21 = vld [vmem:[%s26457_s4 + $0x190] sm:$0xff]  ;;  %v18893_v17 = vcombine.low %v16585_v56, %v16589_v44 }
 0xb94   : > { %v16538_v36 = vmax.f32 %v16530_v35, %v16534_v2  ;;  %v18902_v35 = vcombine.high %v16593_v21, %v16597_v62  ;;  %v16601_v20 = vld [vmem:[%s26457_s4 + $0x1d0] sm:$0xff] }
 0xb95   : > { %v26230_v11 = vpack.c.bf16 %v16540_v0, %v16539_v45  ;;  %v16605_v2 = vld [vmem:[%s26457_s4 + $0x1f0] sm:$0xff]  ;;  %v18901_v45 = vcombine.low %v16593_v21, %v16597_v62 }
 0xb96   : > { %v26232_v53 = vpack.c.bf16 %v16538_v36, %v16537_v26  ;;  %v18910_v0 = vcombine.high %v16601_v20, %v16605_v2  ;;  %v18909_v26 = vcombine.low %v16601_v20, %v16605_v2  ;;  %v18856_v36 = vcombine.high %v16546_v23, %v16550_v31 }
 0xb97   : > { %v16619_v23 = vsub.s32 2, %v26383_v43  ;;  %v16623_v31 = vsub.s32 3, %v26383_v43 }
 0xb98   : > { %17002 = vmatmul.mubr.bf16.vlgmr.msra.gmra.mrb[212].mxu1 %v26232_v53 }
 0xb99   : > { %17023 = vmatpush1.bf16.msra.mxu1 %v18851_v5  ;;  %17011 = vmatprep.mubr.bf16.mxu1 %v22841_v33  ;;  %v18878_v5 = vcombine.high %v16569_v27, %v16573_v54 }
 0xb9a   : > { %17024 = vmatprep.subr.bf16.mxu1 %v18860_v57  ;;  %v16554_v57 = vld [vmem:[%s26457_s4 + $0x58] sm:$0xff] }
 0xb9b   : > { %v18863_v1 = vcombine.low %v16554_v57, %v16558_v32 }
 0xb9d   : > { %17025 = vmatpush1.bf16.msra.mxu1 %v18859_v59  ;;  %v18864_v59 = vcombine.high %v16554_v57, %v16558_v32 }
 0xb9e   : > { %17026 = vmatprep.subr.bf16.mxu1 %v18868_v13  ;;  %v16562_v13 = vld [vmem:[%s26457_s4 + $0x98] sm:$0xff] }
 0xb9f   : > { %v18871_v3 = vcombine.low %v16562_v13, %v16566_v30 }
 0xba0   : > { %17012 = vmatmul.mubr.bf16.gmra.mrb[216].mxu1 %v26230_v11 }
 0xba1   : > { %17027 = vmatpush1.bf16.msra.mxu1 %v18867_v6  ;;  %17054 = vmatprep.mubr.bf16.mxu1 %v22841_v33  ;;  %v18872_v6 = vcombine.high %v16562_v13, %v16566_v30 }
 0xba2   : > { %17028 = vmatprep.subr.bf16.mxu1 %v18876_v29  ;;  %v16570_v29 = vld [vmem:[%s26457_s4 + $0xd8] sm:$0xff] }
 0xba3   : > { %v18879_v51 = vcombine.low %v16570_v29, %v16574_v19 }
 0xba5   : > { %17029 = vmatpush1.bf16.msra.mxu1 %v18875_v61  ;;  %v18880_v61 = vcombine.high %v16570_v29, %v16574_v19 }
 0xba6   : > { %17030 = vmatprep.subr.bf16.mxu1 %v18884_v58  ;;  %v16578_v58 = vld [vmem:[%s26457_s4 + $0x118] sm:$0xff] }
 0xba7   : > { %v18887_v41 = vcombine.low %v16578_v58, %v16582_v28 }
 0xba9   : > { %17031 = vmatpush1.bf16.msra.mxu1 %v18883_v7  ;;  %v18888_v7 = vcombine.high %v16578_v58, %v16582_v28 }
 0xbaa   : > { %17032 = vmatprep.subr.bf16.mxu1 %v18892_v10  ;;  %v16586_v10 = vld [vmem:[%s26457_s4 + $0x158] sm:$0xff] }
 0xbab   : > { %v18895_v9 = vcombine.low %v16586_v10, %v16590_v60 }
 0xbad   : > { %17033 = vmatpush1.bf16.msra.mxu1 %v18891_v49  ;;  %v18896_v49 = vcombine.high %v16586_v10, %v16590_v60 }
 0xbae   : > { %17034 = vmatprep.subr.bf16.mxu1 %v18900_v34  ;;  %v16594_v34 = vld [vmem:[%s26457_s4 + $0x198] sm:$0xff] }
 0xbaf   : > { %v18903_v14 = vcombine.low %v16594_v34, %v16598_v37 }
 0xbb1   : > { %17035 = vmatpush1.bf16.msra.mxu1 %v18899_v22  ;;  %v18904_v22 = vcombine.high %v16594_v34, %v16598_v37 }
 0xbb2   : > { %17036 = vmatprep.subr.bf16.mxu1 %v18908_v52  ;;  %v16602_v52 = vld [vmem:[%s26457_s4 + $0x1d8] sm:$0xff] }
 0xbb5   : > { %17037 = vmatpush1.bf16.msra.mxu1 %v18907_v42  ;;  %v18912_v42 = vcombine.high %v16602_v52, %v16606_v39 }
 0xbb6   : > { %17075 = vmatprep.subr.bf16.mxu1 %v18854_v38  ;;  %v18911_v38 = vcombine.low %v16602_v52, %v16606_v39  ;;  %v16627_v52 = vsub.s32 4, %v26383_v43  ;;  %v16631_v39 = vsub.s32 5, %v26383_v43 }
 0xbb8   : > { %17055 = vmatmul.mubr.bf16.vlgmr.msra.gmra.mrb[220].mxu1 %v26232_v53 }
 0xbb9   : > { %17076 = vmatpush1.bf16.msra.mxu1 %v18853_v4  ;;  %17064 = vmatprep.mubr.bf16.mxu1 %v22841_v33  ;;  %v16611_v4 = vsub.s32 0, %v26383_v43 }
 0xbba   : > { %17077 = vmatprep.subr.bf16.mxu1 %v18862_v12  ;;  %v26389_v12 = vld [vmem:[%s26461_s8] sm:$0xff] }
 0xbbd   : > { %17078 = vmatpush1.bf16.msra.mxu1 %v18861_v46 }
 0xbbe   : > { %17079 = vmatprep.subr.bf16.mxu1 %v18870_v48 }
 0xbc0   : > { %17065 = vmatmul.mubr.bf16.gmra.mrb[224].mxu1 %v26230_v11 }
 0xbc1   : > { %17080 = vmatpush1.bf16.msra.mxu1 %v18869_v18  ;;  %17107 = vmatprep.mubr.bf16.mxu1 %v22841_v33 }
 0xbc2   : > { %17081 = vmatprep.subr.bf16.mxu1 %v18878_v5 }
 0xbc5   : > { %17082 = vmatpush1.bf16.msra.mxu1 %v18877_v63 }
 0xbc6   : > { %17083 = vmatprep.subr.bf16.mxu1 %v18886_v8 }
 0xbc9   : > { %17084 = vmatpush1.bf16.msra.mxu1 %v18885_v47 }
 0xbca   : > { %17085 = vmatprep.subr.bf16.mxu1 %v18894_v25 }
 0xbcd   : > { %17086 = vmatpush1.bf16.msra.mxu1 %v18893_v17 }
 0xbce   : > { %17087 = vmatprep.subr.bf16.mxu1 %v18902_v35 }
 0xbd1   : > { %17088 = vmatpush1.bf16.msra.mxu1 %v18901_v45 }
 0xbd2   : > { %17089 = vmatprep.subr.bf16.mxu1 %v18910_v0 }
 0xbd5   : > { %17090 = vmatpush1.bf16.msra.mxu1 %v18909_v26  ;;  %v16620_v26 = vrot.slane %v26389_v12, %v16619_v23 }
 0xbd6   : > { %17128 = vmatprep.subr.bf16.mxu1 %v18856_v36  ;;  %v16624_v36 = vrot.slane %v26389_v12, %v16623_v31 }
 0xbd8   : > { %17108 = vmatmul.mubr.bf16.vlgmr.msra.gmra.mrb[228].mxu1 %v26232_v53 }
 0xbd9   : > { %17129 = vmatpush1.bf16.msra.mxu1 %v18855_v55  ;;  %17117 = vmatprep.mubr.bf16.mxu1 %v22841_v33 }
 0xbda   : > { %17130 = vmatprep.subr.bf16.mxu1 %v18864_v59 }
 0xbdd   : > { %17131 = vmatpush1.bf16.msra.mxu1 %v18863_v1 }
 0xbde   : > { %17132 = vmatprep.subr.bf16.mxu1 %v18872_v6 }
 0xbe0   : > { %17118 = vmatmul.mubr.bf16.gmra.mrb[232].mxu1 %v26230_v11 }
 0xbe1   : > { %17133 = vmatpush1.bf16.msra.mxu1 %v18871_v3  ;;  %17160 = vmatprep.mubr.bf16.mxu1 %v22841_v33 }
 0xbe2   : > { %17134 = vmatprep.subr.bf16.mxu1 %v18880_v61 }
 0xbe5   : > { %17135 = vmatpush1.bf16.msra.mxu1 %v18879_v51 }
 0xbe6   : > { %17136 = vmatprep.subr.bf16.mxu1 %v18888_v7 }
 0xbe9   : > { %17137 = vmatpush1.bf16.msra.mxu1 %v18887_v41 }
 0xbea   : > { %17138 = vmatprep.subr.bf16.mxu1 %v18896_v49 }
 0xbed   : > { %17139 = vmatpush1.bf16.msra.mxu1 %v18895_v9 }
 0xbee   : > { %17140 = vmatprep.subr.bf16.mxu1 %v18904_v22 }
 0xbf1   : > { %17141 = vmatpush1.bf16.msra.mxu1 %v18903_v14  ;;  %v16628_v14 = vrot.slane %v26389_v12, %v16627_v52 }
 0xbf2   : > { %17142 = vmatprep.subr.bf16.mxu1 %v18912_v42  ;;  %v16632_v42 = vrot.slane %v26389_v12, %v16631_v39 }
 0xbf5   : > { %17143 = vmatpush1.bf16.msra.mxu1 %v18911_v38 }
 0xbf8   : > { %17161 = vmatmul.mubr.bf16.vlgmr.msra.gmra.mrb[236].mxu1 %v26232_v53 }
 0xbf9   : > { %17170 = vmatprep.mubr.bf16.mxu1 %v22841_v33  ;;  %v16612_v33 = vrot.slane %v26389_v12, %v16611_v4 }
 0xc00   : > { %17171 = vmatmul.mubr.bf16.gmra.mrb[240].mxu1 %v26230_v11  ;;  %v16616_v11 = vrot.slane %v26389_v12, %v16615_v15 }
 0xc6b   : > { %v17003_v53 = vpop.f32.mrb[212].mxu1 }
 0xc6c   : > { %v17004_v40 = vadd.f32 %v17003_v53, %v16612_v33  ;;  %v17005_v46 = vpop.f32.mrb[213].mxu1 }
 0xc6d   : > { %v17006_v48 = vadd.f32 %v17005_v46, %v16616_v11  ;;  %v17007_v27 = vpop.f32.mrb[214].mxu1 }
 0xc6e   : > { %v17181_v54 = vmax.f32 %v17004_v40, 0.0  ;;  %v17008_v18 = vadd.f32 %v17007_v27, %v16612_v33  ;;  %v17009_v5 = vpop.f32.mrb[215].mxu1 }
 0xc6f   : > { %v17182_v16 = vmax.f32 %v17006_v48, 0.0  ;;  %v17010_v24 = vadd.f32 %v17009_v5, %v16616_v11 }
 0xc70   : > { %17213 = vst [vmem:[%s26397_s17] sm:$0xff] %v17181_v54  ;;  %v17189_v63 = vmax.f32 %v17008_v18, 0.0 }
 0xc71   : > { %17214 = vst [vmem:[%s26397_s17 + $0x8] sm:$0xff] %v17182_v16  ;;  %v17190_v8 = vmax.f32 %v17010_v24, 0.0 }
 0xc72   : > { %17221 = vst [vmem:[%s26397_s17 + $0x40] sm:$0xff] %v17189_v63 }
 0xc73   : > { %17222 = vst [vmem:[%s26397_s17 + $0x48] sm:$0xff] %v17190_v8  ;;  %v17013_v56 = vpop.f32.mrb[216].mxu1 }
 0xc74   : > { %v17014_v44 = vadd.f32 %v17013_v56, %v16612_v33  ;;  %v17015_v47 = vpop.f32.mrb[217].mxu1 }
 0xc75   : > { %v17016_v25 = vadd.f32 %v17015_v47, %v16616_v11  ;;  %v17017_v21 = vpop.f32.mrb[218].mxu1 }
 0xc76   : > { %v17197_v62 = vmax.f32 %v17014_v44, 0.0  ;;  %v17018_v17 = vadd.f32 %v17017_v21, %v16612_v33  ;;  %v17019_v35 = vpop.f32.mrb[219].mxu1 }
 0xc77   : > { %v17198_v20 = vmax.f32 %v17016_v25, 0.0  ;;  %v17020_v2 = vadd.f32 %v17019_v35, %v16616_v11  ;;  %v16639_v35 = vsub.s32 7, %v26383_v43 }
 0xc78   : > { %17229 = vst [vmem:[%s26397_s17 + $0x80] sm:$0xff] %v17197_v62  ;;  %v17205_v45 = vmax.f32 %v17018_v17, 0.0  ;;  %v16635_v17 = vsub.s32 6, %v26383_v43 }
 0xc79   : > { %17230 = vst [vmem:[%s26397_s17 + $0x88] sm:$0xff] %v17198_v20  ;;  %v17206_v0 = vmax.f32 %v17020_v2, 0.0  ;;  %v16640_v2 = vrot.slane %v26389_v12, %v16639_v35 }
 0xc7a   : > { %17237 = vst [vmem:[%s26397_s17 + $0xc0] sm:$0xff] %v17205_v45  ;;  %v16636_v20 = vrot.slane %v26389_v12, %v16635_v17 }
 0xc7b   : > { %17238 = vst [vmem:[%s26397_s17 + $0xc8] sm:$0xff] %v17206_v0 }
 0xc8b   : > { %v17056_v57 = vpop.f32.mrb[220].mxu1 }
 0xc8c   : > { %v17057_v32 = vadd.f32 %v17056_v57, %v16620_v26  ;;  %v17058_v55 = vpop.f32.mrb[221].mxu1 }
 0xc8d   : > { %v17059_v59 = vadd.f32 %v17058_v55, %v16624_v36  ;;  %v17060_v13 = vpop.f32.mrb[222].mxu1 }
 0xc8e   : > { %v17183_v30 = vmax.f32 %v17057_v32, 0.0  ;;  %v17061_v1 = vadd.f32 %v17060_v13, %v16620_v26  ;;  %v17062_v6 = vpop.f32.mrb[223].mxu1 }
 0xc8f   : > { %v17184_v29 = vmax.f32 %v17059_v59, 0.0  ;;  %v17063_v19 = vadd.f32 %v17062_v6, %v16624_v36 }
 0xc90   : > { %17215 = vst [vmem:[%s26397_s17 + $0x10] sm:$0xff] %v17183_v30  ;;  %v17191_v3 = vmax.f32 %v17061_v1, 0.0 }
 0xc91   : > { %17216 = vst [vmem:[%s26397_s17 + $0x18] sm:$0xff] %v17184_v29  ;;  %v17192_v61 = vmax.f32 %v17063_v19, 0.0 }
 0xc92   : > { %17223 = vst [vmem:[%s26397_s17 + $0x50] sm:$0xff] %v17191_v3 }
 0xc93   : > { %17224 = vst [vmem:[%s26397_s17 + $0x58] sm:$0xff] %v17192_v61  ;;  %v17066_v58 = vpop.f32.mrb[224].mxu1 }
 0xc94   : > { %v17067_v28 = vadd.f32 %v17066_v58, %v16620_v26  ;;  %v17068_v51 = vpop.f32.mrb[225].mxu1 }
 0xc95   : > { %v17069_v7 = vadd.f32 %v17068_v51, %v16624_v36  ;;  %v17070_v10 = vpop.f32.mrb[226].mxu1 }
 0xc96   : > { %v17199_v60 = vmax.f32 %v17067_v28, 0.0  ;;  %v17071_v41 = vadd.f32 %v17070_v10, %v16620_v26  ;;  %v17072_v49 = vpop.f32.mrb[227].mxu1 }
 0xc97   : > { %v17200_v34 = vmax.f32 %v17069_v7, 0.0  ;;  %v17073_v37 = vadd.f32 %v17072_v49, %v16624_v36 }
 0xc98   : > { %17231 = vst [vmem:[%s26397_s17 + $0x90] sm:$0xff] %v17199_v60  ;;  %v17207_v9 = vmax.f32 %v17071_v41, 0.0 }
 0xc99   : > { %17232 = vst [vmem:[%s26397_s17 + $0x98] sm:$0xff] %v17200_v34  ;;  %v17208_v22 = vmax.f32 %v17073_v37, 0.0 }
 0xc9a   : > { %17239 = vst [vmem:[%s26397_s17 + $0xd0] sm:$0xff] %v17207_v9 }
 0xc9b   : > { %17240 = vst [vmem:[%s26397_s17 + $0xd8] sm:$0xff] %v17208_v22 }
 0xcab   : > { %v17109_v38 = vpop.f32.mrb[228].mxu1 }
 0xcac   : > { %v17110_v50 = vadd.f32 %v17109_v38, %v16628_v14  ;;  %v17111_v4 = vpop.f32.mrb[229].mxu1 }
 0xcad   : > { %v17112_v15 = vadd.f32 %v17111_v4, %v16632_v42  ;;  %v17113_v33 = vpop.f32.mrb[230].mxu1 }
 0xcae   : > { %v17185_v11 = vmax.f32 %v17110_v50, 0.0  ;;  %v17114_v53 = vadd.f32 %v17113_v33, %v16628_v14  ;;  %v17115_v40 = vpop.f32.mrb[231].mxu1 }
 0xcaf   : > { %v17186_v46 = vmax.f32 %v17112_v15, 0.0  ;;  %v17116_v48 = vadd.f32 %v17115_v40, %v16632_v42 }
 0xcb0   : > { %17217 = vst [vmem:[%s26397_s17 + $0x20] sm:$0xff] %v17185_v11  ;;  %v17193_v27 = vmax.f32 %v17114_v53, 0.0 }
 0xcb1   : > { %17218 = vst [vmem:[%s26397_s17 + $0x28] sm:$0xff] %v17186_v46  ;;  %v17194_v54 = vmax.f32 %v17116_v48, 0.0 }
 0xcb2   : > { %17225 = vst [vmem:[%s26397_s17 + $0x60] sm:$0xff] %v17193_v27 }
 0xcb3   : > { %17226 = vst [vmem:[%s26397_s17 + $0x68] sm:$0xff] %v17194_v54  ;;  %v17119_v18 = vpop.f32.mrb[232].mxu1 }
 0xcb4   : > { %v17120_v5 = vadd.f32 %v17119_v18, %v16628_v14  ;;  %v17121_v16 = vpop.f32.mrb[233].mxu1 }
 0xcb5   : > { %v17122_v24 = vadd.f32 %v17121_v16, %v16632_v42  ;;  %v17123_v63 = vpop.f32.mrb[234].mxu1 }
 0xcb6   : > { %v17201_v8 = vmax.f32 %v17120_v5, 0.0  ;;  %v17124_v56 = vadd.f32 %v17123_v63, %v16628_v14  ;;  %v17125_v44 = vpop.f32.mrb[235].mxu1 }
 0xcb7   : > { %v17202_v47 = vmax.f32 %v17122_v24, 0.0  ;;  %v17126_v25 = vadd.f32 %v17125_v44, %v16632_v42 }
 0xcb8   : > { %17233 = vst [vmem:[%s26397_s17 + $0xa0] sm:$0xff] %v17201_v8  ;;  %v17209_v21 = vmax.f32 %v17124_v56, 0.0 }
 0xcb9   : > { %17234 = vst [vmem:[%s26397_s17 + $0xa8] sm:$0xff] %v17202_v47  ;;  %v17210_v62 = vmax.f32 %v17126_v25, 0.0 }
 0xcba   : > { %17241 = vst [vmem:[%s26397_s17 + $0xe0] sm:$0xff] %v17209_v21 }
 0xcbb   : > { %17242 = vst [vmem:[%s26397_s17 + $0xe8] sm:$0xff] %v17210_v62 }
 0xccb   : > { %v17162_v45 = vpop.f32.mrb[236].mxu1 }
 0xccc   : > { %v17163_v0 = vadd.f32 %v17162_v45, %v16636_v20  ;;  %v17164_v23 = vpop.f32.mrb[237].mxu1 }
 0xccd   : > { %v17165_v31 = vadd.f32 %v17164_v23, %v16640_v2  ;;  %v17166_v26 = vpop.f32.mrb[238].mxu1 }
 0xcce   : > { %v17187_v36 = vmax.f32 %v17163_v0, 0.0  ;;  %v17167_v57 = vadd.f32 %v17166_v26, %v16636_v20  ;;  %v17168_v32 = vpop.f32.mrb[239].mxu1 }
 0xccf   : > { %v17188_v55 = vmax.f32 %v17165_v31, 0.0  ;;  %v17169_v59 = vadd.f32 %v17168_v32, %v16640_v2 }
 0xcd0   : > { %17219 = vst [vmem:[%s26397_s17 + $0x30] sm:$0xff] %v17187_v36  ;;  %v17195_v13 = vmax.f32 %v17167_v57, 0.0 }
 0xcd1   : > { %17220 = vst [vmem:[%s26397_s17 + $0x38] sm:$0xff] %v17188_v55  ;;  %v17196_v43 = vmax.f32 %v17169_v59, 0.0 }
 0xcd2   : > { %17227 = vst [vmem:[%s26397_s17 + $0x70] sm:$0xff] %v17195_v13 }
 0xcd3   : > { %17228 = vst [vmem:[%s26397_s17 + $0x78] sm:$0xff] %v17196_v43  ;;  %v17172_v12 = vpop.f32.mrb[240].mxu1 }
 0xcd4   : > { %v17173_v30 = vadd.f32 %v17172_v12, %v16636_v20  ;;  %v17174_v1 = vpop.f32.mrb[241].mxu1 }
 0xcd5   : > { %v17175_v6 = vadd.f32 %v17174_v1, %v16640_v2  ;;  %v17176_v29 = vpop.f32.mrb[242].mxu1 }
 0xcd6   : > { %v17203_v19 = vmax.f32 %v17173_v30, 0.0  ;;  %v17177_v3 = vadd.f32 %v17176_v29, %v16636_v20  ;;  %v17178_v61 = vpop.f32.mrb[243].mxu1 }
 0xcd7   : > { %v17204_v58 = vmax.f32 %v17175_v6, 0.0  ;;  %v17179_v28 = vadd.f32 %v17178_v61, %v16640_v2 }
 0xcd8   : > { %17235 = vst [vmem:[%s26397_s17 + $0xb0] sm:$0xff] %v17203_v19  ;;  %v17211_v51 = vmax.f32 %v17177_v3, 0.0 }
 0xcd9   : > { %17236 = vst [vmem:[%s26397_s17 + $0xb8] sm:$0xff] %v17204_v58  ;;  %v17212_v7 = vmax.f32 %v17179_v28, 0.0 }
 0xcda   : > { %17243 = vst [vmem:[%s26397_s17 + $0xf0] sm:$0xff] %v17211_v51 }
 0xcdb   : > { %17244 = vst [vmem:[%s26397_s17 + $0xf8] sm:$0xff] %v17212_v7 }
 0xcdc PF: > { %p16_p9 = scmp.ge.s32.totalorder %s22909_s13, 4   ;;  %s26572_s30 = smov %s22835_s10 }
 0xcdd   : > { %s26573_s10 = smov %s22918_s16  ;;  %s26574_s11 = smov %s22909_s13 }
 0xcde   :  { %18 = sbr.rel (!%p16_p9) target bundleno = 2 (0x2), region = 180 }

</bundles_post_ra>
